<compile_context>
chip_gen: v6e
topology: v6e:2x2x1
jax: 0.10.0
libtpu: 0.0.40
codegen_flags: <defaults>
</compile_context>

<pallas_src>
import math

import numpy as np
import jax
import jax.numpy as jnp
from jax.experimental import pallas as pl
from jax.experimental.pallas import tpu as pltpu


# dtype fed to the MXU / used for activation scratch (accumulation is f32).
_MXU_DTYPE = jnp.bfloat16

ENC_CHANNELS = [(1, 16), (16, 32), (32, 64), (64, 128), (128, 256)]
DEC_CHANNELS = [(256, 128), (128, 64), (64, 32), (32, 16), (16, 1)]
# How many independent copies of the fused 2x2 filter sit on the block
# diagonal (= conv positions that share one row of the Morton slab).
ENC_COPIES = [64, 16, 4, 1, 1]
DEC_COPIES = [1, 1, 4, 16, 64]


def _relu(v):
    return jnp.maximum(v, 0.0)


# ---------------------------------------------------------------------------
# The single fused Pallas kernel (one grid step = `blk` 32x32 macro-blocks)
# ---------------------------------------------------------------------------
def _autoencoder_kernel(x_ref,
                        w1, b1, w2, b2, w3, b3, w4, b4, w5, b5,
                        w6, b6, w7, b7, w8, b8, w9, b9, w10, b10,
                        o_ref,
                        a1, a2, a3, x5, d1, y7, y8, y9):
    f32 = jnp.float32
    act = a1.dtype
    blk = x5.shape[0]                      # macro-blocks handled per grid step

    def mm(lhs, w_ref):
        return jnp.dot(lhs, w_ref[...], preferred_element_type=f32)

    # ---- encoder layers 1..3 (rows = level-4 cells, block-diagonal weights) -
    a1[...] = _relu(mm(x_ref[...], w1) + b1[...]).astype(act)   # Conv 1 -> 16
    a2[...] = _relu(mm(a1[...], w2) + b2[...]).astype(act)      # Conv 16 -> 32
    a3[...] = _relu(mm(a2[...], w3) + b3[...]).astype(act)      # Conv 32 -> 64

    # ---- encoder layer 4 + regroup level-4 rows -> level-5 lanes (128-aligned)
    for j in range(4):                                          # Conv 64 -> 128
        x5[:, pl.ds(128 * j, 128)] = _relu(
            mm(a3[pl.ds(blk * j, blk), :], w4) + b4[...]).astype(act)

    # ---- bottleneck: encoder layer 5 then decoder layer 1 (N-fused) ---------
    z5 = _relu(mm(x5[...], w5) + b5[...])                # Conv 128 -> 256
    y6 = _relu(mm(z5.astype(act), w6) + b6[...])         # ConvT 256 -> 128
    for j in range(4):                                   # level-5 lanes -> level-4 rows
        d1[pl.ds(blk * j, blk), :] = y6[:, 128 * j:128 * (j + 1)].astype(act)

    # ---- decoder layers 2..4 (rows = level-4 cells, N-fused / block-diag) ---
    y7[...] = _relu(mm(d1[...], w7) + b7[...]).astype(act)      # ConvT 128 -> 64
    y8[...] = _relu(mm(y7[...], w8) + b8[...]).astype(act)      # ConvT 64 -> 32
    y9[...] = _relu(mm(y8[...], w9) + b9[...]).astype(act)      # ConvT 32 -> 16

    # ---- decoder layer 5 + stable sigmoid (EUP tanh), 256-lane-dense store --
    logits = mm(y9[...], w10) + b10[...]                 # ConvT 16 -> 1
    o_ref[...] = 0.5 * jnp.tanh(0.5 * logits) + 0.5


def _fused_forward(x_packed, prepared, blk):
    rows = x_packed.shape[0]
    row_blk = 4 * blk
    nblk = rows // row_blk
    act = _MXU_DTYPE
    f32 = jnp.float32

    def const_spec(shape):
        return pl.BlockSpec(shape, lambda i: (0,) * len(shape))

    in_specs = [pl.BlockSpec((row_blk, 256), lambda i: (i, 0))]
    in_specs += [const_spec(p.shape) for p in prepared]

    grid_spec = pltpu.PrefetchScalarGridSpec(
        num_scalar_prefetch=0,
        grid=(nblk,),
        in_specs=in_specs,
        out_specs=pl.BlockSpec((row_blk, 256), lambda i: (i, 0)),
        scratch_shapes=[
            pltpu.VMEM((row_blk, 1024), act),   # a1: enc1 out (64 pos x 16 ch)
            pltpu.VMEM((row_blk, 512), act),    # a2: enc2 out (16 pos x 32 ch)
            pltpu.VMEM((row_blk, 256), act),    # a3: enc3 out (4 pos x 64 ch)
            pltpu.VMEM((blk, 512), act),        # x5: enc5 input (level-5 rows)
            pltpu.VMEM((row_blk, 128), act),    # d1: dec1 out (level-4 rows)
            pltpu.VMEM((row_blk, 256), act),    # y7: dec2 out
            pltpu.VMEM((row_blk, 512), act),    # y8: dec3 out
            pltpu.VMEM((row_blk, 1024), act),   # y9: dec4 out
        ],
    )
    return pl.pallas_call(
        _autoencoder_kernel,
        out_shape=jax.ShapeDtypeStruct((rows, 256), f32),
        grid_spec=grid_spec,
        compiler_params=pltpu.CompilerParams(
            dimension_semantics=("parallel",),
            vmem_limit_bytes=64 * 1024 * 1024),
    )(x_packed, *prepared)


# ---------------------------------------------------------------------------
# One-time host-side Morton packing (numpy index maps, static per shape)
# ---------------------------------------------------------------------------
def _packing_maps(n, h, w, blk):
    A, B = h // 32, w // 32
    base = n * A * B
    nblk = -(-base // blk)
    rows = nblk * 4 * blk
    nn = np.arange(n).reshape(n, 1, 1)
    yy = np.arange(h).reshape(1, h, 1)
    xx = np.arange(w).reshape(1, 1, w)
    p, q = yy % 32, xx % 32
    m = (nn * A + yy // 32) * B + xx // 32                    # macro-block id
    sig = [((p >> t) & 1) * 2 + ((q >> t) & 1) for t in range(5)]
    row = (m // blk) * (4 * blk) + sig[4] * blk + (m % blk)   # level-4 row
    lane = ((sig[3] * 4 + sig[2]) * 4 + sig[1]) * 4 + sig[0]  # Morton pixel idx
    dest = (row * 256 + lane).reshape(-1)                     # pixel -> slab slot
    src = np.zeros(rows * 256, dtype=np.int32)
    src[dest] = np.arange(n * h * w, dtype=np.int32)
    filled = np.zeros(rows * 256, dtype=bool)
    filled[dest] = True
    return dest.astype(np.int32), src, filled, rows


# ---------------------------------------------------------------------------
# Parameter prep: PyTorch layouts -> fused / block-diagonal kernel layouts
# ---------------------------------------------------------------------------
def _fuse_conv_weight(w):
    # Conv2d weight (cout, cin, 2, 2) -> (4*cin, cout), rows ordered (kh, kw, cin)
    cout, cin = w.shape[0], w.shape[1]
    return jnp.transpose(w, (2, 3, 1, 0)).reshape(4 * cin, cout)


def _fuse_convT_weight(w):
    # ConvTranspose2d weight (cin, cout, 2, 2) -> (cin, 4*cout), cols (kh, kw, cout)
    cin, cout = w.shape[0], w.shape[1]
    return jnp.transpose(w, (0, 2, 3, 1)).reshape(cin, 4 * cout)


def _block_diag(block, copies):
    if copies == 1:
        return block
    return jnp.kron(jnp.eye(copies, dtype=block.dtype), block)


def _prepare_params(params):
    prepared = []
    for (w, b), reps in zip(params["enc"], ENC_COPIES):
        wf = _block_diag(_fuse_conv_weight(w.astype(jnp.float32)), reps)
        prepared += [wf.astype(_MXU_DTYPE),
                     jnp.tile(b.astype(jnp.float32), reps).reshape(1, -1)]
    for (w, b), reps in zip(params["dec"], DEC_COPIES):
        wf = _block_diag(_fuse_convT_weight(w.astype(jnp.float32)), reps)
        prepared += [wf.astype(_MXU_DTYPE),
                     jnp.tile(b.astype(jnp.float32), 4 * reps).reshape(1, -1)]
    return prepared


# ---------------------------------------------------------------------------
# Forward pass
# ---------------------------------------------------------------------------
def conv_autoencoder_forward(params, x):
    n, c, h, w = x.shape
    assert c == 1 and h % 32 == 0 and w % 32 == 0, (n, c, h, w)
    base = n * (h // 32) * (w // 32)
    blk = 32 if base >= 64 else 16            # macro-blocks per grid step
    dest, src, filled, rows = _packing_maps(n, h, w, blk)
    x_flat = x.reshape(-1).astype(jnp.float32)
    packed = jnp.where(jnp.asarray(filled), x_flat[jnp.asarray(src)], 0.0)
    packed = packed.reshape(rows, 256).astype(_MXU_DTYPE)
    out = _fused_forward(packed, _prepare_params(params), blk)
    return out.reshape(-1)[jnp.asarray(dest)].reshape(n, 1, h, w)


def init_params(key):
    params = {"enc": [], "dec": []}
    for cin, cout in ENC_CHANNELS:
        key, k1, k2 = jax.random.split(key, 3)
        bound = 1.0 / math.sqrt(cin * 4)
        w = jax.random.uniform(k1, (cout, cin, 2, 2), jnp.float32, -bound, bound)
        b = jax.random.uniform(k2, (cout,), jnp.float32, -bound, bound)
        params["enc"].append((w, b))
    for cin, cout in DEC_CHANNELS:
        key, k1, k2 = jax.random.split(key, 3)
        bound = 1.0 / math.sqrt(cin * 4)
        w = jax.random.uniform(k1, (cin, cout, 2, 2), jnp.float32, -bound, bound)
        b = jax.random.uniform(k2, (cout,), jnp.float32, -bound, bound)
        params["dec"].append((w, b))
    return params


# Pure-JAX reference of the PyTorch module (for a numerical cross-check).
def _reference_forward(params, x):
    h = x.astype(jnp.float32)
    for w, b in params["enc"]:
        h = jax.lax.conv_general_dilated(
            h, w, window_strides=(2, 2), padding="VALID",
            dimension_numbers=("NCHW", "OIHW", "NCHW"))
        h = jax.nn.relu(h + b[None, :, None, None])
    n_dec = len(params["dec"])
    for idx, (w, b) in enumerate(params["dec"]):
        n, ci, hh, ww = h.shape
        co = w.shape[1]
        y = jnp.einsum("ncij,cdhw->ndihjw", h, w).reshape(n, co, 2 * hh, 2 * ww)
        y = y + b[None, :, None, None]
        h = jax.nn.sigmoid(y) if idx == n_dec - 1 else jax.nn.relu(y)
    return h


if __name__ == "__main__":
    key = jax.random.PRNGKey(0)
    kx, kp = jax.random.split(key)
    params = init_params(kp)

    # Spatial dims must be divisible by 2^5 = 32 (five stride-2 convs).
    x = jax.random.uniform(kx, (5, 1, 64, 64), dtype=jnp.float32)

    y = jax.block_until_ready(jax.jit(conv_autoencoder_forward)(params, x))

    assert y.shape == x.shape, y.shape
    assert y.dtype == jnp.float32
    assert bool(jnp.all(y >= 0.0)) and bool(jnp.all(y <= 1.0))

    # Numerical cross-check against the f32 reference (kernel uses bf16 MXU
    # operands with f32 accumulation, so allow a modest tolerance).
    y_ref = _reference_forward(params, x)
    err = float(jnp.max(jnp.abs(y - y_ref)))
    assert err < 5e-2, f"max abs error vs reference: {err}"

    print("KERNEL_OK")
</pallas_src>

<mosaic_0001>
module attributes {stable_mosaic.version = 11 : i64} {
  func.func @_autoencoder_kernel(%arg0: i32, %arg1: memref<64x256xbf16, #tpu.memory_space<vmem>>, %arg2: memref<256x1024xbf16, #tpu.memory_space<vmem>>, %arg3: memref<1x1024xf32, #tpu.memory_space<vmem>>, %arg4: memref<1024x512xbf16, #tpu.memory_space<vmem>>, %arg5: memref<1x512xf32, #tpu.memory_space<vmem>>, %arg6: memref<512x256xbf16, #tpu.memory_space<vmem>>, %arg7: memref<1x256xf32, #tpu.memory_space<vmem>>, %arg8: memref<256x128xbf16, #tpu.memory_space<vmem>>, %arg9: memref<1x128xf32, #tpu.memory_space<vmem>>, %arg10: memref<512x256xbf16, #tpu.memory_space<vmem>>, %arg11: memref<1x256xf32, #tpu.memory_space<vmem>>, %arg12: memref<256x512xbf16, #tpu.memory_space<vmem>>, %arg13: memref<1x512xf32, #tpu.memory_space<vmem>>, %arg14: memref<128x256xbf16, #tpu.memory_space<vmem>>, %arg15: memref<1x256xf32, #tpu.memory_space<vmem>>, %arg16: memref<256x512xbf16, #tpu.memory_space<vmem>>, %arg17: memref<1x512xf32, #tpu.memory_space<vmem>>, %arg18: memref<512x1024xbf16, #tpu.memory_space<vmem>>, %arg19: memref<1x1024xf32, #tpu.memory_space<vmem>>, %arg20: memref<1024x256xbf16, #tpu.memory_space<vmem>>, %arg21: memref<1x256xf32, #tpu.memory_space<vmem>>, %arg22: memref<64x256xf32, #tpu.memory_space<vmem>>, %arg23: memref<64x1024xbf16, #tpu.memory_space<vmem>>, %arg24: memref<64x512xbf16, #tpu.memory_space<vmem>>, %arg25: memref<64x256xbf16, #tpu.memory_space<vmem>>, %arg26: memref<16x512xbf16, #tpu.memory_space<vmem>>, %arg27: memref<64x128xbf16, #tpu.memory_space<vmem>>, %arg28: memref<64x256xbf16, #tpu.memory_space<vmem>>, %arg29: memref<64x512xbf16, #tpu.memory_space<vmem>>, %arg30: memref<64x1024xbf16, #tpu.memory_space<vmem>>) attributes {dimension_semantics = [#tpu.dimension_semantics<parallel>], iteration_bounds = array<i64: 2>, scalar_prefetch = 0 : i64, scratch_operands = 8 : i64, tpu.core_type = #tpu.core_type<tc>, window_params = [{transform_indices = @transform_0, window_bounds = array<i64: 64, 256>}, {pipeline_mode = #tpu.pipeline_mode<synchronous>, transform_indices = @transform_1, window_bounds = array<i64: 256, 1024>}, {pipeline_mode = #tpu.pipeline_mode<synchronous>, transform_indices = @transform_2, window_bounds = array<i64: 1, 1024>}, {pipeline_mode = #tpu.pipeline_mode<synchronous>, transform_indices = @transform_3, window_bounds = array<i64: 1024, 512>}, {pipeline_mode = #tpu.pipeline_mode<synchronous>, transform_indices = @transform_4, window_bounds = array<i64: 1, 512>}, {pipeline_mode = #tpu.pipeline_mode<synchronous>, transform_indices = @transform_5, window_bounds = array<i64: 512, 256>}, {pipeline_mode = #tpu.pipeline_mode<synchronous>, transform_indices = @transform_6, window_bounds = array<i64: 1, 256>}, {pipeline_mode = #tpu.pipeline_mode<synchronous>, transform_indices = @transform_7, window_bounds = array<i64: 256, 128>}, {pipeline_mode = #tpu.pipeline_mode<synchronous>, transform_indices = @transform_8, window_bounds = array<i64: 1, 128>}, {pipeline_mode = #tpu.pipeline_mode<synchronous>, transform_indices = @transform_9, window_bounds = array<i64: 512, 256>}, {pipeline_mode = #tpu.pipeline_mode<synchronous>, transform_indices = @transform_10, window_bounds = array<i64: 1, 256>}, {pipeline_mode = #tpu.pipeline_mode<synchronous>, transform_indices = @transform_11, window_bounds = array<i64: 256, 512>}, {pipeline_mode = #tpu.pipeline_mode<synchronous>, transform_indices = @transform_12, window_bounds = array<i64: 1, 512>}, {pipeline_mode = #tpu.pipeline_mode<synchronous>, transform_indices = @transform_13, window_bounds = array<i64: 128, 256>}, {pipeline_mode = #tpu.pipeline_mode<synchronous>, transform_indices = @transform_14, window_bounds = array<i64: 1, 256>}, {pipeline_mode = #tpu.pipeline_mode<synchronous>, transform_indices = @transform_15, window_bounds = array<i64: 256, 512>}, {pipeline_mode = #tpu.pipeline_mode<synchronous>, transform_indices = @transform_16, window_bounds = array<i64: 1, 512>}, {pipeline_mode = #tpu.pipeline_mode<synchronous>, transform_indices = @transform_17, window_bounds = array<i64: 512, 1024>}, {pipeline_mode = #tpu.pipeline_mode<synchronous>, transform_indices = @transform_18, window_bounds = array<i64: 1, 1024>}, {pipeline_mode = #tpu.pipeline_mode<synchronous>, transform_indices = @transform_19, window_bounds = array<i64: 1024, 256>}, {pipeline_mode = #tpu.pipeline_mode<synchronous>, transform_indices = @transform_20, window_bounds = array<i64: 1, 256>}, {transform_indices = @transform_21, window_bounds = array<i64: 64, 256>}]} {
    %c0 = arith.constant 0 : index
    %c0_0 = arith.constant 0 : index
    %0 = vector.load %arg1[%c0, %c0_0] : memref<64x256xbf16, #tpu.memory_space<vmem>>, vector<64x256xbf16>
    %c0_1 = arith.constant 0 : index
    %c0_2 = arith.constant 0 : index
    %1 = vector.load %arg2[%c0_1, %c0_2] : memref<256x1024xbf16, #tpu.memory_space<vmem>>, vector<256x1024xbf16>
    %cst = arith.constant dense<0.000000e+00> : vector<64x1024xf32>
    %2 = tpu.matmul %0, %1, %cst {dimension_numbers = #tpu.dot_dimension_numbers<[1], [0], [0], [1], [0, 0, 1, 1], [], []>} : vector<64x256xbf16>, vector<256x1024xbf16>, vector<64x1024xf32> -> vector<64x1024xf32>
    %c0_3 = arith.constant 0 : index
    %c0_4 = arith.constant 0 : index
    %3 = vector.load %arg3[%c0_3, %c0_4] : memref<1x1024xf32, #tpu.memory_space<vmem>>, vector<1x1024xf32>
    %4 = vector.broadcast %3 : vector<1x1024xf32> to vector<64x1024xf32>
    %5 = arith.addf %2, %4 : vector<64x1024xf32>
    %cst_5 = arith.constant 0.000000e+00 : f32
    %6 = vector.broadcast %cst_5 : f32 to vector<64x1024xf32>
    %7 = arith.maximumf %5, %6 : vector<64x1024xf32>
    %8 = arith.truncf %7 : vector<64x1024xf32> to vector<64x1024xbf16>
    %c0_6 = arith.constant 0 : index
    %c0_7 = arith.constant 0 : index
    %9 = vector.load %arg23[%c0_6, %c0_7] : memref<64x1024xbf16, #tpu.memory_space<vmem>>, vector<64x1024xbf16>
    tpu.vector_store %arg23[%c0_6, %c0_7], %8 {strides = array<i32>} : memref<64x1024xbf16, #tpu.memory_space<vmem>>, vector<64x1024xbf16>,
    %c0_8 = arith.constant 0 : index
    %c0_9 = arith.constant 0 : index
    %10 = vector.load %arg23[%c0_8, %c0_9] : memref<64x1024xbf16, #tpu.memory_space<vmem>>, vector<64x1024xbf16>
    %c0_10 = arith.constant 0 : index
    %c0_11 = arith.constant 0 : index
    %11 = vector.load %arg4[%c0_10, %c0_11] : memref<1024x512xbf16, #tpu.memory_space<vmem>>, vector<1024x512xbf16>
    %cst_12 = arith.constant dense<0.000000e+00> : vector<64x512xf32>
    %12 = tpu.matmul %10, %11, %cst_12 {dimension_numbers = #tpu.dot_dimension_numbers<[1], [0], [0], [1], [0, 0, 1, 1], [], []>} : vector<64x1024xbf16>, vector<1024x512xbf16>, vector<64x512xf32> -> vector<64x512xf32>
    %c0_13 = arith.constant 0 : index
    %c0_14 = arith.constant 0 : index
    %13 = vector.load %arg5[%c0_13, %c0_14] : memref<1x512xf32, #tpu.memory_space<vmem>>, vector<1x512xf32>
    %14 = vector.broadcast %13 : vector<1x512xf32> to vector<64x512xf32>
    %15 = arith.addf %12, %14 : vector<64x512xf32>
    %cst_15 = arith.constant 0.000000e+00 : f32
    %16 = vector.broadcast %cst_15 : f32 to vector<64x512xf32>
    %17 = arith.maximumf %15, %16 : vector<64x512xf32>
    %18 = arith.truncf %17 : vector<64x512xf32> to vector<64x512xbf16>
    %c0_16 = arith.constant 0 : index
    %c0_17 = arith.constant 0 : index
    %19 = vector.load %arg24[%c0_16, %c0_17] : memref<64x512xbf16, #tpu.memory_space<vmem>>, vector<64x512xbf16>
    tpu.vector_store %arg24[%c0_16, %c0_17], %18 {strides = array<i32>} : memref<64x512xbf16, #tpu.memory_space<vmem>>, vector<64x512xbf16>,
    %c0_18 = arith.constant 0 : index
    %c0_19 = arith.constant 0 : index
    %20 = vector.load %arg24[%c0_18, %c0_19] : memref<64x512xbf16, #tpu.memory_space<vmem>>, vector<64x512xbf16>
    %c0_20 = arith.constant 0 : index
    %c0_21 = arith.constant 0 : index
    %21 = vector.load %arg6[%c0_20, %c0_21] : memref<512x256xbf16, #tpu.memory_space<vmem>>, vector<512x256xbf16>
    %cst_22 = arith.constant dense<0.000000e+00> : vector<64x256xf32>
    %22 = tpu.matmul %20, %21, %cst_22 {dimension_numbers = #tpu.dot_dimension_numbers<[1], [0], [0], [1], [0, 0, 1, 1], [], []>} : vector<64x512xbf16>, vector<512x256xbf16>, vector<64x256xf32> -> vector<64x256xf32>
    %c0_23 = arith.constant 0 : index
    %c0_24 = arith.constant 0 : index
    %23 = vector.load %arg7[%c0_23, %c0_24] : memref<1x256xf32, #tpu.memory_space<vmem>>, vector<1x256xf32>
    %24 = vector.broadcast %23 : vector<1x256xf32> to vector<64x256xf32>
    %25 = arith.addf %22, %24 : vector<64x256xf32>
    %cst_25 = arith.constant 0.000000e+00 : f32
    %26 = vector.broadcast %cst_25 : f32 to vector<64x256xf32>
    %27 = arith.maximumf %25, %26 : vector<64x256xf32>
    %28 = arith.truncf %27 : vector<64x256xf32> to vector<64x256xbf16>
    %c0_26 = arith.constant 0 : index
    %c0_27 = arith.constant 0 : index
    %29 = vector.load %arg25[%c0_26, %c0_27] : memref<64x256xbf16, #tpu.memory_space<vmem>>, vector<64x256xbf16>
    tpu.vector_store %arg25[%c0_26, %c0_27], %28 {strides = array<i32>} : memref<64x256xbf16, #tpu.memory_space<vmem>>, vector<64x256xbf16>,
    %c0_28 = arith.constant 0 : index
    %c0_29 = arith.constant 0 : index
    %30 = vector.load %arg25[%c0_28, %c0_29] : memref<64x256xbf16, #tpu.memory_space<vmem>>, vector<16x256xbf16>
    %c0_30 = arith.constant 0 : index
    %c0_31 = arith.constant 0 : index
    %31 = vector.load %arg8[%c0_30, %c0_31] : memref<256x128xbf16, #tpu.memory_space<vmem>>, vector<256x128xbf16>
    %cst_32 = arith.constant dense<0.000000e+00> : vector<16x128xf32>
    %32 = tpu.matmul %30, %31, %cst_32 {dimension_numbers = #tpu.dot_dimension_numbers<[1], [0], [0], [1], [0, 0, 1, 1], [], []>} : vector<16x256xbf16>, vector<256x128xbf16>, vector<16x128xf32> -> vector<16x128xf32>
    %c0_33 = arith.constant 0 : index
    %c0_34 = arith.constant 0 : index
    %33 = vector.load %arg9[%c0_33, %c0_34] : memref<1x128xf32, #tpu.memory_space<vmem>>, vector<1x128xf32>
    %34 = vector.broadcast %33 : vector<1x128xf32> to vector<16x128xf32>
    %35 = arith.addf %32, %34 : vector<16x128xf32>
    %cst_35 = arith.constant 0.000000e+00 : f32
    %36 = vector.broadcast %cst_35 : f32 to vector<16x128xf32>
    %37 = arith.maximumf %35, %36 : vector<16x128xf32>
    %38 = arith.truncf %37 : vector<16x128xf32> to vector<16x128xbf16>
    %c0_36 = arith.constant 0 : index
    %c0_37 = arith.constant 0 : index
    %39 = vector.load %arg26[%c0_36, %c0_37] : memref<16x512xbf16, #tpu.memory_space<vmem>>, vector<16x128xbf16>
    tpu.vector_store %arg26[%c0_36, %c0_37], %38 {strides = array<i32>} : memref<16x512xbf16, #tpu.memory_space<vmem>>, vector<16x128xbf16>,
    %c16 = arith.constant 16 : index
    %c0_38 = arith.constant 0 : index
    %40 = vector.load %arg25[%c16, %c0_38] : memref<64x256xbf16, #tpu.memory_space<vmem>>, vector<16x256xbf16>
    %c0_39 = arith.constant 0 : index
    %c0_40 = arith.constant 0 : index
    %41 = vector.load %arg8[%c0_39, %c0_40] : memref<256x128xbf16, #tpu.memory_space<vmem>>, vector<256x128xbf16>
    %cst_41 = arith.constant dense<0.000000e+00> : vector<16x128xf32>
    %42 = tpu.matmul %40, %41, %cst_41 {dimension_numbers = #tpu.dot_dimension_numbers<[1], [0], [0], [1], [0, 0, 1, 1], [], []>} : vector<16x256xbf16>, vector<256x128xbf16>, vector<16x128xf32> -> vector<16x128xf32>
    %c0_42 = arith.constant 0 : index
    %c0_43 = arith.constant 0 : index
    %43 = vector.load %arg9[%c0_42, %c0_43] : memref<1x128xf32, #tpu.memory_space<vmem>>, vector<1x128xf32>
    %44 = vector.broadcast %43 : vector<1x128xf32> to vector<16x128xf32>
    %45 = arith.addf %42, %44 : vector<16x128xf32>
    %cst_44 = arith.constant 0.000000e+00 : f32
    %46 = vector.broadcast %cst_44 : f32 to vector<16x128xf32>
    %47 = arith.maximumf %45, %46 : vector<16x128xf32>
    %48 = arith.truncf %47 : vector<16x128xf32> to vector<16x128xbf16>
    %c0_45 = arith.constant 0 : index
    %c128 = arith.constant 128 : index
    %49 = vector.load %arg26[%c0_45, %c128] : memref<16x512xbf16, #tpu.memory_space<vmem>>, vector<16x128xbf16>
    tpu.vector_store %arg26[%c0_45, %c128], %48 {strides = array<i32>} : memref<16x512xbf16, #tpu.memory_space<vmem>>, vector<16x128xbf16>,
    %c32 = arith.constant 32 : index
    %c0_46 = arith.constant 0 : index
    %50 = vector.load %arg25[%c32, %c0_46] : memref<64x256xbf16, #tpu.memory_space<vmem>>, vector<16x256xbf16>
    %c0_47 = arith.constant 0 : index
    %c0_48 = arith.constant 0 : index
    %51 = vector.load %arg8[%c0_47, %c0_48] : memref<256x128xbf16, #tpu.memory_space<vmem>>, vector<256x128xbf16>
    %cst_49 = arith.constant dense<0.000000e+00> : vector<16x128xf32>
    %52 = tpu.matmul %50, %51, %cst_49 {dimension_numbers = #tpu.dot_dimension_numbers<[1], [0], [0], [1], [0, 0, 1, 1], [], []>} : vector<16x256xbf16>, vector<256x128xbf16>, vector<16x128xf32> -> vector<16x128xf32>
    %c0_50 = arith.constant 0 : index
    %c0_51 = arith.constant 0 : index
    %53 = vector.load %arg9[%c0_50, %c0_51] : memref<1x128xf32, #tpu.memory_space<vmem>>, vector<1x128xf32>
    %54 = vector.broadcast %53 : vector<1x128xf32> to vector<16x128xf32>
    %55 = arith.addf %52, %54 : vector<16x128xf32>
    %cst_52 = arith.constant 0.000000e+00 : f32
    %56 = vector.broadcast %cst_52 : f32 to vector<16x128xf32>
    %57 = arith.maximumf %55, %56 : vector<16x128xf32>
    %58 = arith.truncf %57 : vector<16x128xf32> to vector<16x128xbf16>
    %c0_53 = arith.constant 0 : index
    %c256 = arith.constant 256 : index
    %59 = vector.load %arg26[%c0_53, %c256] : memref<16x512xbf16, #tpu.memory_space<vmem>>, vector<16x128xbf16>
    tpu.vector_store %arg26[%c0_53, %c256], %58 {strides = array<i32>} : memref<16x512xbf16, #tpu.memory_space<vmem>>, vector<16x128xbf16>,
    %c48 = arith.constant 48 : index
    %c0_54 = arith.constant 0 : index
    %60 = vector.load %arg25[%c48, %c0_54] : memref<64x256xbf16, #tpu.memory_space<vmem>>, vector<16x256xbf16>
    %c0_55 = arith.constant 0 : index
    %c0_56 = arith.constant 0 : index
    %61 = vector.load %arg8[%c0_55, %c0_56] : memref<256x128xbf16, #tpu.memory_space<vmem>>, vector<256x128xbf16>
    %cst_57 = arith.constant dense<0.000000e+00> : vector<16x128xf32>
    %62 = tpu.matmul %60, %61, %cst_57 {dimension_numbers = #tpu.dot_dimension_numbers<[1], [0], [0], [1], [0, 0, 1, 1], [], []>} : vector<16x256xbf16>, vector<256x128xbf16>, vector<16x128xf32> -> vector<16x128xf32>
    %c0_58 = arith.constant 0 : index
    %c0_59 = arith.constant 0 : index
    %63 = vector.load %arg9[%c0_58, %c0_59] : memref<1x128xf32, #tpu.memory_space<vmem>>, vector<1x128xf32>
    %64 = vector.broadcast %63 : vector<1x128xf32> to vector<16x128xf32>
    %65 = arith.addf %62, %64 : vector<16x128xf32>
    %cst_60 = arith.constant 0.000000e+00 : f32
    %66 = vector.broadcast %cst_60 : f32 to vector<16x128xf32>
    %67 = arith.maximumf %65, %66 : vector<16x128xf32>
    %68 = arith.truncf %67 : vector<16x128xf32> to vector<16x128xbf16>
    %c0_61 = arith.constant 0 : index
    %c384 = arith.constant 384 : index
    %69 = vector.load %arg26[%c0_61, %c384] : memref<16x512xbf16, #tpu.memory_space<vmem>>, vector<16x128xbf16>
    tpu.vector_store %arg26[%c0_61, %c384], %68 {strides = array<i32>} : memref<16x512xbf16, #tpu.memory_space<vmem>>, vector<16x128xbf16>,
    %c0_62 = arith.constant 0 : index
    %c0_63 = arith.constant 0 : index
    %70 = vector.load %arg26[%c0_62, %c0_63] : memref<16x512xbf16, #tpu.memory_space<vmem>>, vector<16x512xbf16>
    %c0_64 = arith.constant 0 : index
    %c0_65 = arith.constant 0 : index
    %71 = vector.load %arg10[%c0_64, %c0_65] : memref<512x256xbf16, #tpu.memory_space<vmem>>, vector<512x256xbf16>
    %cst_66 = arith.constant dense<0.000000e+00> : vector<16x256xf32>
    %72 = tpu.matmul %70, %71, %cst_66 {dimension_numbers = #tpu.dot_dimension_numbers<[1], [0], [0], [1], [0, 0, 1, 1], [], []>} : vector<16x512xbf16>, vector<512x256xbf16>, vector<16x256xf32> -> vector<16x256xf32>
    %c0_67 = arith.constant 0 : index
    %c0_68 = arith.constant 0 : index
    %73 = vector.load %arg11[%c0_67, %c0_68] : memref<1x256xf32, #tpu.memory_space<vmem>>, vector<1x256xf32>
    %74 = vector.broadcast %73 : vector<1x256xf32> to vector<16x256xf32>
    %75 = arith.addf %72, %74 : vector<16x256xf32>
    %cst_69 = arith.constant 0.000000e+00 : f32
    %76 = vector.broadcast %cst_69 : f32 to vector<16x256xf32>
    %77 = arith.maximumf %75, %76 : vector<16x256xf32>
    %78 = arith.truncf %77 : vector<16x256xf32> to vector<16x256xbf16>
    %c0_70 = arith.constant 0 : index
    %c0_71 = arith.constant 0 : index
    %79 = vector.load %arg12[%c0_70, %c0_71] : memref<256x512xbf16, #tpu.memory_space<vmem>>, vector<256x512xbf16>
    %cst_72 = arith.constant dense<0.000000e+00> : vector<16x512xf32>
    %80 = tpu.matmul %78, %79, %cst_72 {dimension_numbers = #tpu.dot_dimension_numbers<[1], [0], [0], [1], [0, 0, 1, 1], [], []>} : vector<16x256xbf16>, vector<256x512xbf16>, vector<16x512xf32> -> vector<16x512xf32>
    %c0_73 = arith.constant 0 : index
    %c0_74 = arith.constant 0 : index
    %81 = vector.load %arg13[%c0_73, %c0_74] : memref<1x512xf32, #tpu.memory_space<vmem>>, vector<1x512xf32>
    %82 = vector.broadcast %81 : vector<1x512xf32> to vector<16x512xf32>
    %83 = arith.addf %80, %82 : vector<16x512xf32>
    %cst_75 = arith.constant 0.000000e+00 : f32
    %84 = vector.broadcast %cst_75 : f32 to vector<16x512xf32>
    %85 = arith.maximumf %83, %84 : vector<16x512xf32>
    %86 = vector.extract_strided_slice %85 {offsets = [0, 0], sizes = [16, 128], strides = [1, 1]} : vector<16x512xf32> to vector<16x128xf32>
    %87 = arith.truncf %86 : vector<16x128xf32> to vector<16x128xbf16>
    %c0_76 = arith.constant 0 : index
    %c0_77 = arith.constant 0 : index
    %88 = vector.load %arg27[%c0_76, %c0_77] : memref<64x128xbf16, #tpu.memory_space<vmem>>, vector<16x128xbf16>
    tpu.vector_store %arg27[%c0_76, %c0_77], %87 {strides = array<i32>} : memref<64x128xbf16, #tpu.memory_space<vmem>>, vector<16x128xbf16>,
    %89 = vector.extract_strided_slice %85 {offsets = [0, 128], sizes = [16, 128], strides = [1, 1]} : vector<16x512xf32> to vector<16x128xf32>
    %90 = arith.truncf %89 : vector<16x128xf32> to vector<16x128xbf16>
    %c16_78 = arith.constant 16 : index
    %c0_79 = arith.constant 0 : index
    %91 = vector.load %arg27[%c16_78, %c0_79] : memref<64x128xbf16, #tpu.memory_space<vmem>>, vector<16x128xbf16>
    tpu.vector_store %arg27[%c16_78, %c0_79], %90 {strides = array<i32>} : memref<64x128xbf16, #tpu.memory_space<vmem>>, vector<16x128xbf16>,
    %92 = vector.extract_strided_slice %85 {offsets = [0, 256], sizes = [16, 128], strides = [1, 1]} : vector<16x512xf32> to vector<16x128xf32>
    %93 = arith.truncf %92 : vector<16x128xf32> to vector<16x128xbf16>
    %c32_80 = arith.constant 32 : index
    %c0_81 = arith.constant 0 : index
    %94 = vector.load %arg27[%c32_80, %c0_81] : memref<64x128xbf16, #tpu.memory_space<vmem>>, vector<16x128xbf16>
    tpu.vector_store %arg27[%c32_80, %c0_81], %93 {strides = array<i32>} : memref<64x128xbf16, #tpu.memory_space<vmem>>, vector<16x128xbf16>,
    %95 = vector.extract_strided_slice %85 {offsets = [0, 384], sizes = [16, 128], strides = [1, 1]} : vector<16x512xf32> to vector<16x128xf32>
    %96 = arith.truncf %95 : vector<16x128xf32> to vector<16x128xbf16>
    %c48_82 = arith.constant 48 : index
    %c0_83 = arith.constant 0 : index
    %97 = vector.load %arg27[%c48_82, %c0_83] : memref<64x128xbf16, #tpu.memory_space<vmem>>, vector<16x128xbf16>
    tpu.vector_store %arg27[%c48_82, %c0_83], %96 {strides = array<i32>} : memref<64x128xbf16, #tpu.memory_space<vmem>>, vector<16x128xbf16>,
    %c0_84 = arith.constant 0 : index
    %c0_85 = arith.constant 0 : index
    %98 = vector.load %arg27[%c0_84, %c0_85] : memref<64x128xbf16, #tpu.memory_space<vmem>>, vector<64x128xbf16>
    %c0_86 = arith.constant 0 : index
    %c0_87 = arith.constant 0 : index
    %99 = vector.load %arg14[%c0_86, %c0_87] : memref<128x256xbf16, #tpu.memory_space<vmem>>, vector<128x256xbf16>
    %cst_88 = arith.constant dense<0.000000e+00> : vector<64x256xf32>
    %100 = tpu.matmul %98, %99, %cst_88 {dimension_numbers = #tpu.dot_dimension_numbers<[1], [0], [0], [1], [0, 0, 1, 1], [], []>} : vector<64x128xbf16>, vector<128x256xbf16>, vector<64x256xf32> -> vector<64x256xf32>
    %c0_89 = arith.constant 0 : index
    %c0_90 = arith.constant 0 : index
    %101 = vector.load %arg15[%c0_89, %c0_90] : memref<1x256xf32, #tpu.memory_space<vmem>>, vector<1x256xf32>
    %102 = vector.broadcast %101 : vector<1x256xf32> to vector<64x256xf32>
    %103 = arith.addf %100, %102 : vector<64x256xf32>
    %cst_91 = arith.constant 0.000000e+00 : f32
    %104 = vector.broadcast %cst_91 : f32 to vector<64x256xf32>
    %105 = arith.maximumf %103, %104 : vector<64x256xf32>
    %106 = arith.truncf %105 : vector<64x256xf32> to vector<64x256xbf16>
    %c0_92 = arith.constant 0 : index
    %c0_93 = arith.constant 0 : index
    %107 = vector.load %arg28[%c0_92, %c0_93] : memref<64x256xbf16, #tpu.memory_space<vmem>>, vector<64x256xbf16>
    tpu.vector_store %arg28[%c0_92, %c0_93], %106 {strides = array<i32>} : memref<64x256xbf16, #tpu.memory_space<vmem>>, vector<64x256xbf16>,
    %c0_94 = arith.constant 0 : index
    %c0_95 = arith.constant 0 : index
    %108 = vector.load %arg28[%c0_94, %c0_95] : memref<64x256xbf16, #tpu.memory_space<vmem>>, vector<64x256xbf16>
    %c0_96 = arith.constant 0 : index
    %c0_97 = arith.constant 0 : index
    %109 = vector.load %arg16[%c0_96, %c0_97] : memref<256x512xbf16, #tpu.memory_space<vmem>>, vector<256x512xbf16>
    %cst_98 = arith.constant dense<0.000000e+00> : vector<64x512xf32>
    %110 = tpu.matmul %108, %109, %cst_98 {dimension_numbers = #tpu.dot_dimension_numbers<[1], [0], [0], [1], [0, 0, 1, 1], [], []>} : vector<64x256xbf16>, vector<256x512xbf16>, vector<64x512xf32> -> vector<64x512xf32>
    %c0_99 = arith.constant 0 : index
    %c0_100 = arith.constant 0 : index
    %111 = vector.load %arg17[%c0_99, %c0_100] : memref<1x512xf32, #tpu.memory_space<vmem>>, vector<1x512xf32>
    %112 = vector.broadcast %111 : vector<1x512xf32> to vector<64x512xf32>
    %113 = arith.addf %110, %112 : vector<64x512xf32>
    %cst_101 = arith.constant 0.000000e+00 : f32
    %114 = vector.broadcast %cst_101 : f32 to vector<64x512xf32>
    %115 = arith.maximumf %113, %114 : vector<64x512xf32>
    %116 = arith.truncf %115 : vector<64x512xf32> to vector<64x512xbf16>
    %c0_102 = arith.constant 0 : index
    %c0_103 = arith.constant 0 : index
    %117 = vector.load %arg29[%c0_102, %c0_103] : memref<64x512xbf16, #tpu.memory_space<vmem>>, vector<64x512xbf16>
    tpu.vector_store %arg29[%c0_102, %c0_103], %116 {strides = array<i32>} : memref<64x512xbf16, #tpu.memory_space<vmem>>, vector<64x512xbf16>,
    %c0_104 = arith.constant 0 : index
    %c0_105 = arith.constant 0 : index
    %118 = vector.load %arg29[%c0_104, %c0_105] : memref<64x512xbf16, #tpu.memory_space<vmem>>, vector<64x512xbf16>
    %c0_106 = arith.constant 0 : index
    %c0_107 = arith.constant 0 : index
    %119 = vector.load %arg18[%c0_106, %c0_107] : memref<512x1024xbf16, #tpu.memory_space<vmem>>, vector<512x1024xbf16>
    %cst_108 = arith.constant dense<0.000000e+00> : vector<64x1024xf32>
    %120 = tpu.matmul %118, %119, %cst_108 {dimension_numbers = #tpu.dot_dimension_numbers<[1], [0], [0], [1], [0, 0, 1, 1], [], []>} : vector<64x512xbf16>, vector<512x1024xbf16>, vector<64x1024xf32> -> vector<64x1024xf32>
    %c0_109 = arith.constant 0 : index
    %c0_110 = arith.constant 0 : index
    %121 = vector.load %arg19[%c0_109, %c0_110] : memref<1x1024xf32, #tpu.memory_space<vmem>>, vector<1x1024xf32>
    %122 = vector.broadcast %121 : vector<1x1024xf32> to vector<64x1024xf32>
    %123 = arith.addf %120, %122 : vector<64x1024xf32>
    %cst_111 = arith.constant 0.000000e+00 : f32
    %124 = vector.broadcast %cst_111 : f32 to vector<64x1024xf32>
    %125 = arith.maximumf %123, %124 : vector<64x1024xf32>
    %126 = arith.truncf %125 : vector<64x1024xf32> to vector<64x1024xbf16>
    %c0_112 = arith.constant 0 : index
    %c0_113 = arith.constant 0 : index
    %127 = vector.load %arg30[%c0_112, %c0_113] : memref<64x1024xbf16, #tpu.memory_space<vmem>>, vector<64x1024xbf16>
    tpu.vector_store %arg30[%c0_112, %c0_113], %126 {strides = array<i32>} : memref<64x1024xbf16, #tpu.memory_space<vmem>>, vector<64x1024xbf16>,
    %c0_114 = arith.constant 0 : index
    %c0_115 = arith.constant 0 : index
    %128 = vector.load %arg30[%c0_114, %c0_115] : memref<64x1024xbf16, #tpu.memory_space<vmem>>, vector<64x1024xbf16>
    %c0_116 = arith.constant 0 : index
    %c0_117 = arith.constant 0 : index
    %129 = vector.load %arg20[%c0_116, %c0_117] : memref<1024x256xbf16, #tpu.memory_space<vmem>>, vector<1024x256xbf16>
    %cst_118 = arith.constant dense<0.000000e+00> : vector<64x256xf32>
    %130 = tpu.matmul %128, %129, %cst_118 {dimension_numbers = #tpu.dot_dimension_numbers<[1], [0], [0], [1], [0, 0, 1, 1], [], []>} : vector<64x1024xbf16>, vector<1024x256xbf16>, vector<64x256xf32> -> vector<64x256xf32>
    %c0_119 = arith.constant 0 : index
    %c0_120 = arith.constant 0 : index
    %131 = vector.load %arg21[%c0_119, %c0_120] : memref<1x256xf32, #tpu.memory_space<vmem>>, vector<1x256xf32>
    %132 = vector.broadcast %131 : vector<1x256xf32> to vector<64x256xf32>
    %133 = arith.addf %130, %132 : vector<64x256xf32>
    %cst_121 = arith.constant 5.000000e-01 : f32
    %134 = vector.broadcast %cst_121 : f32 to vector<64x256xf32>
    %135 = arith.mulf %134, %133 : vector<64x256xf32>
    %136 = math.tanh %135 : vector<64x256xf32>
    %cst_122 = arith.constant 5.000000e-01 : f32
    %137 = vector.broadcast %cst_122 : f32 to vector<64x256xf32>
    %138 = arith.mulf %137, %136 : vector<64x256xf32>
    %cst_123 = arith.constant 5.000000e-01 : f32
    %139 = vector.broadcast %cst_123 : f32 to vector<64x256xf32>
    %140 = arith.addf %138, %139 : vector<64x256xf32>
    %c0_124 = arith.constant 0 : index
    %c0_125 = arith.constant 0 : index
    %141 = vector.load %arg22[%c0_124, %c0_125] : memref<64x256xf32, #tpu.memory_space<vmem>>, vector<64x256xf32>
    tpu.vector_store %arg22[%c0_124, %c0_125], %140 {strides = array<i32>} : memref<64x256xf32, #tpu.memory_space<vmem>>, vector<64x256xf32>,
    return
  }
  func.func @transform_0(%arg0: i32) -> (i32, i32) {
    %c0_i32 = arith.constant 0 : i32
    %c0_i32_0 = arith.constant 0 : i32
    return %arg0, %c0_i32 : i32, i32
  }
  func.func @transform_1(%arg0: i32) -> (i32, i32) {
    %c0_i32 = arith.constant 0 : i32
    %c0_i32_0 = arith.constant 0 : i32
    %c0_i32_1 = arith.constant 0 : i32
    return %c0_i32, %c0_i32_0 : i32, i32
  }
  func.func @transform_2(%arg0: i32) -> (i32, i32) {
    %c0_i32 = arith.constant 0 : i32
    %c0_i32_0 = arith.constant 0 : i32
    %c0_i32_1 = arith.constant 0 : i32
    return %c0_i32, %c0_i32_0 : i32, i32
  }
  func.func @transform_3(%arg0: i32) -> (i32, i32) {
    %c0_i32 = arith.constant 0 : i32
    %c0_i32_0 = arith.constant 0 : i32
    %c0_i32_1 = arith.constant 0 : i32
    return %c0_i32, %c0_i32_0 : i32, i32
  }
  func.func @transform_4(%arg0: i32) -> (i32, i32) {
    %c0_i32 = arith.constant 0 : i32
    %c0_i32_0 = arith.constant 0 : i32
    %c0_i32_1 = arith.constant 0 : i32
    return %c0_i32, %c0_i32_0 : i32, i32
  }
  func.func @transform_5(%arg0: i32) -> (i32, i32) {
    %c0_i32 = arith.constant 0 : i32
    %c0_i32_0 = arith.constant 0 : i32
    %c0_i32_1 = arith.constant 0 : i32
    return %c0_i32, %c0_i32_0 : i32, i32
  }
  func.func @transform_6(%arg0: i32) -> (i32, i32) {
    %c0_i32 = arith.constant 0 : i32
    %c0_i32_0 = arith.constant 0 : i32
    %c0_i32_1 = arith.constant 0 : i32
    return %c0_i32, %c0_i32_0 : i32, i32
  }
  func.func @transform_7(%arg0: i32) -> (i32, i32) {
    %c0_i32 = arith.constant 0 : i32
    %c0_i32_0 = arith.constant 0 : i32
    %c0_i32_1 = arith.constant 0 : i32
    return %c0_i32, %c0_i32_0 : i32, i32
  }
  func.func @transform_8(%arg0: i32) -> (i32, i32) {
    %c0_i32 = arith.constant 0 : i32
    %c0_i32_0 = arith.constant 0 : i32
    %c0_i32_1 = arith.constant 0 : i32
    return %c0_i32, %c0_i32_0 : i32, i32
  }
  func.func @transform_9(%arg0: i32) -> (i32, i32) {
    %c0_i32 = arith.constant 0 : i32
    %c0_i32_0 = arith.constant 0 : i32
    %c0_i32_1 = arith.constant 0 : i32
    return %c0_i32, %c0_i32_0 : i32, i32
  }
  func.func @transform_10(%arg0: i32) -> (i32, i32) {
    %c0_i32 = arith.constant 0 : i32
    %c0_i32_0 = arith.constant 0 : i32
    %c0_i32_1 = arith.constant 0 : i32
    return %c0_i32, %c0_i32_0 : i32, i32
  }
  func.func @transform_11(%arg0: i32) -> (i32, i32) {
    %c0_i32 = arith.constant 0 : i32
    %c0_i32_0 = arith.constant 0 : i32
    %c0_i32_1 = arith.constant 0 : i32
    return %c0_i32, %c0_i32_0 : i32, i32
  }
  func.func @transform_12(%arg0: i32) -> (i32, i32) {
    %c0_i32 = arith.constant 0 : i32
    %c0_i32_0 = arith.constant 0 : i32
    %c0_i32_1 = arith.constant 0 : i32
    return %c0_i32, %c0_i32_0 : i32, i32
  }
  func.func @transform_13(%arg0: i32) -> (i32, i32) {
    %c0_i32 = arith.constant 0 : i32
    %c0_i32_0 = arith.constant 0 : i32
    %c0_i32_1 = arith.constant 0 : i32
    return %c0_i32, %c0_i32_0 : i32, i32
  }
  func.func @transform_14(%arg0: i32) -> (i32, i32) {
    %c0_i32 = arith.constant 0 : i32
    %c0_i32_0 = arith.constant 0 : i32
    %c0_i32_1 = arith.constant 0 : i32
    return %c0_i32, %c0_i32_0 : i32, i32
  }
  func.func @transform_15(%arg0: i32) -> (i32, i32) {
    %c0_i32 = arith.constant 0 : i32
    %c0_i32_0 = arith.constant 0 : i32
    %c0_i32_1 = arith.constant 0 : i32
    return %c0_i32, %c0_i32_0 : i32, i32
  }
  func.func @transform_16(%arg0: i32) -> (i32, i32) {
    %c0_i32 = arith.constant 0 : i32
    %c0_i32_0 = arith.constant 0 : i32
    %c0_i32_1 = arith.constant 0 : i32
    return %c0_i32, %c0_i32_0 : i32, i32
  }
  func.func @transform_17(%arg0: i32) -> (i32, i32) {
    %c0_i32 = arith.constant 0 : i32
    %c0_i32_0 = arith.constant 0 : i32
    %c0_i32_1 = arith.constant 0 : i32
    return %c0_i32, %c0_i32_0 : i32, i32
  }
  func.func @transform_18(%arg0: i32) -> (i32, i32) {
    %c0_i32 = arith.constant 0 : i32
    %c0_i32_0 = arith.constant 0 : i32
    %c0_i32_1 = arith.constant 0 : i32
    return %c0_i32, %c0_i32_0 : i32, i32
  }
  func.func @transform_19(%arg0: i32) -> (i32, i32) {
    %c0_i32 = arith.constant 0 : i32
    %c0_i32_0 = arith.constant 0 : i32
    %c0_i32_1 = arith.constant 0 : i32
    return %c0_i32, %c0_i32_0 : i32, i32
  }
  func.func @transform_20(%arg0: i32) -> (i32, i32) {
    %c0_i32 = arith.constant 0 : i32
    %c0_i32_0 = arith.constant 0 : i32
    %c0_i32_1 = arith.constant 0 : i32
    return %c0_i32, %c0_i32_0 : i32, i32
  }
  func.func @transform_21(%arg0: i32) -> (i32, i32) {
    %c0_i32 = arith.constant 0 : i32
    %c0_i32_0 = arith.constant 0 : i32
    return %arg0, %c0_i32 : i32, i32
  }
}

</mosaic_0001>

<bundles_post_ra>
// kernel: tile.45
= control target key start
LH: loop header
LB: loop body
LE: loop exit
PB: predicated region body
PF: predicated region fallthrough
CT: control target
= control target key end

     0   :  { %s64_s0 = inlined_call_operand.vmem [shape: f32[16], index: 0, kind: input, shape index: {}]   ;;  %s65_s1 = inlined_call_operand.vmem [shape: f32[64,16], index: 1, kind: output, shape index: {}]  }
   0x1   :  { %v4_v0 = vld [vmem:[%s64_s0] ss:$0 sm:$0xff] }
   0x2   :  { %5 = vst [vmem:[%s65_s1] sm:$0xff] %v4_v0  ;;  %20 = vst [vmem:[%s65_s1 + $0x8] sm:$0xff] %v4_v0 }
   0x3   :  { %21 = vst [vmem:[%s65_s1 + $0x10] sm:$0xff] %v4_v0  ;;  %22 = vst [vmem:[%s65_s1 + $0x18] sm:$0xff] %v4_v0 }
   0x4   :  { %23 = vst [vmem:[%s65_s1 + $0x20] sm:$0xff] %v4_v0  ;;  %24 = vst [vmem:[%s65_s1 + $0x28] sm:$0xff] %v4_v0 }
   0x5   :  { %25 = vst [vmem:[%s65_s1 + $0x30] sm:$0xff] %v4_v0  ;;  %26 = vst [vmem:[%s65_s1 + $0x38] sm:$0xff] %v4_v0 }

// kernel: tile.46
= control target key start
LH: loop header
LB: loop body
LE: loop exit
PB: predicated region body
PF: predicated region fallthrough
CT: control target
= control target key end

     0   :  { %vm4_vm0 = vcmask 1047556   ;;  %s176_s16 = smov 112   ;;  %s177_s19 = smov 80   ;;  %vm6_vm1 = vcmask 130048   ;;  %vm17_vm2 = vcmask 1048448   ;;  %vm28_vm3 = vcmask 917248   ;;  %s273_s0 = inlined_call_operand.vmem [shape: f32[64,16], index: 0, kind: input, shape index: {}]   ;;  %s274_s1 = inlined_call_operand.vmem [shape: f32[1,1024], index: 1, kind: output, shape index: {}]  }
   0x1   :  { %v148_v0 = vld [vmem:[%s273_s0 + $0x7] ss:$8 sm:$0xf]   ;;  %v152_v2 = vld [vmem:[%s273_s0 + $0x5] ss:$8 sm:$0xf]  }
   0x2   :  { %v149_v1 = vld [vmem:[%s273_s0 + $0x7] ss:$8 sm:$0xf0]   ;;  %v153_v4 = vld [vmem:[%s273_s0 + $0x5] ss:$8 sm:$0xf0]  }
   0x3   :  { %v14_v3 = vsel %vm4_vm0, %v149_v1, %v148_v0  ;;  %v150_v5 = vld [vmem:[%s273_s0 + $0x6] ss:$8 sm:$0xf]   ;;  %v36_v6 = vsel %vm4_vm0, %v153_v4, %v152_v2  ;;  %v154_v9 = vld [vmem:[%s273_s0 + $0x4] ss:$8 sm:$0xf]  }
   0x4   :  { %15 = vrot.lane.b32.xlu0 %v14_v3, %s176_s16  ;;  %v151_v7 = vld [vmem:[%s273_s0 + $0x6] ss:$8 sm:$0xf0]   ;;  %37 = vrot.lane.b32.xlu1 %v36_v6, %s177_s19  ;;  %v155_v10 = vld [vmem:[%s273_s0 + $0x4] ss:$8 sm:$0xf0]  }
   0x5   :  { %v25_v8 = vsel %vm4_vm0, %v151_v7, %v150_v5  ;;  %v47_v11 = vsel %vm4_vm0, %v155_v10, %v154_v9  ;;  %v156_v12 = vld [vmem:[%s273_s0 + $0x3] ss:$8 sm:$0xf]   ;;  %v158_v14 = vld [vmem:[%s273_s0 + $0x2] ss:$8 sm:$0xf]  }
   0x6   :  { %v157_v13 = vld [vmem:[%s273_s0 + $0x3] ss:$8 sm:$0xf0]   ;;  %s178_s30 = smov 96   ;;  %s179_s4 = smov 64   ;;  %vm39_vm4 = vcmask 786048  }
   0x7   :  { %v159_v15 = vld [vmem:[%s273_s0 + $0x2] ss:$8 sm:$0xf0]   ;;  %v58_v16 = vsel %vm4_vm0, %v157_v13, %v156_v12  ;;  %v160_v17 = vld [vmem:[%s273_s0 + $0x1] ss:$8 sm:$0xf]  }
   0x8   :  { %26 = vrot.lane.b32.xlu0 %v25_v8, %s178_s30  ;;  %48 = vrot.lane.b32.xlu1 %v47_v11, %s179_s4  ;;  %v161_v18 = vld [vmem:[%s273_s0 + $0x1] ss:$8 sm:$0xf0]   ;;  %v69_v19 = vsel %vm4_vm0, %v159_v15, %v158_v14  ;;  %v2_v20 = vld [vmem:[%s273_s0] ss:$8 sm:$0xf]  }
   0x9   :  { %v3_v21 = vld [vmem:[%s273_s0] ss:$8 sm:$0xf0]   ;;  %s180_s0 = smov 48   ;;  %s181_s13 = smov 32   ;;  %v80_v23 = vsel %vm4_vm0, %v161_v18, %v160_v17  ;;  %vm50_vm5 = vcmask 654848  }
   0xa   :  { %v5_v22 = vsel %vm4_vm0, %v3_v21, %v2_v20  ;;  %s182_s14 = smov 16   ;;  %vm61_vm6 = vcmask 523648   ;;  %vm72_vm7 = vcmask 392448   ;;  %vm83_vm8 = vcmask 261248  }
   0xb   :  { %7 = vst.msk [vmem:[#allocation0] ss:$8 sm:$0xf] %vm6_vm1, %v5_v22   ;;  %8 = vst.msk [vmem:[#allocation0] ss:$8 sm:$0xf0] %vm6_vm1, %v5_v22  }
   0xc   :  { %59 = vrot.lane.b32.xlu0 %v58_v16, %s180_s0  ;;  %70 = vrot.lane.b32.xlu1 %v69_v19, %s181_s13 }
  0x10   :  { %81 = vrot.lane.b32.xlu0 %v80_v23, %s182_s14 }
  0x76   :  { %v16_v24 = vpop.permute.xlu0 %15   ;;  %v38_v25 = vpop.permute.xlu1 %37  }
  0x77   :  { %18 = vst.msk [vmem:[#allocation0] ss:$8 sm:$0xf] %vm17_vm2, %v16_v24   ;;  %19 = vst.msk [vmem:[#allocation0] ss:$8 sm:$0xf0] %vm17_vm2, %v16_v24  }
  0x7a   :  { %v27_v26 = vpop.permute.xlu0 %26   ;;  %v49_v27 = vpop.permute.xlu1 %48  }
  0x7b   :  { %29 = vst.msk [vmem:[#allocation0] ss:$8 sm:$0xf] %vm28_vm3, %v27_v26   ;;  %30 = vst.msk [vmem:[#allocation0] ss:$8 sm:$0xf0] %vm28_vm3, %v27_v26  }
  0x7c   :  { %40 = vst.msk [vmem:[#allocation0] ss:$8 sm:$0xf] %vm39_vm4, %v38_v25   ;;  %41 = vst.msk [vmem:[#allocation0] ss:$8 sm:$0xf0] %vm39_vm4, %v38_v25  }
  0x7d   :  { %51 = vst.msk [vmem:[#allocation0] ss:$8 sm:$0xf] %vm50_vm5, %v49_v27   ;;  %52 = vst.msk [vmem:[#allocation0] ss:$8 sm:$0xf0] %vm50_vm5, %v49_v27  }
  0x7e   :  { %v60_v28 = vpop.permute.xlu0 %59   ;;  %v71_v29 = vpop.permute.xlu1 %70  }
  0x7f   :  { %62 = vst.msk [vmem:[#allocation0] ss:$8 sm:$0xf] %vm61_vm6, %v60_v28   ;;  %63 = vst.msk [vmem:[#allocation0] ss:$8 sm:$0xf0] %vm61_vm6, %v60_v28  }
  0x80   :  { %73 = vst.msk [vmem:[#allocation0] ss:$8 sm:$0xf] %vm72_vm7, %v71_v29   ;;  %74 = vst.msk [vmem:[#allocation0] ss:$8 sm:$0xf0] %vm72_vm7, %v71_v29  }
  0x82   :  { %v82_v30 = vpop.permute.xlu0 %81  }
  0x83   :  { %84 = vst.msk [vmem:[#allocation0] ss:$8 sm:$0xf] %vm83_vm8, %v82_v30   ;;  %85 = vst.msk [vmem:[#allocation0] ss:$8 sm:$0xf0] %vm83_vm8, %v82_v30  }
  0x8a   :  { %v90_v31 = vld [vmem:[#allocation0] sm:$0x1]  ;;  %v95_v32 = vld [vmem:[#allocation0 + $0x8] sm:$0x1]  ;;  %v101_v33 = vld [vmem:[#allocation0 + $0x10] sm:$0x1] }
  0x8b   :  { %93 = vst [vmem:[%s274_s1] sm:$0x1] %v90_v31  ;;  %162 = vst [vmem:[%s274_s1 + $0x1] sm:$0x1] %v95_v32  ;;  %v108_v34 = vld [vmem:[#allocation0 + $0x18] sm:$0x1] }
  0x8c   :  { %163 = vst [vmem:[%s274_s1 + $0x2] sm:$0x1] %v101_v33  ;;  %v115_v35 = vld [vmem:[#allocation0 + $0x20] sm:$0x1]  ;;  %v122_v36 = vld [vmem:[#allocation0 + $0x28] sm:$0x1] }
  0x8d   :  { %164 = vst [vmem:[%s274_s1 + $0x3] sm:$0x1] %v108_v34  ;;  %165 = vst [vmem:[%s274_s1 + $0x4] sm:$0x1] %v115_v35  ;;  %v129_v37 = vld [vmem:[#allocation0 + $0x30] sm:$0x1] }
  0x8e   :  { %166 = vst [vmem:[%s274_s1 + $0x5] sm:$0x1] %v122_v36  ;;  %v136_v38 = vld [vmem:[#allocation0 + $0x38] sm:$0x1]  ;;  %167 = vst [vmem:[%s274_s1 + $0x6] sm:$0x1] %v129_v37 }
  0x8f   :  { %168 = vst [vmem:[%s274_s1 + $0x7] sm:$0x1] %v136_v38 }

// kernel: tile.50
= control target key start
LH: loop header
LB: loop body
LE: loop exit
PB: predicated region body
PF: predicated region fallthrough
CT: control target
= control target key end

     0   :  { %s28_s0 = inlined_call_operand.vmem [shape: f32[32], index: 0, kind: input, shape index: {}]   ;;  %s29_s1 = inlined_call_operand.vmem [shape: f32[16,32], index: 1, kind: output, shape index: {}]  }
   0x1   :  { %v4_v0 = vld [vmem:[%s28_s0] ss:$0 sm:$0xff] }
   0x2   :  { %5 = vst [vmem:[%s29_s1] sm:$0xff] %v4_v0  ;;  %8 = vst [vmem:[%s29_s1 + $0x8] sm:$0xff] %v4_v0 }

// kernel: tile.51
= control target key start
LH: loop header
LB: loop body
LE: loop exit
PB: predicated region body
PF: predicated region fallthrough
CT: control target
= control target key end

     0   :  { %s62_s8 = smov 96   ;;  %vm3_vm0 = vcmask 261120   ;;  %s64_s15 = smov 64   ;;  %vm9_vm1 = vcmask 1048320   ;;  %vm15_vm2 = vcmask 785920   ;;  %vm21_vm3 = vcmask 523520   ;;  %s99_s0 = inlined_call_operand.vmem [shape: f32[16,32], index: 0, kind: input, shape index: {}]   ;;  %s100_s1 = inlined_call_operand.vmem [shape: f32[1,512], index: 1, kind: output, shape index: {}]  }
   0x1   :  { %v53_v0 = vld [vmem:[%s99_s0 + $0x3] ss:$4 sm:$0xf]   ;;  %v54_v1 = vld [vmem:[%s99_s0 + $0x2] ss:$4 sm:$0xf]  }
   0x2   :  { %7 = vrot.lane.b32.xlu0 %v53_v0, %s62_s8  ;;  %v55_v2 = vld [vmem:[%s99_s0 + $0x1] ss:$4 sm:$0xf]   ;;  %v2_v3 = vld [vmem:[%s99_s0] ss:$4 sm:$0xf]  }
   0x3   :  { %s63_s0 = smov 32   ;;  %4 = vst.msk [vmem:[#allocation0] ss:$8 sm:$0xf] %vm3_vm0, %v2_v3  }
   0x4   :  { %19 = vrot.lane.b32.xlu1 %v55_v2, %s63_s0 }
   0x6   :  { %13 = vrot.lane.b32.xlu0 %v54_v1, %s64_s15 }
  0x74   :  { %v8_v4 = vpop.permute.xlu0 %7  }
  0x75   :  { %10 = vst.msk [vmem:[#allocation0] ss:$8 sm:$0xf] %vm9_vm1, %v8_v4  }
  0x76   :  { %v20_v5 = vpop.permute.xlu1 %19  }
  0x78   :  { %v14_v6 = vpop.permute.xlu0 %13  }
  0x79   :  { %16 = vst.msk [vmem:[#allocation0] ss:$8 sm:$0xf] %vm15_vm2, %v14_v6  }
  0x7a   :  { %22 = vst.msk [vmem:[#allocation0] ss:$8 sm:$0xf] %vm21_vm3, %v20_v5  }
  0x81   :  { %v27_v7 = vld [vmem:[#allocation0] sm:$0x1]  ;;  %v32_v8 = vld [vmem:[#allocation0 + $0x8] sm:$0x1]  ;;  %v38_v9 = vld [vmem:[#allocation0 + $0x10] sm:$0x1] }
  0x82   :  { %30 = vst [vmem:[%s100_s1] sm:$0x1] %v27_v7  ;;  %56 = vst [vmem:[%s100_s1 + $0x1] sm:$0x1] %v32_v8  ;;  %v45_v10 = vld [vmem:[#allocation0 + $0x18] sm:$0x1] }
  0x83   :  { %57 = vst [vmem:[%s100_s1 + $0x2] sm:$0x1] %v38_v9  ;;  %58 = vst [vmem:[%s100_s1 + $0x3] sm:$0x1] %v45_v10 }

// kernel: tile.55
= control target key start
LH: loop header
LB: loop body
LE: loop exit
PB: predicated region body
PF: predicated region fallthrough
CT: control target
= control target key end

     0   :  { %s22_s0 = inlined_call_operand.vmem [shape: f32[64], index: 0, kind: input, shape index: {}]   ;;  %s23_s1 = inlined_call_operand.vmem [shape: f32[4,64], index: 1, kind: output, shape index: {}]  }
   0x1   :  { %v4_v0 = vld [vmem:[%s22_s0] ss:$0 sm:$0xff] }
   0x2   :  { %5 = vst [vmem:[%s23_s1] sm:$0xf] %v4_v0 }

// kernel: tile.56
= control target key start
LH: loop header
LB: loop body
LE: loop exit
PB: predicated region body
PF: predicated region fallthrough
CT: control target
= control target key end

     0   :  { %s7_s8 = smov 3  ;;  %vm9_vm0 = vcmask 523264   ;;  %s34_s9 = smov 64   ;;  %vm16_vm1 = vcmask 1048064   ;;  %s54_s0 = inlined_call_operand.vmem [shape: f32[4,64], index: 0, kind: input, shape index: {}]   ;;  %s55_s1 = inlined_call_operand.vmem [shape: f32[1,256], index: 1, kind: output, shape index: {}]  }
   0x1   :  { %v5_v0 = vld [vmem:[%s54_s0] sm:$0xf]  ;;  %s12_s0 = smov 3 }
   0x2   :  { %6 = vst [vmem:[#allocation1] sm:$0xf] %v5_v0 }
   0x9   :  { %v13_v1 = vld [vmem:[#allocation1 + $0x1] ss:$2 sm:%s12_s0]   ;;  %v8_v2 = vld [vmem:[#allocation1] ss:$2 sm:%s7_s8]  }
   0xa   :  { %14 = vrot.lane.b32.xlu0 %v13_v1, %s34_s9  ;;  %10 = vst.msk [vmem:[#allocation0] ss:$8 sm:$0x3] %vm9_vm0, %v8_v2  }
  0x7c   :  { %v15_v3 = vpop.permute.xlu0 %14  }
  0x7d   :  { %17 = vst.msk [vmem:[#allocation0] ss:$8 sm:$0x3] %vm16_vm1, %v15_v3  }
  0x84   :  { %v22_v4 = vld [vmem:[#allocation0] sm:$0x1]  ;;  %v27_v5 = vld [vmem:[#allocation0 + $0x8] sm:$0x1] }
  0x85   :  { %25 = vst [vmem:[%s55_s1] sm:$0x1] %v22_v4  ;;  %32 = vst [vmem:[%s55_s1 + $0x1] sm:$0x1] %v27_v5 }

// kernel: tile.62
= control target key start
LH: loop header
LB: loop body
LE: loop exit
PB: predicated region body
PF: predicated region fallthrough
CT: control target
= control target key end

     0   :  { %s22_s0 = inlined_call_operand.vmem [shape: f32[128], index: 0, kind: input, shape index: {}]   ;;  %s23_s1 = inlined_call_operand.vmem [shape: f32[4,128], index: 1, kind: output, shape index: {}]  }
   0x1   :  { %v4_v0 = vld [vmem:[%s22_s0] ss:$0 sm:$0xff] }
   0x2   :  { %5 = vst [vmem:[%s23_s1] sm:$0xf] %v4_v0 }

// kernel: conv_autoencoder_forward.1
= control target key start
LH: loop header
LB: loop body
LE: loop exit
PB: predicated region body
PF: predicated region fallthrough
CT: control target
= control target key end

     0   :  { %s19548_s0 = inlined_call_operand.vmem [shape: bf16[128,256], index: 0, kind: input, shape index: {}]   ;;  %s19549_s1 = inlined_call_operand.vmem [shape: bf16[256,1024], index: 1, kind: input, shape index: {}]   ;;  %s19550_s2 = inlined_call_operand.vmem [shape: f32[1,1024], index: 2, kind: input, shape index: {}]   ;;  %s19551_s3 = inlined_call_operand.vmem [shape: bf16[1024,512], index: 3, kind: input, shape index: {}]   ;;  %s19552_s4 = inlined_call_operand.vmem [shape: f32[1,512], index: 4, kind: input, shape index: {}]   ;;  %s19553_s5 = inlined_call_operand.vmem [shape: bf16[512,256], index: 5, kind: input, shape index: {}]   ;;  %s19554_s6 = inlined_call_operand.vmem [shape: f32[1,256], index: 6, kind: input, shape index: {}]   ;;  %s19555_s7 = inlined_call_operand.vmem [shape: bf16[256,128], index: 7, kind: input, shape index: {}]   ;;  %s19556_s8 = inlined_call_operand.vmem [shape: f32[1,128], index: 8, kind: input, shape index: {}]   ;;  %s19557_s9 = inlined_call_operand.vmem [shape: bf16[512,256], index: 9, kind: input, shape index: {}]   ;;  %s19558_s10 = inlined_call_operand.vmem [shape: f32[1,256], index: 10, kind: input, shape index: {}]   ;;  %s19559_s11 = inlined_call_operand.vmem [shape: bf16[256,512], index: 11, kind: input, shape index: {}]   ;;  %s19560_s12 = inlined_call_operand.vmem [shape: f32[1,512], index: 12, kind: input, shape index: {}]   ;;  %s19561_s13 = inlined_call_operand.vmem [shape: bf16[128,256], index: 13, kind: input, shape index: {}]   ;;  %s19562_s14 = inlined_call_operand.vmem [shape: f32[1,256], index: 14, kind: input, shape index: {}]   ;;  %s19563_s15 = inlined_call_operand.vmem [shape: bf16[256,512], index: 15, kind: input, shape index: {}]   ;;  %s19564_s16 = inlined_call_operand.vmem [shape: f32[1,512], index: 16, kind: input, shape index: {}]   ;;  %s19565_s17 = inlined_call_operand.vmem [shape: bf16[512,1024], index: 17, kind: input, shape index: {}]   ;;  %s19566_s18 = inlined_call_operand.vmem [shape: f32[1,1024], index: 18, kind: input, shape index: {}]   ;;  %s19567_s19 = inlined_call_operand.vmem [shape: bf16[1024,256], index: 19, kind: input, shape index: {}]   ;;  %s19568_s20 = inlined_call_operand.vmem [shape: f32[1,256], index: 20, kind: input, shape index: {}]   ;;  %s19569_s21 = inlined_call_operand.vmem [shape: f32[128,256], index: 21, kind: output, shape index: {}]  }
   0x1   :  { %19574 = sst [smem:[#allocation11_spill]] %s19548_s0 }
   0x2   :  { %19575 = sst [smem:[#allocation12_spill]] %s19549_s1 }
   0x3   :  { %19576 = sst [smem:[#allocation13_spill]] %s19550_s2  ;;  %s15082_s2 = smov 0  }
   0x4   :  { %19577 = sst [smem:[#allocation14_spill]] %s19551_s3 }
   0x5   :  { %19578 = sst [smem:[#allocation15_spill]] %s19552_s4 }
   0x6   :  { %19579 = sst [smem:[#allocation16_spill]] %s19553_s5 }
   0x7 LB: > { %19580 = sst [smem:[#allocation10_spill]] %s14969_s2  ;;  %s12121_s25 = sadd.s32 4294967295, %s14969_s2   ;;  %s14969_s2 = sphi %s15082_s2, %s31_s2  }
   0x8   : > { %p12125_p0 = scmp.ge.s32.totalorder %s14969_s2, 1  ;;  %p589_p1 = scmp.lt.s32.totalorder %s14969_s2, 3 }
   0xa   : > { %p590_p2 = pnand %p12125_p0, %p589_p1 }
   0xb   : > { %s19581_s3 = sld [smem:[#allocation12_spill]] (!%p590_p2)  ;;  %s12126_s26 = sshll.u32 (!%p590_p2), %s12121_s25, 3 }
   0xc   : > { %593 = sbr.rel (%p590_p2) target bundleno = 2631 (0xa47), region = 104  ;;  %p652_p3 = scmp.lt.s32.totalorder (!%p590_p2), %s12126_s26, 15 }
   0xd   : > { %s19582_s24 = sld [smem:[#allocation11_spill]] (!%p590_p2) }
   0xe   : > { %s19583_s30 = sld [smem:[#allocation14_spill]] (!%p590_p2) }
   0xf   : > { %s19584_s5 = sld [smem:[#allocation13_spill]] (!%p590_p2) }
  0x10   : > { %s19586_s22 = sld [smem:[#allocation15_spill]] (!%p590_p2) }
  0x11   : > { %v730_v0 = vld [vmem:[%s19581_s3 + $0x1c0] sm:$0xff]  ;;  %v731_v2 = vld [vmem:[%s19581_s3 + $0x1c8] sm:$0xff]  ;;  %s19589_s26 = smov (!%p652_p3, %s12126_s26), 15 }
  0x12   : > { %v734_v1 = vld [vmem:[%s19581_s3 + $0x1e0] sm:$0xff]  ;;  %v735_v4 = vld [vmem:[%s19581_s3 + $0x1e8] sm:$0xff]  ;;  %s13498_s27 = sshll.u32 %s19589_s26, 3  ;;  %s13499_s28 = sshll.u32 %s19589_s26, 4 }
  0x13   : > { %v12197_v3 = vcombine.high %v730_v0, %v734_v1  ;;  %v12196_v5 = vcombine.low %v730_v0, %v734_v1  ;;  %v722_v6 = vld [vmem:[%s19581_s3 + $0x180] sm:$0xff]  ;;  %v12199_v8 = vcombine.high %v731_v2, %v735_v4  ;;  %v12198_v9 = vcombine.low %v731_v2, %v735_v4  ;;  %v723_v11 = vld [vmem:[%s19581_s3 + $0x188] sm:$0xff]  ;;  %s15182_s2 = scalar_lea.vmem %s19582_s24, %s13498_s27  ;;  %s19585_s27 = sld [smem:[#allocation16_spill]] }
  0x14   : > { %v726_v7 = vld [vmem:[%s19581_s3 + $0x1a0] sm:$0xff]  ;;  %v727_v12 = vld [vmem:[%s19581_s3 + $0x1a8] sm:$0xff]  ;;  %s19517_s0 = scalar_lea.vmem %s19569_s21, %s13499_s28 }
  0x15   : > { %v12189_v10 = vcombine.high %v722_v6, %v726_v7  ;;  %v714_v13 = vld [vmem:[%s19581_s3 + $0x140] sm:$0xff]  ;;  %1524 = vmatprep.subr.bf16.mxu0 %v12197_v3  ;;  %v12191_v14 = vcombine.high %v723_v11, %v727_v12  ;;  %v715_v16 = vld [vmem:[%s19581_s3 + $0x148] sm:$0xff]  ;;  %1597 = vmatprep.subr.bf16.mxu1 %v12199_v8  ;;  %v12188_v18 = vcombine.low %v722_v6, %v726_v7 }
  0x16   : > { %v718_v15 = vld [vmem:[%s19581_s3 + $0x160] sm:$0xff]  ;;  %v719_v17 = vld [vmem:[%s19581_s3 + $0x168] sm:$0xff]  ;;  %1525 = vmatpush1.bf16.msra.mxu0 %v12196_v5  ;;  %1598 = vmatpush1.bf16.msra.mxu1 %v12198_v9  ;;  %v12190_v19 = vcombine.low %v723_v11, %v727_v12 }
  0x17   : > { %1526 = vmatprep.subr.bf16.mxu0 %v12189_v10  ;;  %v12181_v20 = vcombine.high %v714_v13, %v718_v15  ;;  %1599 = vmatprep.subr.bf16.mxu1 %v12191_v14  ;;  %v12183_v21 = vcombine.high %v715_v16, %v719_v17  ;;  %v706_v22 = vld [vmem:[%s19581_s3 + $0x100] sm:$0xff]  ;;  %v707_v24 = vld [vmem:[%s19581_s3 + $0x108] sm:$0xff]  ;;  %v12180_v26 = vcombine.low %v714_v13, %v718_v15 }
  0x18   : > { %v710_v23 = vld [vmem:[%s19581_s3 + $0x120] sm:$0xff]  ;;  %v711_v25 = vld [vmem:[%s19581_s3 + $0x128] sm:$0xff]  ;;  %v12182_v27 = vcombine.low %v715_v16, %v719_v17 }
  0x19   : > { %v12173_v28 = vcombine.high %v706_v22, %v710_v23  ;;  %v12175_v29 = vcombine.high %v707_v24, %v711_v25  ;;  %v698_v30 = vld [vmem:[%s19581_s3 + $0xc0] sm:$0xff]  ;;  %v699_v32 = vld [vmem:[%s19581_s3 + $0xc8] sm:$0xff]  ;;  %v12172_v34 = vcombine.low %v706_v22, %v710_v23  ;;  %v12174_v35 = vcombine.low %v707_v24, %v711_v25 }
  0x1a   : > { %1527 = vmatpush1.bf16.msra.mxu0 %v12188_v18  ;;  %1600 = vmatpush1.bf16.msra.mxu1 %v12190_v19  ;;  %v702_v31 = vld [vmem:[%s19581_s3 + $0xe0] sm:$0xff]  ;;  %v703_v33 = vld [vmem:[%s19581_s3 + $0xe8] sm:$0xff] }
  0x1b   : > { %1528 = vmatprep.subr.bf16.mxu0 %v12181_v20  ;;  %1601 = vmatprep.subr.bf16.mxu1 %v12183_v21  ;;  %v12165_v36 = vcombine.high %v698_v30, %v702_v31  ;;  %v12167_v37 = vcombine.high %v699_v32, %v703_v33  ;;  %v690_v38 = vld [vmem:[%s19581_s3 + $0x80] sm:$0xff]  ;;  %v691_v40 = vld [vmem:[%s19581_s3 + $0x88] sm:$0xff]  ;;  %v12164_v42 = vcombine.low %v698_v30, %v702_v31 }
  0x1c   : > { %v694_v39 = vld [vmem:[%s19581_s3 + $0xa0] sm:$0xff]  ;;  %v695_v41 = vld [vmem:[%s19581_s3 + $0xa8] sm:$0xff]  ;;  %v12166_v43 = vcombine.low %v699_v32, %v703_v33 }
  0x1d   : > { %v12157_v44 = vcombine.high %v690_v38, %v694_v39  ;;  %v12159_v45 = vcombine.high %v691_v40, %v695_v41  ;;  %v682_v46 = vld [vmem:[%s19581_s3 + $0x40] sm:$0xff]  ;;  %v683_v48 = vld [vmem:[%s19581_s3 + $0x48] sm:$0xff]  ;;  %v12156_v50 = vcombine.low %v690_v38, %v694_v39  ;;  %v12158_v51 = vcombine.low %v691_v40, %v695_v41 }
  0x1e   : > { %1529 = vmatpush1.bf16.msra.mxu0 %v12180_v26  ;;  %1602 = vmatpush1.bf16.msra.mxu1 %v12182_v27  ;;  %v686_v47 = vld [vmem:[%s19581_s3 + $0x60] sm:$0xff]  ;;  %v687_v49 = vld [vmem:[%s19581_s3 + $0x68] sm:$0xff] }
  0x1f   : > { %1530 = vmatprep.subr.bf16.mxu0 %v12173_v28  ;;  %1603 = vmatprep.subr.bf16.mxu1 %v12175_v29  ;;  %v12149_v52 = vcombine.high %v682_v46, %v686_v47  ;;  %v12151_v53 = vcombine.high %v683_v48, %v687_v49  ;;  %v674_v54 = vld [vmem:[%s19581_s3] sm:$0xff]  ;;  %v675_v57 = vld [vmem:[%s19581_s3 + $0x8] sm:$0xff]  ;;  %v12148_v59 = vcombine.low %v682_v46, %v686_v47 }
  0x20   : > { %v678_v55 = vld [vmem:[%s19581_s3 + $0x20] sm:$0xff]  ;;  %v679_v58 = vld [vmem:[%s19581_s3 + $0x28] sm:$0xff]  ;;  %v12150_v60 = vcombine.low %v683_v48, %v687_v49 }
  0x21   : > { %v15191_v56 = vld [vmem:[%s15182_s2 + $0x4] ss:$8 sps:$4 sm:$0xff]   ;;  %v12141_v61 = vcombine.high %v674_v54, %v678_v55  ;;  %v12143_v62 = vcombine.high %v675_v57, %v679_v58  ;;  %v12140_v3 = vcombine.low %v674_v54, %v678_v55  ;;  %v12142_v4 = vcombine.low %v675_v57, %v679_v58 }
  0x22   : > { %1531 = vmatpush1.bf16.msra.mxu0 %v12172_v34  ;;  %1604 = vmatpush1.bf16.msra.mxu1 %v12174_v35  ;;  %v794_v63 = vld [vmem:[%s19581_s3 + $0x3c0] sm:$0xff]  ;;  %v795_v1 = vld [vmem:[%s19581_s3 + $0x3c8] sm:$0xff] }
  0x23   : > { %1532 = vmatprep.subr.bf16.mxu0 %v12165_v36  ;;  %1605 = vmatprep.subr.bf16.mxu1 %v12167_v37  ;;  %v798_v0 = vld [vmem:[%s19581_s3 + $0x3e0] sm:$0xff]  ;;  %v799_v2 = vld [vmem:[%s19581_s3 + $0x3e8] sm:$0xff] }
  0x24   : > { %1556 = vmatprep.mubr.bf16.mxu0 %v15191_v56  ;;  %1629 = vmatprep.mubr.bf16.mxu1 %v15191_v56  ;;  %v12261_v5 = vcombine.high %v794_v63, %v798_v0  ;;  %v12263_v6 = vcombine.high %v795_v1, %v799_v2  ;;  %v786_v7 = vld [vmem:[%s19581_s3 + $0x380] sm:$0xff]  ;;  %v787_v9 = vld [vmem:[%s19581_s3 + $0x388] sm:$0xff]  ;;  %v12260_v11 = vcombine.low %v794_v63, %v798_v0  ;;  %v732_v0 = vld [vmem:[%s19581_s3 + $0x1d0] sm:$0xff] }
  0x25   : > { %v790_v8 = vld [vmem:[%s19581_s3 + $0x3a0] sm:$0xff]  ;;  %v791_v10 = vld [vmem:[%s19581_s3 + $0x3a8] sm:$0xff]  ;;  %v12262_v12 = vcombine.low %v795_v1, %v799_v2  ;;  %v736_v1 = vld [vmem:[%s19581_s3 + $0x1f0] sm:$0xff] }
  0x26   : > { %1533 = vmatpush1.bf16.msra.mxu0 %v12164_v42  ;;  %1606 = vmatpush1.bf16.msra.mxu1 %v12166_v43  ;;  %v12253_v13 = vcombine.high %v786_v7, %v790_v8  ;;  %v12255_v14 = vcombine.high %v787_v9, %v791_v10  ;;  %v778_v15 = vld [vmem:[%s19581_s3 + $0x340] sm:$0xff]  ;;  %v779_v17 = vld [vmem:[%s19581_s3 + $0x348] sm:$0xff]  ;;  %v12252_v19 = vcombine.low %v786_v7, %v790_v8  ;;  %v733_v2 = vld [vmem:[%s19581_s3 + $0x1d8] sm:$0xff] }
  0x27   : > { %1534 = vmatprep.subr.bf16.mxu0 %v12157_v44  ;;  %1607 = vmatprep.subr.bf16.mxu1 %v12159_v45  ;;  %v782_v16 = vld [vmem:[%s19581_s3 + $0x360] sm:$0xff]  ;;  %v783_v18 = vld [vmem:[%s19581_s3 + $0x368] sm:$0xff]  ;;  %v12254_v20 = vcombine.low %v787_v9, %v791_v10  ;;  %v12201_v7 = vcombine.high %v732_v0, %v736_v1  ;;  %v724_v9 = vld [vmem:[%s19581_s3 + $0x190] sm:$0xff] }
  0x28   : > { %v12245_v21 = vcombine.high %v778_v15, %v782_v16  ;;  %v12247_v22 = vcombine.high %v779_v17, %v783_v18  ;;  %v770_v23 = vld [vmem:[%s19581_s3 + $0x300] sm:$0xff]  ;;  %v771_v25 = vld [vmem:[%s19581_s3 + $0x308] sm:$0xff]  ;;  %v12244_v27 = vcombine.low %v778_v15, %v782_v16  ;;  %v12246_v28 = vcombine.low %v779_v17, %v783_v18  ;;  %v728_v10 = vld [vmem:[%s19581_s3 + $0x1b0] sm:$0xff] }
  0x29   : > { %v774_v24 = vld [vmem:[%s19581_s3 + $0x320] sm:$0xff]  ;;  %v775_v26 = vld [vmem:[%s19581_s3 + $0x328] sm:$0xff]  ;;  %v12193_v15 = vcombine.high %v724_v9, %v728_v10  ;;  %v716_v16 = vld [vmem:[%s19581_s3 + $0x150] sm:$0xff] }
  0x2a   : > { %1535 = vmatpush1.bf16.msra.mxu0 %v12156_v50  ;;  %1608 = vmatpush1.bf16.msra.mxu1 %v12158_v51  ;;  %v12237_v29 = vcombine.high %v770_v23, %v774_v24  ;;  %v12239_v30 = vcombine.high %v771_v25, %v775_v26  ;;  %v762_v31 = vld [vmem:[%s19581_s3 + $0x2c0] sm:$0xff]  ;;  %v763_v33 = vld [vmem:[%s19581_s3 + $0x2c8] sm:$0xff]  ;;  %v12236_v35 = vcombine.low %v770_v23, %v774_v24  ;;  %v720_v18 = vld [vmem:[%s19581_s3 + $0x170] sm:$0xff] }
  0x2b   : > { %1536 = vmatprep.subr.bf16.mxu0 %v12149_v52  ;;  %1609 = vmatprep.subr.bf16.mxu1 %v12151_v53  ;;  %v766_v32 = vld [vmem:[%s19581_s3 + $0x2e0] sm:$0xff]  ;;  %v767_v34 = vld [vmem:[%s19581_s3 + $0x2e8] sm:$0xff]  ;;  %v12238_v36 = vcombine.low %v771_v25, %v775_v26  ;;  %v12185_v24 = vcombine.high %v716_v16, %v720_v18  ;;  %v708_v25 = vld [vmem:[%s19581_s3 + $0x110] sm:$0xff] }
  0x2c   : > { %v12229_v37 = vcombine.high %v762_v31, %v766_v32  ;;  %v12231_v38 = vcombine.high %v763_v33, %v767_v34  ;;  %v754_v39 = vld [vmem:[%s19581_s3 + $0x280] sm:$0xff]  ;;  %v755_v41 = vld [vmem:[%s19581_s3 + $0x288] sm:$0xff]  ;;  %v12228_v43 = vcombine.low %v762_v31, %v766_v32  ;;  %v12230_v44 = vcombine.low %v763_v33, %v767_v34  ;;  %v700_v34 = vld [vmem:[%s19581_s3 + $0xd0] sm:$0xff] }
  0x2d   : > { %v758_v40 = vld [vmem:[%s19581_s3 + $0x2a0] sm:$0xff]  ;;  %v759_v42 = vld [vmem:[%s19581_s3 + $0x2a8] sm:$0xff]  ;;  %v12184_v31 = vcombine.low %v716_v16, %v720_v18  ;;  %v789_v18 = vld [vmem:[%s19581_s3 + $0x398] sm:$0xff] }
  0x2e   : > { %1537 = vmatpush1.bf16.msra.mxu0 %v12148_v59  ;;  %1610 = vmatpush1.bf16.msra.mxu1 %v12150_v60  ;;  %v12221_v45 = vcombine.high %v754_v39, %v758_v40  ;;  %v12223_v46 = vcombine.high %v755_v41, %v759_v42  ;;  %v746_v47 = vld [vmem:[%s19581_s3 + $0x240] sm:$0xff]  ;;  %v747_v49 = vld [vmem:[%s19581_s3 + $0x248] sm:$0xff]  ;;  %v12220_v51 = vcombine.low %v754_v39, %v758_v40  ;;  %v705_v39 = vld [vmem:[%s19581_s3 + $0xf8] sm:$0xff] }
  0x2f   : > { %1538 = vmatprep.subr.bf16.mxu0 %v12141_v61  ;;  %1611 = vmatprep.subr.bf16.mxu1 %v12143_v62  ;;  %v750_v48 = vld [vmem:[%s19581_s3 + $0x260] sm:$0xff]  ;;  %v751_v50 = vld [vmem:[%s19581_s3 + $0x268] sm:$0xff]  ;;  %v12222_v52 = vcombine.low %v755_v41, %v759_v42 }
  0x30   : > { %v12213_v53 = vcombine.high %v746_v47, %v750_v48  ;;  %v12215_v54 = vcombine.high %v747_v49, %v751_v50  ;;  %v738_v55 = vld [vmem:[%s19581_s3 + $0x200] sm:$0xff]  ;;  %v739_v58 = vld [vmem:[%s19581_s3 + $0x208] sm:$0xff]  ;;  %v12212_v60 = vcombine.low %v746_v47, %v750_v48  ;;  %v12214_v61 = vcombine.low %v747_v49, %v751_v50  ;;  %v697_v47 = vld [vmem:[%s19581_s3 + $0xb8] sm:$0xff] }
  0x31   : > { %v742_v57 = vld [vmem:[%s19581_s3 + $0x220] sm:$0xff]  ;;  %v743_v59 = vld [vmem:[%s19581_s3 + $0x228] sm:$0xff]  ;;  %v684_v50 = vld [vmem:[%s19581_s3 + $0x50] sm:$0xff] }
  0x32   : > { %1539 = vmatpush1.bf16.msra.mxu0 %v12140_v3  ;;  %1612 = vmatpush1.bf16.msra.mxu1 %v12142_v4  ;;  %v12205_v62 = vcombine.high %v738_v55, %v742_v57  ;;  %v12207_v63 = vcombine.high %v739_v58, %v743_v59  ;;  %v737_v3 = vld [vmem:[%s19581_s3 + $0x1f8] sm:$0xff]  ;;  %v12204_v4 = vcombine.low %v738_v55, %v742_v57  ;;  %v15389_v48 = vld [vmem:[%s15182_s2 + $0x20] ss:$8 sps:$4 sm:$0xff]  }
  0x33   : > { %1540 = vmatprep.subr.bf16.mxu0 %v12261_v5  ;;  %1613 = vmatprep.subr.bf16.mxu1 %v12263_v6  ;;  %v12206_v5 = vcombine.low %v739_v58, %v743_v59  ;;  %v15310_v6 = vld [vmem:[%s15182_s2] ss:$8 sps:$4 sm:$0xff]   ;;  %v12203_v8 = vcombine.high %v733_v2, %v737_v3  ;;  %v685_v55 = vld [vmem:[%s19581_s3 + $0x58] sm:$0xff] }
  0x34   : > { %v689_v57 = vld [vmem:[%s19581_s3 + $0x78] sm:$0xff] }
  0x35   : > { %v15405_v58 = vld [vmem:[%s15182_s2 + $0x34] ss:$8 sps:$4 sm:$0xff]  }
  0x36   : > { %1541 = vmatpush2.bf16.msra.mxu0 %v12260_v11  ;;  %1614 = vmatpush2.bf16.msra.mxu1 %v12262_v12  ;;  %v725_v11 = vld [vmem:[%s19581_s3 + $0x198] sm:$0xff] }
  0x37   : > { %1542 = vmatprep.subr.bf16.mxu0 %v12253_v13  ;;  %1615 = vmatprep.subr.bf16.mxu1 %v12255_v14  ;;  %v729_v12 = vld [vmem:[%s19581_s3 + $0x1b8] sm:$0xff]  ;;  %v12200_v13 = vcombine.low %v732_v0, %v736_v1  ;;  %v12202_v14 = vcombine.low %v733_v2, %v737_v3  ;;  %v12155_v3 = vcombine.high %v685_v55, %v689_v57 }
  0x38   : > { %v12195_v17 = vcombine.high %v725_v11, %v729_v12  ;;  %v12194_v23 = vcombine.low %v725_v11, %v729_v12  ;;  %v677_v0 = vld [vmem:[%s19581_s3 + $0x18] sm:$0xff] }
  0x39   : > { %v681_v1 = vld [vmem:[%s19581_s3 + $0x38] sm:$0xff] }
  0x3a   : > { %1543 = vmatpush2.bf16.msra.mxu0 %v12252_v19  ;;  %1616 = vmatpush2.bf16.msra.mxu1 %v12254_v20  ;;  %v15331_v19 = vld [vmem:[%s15182_s2 + $0x14] ss:$8 sps:$4 sm:$0xff]   ;;  %v15422_v2 = vld [vmem:[%s15182_s2 + $0x30] ss:$8 sps:$4 sm:$0xff]   ;;  %v12147_v12 = vcombine.high %v677_v0, %v681_v1  ;;  %v12146_v16 = vcombine.low %v677_v0, %v681_v1 }
  0x3b   : > { %1544 = vmatprep.subr.bf16.mxu0 %v12245_v21  ;;  %1617 = vmatprep.subr.bf16.mxu1 %v12247_v22  ;;  %v717_v20 = vld [vmem:[%s19581_s3 + $0x158] sm:$0xff]  ;;  %v12192_v22 = vcombine.low %v724_v9, %v728_v10 }
  0x3c   : > { %v721_v21 = vld [vmem:[%s19581_s3 + $0x178] sm:$0xff] }
  0x3d   : > { %v12187_v26 = vcombine.high %v717_v20, %v721_v21  ;;  %v12186_v32 = vcombine.low %v717_v20, %v721_v21  ;;  %v797_v10 = vld [vmem:[%s19581_s3 + $0x3d8] sm:$0xff] }
  0x3e   : > { %1545 = vmatpush2.bf16.msra.mxu0 %v12244_v27  ;;  %1618 = vmatpush2.bf16.msra.mxu1 %v12246_v28  ;;  %v712_v27 = vld [vmem:[%s19581_s3 + $0x130] sm:$0xff]  ;;  %v709_v28 = vld [vmem:[%s19581_s3 + $0x118] sm:$0xff] }
  0x3f   : > { %1546 = vmatprep.subr.bf16.mxu0 %v12237_v29  ;;  %1619 = vmatprep.subr.bf16.mxu1 %v12239_v30  ;;  %v713_v29 = vld [vmem:[%s19581_s3 + $0x138] sm:$0xff]  ;;  %v12177_v33 = vcombine.high %v708_v25, %v712_v27  ;;  %v12176_v40 = vcombine.low %v708_v25, %v712_v27 }
  0x40   : > { %v15355_v30 = vld [vmem:[%s15182_s2 + $0x10] ss:$8 sps:$4 sm:$0xff]   ;;  %v12178_v41 = vcombine.low %v709_v28, %v713_v29 }
  0x41   : > { %v801_v11 = vld [vmem:[%s19581_s3 + $0x3f8] sm:$0xff] }
  0x42   : > { %1547 = vmatpush2.bf16.msra.mxu0 %v12236_v35  ;;  %1620 = vmatpush2.bf16.msra.mxu1 %v12238_v36  ;;  %v12179_v35 = vcombine.high %v709_v28, %v713_v29  ;;  %v704_v36 = vld [vmem:[%s19581_s3 + $0xf0] sm:$0xff]  ;;  %v793_v20 = vld [vmem:[%s19581_s3 + $0x3b8] sm:$0xff]  ;;  %v12267_v21 = vcombine.high %v797_v10, %v801_v11  ;;  %v12266_v25 = vcombine.low %v797_v10, %v801_v11 }
  0x43   : > { %1548 = vmatprep.subr.bf16.mxu0 %v12229_v37  ;;  %1621 = vmatprep.subr.bf16.mxu1 %v12231_v38  ;;  %v15365_v37 = vld [vmem:[%s15182_s2 + $0x24] ss:$8 sps:$4 sm:$0xff]   ;;  %v701_v38 = vld [vmem:[%s19581_s3 + $0xd8] sm:$0xff]  ;;  %v12169_v42 = vcombine.high %v700_v34, %v704_v36  ;;  %v12168_v49 = vcombine.low %v700_v34, %v704_v36  ;;  %v12259_v28 = vcombine.high %v789_v18, %v793_v20 }
  0x44   : > { %v781_v27 = vld [vmem:[%s19581_s3 + $0x358] sm:$0xff] }
  0x45   : > { %v777_v36 = vld [vmem:[%s19581_s3 + $0x338] sm:$0xff] }
  0x46   : > { %1549 = vmatpush2.bf16.msra.mxu0 %v12228_v43  ;;  %1622 = vmatpush2.bf16.msra.mxu1 %v12230_v44  ;;  %v692_v43 = vld [vmem:[%s19581_s3 + $0x90] sm:$0xff]  ;;  %v12171_v44 = vcombine.high %v701_v38, %v705_v39  ;;  %v753_v0 = vld [vmem:[%s19581_s3 + $0x278] sm:$0xff] }
  0x47   : > { %1550 = vmatprep.subr.bf16.mxu0 %v12221_v45  ;;  %1623 = vmatprep.subr.bf16.mxu1 %v12223_v46  ;;  %v696_v45 = vld [vmem:[%s19581_s3 + $0xb0] sm:$0xff]  ;;  %v693_v46 = vld [vmem:[%s19581_s3 + $0x98] sm:$0xff] }
  0x48   : > { %v12160_v59 = vcombine.low %v692_v43, %v696_v45  ;;  %v745_v10 = vld [vmem:[%s19581_s3 + $0x238] sm:$0xff] }
  0x4a   : > { %1551 = vmatpush2.bf16.msra.mxu0 %v12220_v51  ;;  %1624 = vmatpush2.bf16.msra.mxu1 %v12222_v52  ;;  %v12170_v51 = vcombine.low %v701_v38, %v705_v39  ;;  %v12161_v52 = vcombine.high %v692_v43, %v696_v45  ;;  %v769_v45 = vld [vmem:[%s19581_s3 + $0x2f8] sm:$0xff] }
  0x4b   : > { %1552 = vmatprep.subr.bf16.mxu0 %v12213_v53  ;;  %1625 = vmatprep.subr.bf16.mxu1 %v12215_v54  ;;  %v688_v53 = vld [vmem:[%s19581_s3 + $0x70] sm:$0xff]  ;;  %v12163_v54 = vcombine.high %v693_v46, %v697_v47 }
  0x4e   : > { %1553 = vmatpush2.bf16.msra.mxu0 %v12212_v60  ;;  %1626 = vmatpush2.bf16.msra.mxu1 %v12214_v61  ;;  %v676_v60 = vld [vmem:[%s19581_s3 + $0x10] sm:$0xff] }
  0x4f   : > { %1554 = vmatprep.subr.bf16.mxu0 %v12205_v62  ;;  %1627 = vmatprep.subr.bf16.mxu1 %v12207_v63  ;;  %v680_v61 = vld [vmem:[%s19581_s3 + $0x30] sm:$0xff]  ;;  %v12162_v62 = vcombine.low %v693_v46, %v697_v47  ;;  %v12153_v63 = vcombine.high %v684_v50, %v688_v53 }
  0x50   : > { %v12145_v9 = vcombine.high %v676_v60, %v680_v61 }
  0x52   : > { %1555 = vmatpush2.bf16.msra.mxu0 %v12204_v4  ;;  %1628 = vmatpush2.bf16.msra.mxu1 %v12206_v5  ;;  %v12152_v4 = vcombine.low %v684_v50, %v688_v53  ;;  %v796_v5 = vld [vmem:[%s19581_s3 + $0x3d0] sm:$0xff]  ;;  %v757_v53 = vld [vmem:[%s19581_s3 + $0x298] sm:$0xff] }
  0x53   : > { %1670 = vmatprep.subr.bf16.mxu0 %v12201_v7  ;;  %1743 = vmatprep.subr.bf16.mxu1 %v12203_v8  ;;  %v800_v7 = vld [vmem:[%s19581_s3 + $0x3f0] sm:$0xff]  ;;  %v12154_v8 = vcombine.low %v685_v55, %v689_v57 }
  0x54   : > { %v760_v50 = vld [vmem:[%s19581_s3 + $0x2b0] sm:$0xff] }
  0x55   : > { %1557 = vmatmul.mubr.bf16.vlgmr.msra.gmra.mxu0 %v15310_v6  ;;  %1630 = vmatmul.mubr.bf16.vlgmr.msra.gmra.mxu1 %v15310_v6 }
  0x56   : > { %1671 = vmatpush1.bf16.msra.mxu0 %v12200_v13  ;;  %1744 = vmatpush1.bf16.msra.mxu1 %v12202_v14  ;;  %v12144_v13 = vcombine.low %v676_v60, %v680_v61  ;;  %v788_v14 = vld [vmem:[%s19581_s3 + $0x390] sm:$0xff] }
  0x57   : > { %1672 = vmatprep.subr.bf16.mxu0 %v12193_v15  ;;  %1745 = vmatprep.subr.bf16.mxu1 %v12195_v17  ;;  %v792_v15 = vld [vmem:[%s19581_s3 + $0x3b0] sm:$0xff]  ;;  %v12265_v17 = vcombine.high %v796_v5, %v800_v7 }
  0x58   : > { %1566 = vmatprep.mubr.bf16.mxu0 %v15331_v19  ;;  %1639 = vmatprep.mubr.bf16.mxu1 %v15331_v19  ;;  %v12256_v29 = vcombine.low %v788_v14, %v792_v15  ;;  %v752_v60 = vld [vmem:[%s19581_s3 + $0x270] sm:$0xff] }
  0x5a   : > { %1673 = vmatpush1.bf16.msra.mxu0 %v12192_v22  ;;  %1746 = vmatpush1.bf16.msra.mxu1 %v12194_v23  ;;  %v12264_v22 = vcombine.low %v796_v5, %v800_v7  ;;  %v780_v23 = vld [vmem:[%s19581_s3 + $0x350] sm:$0xff] }
  0x5b   : > { %1674 = vmatprep.subr.bf16.mxu0 %v12185_v24  ;;  %1747 = vmatprep.subr.bf16.mxu1 %v12187_v26  ;;  %v784_v24 = vld [vmem:[%s19581_s3 + $0x370] sm:$0xff]  ;;  %v12257_v26 = vcombine.high %v788_v14, %v792_v15 }
  0x5c   : > { %v12249_v34 = vcombine.high %v780_v23, %v784_v24  ;;  %v12248_v39 = vcombine.low %v780_v23, %v784_v24  ;;  %v744_v5 = vld [vmem:[%s19581_s3 + $0x230] sm:$0xff] }
  0x5d   : > { %1567 = vmatmul.mubr.bf16.gmra.mxu0 %v15355_v30  ;;  %1640 = vmatmul.mubr.bf16.gmra.mxu1 %v15355_v30  ;;  %v13880_v23 = vld [vmem:[%s19583_s30 + $0xc4] ss:$16 sps:$4 sm:$0xff]   ;;  %v13878_v24 = vld [vmem:[%s19583_s30 + $0xc0] ss:$16 sps:$4 sm:$0xff]  }
  0x5e   : > { %1675 = vmatpush1.bf16.msra.mxu0 %v12184_v31  ;;  %1748 = vmatpush1.bf16.msra.mxu1 %v12186_v32  ;;  %v772_v31 = vld [vmem:[%s19581_s3 + $0x310] sm:$0xff] }
  0x5f   : > { %1676 = vmatprep.subr.bf16.mxu0 %v12177_v33  ;;  %1749 = vmatprep.subr.bf16.mxu1 %v12179_v35  ;;  %v776_v32 = vld [vmem:[%s19581_s3 + $0x330] sm:$0xff]  ;;  %v12258_v33 = vcombine.low %v789_v18, %v793_v20  ;;  %v773_v35 = vld [vmem:[%s19581_s3 + $0x318] sm:$0xff] }
  0x60   : > { %1576 = vmatprep.mubr.bf16.mxu0 %v15365_v37  ;;  %1649 = vmatprep.mubr.bf16.mxu1 %v15365_v37  ;;  %v12241_v43 = vcombine.high %v772_v31, %v776_v32  ;;  %v12243_v46 = vcombine.high %v773_v35, %v777_v36  ;;  %v12240_v47 = vcombine.low %v772_v31, %v776_v32  ;;  %v13877_v18 = vld [vmem:[%s19583_s30 + $0x2e4] ss:$16 sps:$4 sm:$0xff]   ;;  %v13893_v32 = vld [vmem:[%s19583_s30 + $0x280] ss:$16 sps:$4 sm:$0xff]  }
  0x61   : > { %v13895_v31 = vld [vmem:[%s19583_s30 + $0x284] ss:$16 sps:$4 sm:$0xff]  }
  0x62   : > { %1677 = vmatpush1.bf16.msra.mxu0 %v12176_v40  ;;  %1750 = vmatpush1.bf16.msra.mxu1 %v12178_v41  ;;  %v764_v40 = vld [vmem:[%s19581_s3 + $0x2d0] sm:$0xff] }
  0x63   : > { %1678 = vmatprep.subr.bf16.mxu0 %v12169_v42  ;;  %1751 = vmatprep.subr.bf16.mxu1 %v12171_v44  ;;  %v768_v41 = vld [vmem:[%s19581_s3 + $0x2f0] sm:$0xff]  ;;  %v765_v44 = vld [vmem:[%s19581_s3 + $0x2d8] sm:$0xff] }
  0x64   : > { %v12235_v55 = vcombine.high %v765_v44, %v769_v45  ;;  %v12232_v57 = vcombine.low %v764_v40, %v768_v41  ;;  %v12234_v61 = vcombine.low %v765_v44, %v769_v45  ;;  %v13919_v44 = vld [vmem:[%s19583_s30 + $0x204] ss:$16 sps:$4 sm:$0xff]   ;;  %v13917_v45 = vld [vmem:[%s19583_s30 + $0x200] ss:$16 sps:$4 sm:$0xff]  }
  0x65   : > { %1577 = vmatmul.mubr.bf16.gmra.mxu0 %v15389_v48  ;;  %1650 = vmatmul.mubr.bf16.gmra.mxu1 %v15389_v48 }
  0x66   : > { %1679 = vmatpush1.bf16.msra.mxu0 %v12168_v49  ;;  %1752 = vmatpush1.bf16.msra.mxu1 %v12170_v51  ;;  %v756_v49 = vld [vmem:[%s19581_s3 + $0x290] sm:$0xff]  ;;  %v12242_v51 = vcombine.low %v773_v35, %v777_v36 }
  0x67   : > { %1680 = vmatprep.subr.bf16.mxu0 %v12161_v52  ;;  %1753 = vmatprep.subr.bf16.mxu1 %v12163_v54  ;;  %v12233_v52 = vcombine.high %v764_v40, %v768_v41  ;;  %v761_v54 = vld [vmem:[%s19581_s3 + $0x2b8] sm:$0xff]  ;;  %v13899_v35 = vld [vmem:[%s19583_s30 + $0x260] ss:$16 sps:$4 sm:$0xff]   ;;  %v13910_v40 = vld [vmem:[%s19583_s30 + $0x24] ss:$16 sps:$4 sm:$0xff]  }
  0x68   : > { %1586 = vmatprep.mubr.bf16.mxu0 %v15405_v58  ;;  %1659 = vmatprep.mubr.bf16.mxu1 %v15405_v58  ;;  %v12227_v1 = vcombine.high %v757_v53, %v761_v54  ;;  %v12226_v7 = vcombine.low %v757_v53, %v761_v54  ;;  %v13902_v36 = vld [vmem:[%s19583_s30 + $0x40] ss:$16 sps:$4 sm:$0xff]   ;;  %v13913_v41 = vld [vmem:[%s19583_s30 + $0x224] ss:$16 sps:$4 sm:$0xff]  }
  0x69   : > { %v13929_v53 = vld [vmem:[%s19583_s30 + $0x3c0] ss:$16 sps:$4 sm:$0xff]   ;;  %v13934_v54 = vld [vmem:[%s19583_s30 + $0x1a4] ss:$16 sps:$4 sm:$0xff]  }
  0x6a   : > { %1681 = vmatpush1.bf16.msra.mxu0 %v12160_v59  ;;  %1754 = vmatpush1.bf16.msra.mxu1 %v12162_v62  ;;  %v748_v59 = vld [vmem:[%s19581_s3 + $0x250] sm:$0xff]  ;;  %v12225_v62 = vcombine.high %v756_v49, %v760_v50 }
  0x6b   : > { %1682 = vmatprep.subr.bf16.mxu0 %v12153_v63  ;;  %1755 = vmatprep.subr.bf16.mxu1 %v12155_v3  ;;  %v749_v63 = vld [vmem:[%s19581_s3 + $0x258] sm:$0xff]  ;;  %v12224_v3 = vcombine.low %v756_v49, %v760_v50  ;;  %v13923_v49 = vld [vmem:[%s19583_s30 + $0x3e0] ss:$16 sps:$4 sm:$0xff]   ;;  %v13928_v50 = vld [vmem:[%s19583_s30 + $0x1c4] ss:$16 sps:$4 sm:$0xff]  }
  0x6c   : > { %v12219_v11 = vcombine.high %v749_v63, %v753_v0 }
  0x6d   : > { %1587 = vmatmul.mubr.bf16.gmra.mxu0 %v15422_v2  ;;  %1660 = vmatmul.mubr.bf16.gmra.mxu1 %v15422_v2 }
  0x6e   : > { %1683 = vmatpush1.bf16.msra.mxu0 %v12152_v4  ;;  %1756 = vmatpush1.bf16.msra.mxu1 %v12154_v8  ;;  %v740_v4 = vld [vmem:[%s19581_s3 + $0x210] sm:$0xff]  ;;  %v12217_v8 = vcombine.high %v748_v59, %v752_v60 }
  0x6f   : > { %1684 = vmatprep.subr.bf16.mxu0 %v12145_v9  ;;  %1757 = vmatprep.subr.bf16.mxu1 %v12147_v12  ;;  %v741_v9 = vld [vmem:[%s19581_s3 + $0x218] sm:$0xff]  ;;  %v12216_v12 = vcombine.low %v748_v59, %v752_v60  ;;  %v12209_v14 = vcombine.high %v740_v4, %v744_v5  ;;  %v13935_v59 = vld [vmem:[%s19583_s30 + $0x3a0] ss:$16 sps:$4 sm:$0xff]   ;;  %v13940_v60 = vld [vmem:[%s19583_s30 + $0x184] ss:$16 sps:$4 sm:$0xff]  }
  0x70   : > { %1702 = vmatprep.mubr.bf16.mxu0 %v15191_v56  ;;  %1775 = vmatprep.mubr.bf16.mxu1 %v15191_v56  ;;  %v785_v56 = vld [vmem:[%s19581_s3 + $0x378] sm:$0xff]  ;;  %v12211_v15 = vcombine.high %v741_v9, %v745_v10  ;;  %v12210_v20 = vcombine.low %v741_v9, %v745_v10  ;;  %v13953_v9 = vld [vmem:[%s19583_s30 + $0x340] ss:$16 sps:$4 sm:$0xff]   ;;  %v13958_v10 = vld [vmem:[%s19583_s30 + $0x124] ss:$16 sps:$4 sm:$0xff]  }
  0x71   : > { %v12251_v38 = vcombine.high %v781_v27, %v785_v56  ;;  %v12250_v42 = vcombine.low %v781_v27, %v785_v56  ;;  %v13886_v27 = vld [vmem:[%s19583_s30 + $0xa4] ss:$16 sps:$4 sm:$0xff]  }
  0x72   : > { %1685 = vmatpush1.bf16.msra.mxu0 %v12144_v13  ;;  %1758 = vmatpush1.bf16.msra.mxu1 %v12146_v16  ;;  %v12218_v13 = vcombine.low %v749_v63, %v753_v0  ;;  %v13874_v16 = vld [vmem:[%s19583_s30 + $0xe4] ss:$16 sps:$4 sm:$0xff]   ;;  %v13941_v63 = vld [vmem:[%s19583_s30 + $0x380] ss:$16 sps:$4 sm:$0xff]  }
  0x73   : > { %1686 = vmatprep.subr.bf16.mxu0 %v12265_v17  ;;  %1759 = vmatprep.subr.bf16.mxu1 %v12267_v21  ;;  %v12208_v17 = vcombine.low %v740_v4, %v744_v5  ;;  %v13872_v21 = vld [vmem:[%s19583_s30 + $0xe0] ss:$16 sps:$4 sm:$0xff]   ;;  %v13889_v56 = vld [vmem:[%s19583_s30 + $0x2a4] ss:$16 sps:$4 sm:$0xff]  }
  0x74   : > { %v13946_v0 = vld [vmem:[%s19583_s30 + $0x164] ss:$16 sps:$4 sm:$0xff]   ;;  %v13947_v4 = vld [vmem:[%s19583_s30 + $0x360] ss:$16 sps:$4 sm:$0xff]  }
  0x75   : > { %v13952_v5 = vld [vmem:[%s19583_s30 + $0x144] ss:$16 sps:$4 sm:$0xff]  }
  0x76   : > { %1687 = vmatpush2.bf16.msra.mxu0 %v12264_v22  ;;  %1760 = vmatpush2.bf16.msra.mxu1 %v12266_v25  ;;  %v13875_v22 = vld [vmem:[%s19583_s30 + $0x2e0] ss:$16 sps:$4 sm:$0xff]   ;;  %v13883_v25 = vld [vmem:[%s19583_s30 + $0x2c4] ss:$16 sps:$4 sm:$0xff]  }
  0x77   : > { %1688 = vmatprep.subr.bf16.mxu0 %v12257_v26  ;;  %1761 = vmatprep.subr.bf16.mxu1 %v12259_v28  ;;  %v13881_v26 = vld [vmem:[%s19583_s30 + $0x2c0] ss:$16 sps:$4 sm:$0xff]  }
  0x78   : > { %v13887_v28 = vld [vmem:[%s19583_s30 + $0x2a0] ss:$16 sps:$4 sm:$0xff]  }
  0x7a   : > { %1689 = vmatpush2.bf16.msra.mxu0 %v12256_v29  ;;  %1762 = vmatpush2.bf16.msra.mxu1 %v12258_v33  ;;  %v13890_v29 = vld [vmem:[%s19583_s30 + $0x80] ss:$16 sps:$4 sm:$0xff]   ;;  %v13898_v33 = vld [vmem:[%s19583_s30 + $0x64] ss:$16 sps:$4 sm:$0xff]  }
  0x7b   : > { %1690 = vmatprep.subr.bf16.mxu0 %v12249_v34  ;;  %1763 = vmatprep.subr.bf16.mxu1 %v12251_v38  ;;  %v13901_v34 = vld [vmem:[%s19583_s30 + $0x264] ss:$16 sps:$4 sm:$0xff]  }
  0x7c   : > { %v13907_v38 = vld [vmem:[%s19583_s30 + $0x244] ss:$16 sps:$4 sm:$0xff]  }
  0x7e   : > { %1691 = vmatpush2.bf16.msra.mxu0 %v12248_v39  ;;  %1764 = vmatpush2.bf16.msra.mxu1 %v12250_v42  ;;  %v13905_v39 = vld [vmem:[%s19583_s30 + $0x240] ss:$16 sps:$4 sm:$0xff]  }
  0x7f   : > { %1692 = vmatprep.subr.bf16.mxu0 %v12241_v43  ;;  %1765 = vmatprep.subr.bf16.mxu1 %v12243_v46  ;;  %v13911_v42 = vld [vmem:[%s19583_s30 + $0x220] ss:$16 sps:$4 sm:$0xff]   ;;  %v13922_v46 = vld [vmem:[%s19583_s30 + $0x1e4] ss:$16 sps:$4 sm:$0xff]  }
  0x80   : > { %v13914_v43 = vld [vmem:[%s19583_s30] ss:$16 sps:$4 sm:$0xff]  }
  0x82   : > { %1693 = vmatpush2.bf16.msra.mxu0 %v12240_v47  ;;  %1766 = vmatpush2.bf16.msra.mxu1 %v12242_v51  ;;  %v13920_v47 = vld [vmem:[%s19583_s30 + $0x1e0] ss:$16 sps:$4 sm:$0xff]  }
  0x83   : > { %1694 = vmatprep.subr.bf16.mxu0 %v12233_v52  ;;  %1767 = vmatprep.subr.bf16.mxu1 %v12235_v55  ;;  %v13926_v51 = vld [vmem:[%s19583_s30 + $0x1c0] ss:$16 sps:$4 sm:$0xff]   ;;  %v13931_v52 = vld [vmem:[%s19583_s30 + $0x3c4] ss:$16 sps:$4 sm:$0xff]  }
  0x84   : > { %v13932_v55 = vld [vmem:[%s19583_s30 + $0x1a0] ss:$16 sps:$4 sm:$0xff]  }
  0x86   : > { %1695 = vmatpush2.bf16.msra.mxu0 %v12232_v57  ;;  %1768 = vmatpush2.bf16.msra.mxu1 %v12234_v61  ;;  %v13937_v57 = vld [vmem:[%s19583_s30 + $0x3a4] ss:$16 sps:$4 sm:$0xff]   ;;  %v13938_v61 = vld [vmem:[%s19583_s30 + $0x180] ss:$16 sps:$4 sm:$0xff]  }
  0x87   : > { %1696 = vmatprep.subr.bf16.mxu0 %v12225_v62  ;;  %1769 = vmatprep.subr.bf16.mxu1 %v12227_v1  ;;  %v13943_v62 = vld [vmem:[%s19583_s30 + $0x384] ss:$16 sps:$4 sm:$0xff]   ;;  %v13944_v1 = vld [vmem:[%s19583_s30 + $0x160] ss:$16 sps:$4 sm:$0xff]  }
  0x8a   : > { %1697 = vmatpush2.bf16.msra.mxu0 %v12224_v3  ;;  %1770 = vmatpush2.bf16.msra.mxu1 %v12226_v7  ;;  %v13949_v3 = vld [vmem:[%s19583_s30 + $0x364] ss:$16 sps:$4 sm:$0xff]   ;;  %v13950_v7 = vld [vmem:[%s19583_s30 + $0x140] ss:$16 sps:$4 sm:$0xff]  }
  0x8b   : > { %1698 = vmatprep.subr.bf16.mxu0 %v12217_v8  ;;  %1771 = vmatprep.subr.bf16.mxu1 %v12219_v11  ;;  %v13955_v8 = vld [vmem:[%s19583_s30 + $0x344] ss:$16 sps:$4 sm:$0xff]   ;;  %v13956_v11 = vld [vmem:[%s19583_s30 + $0x120] ss:$16 sps:$4 sm:$0xff]  }
  0x8e   : > { %1699 = vmatpush2.bf16.msra.mxu0 %v12216_v12  ;;  %1772 = vmatpush2.bf16.msra.mxu1 %v12218_v13  ;;  %v13961_v12 = vld [vmem:[%s19583_s30 + $0x324] ss:$16 sps:$4 sm:$0xff]   ;;  %v13959_v13 = vld [vmem:[%s19583_s30 + $0x320] ss:$16 sps:$4 sm:$0xff]  }
  0x8f   : > { %1700 = vmatprep.subr.bf16.mxu0 %v12209_v14  ;;  %1773 = vmatprep.subr.bf16.mxu1 %v12211_v15  ;;  %v13964_v14 = vld [vmem:[%s19583_s30 + $0x104] ss:$16 sps:$4 sm:$0xff]   ;;  %v13962_v15 = vld [vmem:[%s19583_s30 + $0x100] ss:$16 sps:$4 sm:$0xff]  }
  0x92   : > { %1701 = vmatpush2.bf16.msra.mxu0 %v12208_v17  ;;  %1774 = vmatpush2.bf16.msra.mxu1 %v12210_v20  ;;  %v13965_v17 = vld [vmem:[%s19583_s30 + $0x300] ss:$16 sps:$4 sm:$0xff]   ;;  %v13973_v20 = vld [vmem:[%s19583_s30 + $0x6e4] ss:$16 sps:$4 sm:$0xff]  }
  0x93   : > { %3854 = vmatprep.subr.bf16.mxu0 %v13874_v16  ;;  %3927 = vmatprep.subr.bf16.mxu1 %v13877_v18  ;;  %v13967_v16 = vld [vmem:[%s19583_s30 + $0x304] ss:$16 sps:$4 sm:$0xff]  }
  0x94   : > { %v13970_v18 = vld [vmem:[%s19583_s30 + $0x4e4] ss:$16 sps:$4 sm:$0xff]  }
  0x95   : > { %1703 = vmatmul.mubr.bf16.vlgmr.msra.gmra.mxu0 %v15310_v6  ;;  %1776 = vmatmul.mubr.bf16.vlgmr.msra.gmra.mxu1 %v15310_v6  ;;  %v13884_v6 = vld [vmem:[%s19583_s30 + $0xa0] ss:$16 sps:$4 sm:$0xff]  }
  0x96   : > { %1712 = vmatprep.mubr.bf16.mxu0 %v15331_v19  ;;  %1785 = vmatprep.mubr.bf16.mxu1 %v15331_v19  ;;  %v13892_v19 = vld [vmem:[%s19583_s30 + $0x84] ss:$16 sps:$4 sm:$0xff]  }
  0x97   : > { %3855 = vmatpush1.bf16.msra.mxu0 %v13872_v21  ;;  %3928 = vmatpush1.bf16.msra.mxu1 %v13875_v22  ;;  %v804_v21 = vlaneseq }
  0x98   : > { %3856 = vmatprep.subr.bf16.mxu0 %v13880_v23  ;;  %3929 = vmatprep.subr.bf16.mxu1 %v13883_v25  ;;  %v15749_v25 = vld [vmem:[%s19584_s5] sm:$0xff] }
  0x99   : > { %v15738_v22 = vshrl.u32 %v804_v21, 7 }
  0x9b   : > { %3857 = vmatpush1.bf16.msra.mxu0 %v13878_v24  ;;  %3930 = vmatpush1.bf16.msra.mxu1 %v13881_v26  ;;  %v15741_v23 = vsub.s32 0, %v15738_v22  ;;  %v15744_v24 = vsub.s32 2, %v15738_v22  ;;  %v15752_v26 = vsub.s32 1, %v15738_v22 }
  0x9c   : > { %3858 = vmatprep.subr.bf16.mxu0 %v13886_v27  ;;  %3931 = vmatprep.subr.bf16.mxu1 %v13889_v56  ;;  %v15755_v27 = vsub.s32 3, %v15738_v22 }
  0x9d   : > { %1713 = vmatmul.mubr.bf16.gmra.mxu0 %v15355_v30  ;;  %1786 = vmatmul.mubr.bf16.gmra.mxu1 %v15355_v30  ;;  %v13896_v30 = vld [vmem:[%s19583_s30 + $0x60] ss:$16 sps:$4 sm:$0xff]  }
  0x9e   : > { %1722 = vmatprep.mubr.bf16.mxu0 %v15365_v37  ;;  %1795 = vmatprep.mubr.bf16.mxu1 %v15365_v37  ;;  %v13904_v37 = vld [vmem:[%s19583_s30 + $0x44] ss:$16 sps:$4 sm:$0xff]  }
  0x9f   : > { %3859 = vmatpush1.bf16.msra.mxu0 %v13884_v6  ;;  %3932 = vmatpush1.bf16.msra.mxu1 %v13887_v28  ;;  %v15759_v28 = vrot.slane %v15749_v25, %v15752_v26 }
  0xa0   : > { %3860 = vmatprep.subr.bf16.mxu0 %v13892_v19  ;;  %3933 = vmatprep.subr.bf16.mxu1 %v13895_v31  ;;  %v15763_v19 = vrot.slane %v15749_v25, %v15741_v23  ;;  %v15767_v31 = vrot.slane %v15749_v25, %v15755_v27 }
  0xa3   : > { %3861 = vmatpush1.bf16.msra.mxu0 %v13890_v29  ;;  %3934 = vmatpush1.bf16.msra.mxu1 %v13893_v32  ;;  %v15771_v32 = vrot.slane %v15749_v25, %v15744_v24 }
  0xa4   : > { %3862 = vmatprep.subr.bf16.mxu0 %v13898_v33  ;;  %3935 = vmatprep.subr.bf16.mxu1 %v13901_v34 }
  0xa5   : > { %1723 = vmatmul.mubr.bf16.gmra.mxu0 %v15389_v48  ;;  %1796 = vmatmul.mubr.bf16.gmra.mxu1 %v15389_v48  ;;  %v13908_v48 = vld [vmem:[%s19583_s30 + $0x20] ss:$16 sps:$4 sm:$0xff]  }
  0xa6   : > { %1732 = vmatprep.mubr.bf16.mxu0 %v15405_v58  ;;  %1805 = vmatprep.mubr.bf16.mxu1 %v15405_v58  ;;  %v13916_v58 = vld [vmem:[%s19583_s30 + $0x4] ss:$16 sps:$4 sm:$0xff]  }
  0xa7   : > { %3863 = vmatpush1.bf16.msra.mxu0 %v13896_v30  ;;  %3936 = vmatpush1.bf16.msra.mxu1 %v13899_v35 }
  0xa8   : > { %3864 = vmatprep.subr.bf16.mxu0 %v13904_v37  ;;  %3937 = vmatprep.subr.bf16.mxu1 %v13907_v38 }
  0xab   : > { %3865 = vmatpush1.bf16.msra.mxu0 %v13902_v36  ;;  %3938 = vmatpush1.bf16.msra.mxu1 %v13905_v39 }
  0xac   : > { %3866 = vmatprep.subr.bf16.mxu0 %v13910_v40  ;;  %3939 = vmatprep.subr.bf16.mxu1 %v13913_v41 }
  0xad   : > { %1733 = vmatmul.mubr.bf16.gmra.mxu0 %v15422_v2  ;;  %1806 = vmatmul.mubr.bf16.gmra.mxu1 %v15422_v2  ;;  %v13925_v2 = vld [vmem:[%s19583_s30 + $0x3e4] ss:$16 sps:$4 sm:$0xff]  }
  0xaf   : > { %3867 = vmatpush1.bf16.msra.mxu0 %v13908_v48  ;;  %3940 = vmatpush1.bf16.msra.mxu1 %v13911_v42 }
  0xb0   : > { %3868 = vmatprep.subr.bf16.mxu0 %v13916_v58  ;;  %3941 = vmatprep.subr.bf16.mxu1 %v13919_v44 }
  0xb3   : > { %3869 = vmatpush1.bf16.msra.mxu0 %v13914_v43  ;;  %3942 = vmatpush1.bf16.msra.mxu1 %v13917_v45 }
  0xb4   : > { %3870 = vmatprep.subr.bf16.mxu0 %v13922_v46  ;;  %3943 = vmatprep.subr.bf16.mxu1 %v13925_v2  ;;  %v13968_v2 = vld [vmem:[%s19583_s30 + $0x4e0] ss:$16 sps:$4 sm:$0xff]  }
  0xb7   : > { %3871 = vmatpush2.bf16.msra.mxu0 %v13920_v47  ;;  %3944 = vmatpush2.bf16.msra.mxu1 %v13923_v49 }
  0xb8   : > { %3872 = vmatprep.subr.bf16.mxu0 %v13928_v50  ;;  %3945 = vmatprep.subr.bf16.mxu1 %v13931_v52 }
  0xbb   : > { %3873 = vmatpush2.bf16.msra.mxu0 %v13926_v51  ;;  %3946 = vmatpush2.bf16.msra.mxu1 %v13929_v53  ;;  %v13971_v53 = vld [vmem:[%s19583_s30 + $0x6e0] ss:$16 sps:$4 sm:$0xff]  }
  0xbc   : > { %3874 = vmatprep.subr.bf16.mxu0 %v13934_v54  ;;  %3947 = vmatprep.subr.bf16.mxu1 %v13937_v57  ;;  %v13976_v54 = vld [vmem:[%s19583_s30 + $0x4c4] ss:$16 sps:$4 sm:$0xff]  }
  0xbf   : > { %3875 = vmatpush2.bf16.msra.mxu0 %v13932_v55  ;;  %3948 = vmatpush2.bf16.msra.mxu1 %v13935_v59 }
  0xc0   : > { %3876 = vmatprep.subr.bf16.mxu0 %v13940_v60  ;;  %3949 = vmatprep.subr.bf16.mxu1 %v13943_v62 }
  0xc3   : > { %3877 = vmatpush2.bf16.msra.mxu0 %v13938_v61  ;;  %3950 = vmatpush2.bf16.msra.mxu1 %v13941_v63 }
  0xc4   : > { %3878 = vmatprep.subr.bf16.mxu0 %v13946_v0  ;;  %3951 = vmatprep.subr.bf16.mxu1 %v13949_v3 }
  0xc7   : > { %3879 = vmatpush2.bf16.msra.mxu0 %v13944_v1  ;;  %3952 = vmatpush2.bf16.msra.mxu1 %v13947_v4 }
  0xc8   : > { %3880 = vmatprep.subr.bf16.mxu0 %v13952_v5  ;;  %3953 = vmatprep.subr.bf16.mxu1 %v13955_v8  ;;  %v13979_v8 = vld [vmem:[%s19583_s30 + $0x6c4] ss:$16 sps:$4 sm:$0xff]  }
  0xcb   : > { %3881 = vmatpush2.bf16.msra.mxu0 %v13950_v7  ;;  %3954 = vmatpush2.bf16.msra.mxu1 %v13953_v9  ;;  %v13974_v7 = vld [vmem:[%s19583_s30 + $0x4c0] ss:$16 sps:$4 sm:$0xff]  }
  0xcc   : > { %3882 = vmatprep.subr.bf16.mxu0 %v13958_v10  ;;  %3955 = vmatprep.subr.bf16.mxu1 %v13961_v12  ;;  %v13982_v12 = vld [vmem:[%s19583_s30 + $0x4a4] ss:$16 sps:$4 sm:$0xff]  }
  0xcf   : > { %3883 = vmatpush2.bf16.msra.mxu0 %v13956_v11  ;;  %3956 = vmatpush2.bf16.msra.mxu1 %v13959_v13  ;;  %v13977_v11 = vld [vmem:[%s19583_s30 + $0x6c0] ss:$16 sps:$4 sm:$0xff]  }
  0xd0   : > { %3884 = vmatprep.subr.bf16.mxu0 %v13964_v14  ;;  %3957 = vmatprep.subr.bf16.mxu1 %v13967_v16 }
  0xd3   : > { %3885 = vmatpush2.bf16.msra.mxu0 %v13962_v15  ;;  %3958 = vmatpush2.bf16.msra.mxu1 %v13965_v17 }
  0xd4   : > { %4000 = vmatprep.subr.bf16.mxu0 %v13970_v18  ;;  %4073 = vmatprep.subr.bf16.mxu1 %v13973_v20 }
 0x115   : > { %v1558_v6 = vpop.f32.mrf.mxu0  ;;  %v1631_v56 = vpop.f32.mrf.mxu1 }
 0x116   : > { %v1559_v36 = vadd.f32 %v1558_v6, %v15763_v19  ;;  %v1632_v48 = vadd.f32 %v1631_v56, %v15771_v32 }
 0x117   : > { %v1560_v29 = vpop.f32.mrf.mxu0  ;;  %v1633_v33 = vpop.f32.mrf.mxu1 }
 0x118   : > { %v1561_v34 = vadd.f32 %v1560_v29, %v15759_v28  ;;  %v1634_v38 = vadd.f32 %v1633_v33, %v15767_v31  ;;  %v1816_v50 = vmax.f32 %v1559_v36, 0.0  ;;  %v1818_v59 = vmax.f32 %v1632_v48, 0.0  ;;  %v13983_v36 = vld [vmem:[%s19583_s30 + $0x6a0] ss:$16 sps:$4 sm:$0xff]  }
 0x119   : > { %v1562_v30 = vpop.f32.mrf.mxu0  ;;  %v1635_v37 = vpop.f32.mrf.mxu1 }
 0x11a   : > { %v1563_v35 = vadd.f32 %v1562_v30, %v15763_v19  ;;  %v1636_v39 = vadd.f32 %v1635_v37, %v15771_v32  ;;  %v1817_v45 = vmax.f32 %v1561_v34, 0.0  ;;  %v1819_v51 = vmax.f32 %v1634_v38, 0.0  ;;  %v13980_v30 = vld [vmem:[%s19583_s30 + $0x4a0] ss:$16 sps:$4 sm:$0xff]   ;;  %v13985_v34 = vld [vmem:[%s19583_s30 + $0x6a4] ss:$16 sps:$4 sm:$0xff]  }
 0x11b   : > { %v1564_v40 = vpop.f32.mrf.mxu0  ;;  %v1637_v42 = vpop.f32.mrf.mxu1  ;;  %v13988_v38 = vld [vmem:[%s19583_s30 + $0x484] ss:$16 sps:$4 sm:$0xff]  }
 0x11c   : > { %v1565_v41 = vadd.f32 %v1564_v40, %v15759_v28  ;;  %v1824_v58 = vmax.f32 %v1563_v35, 0.0  ;;  %v1638_v43 = vadd.f32 %v1637_v42, %v15767_v31  ;;  %v1826_v46 = vmax.f32 %v1636_v39, 0.0  ;;  %v13991_v42 = vld [vmem:[%s19583_s30 + $0x684] ss:$16 sps:$4 sm:$0xff]  }
 0x11d   : > { %v1568_v44 = vpop.f32.mrf.mxu0  ;;  %v1641_v49 = vpop.f32.mrf.mxu1 }
 0x11e   : > { %v1825_v47 = vmax.f32 %v1565_v41, 0.0  ;;  %v1827_v52 = vmax.f32 %v1638_v43, 0.0  ;;  %v1569_v55 = vadd.f32 %v1568_v44, %v15763_v19  ;;  %v1642_v62 = vadd.f32 %v1641_v49, %v15771_v32 }
 0x11f   : > { %v1570_v57 = vpop.f32.mrf.mxu0  ;;  %v1643_v63 = vpop.f32.mrf.mxu1  ;;  %v15795_v0 = vpack.c.bf16 %v1824_v58, %v1816_v50  ;;  %v15800_v5 = vpack.c.bf16 %v1826_v46, %v1818_v59  ;;  %v13994_v59 = vld [vmem:[%s19583_s30 + $0x464] ss:$16 sps:$4 sm:$0xff]  }
 0x120   : > { %v15791_v60 = vpack.c.bf16 %v1825_v47, %v1817_v45  ;;  %v1571_v61 = vadd.f32 %v1570_v57, %v15759_v28  ;;  %v15797_v1 = vpack.c.bf16 %v1827_v52, %v1819_v51  ;;  %v1644_v4 = vadd.f32 %v1643_v63, %v15767_v31  ;;  %v13986_v52 = vld [vmem:[%s19583_s30 + $0x480] ss:$16 sps:$4 sm:$0xff]  }
 0x121   : > { %v1572_v3 = vpop.f32.mrf.mxu0  ;;  %v1645_v10 = vpop.f32.mrf.mxu1  ;;  %v1832_v13 = vmax.f32 %v1569_v55, 0.0  ;;  %v1834_v17 = vmax.f32 %v1642_v62, 0.0 }
 0x122   : > { %3886 = vmatprep.mubr.bf16.mxu0 %v15791_v60  ;;  %v1573_v9 = vadd.f32 %v1572_v3, %v15763_v19  ;;  %3959 = vmatprep.mubr.bf16.mxu1 %v15797_v1  ;;  %v1646_v15 = vadd.f32 %v1645_v10, %v15771_v32  ;;  %v1833_v16 = vmax.f32 %v1571_v61, 0.0  ;;  %v1835_v6 = vmax.f32 %v1644_v4, 0.0 }
 0x123   : > { %3887 = vmatmul.mubr.bf16.vlgmr.msra.gmra.mxu0 %v15795_v0  ;;  %v1574_v14 = vpop.f32.mrf.mxu0  ;;  %3960 = vmatmul.mubr.bf16.vlgmr.msra.gmra.mxu1 %v15800_v5  ;;  %v1647_v21 = vpop.f32.mrf.mxu1 }
 0x124   : > { %4001 = vmatpush1.bf16.msra.mxu0 %v13968_v2  ;;  %v1840_v18 = vmax.f32 %v1573_v9, 0.0  ;;  %v1575_v20 = vadd.f32 %v1574_v14, %v15759_v28  ;;  %4074 = vmatpush1.bf16.msra.mxu1 %v13971_v53  ;;  %v1842_v56 = vmax.f32 %v1646_v15, 0.0  ;;  %v1648_v33 = vadd.f32 %v1647_v21, %v15767_v31  ;;  %v13989_v53 = vld [vmem:[%s19583_s30 + $0x680] ss:$16 sps:$4 sm:$0xff]  }
 0x125   : > { %4002 = vmatprep.subr.bf16.mxu0 %v13976_v54  ;;  %v1578_v29 = vpop.f32.mrf.mxu0  ;;  %4075 = vmatprep.subr.bf16.mxu1 %v13979_v8  ;;  %v1651_v37 = vpop.f32.mrf.mxu1  ;;  %v13995_v15 = vld [vmem:[%s19583_s30 + $0x660] ss:$16 sps:$4 sm:$0xff]  }
 0x126   : > { %v1841_v35 = vmax.f32 %v1575_v20, 0.0  ;;  %v15834_v39 = vpack.c.bf16 %v1840_v18, %v1832_v13  ;;  %v1579_v40 = vadd.f32 %v1578_v29, %v15763_v19  ;;  %v1843_v48 = vmax.f32 %v1648_v33, 0.0 }
 0x127   : > { %v1580_v41 = vpop.f32.mrf.mxu0  ;;  %v15840_v58 = vpack.c.bf16 %v1842_v56, %v1834_v17  ;;  %v1652_v44 = vadd.f32 %v1651_v37, %v15771_v32  ;;  %v1653_v45 = vpop.f32.mrf.mxu1 }
 0x128   : > { %4003 = vmatpush1.bf16.msra.mxu0 %v13974_v7  ;;  %v1581_v43 = vadd.f32 %v1580_v41, %v15759_v28  ;;  %v15844_v46 = vpack.c.bf16 %v1841_v35, %v1833_v16  ;;  %4076 = vmatpush1.bf16.msra.mxu1 %v13977_v11  ;;  %v1654_v2 = vadd.f32 %v1653_v45, %v15767_v31  ;;  %v1848_v54 = vmax.f32 %v1579_v40, 0.0  ;;  %v13992_v11 = vld [vmem:[%s19583_s30 + $0x460] ss:$16 sps:$4 sm:$0xff]   ;;  %v14000_v16 = vld [vmem:[%s19583_s30 + $0x444] ss:$16 sps:$4 sm:$0xff]  }
 0x129   : > { %4004 = vmatprep.subr.bf16.mxu0 %v13982_v12  ;;  %v1582_v47 = vpop.f32.mrf.mxu0  ;;  %v15847_v49 = vpack.c.bf16 %v1843_v48, %v1835_v6  ;;  %4077 = vmatprep.subr.bf16.mxu1 %v13985_v34  ;;  %v1655_v51 = vpop.f32.mrf.mxu1  ;;  %v1850_v62 = vmax.f32 %v1652_v44, 0.0  ;;  %v13997_v12 = vld [vmem:[%s19583_s30 + $0x664] ss:$16 sps:$4 sm:$0xff]   ;;  %v13998_v48 = vld [vmem:[%s19583_s30 + $0x440] ss:$16 sps:$4 sm:$0xff]  }
 0x12a   : > { %v1583_v50 = vadd.f32 %v1582_v47, %v15763_v19  ;;  %3896 = vmatprep.mubr.bf16.mxu0 %v15844_v46  ;;  %v1656_v57 = vadd.f32 %v1655_v51, %v15771_v32  ;;  %v1849_v61 = vmax.f32 %v1581_v43, 0.0  ;;  %v1851_v7 = vmax.f32 %v1654_v2, 0.0  ;;  %v14003_v6 = vld [vmem:[%s19583_s30 + $0x644] ss:$16 sps:$4 sm:$0xff]   ;;  %v14001_v41 = vld [vmem:[%s19583_s30 + $0x640] ss:$16 sps:$4 sm:$0xff]  }
 0x12b   : > { %v1584_v55 = vpop.f32.mrf.mxu0  ;;  %3897 = vmatmul.mubr.bf16.gmra.mxu0 %v15834_v39  ;;  %3969 = vmatprep.mubr.bf16.mxu1 %v15847_v49  ;;  %v1657_v4 = vpop.f32.mrf.mxu1 }
 0x12c   : > { %4005 = vmatpush1.bf16.msra.mxu0 %v13980_v30  ;;  %v1856_v63 = vmax.f32 %v1583_v50, 0.0  ;;  %v1585_v3 = vadd.f32 %v1584_v55, %v15759_v28  ;;  %3970 = vmatmul.mubr.bf16.gmra.mxu1 %v15840_v58  ;;  %v1858_v8 = vmax.f32 %v1656_v57, 0.0  ;;  %v1658_v10 = vadd.f32 %v1657_v4, %v15767_v31  ;;  %v14009_v55 = vld [vmem:[%s19583_s30 + $0x624] ss:$16 sps:$4 sm:$0xff]  }
 0x12d   : > { %4078 = vmatpush1.bf16.msra.mxu1 %v13983_v36  ;;  %4006 = vmatprep.subr.bf16.mxu0 %v13988_v38  ;;  %v1588_v9 = vpop.f32.mrf.mxu0  ;;  %v1661_v14 = vpop.f32.mrf.mxu1 }
 0x12e   : > { %4079 = vmatprep.subr.bf16.mxu1 %v13991_v42  ;;  %v1857_v13 = vmax.f32 %v1585_v3, 0.0  ;;  %v15878_v17 = vpack.c.bf16 %v1856_v63, %v1848_v54  ;;  %v1589_v18 = vadd.f32 %v1588_v9, %v15763_v19  ;;  %v1859_v20 = vmax.f32 %v1658_v10, 0.0  ;;  %v14004_v54 = vld [vmem:[%s19583_s30 + $0x420] ss:$16 sps:$4 sm:$0xff]   ;;  %v14018_v9 = vld [vmem:[%s19583_s30 + $0x5e4] ss:$16 sps:$4 sm:$0xff]  }
 0x12f   : > { %v1590_v21 = vpop.f32.mrf.mxu0  ;;  %v15884_v56 = vpack.c.bf16 %v1858_v8, %v1850_v62  ;;  %v1662_v33 = vadd.f32 %v1661_v14, %v15771_v32  ;;  %v1663_v30 = vpop.f32.mrf.mxu1  ;;  %v14015_v62 = vld [vmem:[%s19583_s30 + $0x604] ss:$16 sps:$4 sm:$0xff]   ;;  %v14013_v8 = vld [vmem:[%s19583_s30 + $0x600] ss:$16 sps:$4 sm:$0xff]  }
 0x130   : > { %4007 = vmatpush1.bf16.msra.mxu0 %v13986_v52  ;;  %v1591_v29 = vadd.f32 %v1590_v21, %v15759_v28  ;;  %v15888_v34 = vpack.c.bf16 %v1857_v13, %v1849_v61  ;;  %v1664_v37 = vadd.f32 %v1663_v30, %v15767_v31  ;;  %v15891_v36 = vpack.c.bf16 %v1859_v20, %v1851_v7  ;;  %v14010_v7 = vld [vmem:[%s19583_s30 + $0x400] ss:$16 sps:$4 sm:$0xff]   ;;  %v14024_v13 = vld [vmem:[%s19583_s30 + $0x5c4] ss:$16 sps:$4 sm:$0xff]  }
 0x131   : > { %4080 = vmatpush1.bf16.msra.mxu1 %v13989_v53  ;;  %4008 = vmatprep.subr.bf16.mxu0 %v13994_v59  ;;  %v1592_v35 = vpop.f32.mrf.mxu0  ;;  %v1665_v40 = vpop.f32.mrf.mxu1  ;;  %v1864_v42 = vmax.f32 %v1589_v18, 0.0  ;;  %v1866_v47 = vmax.f32 %v1662_v33, 0.0  ;;  %v14012_v59 = vld [vmem:[%s19583_s30 + $0x404] ss:$16 sps:$4 sm:$0xff]   ;;  %v14016_v10 = vld [vmem:[%s19583_s30 + $0x5e0] ss:$16 sps:$4 sm:$0xff]  }
 0x132   : > { %4081 = vmatprep.subr.bf16.mxu1 %v13997_v12  ;;  %v1593_v38 = vadd.f32 %v1592_v35, %v15763_v19  ;;  %3906 = vmatprep.mubr.bf16.mxu0 %v15888_v34  ;;  %v1666_v44 = vadd.f32 %v1665_v40, %v15771_v32  ;;  %v14006_v19 = vld [vmem:[%s19583_s30 + $0x424] ss:$16 sps:$4 sm:$0xff]   ;;  %v1865_v45 = vmax.f32 %v1591_v29, 0.0  ;;  %v1867_v32 = vmax.f32 %v1664_v37, 0.0  ;;  %v14019_v12 = vld [vmem:[%s19583_s30 + $0x7e0] ss:$16 sps:$4 sm:$0xff]  }
 0x133   : > { %v1594_v43 = vpop.f32.mrf.mxu0  ;;  %3907 = vmatmul.mubr.bf16.gmra.mxu0 %v15878_v17  ;;  %3979 = vmatprep.mubr.bf16.mxu1 %v15891_v36  ;;  %v1667_v51 = vpop.f32.mrf.mxu1  ;;  %v14022_v14 = vld [vmem:[%s19583_s30 + $0x5c0] ss:$16 sps:$4 sm:$0xff]   ;;  %v14030_v18 = vld [vmem:[%s19583_s30 + $0x5a4] ss:$16 sps:$4 sm:$0xff]  }
 0x134   : > { %4009 = vmatpush1.bf16.msra.mxu0 %v13992_v11  ;;  %v1872_v2 = vmax.f32 %v1593_v38, 0.0  ;;  %v1595_v50 = vadd.f32 %v1594_v43, %v15759_v28  ;;  %3980 = vmatmul.mubr.bf16.gmra.mxu1 %v15884_v56  ;;  %v1874_v52 = vmax.f32 %v1666_v44, 0.0  ;;  %v1668_v53 = vadd.f32 %v1667_v51, %v15767_v31  ;;  %v14007_v28 = vld [vmem:[%s19583_s30 + $0x620] ss:$16 sps:$4 sm:$0xff]   ;;  %v14021_v11 = vld [vmem:[%s19583_s30 + $0x7e4] ss:$16 sps:$4 sm:$0xff]  }
 0x135   : > { %4082 = vmatpush1.bf16.msra.mxu1 %v13995_v15  ;;  %4010 = vmatprep.subr.bf16.mxu0 %v14000_v16  ;;  %v14027_v15 = vld [vmem:[%s19583_s30 + $0x7c4] ss:$16 sps:$4 sm:$0xff]   ;;  %v14025_v16 = vld [vmem:[%s19583_s30 + $0x7c0] ss:$16 sps:$4 sm:$0xff]   ;;  %v826_v44 = vsub.s32 5, %v15738_v22 }
 0x136   : > { %4083 = vmatprep.subr.bf16.mxu1 %v14003_v6  ;;  %v1873_v57 = vmax.f32 %v1595_v50, 0.0  ;;  %v15922_v61 = vpack.c.bf16 %v1872_v2, %v1864_v42  ;;  %v1875_v31 = vmax.f32 %v1668_v53, 0.0  ;;  %v15927_v63 = vpack.c.bf16 %v1874_v52, %v1866_v47  ;;  %v14028_v20 = vld [vmem:[%s19583_s30 + $0x5a0] ss:$16 sps:$4 sm:$0xff]   ;;  %v14033_v21 = vld [vmem:[%s19583_s30 + $0x7a4] ss:$16 sps:$4 sm:$0xff]  }
 0x137   : > { %v14031_v6 = vld [vmem:[%s19583_s30 + $0x7a0] ss:$16 sps:$4 sm:$0xff]   ;;  %v14036_v29 = vld [vmem:[%s19583_s30 + $0x584] ss:$16 sps:$4 sm:$0xff]   ;;  %v834_v47 = vsub.s32 7, %v15738_v22  ;;  %v830_v50 = vsub.s32 6, %v15738_v22  ;;  %v16025_v52 = vrot.slane %v15749_v25, %v826_v44 }
 0x138   : > { %4011 = vmatpush1.bf16.msra.mxu0 %v13998_v48  ;;  %v15929_v3 = vpack.c.bf16 %v1873_v57, %v1865_v45  ;;  %v15931_v4 = vpack.c.bf16 %v1875_v31, %v1867_v32  ;;  %v14034_v33 = vld [vmem:[%s19583_s30 + $0x580] ss:$16 sps:$4 sm:$0xff]   ;;  %v14039_v30 = vld [vmem:[%s19583_s30 + $0x784] ss:$16 sps:$4 sm:$0xff]  }
 0x139   : > { %4084 = vmatpush1.bf16.msra.mxu1 %v14001_v41  ;;  %4012 = vmatprep.subr.bf16.mxu0 %v14006_v19  ;;  %v14037_v35 = vld [vmem:[%s19583_s30 + $0x780] ss:$16 sps:$4 sm:$0xff]   ;;  %v14042_v37 = vld [vmem:[%s19583_s30 + $0x564] ss:$16 sps:$4 sm:$0xff]   ;;  %v822_v19 = vsub.s32 4, %v15738_v22 }
 0x13a   : > { %4085 = vmatprep.subr.bf16.mxu1 %v14009_v55  ;;  %3916 = vmatprep.mubr.bf16.mxu0 %v15929_v3  ;;  %v14040_v38 = vld [vmem:[%s19583_s30 + $0x560] ss:$16 sps:$4 sm:$0xff]   ;;  %v14045_v40 = vld [vmem:[%s19583_s30 + $0x764] ss:$16 sps:$4 sm:$0xff]  }
 0x13b   : > { %3917 = vmatmul.mubr.bf16.gmra.mxu0 %v15922_v61  ;;  %3989 = vmatprep.mubr.bf16.mxu1 %v15931_v4  ;;  %v14043_v48 = vld [vmem:[%s19583_s30 + $0x760] ss:$16 sps:$4 sm:$0xff]   ;;  %v14048_v41 = vld [vmem:[%s19583_s30 + $0x544] ss:$16 sps:$4 sm:$0xff]   ;;  %v16036_v55 = vrot.slane %v15749_v25, %v822_v19 }
 0x13c   : > { %4013 = vmatpush1.bf16.msra.mxu0 %v14004_v54  ;;  %3990 = vmatmul.mubr.bf16.gmra.mxu1 %v15927_v63  ;;  %v14046_v42 = vld [vmem:[%s19583_s30 + $0x540] ss:$16 sps:$4 sm:$0xff]   ;;  %v14051_v43 = vld [vmem:[%s19583_s30 + $0x744] ss:$16 sps:$4 sm:$0xff]  }
 0x13d   : > { %4086 = vmatpush1.bf16.msra.mxu1 %v14007_v28  ;;  %4014 = vmatprep.subr.bf16.mxu0 %v14012_v59  ;;  %v14049_v45 = vld [vmem:[%s19583_s30 + $0x740] ss:$16 sps:$4 sm:$0xff]   ;;  %v14054_v2 = vld [vmem:[%s19583_s30 + $0x524] ss:$16 sps:$4 sm:$0xff]   ;;  %v16041_v28 = vrot.slane %v15749_v25, %v834_v47 }
 0x13e   : > { %4087 = vmatprep.subr.bf16.mxu1 %v14015_v62  ;;  %v14052_v53 = vld [vmem:[%s19583_s30 + $0x520] ss:$16 sps:$4 sm:$0xff]   ;;  %v14057_v54 = vld [vmem:[%s19583_s30 + $0x724] ss:$16 sps:$4 sm:$0xff]   ;;  %v16052_v62 = vrot.slane %v15749_v25, %v830_v50 }
 0x13f   : > { %v14055_v59 = vld [vmem:[%s19583_s30 + $0x720] ss:$16 sps:$4 sm:$0xff]   ;;  %v14060_v31 = vld [vmem:[%s19583_s30 + $0x504] ss:$16 sps:$4 sm:$0xff]  }
 0x140   : > { %4015 = vmatpush1.bf16.msra.mxu0 %v14010_v7  ;;  %v14063_v25 = vld [vmem:[%s19583_s30 + $0x704] ss:$16 sps:$4 sm:$0xff]  }
 0x141   : > { %4088 = vmatpush1.bf16.msra.mxu1 %v14013_v8  ;;  %4016 = vmatprep.subr.bf16.mxu0 %v14018_v9 }
 0x142   : > { %4089 = vmatprep.subr.bf16.mxu1 %v14021_v11 }
 0x144   : > { %4017 = vmatpush2.bf16.msra.mxu0 %v14016_v10 }
 0x145   : > { %4090 = vmatpush2.bf16.msra.mxu1 %v14019_v12  ;;  %4018 = vmatprep.subr.bf16.mxu0 %v14024_v13  ;;  %v14058_v12 = vld [vmem:[%s19583_s30 + $0x500] ss:$16 sps:$4 sm:$0xff]  }
 0x146   : > { %4091 = vmatprep.subr.bf16.mxu1 %v14027_v15 }
 0x148   : > { %4019 = vmatpush2.bf16.msra.mxu0 %v14022_v14 }
 0x149   : > { %4092 = vmatpush2.bf16.msra.mxu1 %v14025_v16  ;;  %4020 = vmatprep.subr.bf16.mxu0 %v14030_v18  ;;  %v14061_v18 = vld [vmem:[%s19583_s30 + $0x700] ss:$16 sps:$4 sm:$0xff]  }
 0x14a   : > { %4093 = vmatprep.subr.bf16.mxu1 %v14033_v21 }
 0x14c   : > { %4021 = vmatpush2.bf16.msra.mxu0 %v14028_v20  ;;  %v14066_v20 = vld [vmem:[%s19583_s30 + $0xec] ss:$16 sps:$4 sm:$0xff]  }
 0x14d   : > { %4094 = vmatpush2.bf16.msra.mxu1 %v14031_v6  ;;  %4022 = vmatprep.subr.bf16.mxu0 %v14036_v29 }
 0x14e   : > { %4095 = vmatprep.subr.bf16.mxu1 %v14039_v30 }
 0x150   : > { %4023 = vmatpush2.bf16.msra.mxu0 %v14034_v33  ;;  %v14069_v33 = vld [vmem:[%s19583_s30 + $0x2ec] ss:$16 sps:$4 sm:$0xff]  }
 0x151   : > { %4096 = vmatpush2.bf16.msra.mxu1 %v14037_v35  ;;  %4024 = vmatprep.subr.bf16.mxu0 %v14042_v37 }
 0x152   : > { %4097 = vmatprep.subr.bf16.mxu1 %v14045_v40 }
 0x154   : > { %4025 = vmatpush2.bf16.msra.mxu0 %v14040_v38 }
 0x155   : > { %4098 = vmatpush2.bf16.msra.mxu1 %v14043_v48  ;;  %v1704_v51 = vpop.f32.mrf.mxu0  ;;  %4026 = vmatprep.subr.bf16.mxu0 %v14048_v41  ;;  %v1777_v32 = vpop.f32.mrf.mxu1 }
 0x156   : > { %4099 = vmatprep.subr.bf16.mxu1 %v14051_v43  ;;  %v1705_v13 = vadd.f32 %v1704_v51, %v16036_v55  ;;  %v1778_v21 = vadd.f32 %v1777_v32, %v16052_v62 }
 0x157   : > { %v1706_v57 = vpop.f32.mrf.mxu0  ;;  %v1779_v7 = vpop.f32.mrf.mxu1 }
 0x158   : > { %4027 = vmatpush2.bf16.msra.mxu0 %v14046_v42  ;;  %v1707_v9 = vadd.f32 %v1706_v57, %v16025_v52  ;;  %v1780_v14 = vadd.f32 %v1779_v7, %v16041_v28  ;;  %v14064_v42 = vld [vmem:[%s19583_s30 + $0xe8] ss:$16 sps:$4 sm:$0xff]   ;;  %v1820_v43 = vmax.f32 %v1705_v13, 0.0  ;;  %v1822_v57 = vmax.f32 %v1778_v21, 0.0 }
 0x159   : > { %4100 = vmatpush2.bf16.msra.mxu1 %v14049_v45  ;;  %v1708_v8 = vpop.f32.mrf.mxu0  ;;  %4028 = vmatprep.subr.bf16.mxu0 %v14054_v2  ;;  %v1781_v11 = vpop.f32.mrf.mxu1 }
 0x15a   : > { %v1709_v10 = vadd.f32 %v1708_v8, %v16036_v55  ;;  %4101 = vmatprep.subr.bf16.mxu1 %v14057_v54  ;;  %v1782_v15 = vadd.f32 %v1781_v11, %v16052_v62  ;;  %v1821_v38 = vmax.f32 %v1707_v9, 0.0  ;;  %v1823_v45 = vmax.f32 %v1780_v14, 0.0  ;;  %v14072_v54 = vld [vmem:[%s19583_s30 + $0xcc] ss:$16 sps:$4 sm:$0xff]  }
 0x15b   : > { %v1710_v16 = vpop.f32.mrf.mxu0  ;;  %v1783_v29 = vpop.f32.mrf.mxu1  ;;  %v14075_v9 = vld [vmem:[%s19583_s30 + $0x2cc] ss:$16 sps:$4 sm:$0xff]  }
 0x15c   : > { %v1711_v6 = vadd.f32 %v1710_v16, %v16025_v52  ;;  %4029 = vmatpush2.bf16.msra.mxu0 %v14052_v53  ;;  %v1828_v30 = vmax.f32 %v1709_v10, 0.0  ;;  %v1784_v35 = vadd.f32 %v1783_v29, %v16041_v28  ;;  %v1830_v40 = vmax.f32 %v1782_v15, 0.0  ;;  %v14067_v53 = vld [vmem:[%s19583_s30 + $0x2e8] ss:$16 sps:$4 sm:$0xff]   ;;  %v14078_v29 = vld [vmem:[%s19583_s30 + $0xac] ss:$16 sps:$4 sm:$0xff]  }
 0x15d   : > { %4102 = vmatpush2.bf16.msra.mxu1 %v14055_v59  ;;  %v1714_v37 = vpop.f32.mrf.mxu0  ;;  %4030 = vmatprep.subr.bf16.mxu0 %v14060_v31  ;;  %v1787_v41 = vpop.f32.mrf.mxu1  ;;  %v14070_v16 = vld [vmem:[%s19583_s30 + $0xc8] ss:$16 sps:$4 sm:$0xff]  }
 0x15e   : > { %v1829_v48 = vmax.f32 %v1711_v6, 0.0  ;;  %4103 = vmatprep.subr.bf16.mxu1 %v14063_v25  ;;  %v1831_v2 = vmax.f32 %v1784_v35, 0.0  ;;  %v1715_v51 = vadd.f32 %v1714_v37, %v16036_v55  ;;  %v1788_v59 = vadd.f32 %v1787_v41, %v16052_v62 }
 0x15f   : > { %v1716_v32 = vpop.f32.mrf.mxu0  ;;  %v1789_v7 = vpop.f32.mrf.mxu1  ;;  %v16094_v10 = vpack.c.bf16 %v1828_v30, %v1820_v43  ;;  %v16099_v14 = vpack.c.bf16 %v1830_v40, %v1822_v57  ;;  %v14081_v40 = vld [vmem:[%s19583_s30 + $0x2ac] ss:$16 sps:$4 sm:$0xff]  }
 0x160   : > { %v1717_v31 = vadd.f32 %v1716_v32, %v16025_v52  ;;  %4031 = vmatpush2.bf16.msra.mxu0 %v14058_v12  ;;  %v16089_v8 = vpack.c.bf16 %v1829_v48, %v1821_v38  ;;  %v1790_v11 = vadd.f32 %v1789_v7, %v16041_v28  ;;  %v16097_v13 = vpack.c.bf16 %v1831_v2, %v1823_v45  ;;  %v14076_v32 = vld [vmem:[%s19583_s30 + $0xa8] ss:$16 sps:$4 sm:$0xff]  }
 0x161   : > { %4104 = vmatpush2.bf16.msra.mxu1 %v14061_v18  ;;  %v1718_v25 = vpop.f32.mrf.mxu0  ;;  %4146 = vmatprep.subr.bf16.mxu0 %v14066_v20  ;;  %v1791_v12 = vpop.f32.mrf.mxu1  ;;  %v1836_v21 = vmax.f32 %v1715_v51, 0.0  ;;  %v14073_v20 = vld [vmem:[%s19583_s30 + $0x2c8] ss:$16 sps:$4 sm:$0xff]  }
 0x162   : > { %v1719_v15 = vadd.f32 %v1718_v25, %v16036_v55  ;;  %4032 = vmatprep.mubr.bf16.mxu0 %v16089_v8  ;;  %4219 = vmatprep.subr.bf16.mxu1 %v14069_v33  ;;  %v1792_v6 = vadd.f32 %v1791_v12, %v16052_v62  ;;  %v1838_v33 = vmax.f32 %v1788_v59, 0.0  ;;  %v1837_v30 = vmax.f32 %v1717_v31, 0.0  ;;  %v14079_v7 = vld [vmem:[%s19583_s30 + $0x2a8] ss:$16 sps:$4 sm:$0xff]   ;;  %v14087_v12 = vld [vmem:[%s19583_s30 + $0x28c] ss:$16 sps:$4 sm:$0xff]  }
 0x163   : > { %4105 = vmatprep.mubr.bf16.mxu1 %v16097_v13  ;;  %v1720_v18 = vpop.f32.mrf.mxu0  ;;  %4033 = vmatmul.mubr.bf16.vlgmr.msra.gmra.mxu0 %v16094_v10  ;;  %v1793_v38 = vpop.f32.mrf.mxu1  ;;  %v1839_v48 = vmax.f32 %v1790_v11, 0.0 }
 0x164   : > { %v1844_v35 = vmax.f32 %v1719_v15, 0.0  ;;  %v1721_v37 = vadd.f32 %v1720_v18, %v16025_v52  ;;  %4106 = vmatmul.mubr.bf16.vlgmr.msra.gmra.mxu1 %v16099_v14  ;;  %4147 = vmatpush1.bf16.msra.mxu0 %v14064_v42  ;;  %v1846_v41 = vmax.f32 %v1792_v6, 0.0  ;;  %v1794_v43 = vadd.f32 %v1793_v38, %v16041_v28  ;;  %v14090_v38 = vld [vmem:[%s19583_s30 + $0x6c] ss:$16 sps:$4 sm:$0xff]  }
 0x165   : > { %4220 = vmatpush1.bf16.msra.mxu1 %v14067_v53  ;;  %v1724_v45 = vpop.f32.mrf.mxu0  ;;  %4148 = vmatprep.subr.bf16.mxu0 %v14072_v54  ;;  %v1797_v51 = vpop.f32.mrf.mxu1  ;;  %v14084_v53 = vld [vmem:[%s19583_s30 + $0x8c] ss:$16 sps:$4 sm:$0xff]  }
 0x166   : > { %v1845_v2 = vmax.f32 %v1721_v37, 0.0  ;;  %4221 = vmatprep.subr.bf16.mxu1 %v14075_v9  ;;  %v16124_v57 = vpack.c.bf16 %v1844_v35, %v1836_v21  ;;  %v1847_v42 = vmax.f32 %v1794_v43, 0.0  ;;  %v1725_v59 = vadd.f32 %v1724_v45, %v16036_v55 }
 0x167   : > { %v1726_v31 = vpop.f32.mrf.mxu0  ;;  %v16133_v54 = vpack.c.bf16 %v1846_v41, %v1838_v33  ;;  %v1798_v9 = vadd.f32 %v1797_v51, %v16052_v62  ;;  %v1799_v25 = vpop.f32.mrf.mxu1 }
 0x168   : > { %v1727_v11 = vadd.f32 %v1726_v31, %v16025_v52  ;;  %4149 = vmatpush1.bf16.msra.mxu0 %v14070_v16  ;;  %v16137_v15 = vpack.c.bf16 %v1845_v2, %v1837_v30  ;;  %v1800_v21 = vadd.f32 %v1799_v25, %v16041_v28  ;;  %v16143_v18 = vpack.c.bf16 %v1847_v42, %v1839_v48  ;;  %v14082_v16 = vld [vmem:[%s19583_s30 + $0x88] ss:$16 sps:$4 sm:$0xff]   ;;  %v14093_v2 = vld [vmem:[%s19583_s30 + $0x26c] ss:$16 sps:$4 sm:$0xff]  }
 0x169   : > { %4222 = vmatpush1.bf16.msra.mxu1 %v14073_v20  ;;  %v1728_v6 = vpop.f32.mrf.mxu0  ;;  %4150 = vmatprep.subr.bf16.mxu0 %v14078_v29  ;;  %v1801_v35 = vpop.f32.mrf.mxu1  ;;  %v1852_v30 = vmax.f32 %v1725_v59, 0.0  ;;  %v14085_v29 = vld [vmem:[%s19583_s30 + $0x288] ss:$16 sps:$4 sm:$0xff]  }
 0x16a   : > { %v1729_v33 = vadd.f32 %v1728_v6, %v16036_v55  ;;  %4042 = vmatprep.mubr.bf16.mxu0 %v16137_v15  ;;  %4223 = vmatprep.subr.bf16.mxu1 %v14081_v40  ;;  %v1802_v37 = vadd.f32 %v1801_v35, %v16052_v62  ;;  %v1854_v40 = vmax.f32 %v1798_v9, 0.0  ;;  %v1853_v48 = vmax.f32 %v1727_v11, 0.0  ;;  %v14088_v25 = vld [vmem:[%s19583_s30 + $0x68] ss:$16 sps:$4 sm:$0xff]  }
 0x16b   : > { %4115 = vmatprep.mubr.bf16.mxu1 %v16143_v18  ;;  %v1730_v20 = vpop.f32.mrf.mxu0  ;;  %4043 = vmatmul.mubr.bf16.gmra.mxu0 %v16124_v57  ;;  %v1803_v45 = vpop.f32.mrf.mxu1  ;;  %v1855_v51 = vmax.f32 %v1800_v21, 0.0  ;;  %v14091_v21 = vld [vmem:[%s19583_s30 + $0x268] ss:$16 sps:$4 sm:$0xff]  }
 0x16c   : > { %v1860_v41 = vmax.f32 %v1729_v33, 0.0  ;;  %v1731_v43 = vadd.f32 %v1730_v20, %v16025_v52  ;;  %4116 = vmatmul.mubr.bf16.gmra.mxu1 %v16133_v54  ;;  %4151 = vmatpush1.bf16.msra.mxu0 %v14076_v32  ;;  %v1862_v42 = vmax.f32 %v1802_v37, 0.0  ;;  %v1804_v59 = vadd.f32 %v1803_v45, %v16041_v28 }
 0x16d   : > { %4224 = vmatpush1.bf16.msra.mxu1 %v14079_v7  ;;  %v1734_v31 = vpop.f32.mrf.mxu0  ;;  %4152 = vmatprep.subr.bf16.mxu0 %v14084_v53  ;;  %v1807_v11 = vpop.f32.mrf.mxu1  ;;  %v14096_v7 = vld [vmem:[%s19583_s30 + $0x4c] ss:$16 sps:$4 sm:$0xff]  }
 0x16e   : > { %v1861_v9 = vmax.f32 %v1731_v43, 0.0  ;;  %4225 = vmatprep.subr.bf16.mxu1 %v14087_v12  ;;  %v16168_v6 = vpack.c.bf16 %v1860_v41, %v1852_v30  ;;  %v1863_v32 = vmax.f32 %v1804_v59, 0.0  ;;  %v1735_v33 = vadd.f32 %v1734_v31, %v16036_v55  ;;  %v14099_v41 = vld [vmem:[%s19583_s30 + $0x24c] ss:$16 sps:$4 sm:$0xff]  }
 0x16f   : > { %v1736_v35 = vpop.f32.mrf.mxu0  ;;  %v16177_v53 = vpack.c.bf16 %v1862_v42, %v1854_v40  ;;  %v1808_v12 = vadd.f32 %v1807_v11, %v16052_v62  ;;  %v1809_v30 = vpop.f32.mrf.mxu1 }
 0x170   : > { %v1737_v37 = vadd.f32 %v1736_v35, %v16025_v52  ;;  %4153 = vmatpush1.bf16.msra.mxu0 %v14082_v16  ;;  %v16181_v20 = vpack.c.bf16 %v1861_v9, %v1853_v48  ;;  %v1810_v43 = vadd.f32 %v1809_v30, %v16041_v28  ;;  %v16187_v59 = vpack.c.bf16 %v1863_v32, %v1855_v51  ;;  %v14094_v16 = vld [vmem:[%s19583_s30 + $0x48] ss:$16 sps:$4 sm:$0xff]   ;;  %v14102_v35 = vld [vmem:[%s19583_s30 + $0x2c] ss:$16 sps:$4 sm:$0xff]  }
 0x171   : > { %4226 = vmatpush1.bf16.msra.mxu1 %v14085_v29  ;;  %v1738_v45 = vpop.f32.mrf.mxu0  ;;  %4154 = vmatprep.subr.bf16.mxu0 %v14090_v38  ;;  %v1811_v42 = vpop.f32.mrf.mxu1  ;;  %v1868_v48 = vmax.f32 %v1735_v33, 0.0  ;;  %v1870_v38 = vmax.f32 %v1808_v12, 0.0 }
 0x172   : > { %v1739_v40 = vadd.f32 %v1738_v45, %v16036_v55  ;;  %4052 = vmatprep.mubr.bf16.mxu0 %v16181_v20  ;;  %4227 = vmatprep.subr.bf16.mxu1 %v14093_v2  ;;  %v1812_v31 = vadd.f32 %v1811_v42, %v16052_v62  ;;  %v14097_v55 = vld [vmem:[%s19583_s30 + $0x248] ss:$16 sps:$4 sm:$0xff]   ;;  %v1869_v51 = vmax.f32 %v1737_v37, 0.0  ;;  %v1871_v32 = vmax.f32 %v1810_v43, 0.0  ;;  %v14111_v45 = vld [vmem:[%s19583_s30 + $0x20c] ss:$16 sps:$4 sm:$0xff]  }
 0x173   : > { %4125 = vmatprep.mubr.bf16.mxu1 %v16187_v59  ;;  %v1740_v29 = vpop.f32.mrf.mxu0  ;;  %4053 = vmatmul.mubr.bf16.gmra.mxu0 %v16168_v6  ;;  %v1813_v11 = vpop.f32.mrf.mxu1  ;;  %v14109_v42 = vld [vmem:[%s19583_s30 + $0x208] ss:$16 sps:$4 sm:$0xff]  }
 0x174   : > { %v1876_v9 = vmax.f32 %v1739_v40, 0.0  ;;  %v1741_v2 = vadd.f32 %v1740_v29, %v16025_v52  ;;  %4126 = vmatmul.mubr.bf16.gmra.mxu1 %v16177_v53  ;;  %4155 = vmatpush1.bf16.msra.mxu0 %v14088_v25  ;;  %v1878_v62 = vmax.f32 %v1812_v31, 0.0  ;;  %v1814_v33 = vadd.f32 %v1813_v11, %v16041_v28  ;;  %v14100_v52 = vld [vmem:[%s19583_s30 + $0x28] ss:$16 sps:$4 sm:$0xff]   ;;  %v14105_v25 = vld [vmem:[%s19583_s30 + $0x22c] ss:$16 sps:$4 sm:$0xff]  }
 0x175   : > { %4228 = vmatpush1.bf16.msra.mxu1 %v14091_v21  ;;  %4156 = vmatprep.subr.bf16.mxu0 %v14096_v7  ;;  %v14103_v28 = vld [vmem:[%s19583_s30 + $0x228] ss:$16 sps:$4 sm:$0xff]   ;;  %v14120_v29 = vld [vmem:[%s19583_s30 + $0x1cc] ss:$16 sps:$4 sm:$0xff]  }
 0x176   : > { %v1877_v30 = vmax.f32 %v1741_v2, 0.0  ;;  %4229 = vmatprep.subr.bf16.mxu1 %v14099_v41  ;;  %v16212_v12 = vpack.c.bf16 %v1876_v9, %v1868_v48  ;;  %v1879_v37 = vmax.f32 %v1814_v33, 0.0  ;;  %v16217_v21 = vpack.c.bf16 %v1878_v62, %v1870_v38  ;;  %v14108_v41 = vld [vmem:[%s19583_s30 + $0xc] ss:$16 sps:$4 sm:$0xff]   ;;  %v14106_v40 = vld [vmem:[%s19583_s30 + $0x8] ss:$16 sps:$4 sm:$0xff]  }
 0x177   : > { %v14117_v48 = vld [vmem:[%s19583_s30 + $0x3ec] ss:$16 sps:$4 sm:$0xff]   ;;  %v14115_v31 = vld [vmem:[%s19583_s30 + $0x3e8] ss:$16 sps:$4 sm:$0xff]  }
 0x178   : > { %4157 = vmatpush1.bf16.msra.mxu0 %v14094_v16  ;;  %v16219_v7 = vpack.c.bf16 %v1877_v30, %v1869_v51  ;;  %v16224_v43 = vpack.c.bf16 %v1879_v37, %v1871_v32  ;;  %v14114_v16 = vld [vmem:[%s19583_s30 + $0x1ec] ss:$16 sps:$4 sm:$0xff]   ;;  %v14121_v38 = vld [vmem:[%s19583_s30 + $0x3c8] ss:$16 sps:$4 sm:$0xff]  }
 0x179   : > { %4230 = vmatpush1.bf16.msra.mxu1 %v14097_v55  ;;  %4158 = vmatprep.subr.bf16.mxu0 %v14102_v35  ;;  %v14123_v55 = vld [vmem:[%s19583_s30 + $0x3cc] ss:$16 sps:$4 sm:$0xff]   ;;  %v14124_v9 = vld [vmem:[%s19583_s30 + $0x1a8] ss:$16 sps:$4 sm:$0xff]  }
 0x17a   : > { %4062 = vmatprep.mubr.bf16.mxu0 %v16219_v7  ;;  %4231 = vmatprep.subr.bf16.mxu1 %v14105_v25  ;;  %v14126_v51 = vld [vmem:[%s19583_s30 + $0x1ac] ss:$16 sps:$4 sm:$0xff]   ;;  %v14127_v11 = vld [vmem:[%s19583_s30 + $0x3a8] ss:$16 sps:$4 sm:$0xff]  }
 0x17b   : > { %4135 = vmatprep.mubr.bf16.mxu1 %v16224_v43  ;;  %4063 = vmatmul.mubr.bf16.gmra.mxu0 %v16212_v12  ;;  %v14129_v2 = vld [vmem:[%s19583_s30 + $0x3ac] ss:$16 sps:$4 sm:$0xff]   ;;  %v14130_v62 = vld [vmem:[%s19583_s30 + $0x188] ss:$16 sps:$4 sm:$0xff]  }
 0x17c   : > { %4136 = vmatmul.mubr.bf16.gmra.mxu1 %v16217_v21  ;;  %4159 = vmatpush1.bf16.msra.mxu0 %v14100_v52  ;;  %v14132_v32 = vld [vmem:[%s19583_s30 + $0x18c] ss:$16 sps:$4 sm:$0xff]   ;;  %v14133_v35 = vld [vmem:[%s19583_s30 + $0x388] ss:$16 sps:$4 sm:$0xff]  }
 0x17d   : > { %4232 = vmatpush1.bf16.msra.mxu1 %v14103_v28  ;;  %4178 = vmatprep.mubr.bf16.mxu0 %v15791_v60  ;;  %v14112_v60 = vld [vmem:[%s19583_s30 + $0x1e8] ss:$16 sps:$4 sm:$0xff]   ;;  %v14135_v33 = vld [vmem:[%s19583_s30 + $0x38c] ss:$16 sps:$4 sm:$0xff]  }
 0x17e   : > { %4251 = vmatprep.mubr.bf16.mxu1 %v15797_v1  ;;  %4160 = vmatprep.subr.bf16.mxu0 %v14108_v41  ;;  %v14118_v1 = vld [vmem:[%s19583_s30 + $0x1c8] ss:$16 sps:$4 sm:$0xff]   ;;  %v14138_v30 = vld [vmem:[%s19583_s30 + $0x16c] ss:$16 sps:$4 sm:$0xff]  }
 0x17f   : > { %4233 = vmatprep.subr.bf16.mxu1 %v14111_v45  ;;  %v14136_v52 = vld [vmem:[%s19583_s30 + $0x168] ss:$16 sps:$4 sm:$0xff]   ;;  %v14141_v25 = vld [vmem:[%s19583_s30 + $0x36c] ss:$16 sps:$4 sm:$0xff]  }
 0x180   : > { %4161 = vmatpush1.bf16.msra.mxu0 %v14106_v40  ;;  %v14139_v37 = vld [vmem:[%s19583_s30 + $0x368] ss:$16 sps:$4 sm:$0xff]   ;;  %v14144_v28 = vld [vmem:[%s19583_s30 + $0x14c] ss:$16 sps:$4 sm:$0xff]  }
 0x181   : > { %4234 = vmatpush1.bf16.msra.mxu1 %v14109_v42  ;;  %4162 = vmatprep.subr.bf16.mxu0 %v14114_v16  ;;  %v14147_v41 = vld [vmem:[%s19583_s30 + $0x34c] ss:$16 sps:$4 sm:$0xff]   ;;  %v14142_v45 = vld [vmem:[%s19583_s30 + $0x148] ss:$16 sps:$4 sm:$0xff]  }
 0x182   : > { %4235 = vmatprep.subr.bf16.mxu1 %v14117_v48  ;;  %v14145_v40 = vld [vmem:[%s19583_s30 + $0x348] ss:$16 sps:$4 sm:$0xff]   ;;  %v14150_v42 = vld [vmem:[%s19583_s30 + $0x12c] ss:$16 sps:$4 sm:$0xff]  }
 0x183   : > { %v14153_v16 = vld [vmem:[%s19583_s30 + $0x32c] ss:$16 sps:$4 sm:$0xff]   ;;  %v14148_v48 = vld [vmem:[%s19583_s30 + $0x128] ss:$16 sps:$4 sm:$0xff]  }
 0x184   : > { %4163 = vmatpush2.bf16.msra.mxu0 %v14112_v60  ;;  %v14151_v60 = vld [vmem:[%s19583_s30 + $0x328] ss:$16 sps:$4 sm:$0xff]  }
 0x185   : > { %4236 = vmatpush2.bf16.msra.mxu1 %v14115_v31  ;;  %4164 = vmatprep.subr.bf16.mxu0 %v14120_v29  ;;  %v14156_v31 = vld [vmem:[%s19583_s30 + $0x10c] ss:$16 sps:$4 sm:$0xff]  }
 0x186   : > { %4237 = vmatprep.subr.bf16.mxu1 %v14123_v55  ;;  %v14159_v29 = vld [vmem:[%s19583_s30 + $0x30c] ss:$16 sps:$4 sm:$0xff]   ;;  %v14157_v55 = vld [vmem:[%s19583_s30 + $0x308] ss:$16 sps:$4 sm:$0xff]  }
 0x188   : > { %4165 = vmatpush2.bf16.msra.mxu0 %v14118_v1  ;;  %v14154_v1 = vld [vmem:[%s19583_s30 + $0x108] ss:$16 sps:$4 sm:$0xff]  }
 0x189   : > { %4238 = vmatpush2.bf16.msra.mxu1 %v14121_v38  ;;  %4166 = vmatprep.subr.bf16.mxu0 %v14126_v51  ;;  %v14162_v38 = vld [vmem:[%s19583_s30 + $0x4ec] ss:$16 sps:$4 sm:$0xff]  }
 0x18a   : > { %4239 = vmatprep.subr.bf16.mxu1 %v14129_v2  ;;  %v14165_v51 = vld [vmem:[%s19583_s30 + $0x6ec] ss:$16 sps:$4 sm:$0xff]   ;;  %v14163_v2 = vld [vmem:[%s19583_s30 + $0x6e8] ss:$16 sps:$4 sm:$0xff]  }
 0x18c   : > { %4167 = vmatpush2.bf16.msra.mxu0 %v14124_v9  ;;  %v14160_v9 = vld [vmem:[%s19583_s30 + $0x4e8] ss:$16 sps:$4 sm:$0xff]  }
 0x18d   : > { %4240 = vmatpush2.bf16.msra.mxu1 %v14127_v11  ;;  %4168 = vmatprep.subr.bf16.mxu0 %v14132_v32  ;;  %v14168_v11 = vld [vmem:[%s19583_s30 + $0x4cc] ss:$16 sps:$4 sm:$0xff]  }
 0x18e   : > { %4241 = vmatprep.subr.bf16.mxu1 %v14135_v33  ;;  %v14171_v32 = vld [vmem:[%s19583_s30 + $0x6cc] ss:$16 sps:$4 sm:$0xff]   ;;  %v14169_v33 = vld [vmem:[%s19583_s30 + $0x6c8] ss:$16 sps:$4 sm:$0xff]  }
 0x190   : > { %4169 = vmatpush2.bf16.msra.mxu0 %v14130_v62  ;;  %v14166_v62 = vld [vmem:[%s19583_s30 + $0x4c8] ss:$16 sps:$4 sm:$0xff]  }
 0x191   : > { %4242 = vmatpush2.bf16.msra.mxu1 %v14133_v35  ;;  %4170 = vmatprep.subr.bf16.mxu0 %v14138_v30  ;;  %v14180_v35 = vld [vmem:[%s19583_s30 + $0x48c] ss:$16 sps:$4 sm:$0xff]  }
 0x192   : > { %4243 = vmatprep.subr.bf16.mxu1 %v14141_v25  ;;  %v14183_v30 = vld [vmem:[%s19583_s30 + $0x68c] ss:$16 sps:$4 sm:$0xff]  }
 0x193   : > { %v14186_v25 = vld [vmem:[%s19583_s30 + $0x46c] ss:$16 sps:$4 sm:$0xff]  }
 0x194   : > { %4171 = vmatpush2.bf16.msra.mxu0 %v14136_v52  ;;  %v14178_v52 = vld [vmem:[%s19583_s30 + $0x488] ss:$16 sps:$4 sm:$0xff]  }
 0x195   : > { %4244 = vmatpush2.bf16.msra.mxu1 %v14139_v37  ;;  %4172 = vmatprep.subr.bf16.mxu0 %v14144_v28  ;;  %v14192_v37 = vld [vmem:[%s19583_s30 + $0x44c] ss:$16 sps:$4 sm:$0xff]  }
 0x196   : > { %4245 = vmatprep.subr.bf16.mxu1 %v14147_v41  ;;  %v14195_v28 = vld [vmem:[%s19583_s30 + $0x64c] ss:$16 sps:$4 sm:$0xff]   ;;  %v14190_v41 = vld [vmem:[%s19583_s30 + $0x448] ss:$16 sps:$4 sm:$0xff]  }
 0x198   : > { %4173 = vmatpush2.bf16.msra.mxu0 %v14142_v45  ;;  %v14198_v45 = vld [vmem:[%s19583_s30 + $0x42c] ss:$16 sps:$4 sm:$0xff]  }
 0x199   : > { %4246 = vmatpush2.bf16.msra.mxu1 %v14145_v40  ;;  %4174 = vmatprep.subr.bf16.mxu0 %v14150_v42  ;;  %v14204_v40 = vld [vmem:[%s19583_s30 + $0x40c] ss:$16 sps:$4 sm:$0xff]  }
 0x19a   : > { %4247 = vmatprep.subr.bf16.mxu1 %v14153_v16  ;;  %v14207_v42 = vld [vmem:[%s19583_s30 + $0x60c] ss:$16 sps:$4 sm:$0xff]   ;;  %v14202_v16 = vld [vmem:[%s19583_s30 + $0x408] ss:$16 sps:$4 sm:$0xff]  }
 0x19c   : > { %4175 = vmatpush2.bf16.msra.mxu0 %v14148_v48  ;;  %v14210_v48 = vld [vmem:[%s19583_s30 + $0x5ec] ss:$16 sps:$4 sm:$0xff]  }
 0x19d   : > { %4248 = vmatpush2.bf16.msra.mxu1 %v14151_v60  ;;  %4176 = vmatprep.subr.bf16.mxu0 %v14156_v31  ;;  %v14216_v60 = vld [vmem:[%s19583_s30 + $0x5cc] ss:$16 sps:$4 sm:$0xff]  }
 0x19e   : > { %4249 = vmatprep.subr.bf16.mxu1 %v14159_v29  ;;  %v14219_v31 = vld [vmem:[%s19583_s30 + $0x7cc] ss:$16 sps:$4 sm:$0xff]   ;;  %v14214_v29 = vld [vmem:[%s19583_s30 + $0x5c8] ss:$16 sps:$4 sm:$0xff]  }
 0x1a0   : > { %4177 = vmatpush2.bf16.msra.mxu0 %v14154_v1  ;;  %v14217_v1 = vld [vmem:[%s19583_s30 + $0x7c8] ss:$16 sps:$4 sm:$0xff]  }
 0x1a1   : > { %4250 = vmatpush2.bf16.msra.mxu1 %v14157_v55  ;;  %4292 = vmatprep.subr.bf16.mxu0 %v14162_v38  ;;  %v14222_v55 = vld [vmem:[%s19583_s30 + $0x5ac] ss:$16 sps:$4 sm:$0xff]  }
 0x1a2   : > { %4365 = vmatprep.subr.bf16.mxu1 %v14165_v51  ;;  %v14225_v38 = vld [vmem:[%s19583_s30 + $0x7ac] ss:$16 sps:$4 sm:$0xff]   ;;  %v14220_v51 = vld [vmem:[%s19583_s30 + $0x5a8] ss:$16 sps:$4 sm:$0xff]  }
 0x1a3   : > { %4179 = vmatmul.mubr.bf16.vlgmr.msra.gmra.mxu0 %v15795_v0  ;;  %v14174_v0 = vld [vmem:[%s19583_s30 + $0x4ac] ss:$16 sps:$4 sm:$0xff]  }
 0x1a4   : > { %4252 = vmatmul.mubr.bf16.vlgmr.msra.gmra.mxu1 %v15800_v5  ;;  %4188 = vmatprep.mubr.bf16.mxu0 %v15844_v46  ;;  %v14177_v5 = vld [vmem:[%s19583_s30 + $0x6ac] ss:$16 sps:$4 sm:$0xff]   ;;  %v14172_v46 = vld [vmem:[%s19583_s30 + $0x4a8] ss:$16 sps:$4 sm:$0xff]  }
 0x1a5   : > { %4261 = vmatprep.mubr.bf16.mxu1 %v15847_v49  ;;  %4293 = vmatpush1.bf16.msra.mxu0 %v14160_v9  ;;  %v14175_v49 = vld [vmem:[%s19583_s30 + $0x6a8] ss:$16 sps:$4 sm:$0xff]  }
 0x1a6   : > { %4366 = vmatpush1.bf16.msra.mxu1 %v14163_v2  ;;  %4294 = vmatprep.subr.bf16.mxu0 %v14168_v11  ;;  %v14223_v9 = vld [vmem:[%s19583_s30 + $0x7a8] ss:$16 sps:$4 sm:$0xff]   ;;  %v14228_v2 = vld [vmem:[%s19583_s30 + $0x58c] ss:$16 sps:$4 sm:$0xff]  }
 0x1a7   : > { %4367 = vmatprep.subr.bf16.mxu1 %v14171_v32  ;;  %v14231_v11 = vld [vmem:[%s19583_s30 + $0x78c] ss:$16 sps:$4 sm:$0xff]   ;;  %v14226_v32 = vld [vmem:[%s19583_s30 + $0x588] ss:$16 sps:$4 sm:$0xff]  }
 0x1a9   : > { %4295 = vmatpush1.bf16.msra.mxu0 %v14166_v62  ;;  %v14229_v62 = vld [vmem:[%s19583_s30 + $0x788] ss:$16 sps:$4 sm:$0xff]  }
 0x1aa   : > { %4368 = vmatpush1.bf16.msra.mxu1 %v14169_v33  ;;  %4296 = vmatprep.subr.bf16.mxu0 %v14174_v0  ;;  %v14234_v33 = vld [vmem:[%s19583_s30 + $0x56c] ss:$16 sps:$4 sm:$0xff]  }
 0x1ab   : > { %4189 = vmatmul.mubr.bf16.gmra.mxu0 %v15834_v39  ;;  %4369 = vmatprep.subr.bf16.mxu1 %v14177_v5  ;;  %v14181_v39 = vld [vmem:[%s19583_s30 + $0x688] ss:$16 sps:$4 sm:$0xff]   ;;  %v14237_v0 = vld [vmem:[%s19583_s30 + $0x76c] ss:$16 sps:$4 sm:$0xff]  }
 0x1ac   : > { %4262 = vmatmul.mubr.bf16.gmra.mxu1 %v15840_v58  ;;  %4198 = vmatprep.mubr.bf16.mxu0 %v15888_v34  ;;  %v14189_v58 = vld [vmem:[%s19583_s30 + $0x66c] ss:$16 sps:$4 sm:$0xff]   ;;  %v14184_v34 = vld [vmem:[%s19583_s30 + $0x468] ss:$16 sps:$4 sm:$0xff]  }
 0x1ad   : > { %4271 = vmatprep.mubr.bf16.mxu1 %v15891_v36  ;;  %4297 = vmatpush1.bf16.msra.mxu0 %v14172_v46  ;;  %v14187_v36 = vld [vmem:[%s19583_s30 + $0x668] ss:$16 sps:$4 sm:$0xff]  }
 0x1ae   : > { %4370 = vmatpush1.bf16.msra.mxu1 %v14175_v49  ;;  %4298 = vmatprep.subr.bf16.mxu0 %v14180_v35  ;;  %v14232_v5 = vld [vmem:[%s19583_s30 + $0x568] ss:$16 sps:$4 sm:$0xff]   ;;  %v14240_v49 = vld [vmem:[%s19583_s30 + $0x54c] ss:$16 sps:$4 sm:$0xff]  }
 0x1af   : > { %4371 = vmatprep.subr.bf16.mxu1 %v14183_v30  ;;  %v14235_v46 = vld [vmem:[%s19583_s30 + $0x768] ss:$16 sps:$4 sm:$0xff]   ;;  %v14243_v35 = vld [vmem:[%s19583_s30 + $0x74c] ss:$16 sps:$4 sm:$0xff]  }
 0x1b0   : > { %v14238_v30 = vld [vmem:[%s19583_s30 + $0x548] ss:$16 sps:$4 sm:$0xff]  }
 0x1b1   : > { %4299 = vmatpush1.bf16.msra.mxu0 %v14178_v52  ;;  %v14241_v52 = vld [vmem:[%s19583_s30 + $0x748] ss:$16 sps:$4 sm:$0xff]  }
 0x1b2   : > { %4372 = vmatpush1.bf16.msra.mxu1 %v14181_v39  ;;  %4300 = vmatprep.subr.bf16.mxu0 %v14186_v25  ;;  %v14246_v39 = vld [vmem:[%s19583_s30 + $0x52c] ss:$16 sps:$4 sm:$0xff]  }
 0x1b3   : > { %4199 = vmatmul.mubr.bf16.gmra.mxu0 %v15878_v17  ;;  %4373 = vmatprep.subr.bf16.mxu1 %v14189_v58  ;;  %v14193_v17 = vld [vmem:[%s19583_s30 + $0x648] ss:$16 sps:$4 sm:$0xff]   ;;  %v14249_v25 = vld [vmem:[%s19583_s30 + $0x72c] ss:$16 sps:$4 sm:$0xff]  }
 0x1b4   : > { %4272 = vmatmul.mubr.bf16.gmra.mxu1 %v15884_v56  ;;  %4208 = vmatprep.mubr.bf16.mxu0 %v15929_v3  ;;  %v14201_v56 = vld [vmem:[%s19583_s30 + $0x62c] ss:$16 sps:$4 sm:$0xff]   ;;  %v14196_v3 = vld [vmem:[%s19583_s30 + $0x428] ss:$16 sps:$4 sm:$0xff]  }
 0x1b5   : > { %4281 = vmatprep.mubr.bf16.mxu1 %v15931_v4  ;;  %4301 = vmatpush1.bf16.msra.mxu0 %v14184_v34  ;;  %v14199_v4 = vld [vmem:[%s19583_s30 + $0x628] ss:$16 sps:$4 sm:$0xff]  }
 0x1b6   : > { %4374 = vmatpush1.bf16.msra.mxu1 %v14187_v36  ;;  %4302 = vmatprep.subr.bf16.mxu0 %v14192_v37  ;;  %v14244_v58 = vld [vmem:[%s19583_s30 + $0x528] ss:$16 sps:$4 sm:$0xff]   ;;  %v14252_v36 = vld [vmem:[%s19583_s30 + $0x50c] ss:$16 sps:$4 sm:$0xff]  }
 0x1b7   : > { %4375 = vmatprep.subr.bf16.mxu1 %v14195_v28  ;;  %v14247_v34 = vld [vmem:[%s19583_s30 + $0x728] ss:$16 sps:$4 sm:$0xff]   ;;  %v14255_v37 = vld [vmem:[%s19583_s30 + $0x70c] ss:$16 sps:$4 sm:$0xff]  }
 0x1b8   : > { %v14250_v28 = vld [vmem:[%s19583_s30 + $0x508] ss:$16 sps:$4 sm:$0xff]  }
 0x1b9   : > { %4303 = vmatpush1.bf16.msra.mxu0 %v14190_v41  ;;  %v14253_v41 = vld [vmem:[%s19583_s30 + $0x708] ss:$16 sps:$4 sm:$0xff]  }
 0x1ba   : > { %4376 = vmatpush1.bf16.msra.mxu1 %v14193_v17  ;;  %4304 = vmatprep.subr.bf16.mxu0 %v14198_v45  ;;  %v14258_v17 = vld [vmem:[%s19585_s27 + $0x74] ss:$8 sps:$4 sm:$0xff]   ;;  %v14256_v45 = vld [vmem:[%s19585_s27 + $0x70] ss:$8 sps:$4 sm:$0xff]  }
 0x1bb   : > { %4209 = vmatmul.mubr.bf16.gmra.mxu0 %v15922_v61  ;;  %4377 = vmatprep.subr.bf16.mxu1 %v14201_v56  ;;  %v14205_v61 = vld [vmem:[%s19583_s30 + $0x608] ss:$16 sps:$4 sm:$0xff]   ;;  %v14261_v56 = vld [vmem:[%s19585_s27 + $0x64] ss:$8 sps:$4 sm:$0xff]  }
 0x1bc   : > { %4282 = vmatmul.mubr.bf16.gmra.mxu1 %v15927_v63  ;;  %4324 = vmatprep.mubr.bf16.mxu0 %v16089_v8  ;;  %v14213_v63 = vld [vmem:[%s19583_s30 + $0x7ec] ss:$16 sps:$4 sm:$0xff]   ;;  %v14208_v8 = vld [vmem:[%s19583_s30 + $0x5e8] ss:$16 sps:$4 sm:$0xff]  }
 0x1bd   : > { %4305 = vmatpush1.bf16.msra.mxu0 %v14196_v3  ;;  %4397 = vmatprep.mubr.bf16.mxu1 %v16097_v13  ;;  %v14211_v13 = vld [vmem:[%s19583_s30 + $0x7e8] ss:$16 sps:$4 sm:$0xff]  }
 0x1be   : > { %4378 = vmatpush1.bf16.msra.mxu1 %v14199_v4  ;;  %4306 = vmatprep.subr.bf16.mxu0 %v14204_v40  ;;  %v14259_v3 = vld [vmem:[%s19585_s27 + $0x60] ss:$8 sps:$4 sm:$0xff]   ;;  %v14264_v40 = vld [vmem:[%s19585_s27 + $0x54] ss:$8 sps:$4 sm:$0xff]  }
 0x1bf   : > { %4379 = vmatprep.subr.bf16.mxu1 %v14207_v42 }
 0x1c1   : > { %4307 = vmatpush1.bf16.msra.mxu0 %v14202_v16  ;;  %v14265_v16 = vld [vmem:[%s19585_s27 + $0x40] ss:$8 sps:$4 sm:$0xff]  }
 0x1c2   : > { %4380 = vmatpush1.bf16.msra.mxu1 %v14205_v61  ;;  %4308 = vmatprep.subr.bf16.mxu0 %v14210_v48  ;;  %v14270_v48 = vld [vmem:[%s19585_s27 + $0x34] ss:$8 sps:$4 sm:$0xff]  }
 0x1c3   : > { %4381 = vmatprep.subr.bf16.mxu1 %v14213_v63 }
 0x1c5   : > { %4309 = vmatpush2.bf16.msra.mxu0 %v14208_v8 }
 0x1c6   : > { %4382 = vmatpush2.bf16.msra.mxu1 %v14211_v13  ;;  %4310 = vmatprep.subr.bf16.mxu0 %v14216_v60  ;;  %v14304_v13 = vld [vmem:[%s19585_s27 + $0x170] ss:$8 sps:$4 sm:$0xff]  }
 0x1c7   : > { %4383 = vmatprep.subr.bf16.mxu1 %v14219_v31 }
 0x1c9   : > { %4311 = vmatpush2.bf16.msra.mxu0 %v14214_v29  ;;  %v14271_v29 = vld [vmem:[%s19585_s27 + $0x20] ss:$8 sps:$4 sm:$0xff]  }
 0x1ca   : > { %4384 = vmatpush2.bf16.msra.mxu1 %v14217_v1  ;;  %4312 = vmatprep.subr.bf16.mxu0 %v14222_v55  ;;  %v14274_v55 = vld [vmem:[%s19585_s27 + $0x10] ss:$8 sps:$4 sm:$0xff]  }
 0x1cb   : > { %4385 = vmatprep.subr.bf16.mxu1 %v14225_v38  ;;  %v14279_v38 = vld [vmem:[%s19585_s27 + $0x4] ss:$8 sps:$4 sm:$0xff]  }
 0x1cd   : > { %4313 = vmatpush2.bf16.msra.mxu0 %v14220_v51  ;;  %v14312_v51 = vld [vmem:[%s19585_s27 + $0x154] ss:$8 sps:$4 sm:$0xff]  }
 0x1ce   : > { %4386 = vmatpush2.bf16.msra.mxu1 %v14223_v9  ;;  %4314 = vmatprep.subr.bf16.mxu0 %v14228_v2  ;;  %v14310_v9 = vld [vmem:[%s19585_s27 + $0x150] ss:$8 sps:$4 sm:$0xff]  }
 0x1cf   : > { %4387 = vmatprep.subr.bf16.mxu1 %v14231_v11 }
 0x1d1   : > { %4315 = vmatpush2.bf16.msra.mxu0 %v14226_v32  ;;  %v14277_v32 = vld [vmem:[%s19585_s27] ss:$8 sps:$4 sm:$0xff]  }
 0x1d2   : > { %4388 = vmatpush2.bf16.msra.mxu1 %v14229_v62  ;;  %4316 = vmatprep.subr.bf16.mxu0 %v14234_v33  ;;  %v14315_v62 = vld [vmem:[%s19585_s27 + $0x144] ss:$8 sps:$4 sm:$0xff]  }
 0x1d3   : > { %4389 = vmatprep.subr.bf16.mxu1 %v14237_v0 }
 0x1d5   : > { %4317 = vmatpush2.bf16.msra.mxu0 %v14232_v5  ;;  %v14280_v5 = vld [vmem:[%s19585_s27 + $0xf0] ss:$8 sps:$4 sm:$0xff]  }
 0x1d6   : > { %4390 = vmatpush2.bf16.msra.mxu1 %v14235_v46  ;;  %4318 = vmatprep.subr.bf16.mxu0 %v14240_v49  ;;  %v14285_v46 = vld [vmem:[%s19585_s27 + $0xe4] ss:$8 sps:$4 sm:$0xff]   ;;  %v14318_v49 = vld [vmem:[%s19585_s27 + $0x134] ss:$8 sps:$4 sm:$0xff]  }
 0x1d7   : > { %4391 = vmatprep.subr.bf16.mxu1 %v14243_v35  ;;  %v14316_v35 = vld [vmem:[%s19585_s27 + $0x130] ss:$8 sps:$4 sm:$0xff]  }
 0x1d9   : > { %4319 = vmatpush2.bf16.msra.mxu0 %v14238_v30 }
 0x1da   : > { %4392 = vmatpush2.bf16.msra.mxu1 %v14241_v52  ;;  %4320 = vmatprep.subr.bf16.mxu0 %v14246_v39  ;;  %v14321_v52 = vld [vmem:[%s19585_s27 + $0x124] ss:$8 sps:$4 sm:$0xff]  }
 0x1db   : > { %4393 = vmatprep.subr.bf16.mxu1 %v14249_v25  ;;  %v14283_v25 = vld [vmem:[%s19585_s27 + $0xe0] ss:$8 sps:$4 sm:$0xff]  }
 0x1dd   : > { %4321 = vmatpush2.bf16.msra.mxu0 %v14244_v58  ;;  %v14288_v58 = vld [vmem:[%s19585_s27 + $0xd4] ss:$8 sps:$4 sm:$0xff]  }
 0x1de   : > { %4394 = vmatpush2.bf16.msra.mxu1 %v14247_v34  ;;  %4322 = vmatprep.subr.bf16.mxu0 %v14252_v36  ;;  %v14319_v34 = vld [vmem:[%s19585_s27 + $0x120] ss:$8 sps:$4 sm:$0xff]  }
 0x1df   : > { %4395 = vmatprep.subr.bf16.mxu1 %v14255_v37  ;;  %v14324_v37 = vld [vmem:[%s19585_s27 + $0x114] ss:$8 sps:$4 sm:$0xff]  }
 0x1e1   : > { %4323 = vmatpush2.bf16.msra.mxu0 %v14250_v28 }
 0x1e2   : > { %4396 = vmatpush2.bf16.msra.mxu1 %v14253_v41  ;;  %5074 = vmatprep.subr.bf16.mxu0 %v14258_v17  ;;  %v14286_v41 = vld [vmem:[%s19585_s27 + $0xd0] ss:$8 sps:$4 sm:$0xff]   ;;  %v14291_v17 = vld [vmem:[%s19585_s27 + $0xc4] ss:$8 sps:$4 sm:$0xff]  }
 0x1e3   : > { %v16561_v4 = vpop.f32.mrf.mxu0  ;;  %v16566_v42 = vpop.f32.mrf.mxu1 }
 0x1e4   : > { %4325 = vmatmul.mubr.bf16.vlgmr.msra.gmra.mxu0 %v16094_v10  ;;  %v14262_v10 = vld [vmem:[%s19585_s27 + $0x50] ss:$8 sps:$4 sm:$0xff]  }
 0x1e5   : > { %4398 = vmatmul.mubr.bf16.vlgmr.msra.gmra.mxu1 %v16099_v14  ;;  %4334 = vmatprep.mubr.bf16.mxu0 %v16137_v15  ;;  %v16571_v14 = vpop.f32.mrf.mxu0  ;;  %v14267_v15 = vld [vmem:[%s19585_s27 + $0x44] ss:$8 sps:$4 sm:$0xff]  }
 0x1e6   : > { %4407 = vmatprep.mubr.bf16.mxu1 %v16143_v18  ;;  %5075 = vmatpush1.bf16.msra.mxu0 %v14256_v45  ;;  %v16576_v18 = vpop.f32.mrf.mxu1  ;;  %v14322_v45 = vld [vmem:[%s19585_s27 + $0x110] ss:$8 sps:$4 sm:$0xff]  }
 0x1e7   : > { %5076 = vmatprep.subr.bf16.mxu0 %v14261_v56  ;;  %v16585_v61 = vpop.f32.mrf.mxu0 }
 0x1e8   : > { %v16590_v63 = vpop.f32.mrf.mxu1 }
 0x1ea   : > { %5077 = vmatpush1.bf16.msra.mxu0 %v14259_v3  ;;  %v16603_v8 = vpop.f32.mrf.mxu1  ;;  %v14327_v3 = vld [vmem:[%s19585_s27 + $0x104] ss:$8 sps:$4 sm:$0xff]  }
 0x1eb   : > { %5078 = vmatprep.subr.bf16.mxu0 %v14264_v40 }
 0x1ec   : > { %4335 = vmatmul.mubr.bf16.gmra.mxu0 %v16124_v57  ;;  %v14268_v57 = vld [vmem:[%s19585_s27 + $0x30] ss:$8 sps:$4 sm:$0xff]   ;;  %v16614_v31 = vpop.f32.mrf.mxu1 }
 0x1ed   : > { %4408 = vmatmul.mubr.bf16.gmra.mxu1 %v16133_v54  ;;  %4344 = vmatprep.mubr.bf16.mxu0 %v16181_v20  ;;  %v16595_v54 = vpop.f32.mrf.mxu0  ;;  %v14273_v20 = vld [vmem:[%s19585_s27 + $0x24] ss:$8 sps:$4 sm:$0xff]  }
 0x1ee   : > { %4417 = vmatprep.mubr.bf16.mxu1 %v16187_v59  ;;  %5079 = vmatpush1.bf16.msra.mxu0 %v14262_v10  ;;  %v14306_v59 = vld [vmem:[%s19585_s27 + $0x174] ss:$8 sps:$4 sm:$0xff]   ;;  %v16630_v1 = vpop.f32.mrf.mxu1  ;;  %v14289_v10 = vld [vmem:[%s19585_s27 + $0xc0] ss:$8 sps:$4 sm:$0xff]  }
 0x1ef   : > { %5080 = vmatprep.subr.bf16.mxu0 %v14267_v15  ;;  %v16611_v60 = vpop.f32.mrf.mxu0  ;;  %5147 = vmatprep.subr.bf16.mxu1 %v14306_v59  ;;  %v14294_v15 = vld [vmem:[%s19585_s27 + $0xb4] ss:$8 sps:$4 sm:$0xff]   ;;  %v14292_v59 = vld [vmem:[%s19585_s27 + $0xb0] ss:$8 sps:$4 sm:$0xff]  }
 0x1f0   : > { %5148 = vmatpush1.bf16.msra.mxu1 %v14304_v13  ;;  %v16648_v11 = vpop.f32.mrf.mxu1  ;;  %v14297_v13 = vld [vmem:[%s19585_s27 + $0xa4] ss:$8 sps:$4 sm:$0xff]  }
 0x1f2   : > { %5081 = vmatpush1.bf16.msra.mxu0 %v14265_v16  ;;  %v16664_v0 = vpop.f32.mrf.mxu1  ;;  %v14325_v16 = vld [vmem:[%s19585_s27 + $0x100] ss:$8 sps:$4 sm:$0xff]  }
 0x1f3   : > { %5082 = vmatprep.subr.bf16.mxu0 %v14270_v48 }
 0x1f4   : > { %4345 = vmatmul.mubr.bf16.gmra.mxu0 %v16168_v6  ;;  %v14276_v6 = vld [vmem:[%s19585_s27 + $0x14] ss:$8 sps:$4 sm:$0xff]   ;;  %v16683_v39 = vpop.f32.mrf.mxu1 }
 0x1f5   : > { %4418 = vmatmul.mubr.bf16.gmra.mxu1 %v16177_v53  ;;  %4354 = vmatprep.mubr.bf16.mxu0 %v16219_v7  ;;  %v14309_v53 = vld [vmem:[%s19585_s27 + $0x164] ss:$8 sps:$4 sm:$0xff]   ;;  %v14307_v7 = vld [vmem:[%s19585_s27 + $0x160] ss:$8 sps:$4 sm:$0xff]  }
 0x1f6   : > { %4427 = vmatprep.mubr.bf16.mxu1 %v16224_v43  ;;  %5083 = vmatpush1.bf16.msra.mxu0 %v14268_v57  ;;  %v16628_v43 = vpop.f32.mrf.mxu0  ;;  %v16699_v28 = vpop.f32.mrf.mxu1  ;;  %v14330_v57 = vld [vmem:[%s19585_s27 + $0x1f4] ss:$8 sps:$4 sm:$0xff]  }
 0x1f7   : > { %5084 = vmatprep.subr.bf16.mxu0 %v14273_v20  ;;  %5149 = vmatprep.subr.bf16.mxu1 %v14309_v53  ;;  %v14333_v53 = vld [vmem:[%s19585_s27 + $0x1e4] ss:$8 sps:$4 sm:$0xff]  }
 0x1f8   : > { %5150 = vmatpush1.bf16.msra.mxu1 %v14307_v7  ;;  %v16646_v2 = vpop.f32.mrf.mxu0  ;;  %v16715_v40 = vpop.f32.mrf.mxu1 }
 0x1f9   : > { %5151 = vmatprep.subr.bf16.mxu1 %v14312_v51  ;;  %v14331_v51 = vld [vmem:[%s19585_s27 + $0x1e0] ss:$8 sps:$4 sm:$0xff]  }
 0x1fa   : > { %5085 = vmatpush1.bf16.msra.mxu0 %v14271_v29  ;;  %v16662_v33 = vpop.f32.mrf.mxu0  ;;  %v16731_v20 = vpop.f32.mrf.mxu1  ;;  %v14328_v29 = vld [vmem:[%s19585_s27 + $0x1f0] ss:$8 sps:$4 sm:$0xff]  }
 0x1fb   : > { %5086 = vmatprep.subr.bf16.mxu0 %v14276_v6 }
 0x1fc   : > { %4355 = vmatmul.mubr.bf16.gmra.mxu0 %v16212_v12  ;;  %v14282_v12 = vld [vmem:[%s19585_s27 + $0xf4] ss:$8 sps:$4 sm:$0xff]   ;;  %5152 = vmatpush1.bf16.msra.mxu1 %v14310_v9  ;;  %v16678_v30 = vpop.f32.mrf.mxu0  ;;  %v16747_v7 = vpop.f32.mrf.mxu1 }
 0x1fd   : > { %4428 = vmatmul.mubr.bf16.gmra.mxu1 %v16217_v21  ;;  %v14313_v21 = vld [vmem:[%s19585_s27 + $0x140] ss:$8 sps:$4 sm:$0xff]   ;;  %5153 = vmatprep.subr.bf16.mxu1 %v14315_v62 }
 0x1fe   : > { %5087 = vmatpush1.bf16.msra.mxu0 %v14274_v55  ;;  %v16694_v36 = vpop.f32.mrf.mxu0  ;;  %v14295_v55 = vld [vmem:[%s19585_s27 + $0xa0] ss:$8 sps:$4 sm:$0xff]   ;;  %v16768_v62 = vpop.f32.mrf.mxu1 }
 0x1ff   : > { %5088 = vmatprep.subr.bf16.mxu0 %v14279_v38  ;;  %v14300_v38 = vld [vmem:[%s19585_s27 + $0x94] ss:$8 sps:$4 sm:$0xff]  }
 0x200   : > { %5154 = vmatpush1.bf16.msra.mxu1 %v14313_v21  ;;  %v16710_v56 = vpop.f32.mrf.mxu0  ;;  %v14298_v21 = vld [vmem:[%s19585_s27 + $0x90] ss:$8 sps:$4 sm:$0xff]  }
 0x201   : > { %5155 = vmatprep.subr.bf16.mxu1 %v14318_v49  ;;  %v14334_v49 = vld [vmem:[%s19585_s27 + $0x1d0] ss:$8 sps:$4 sm:$0xff]  }
 0x202   : > { %5089 = vmatpush1.bf16.msra.mxu0 %v14277_v32  ;;  %v16726_v48 = vpop.f32.mrf.mxu0  ;;  %v14336_v32 = vld [vmem:[%s19585_s27 + $0x1d4] ss:$8 sps:$4 sm:$0xff]  }
 0x203   : > { %5090 = vmatprep.subr.bf16.mxu0 %v14282_v12  ;;  %v16766_v12 = vld [vmem:[%s19586_s22] sm:$0xf] }
 0x204   : > { %5156 = vmatpush1.bf16.msra.mxu1 %v14316_v35  ;;  %v16742_v6 = vpop.f32.mrf.mxu0  ;;  %v16785_v35 = vrot.slane %v16766_v12, %v15741_v23 }
 0x205   : > { %5157 = vmatprep.subr.bf16.mxu1 %v14321_v52 }
 0x206   : > { %5091 = vmatpush2.bf16.msra.mxu0 %v14280_v5  ;;  %v16758_v9 = vpop.f32.mrf.mxu0  ;;  %v14303_v5 = vld [vmem:[%s19585_s27 + $0x84] ss:$8 sps:$4 sm:$0xff]  }
 0x207   : > { %5092 = vmatprep.subr.bf16.mxu0 %v14285_v46  ;;  %v16778_v46 = vrot.slane %v16766_v12, %v15752_v26 }
 0x208   : > { %5158 = vmatpush1.bf16.msra.mxu1 %v14319_v34  ;;  %v16787_v52 = vpop.f32.mrf.mxu0  ;;  %v14301_v34 = vld [vmem:[%s19585_s27 + $0x80] ss:$8 sps:$4 sm:$0xff]  }
 0x209   : > { %5159 = vmatprep.subr.bf16.mxu1 %v14324_v37  ;;  %v3891_v37 = vadd.f32 %v16571_v14, %v16778_v46  ;;  %v14342_v14 = vld [vmem:[%s19585_s27 + $0x1b4] ss:$8 sps:$4 sm:$0xff]  }
 0x20a   : > { %5093 = vmatpush2.bf16.msra.mxu0 %v14283_v25  ;;  %v14339_v25 = vld [vmem:[%s19585_s27 + $0x1c4] ss:$8 sps:$4 sm:$0xff]  }
 0x20b   : > { %5094 = vmatprep.subr.bf16.mxu0 %v14288_v58  ;;  %v16792_v58 = vpop.f32.mrf.mxu1 }
 0x20c   : > { %5160 = vmatpush1.bf16.msra.mxu1 %v14322_v45  ;;  %v16804_v45 = vpop.f32.mrf.mxu0 }
 0x20d   : > { %5161 = vmatprep.subr.bf16.mxu1 %v14327_v3  ;;  %v3893_v3 = vadd.f32 %v16585_v61, %v16785_v35 }
 0x20e   : > { %5095 = vmatpush2.bf16.msra.mxu0 %v14286_v41  ;;  %v14337_v41 = vld [vmem:[%s19585_s27 + $0x1c0] ss:$8 sps:$4 sm:$0xff]  }
 0x20f   : > { %5096 = vmatprep.subr.bf16.mxu0 %v14291_v17  ;;  %v3889_v17 = vadd.f32 %v16561_v4, %v16785_v35 }
 0x210   : > { %5162 = vmatpush1.bf16.msra.mxu1 %v14325_v16  ;;  %v3964_v16 = vadd.f32 %v16576_v18, %v3891_v37  ;;  %v14345_v18 = vld [vmem:[%s19585_s27 + $0x1a4] ss:$8 sps:$4 sm:$0xff]  }
 0x211   : > { %5163 = vmatprep.subr.bf16.mxu1 %v14330_v57  ;;  %v3895_v57 = vadd.f32 %v16595_v54, %v16778_v46  ;;  %v3962_v61 = vadd.f32 %v16566_v42, %v3889_v17  ;;  %v14343_v42 = vld [vmem:[%s19585_s27 + $0x1a0] ss:$8 sps:$4 sm:$0xff]  }
 0x212   : > { %5097 = vmatpush2.bf16.msra.mxu0 %v14289_v10  ;;  %v16808_v10 = vpop.f32.mrf.mxu1 }
 0x213   : > { %5098 = vmatprep.subr.bf16.mxu0 %v14294_v15  ;;  %v3968_v54 = vadd.f32 %v16603_v8, %v3895_v57 }
 0x214   : > { %5164 = vmatpush2.bf16.msra.mxu1 %v14328_v29  ;;  %v3966_v29 = vadd.f32 %v16590_v63, %v3893_v3  ;;  %v3899_v63 = vadd.f32 %v16611_v60, %v16785_v35  ;;  %v14348_v3 = vld [vmem:[%s19585_s27 + $0x194] ss:$8 sps:$4 sm:$0xff]   ;;  %v3905_v60 = vadd.f32 %v16662_v33, %v16778_v46 }
 0x215   : > { %5165 = vmatprep.subr.bf16.mxu1 %v14333_v53 }
 0x216   : > { %5099 = vmatpush2.bf16.msra.mxu0 %v14292_v59  ;;  %v14340_v59 = vld [vmem:[%s19585_s27 + $0x1b0] ss:$8 sps:$4 sm:$0xff]   ;;  %v3972_v57 = vadd.f32 %v16614_v31, %v3899_v63  ;;  %v3911_v31 = vadd.f32 %v16694_v36, %v16778_v46 }
 0x217   : > { %5100 = vmatprep.subr.bf16.mxu0 %v14297_v13 }
 0x218   : > { %5166 = vmatpush2.bf16.msra.mxu1 %v14331_v51 }
 0x219   : > { %5167 = vmatprep.subr.bf16.mxu1 %v14336_v32  ;;  %v3901_v32 = vadd.f32 %v16628_v43, %v16778_v46 }
 0x21a   : > { %5101 = vmatpush2.bf16.msra.mxu0 %v14295_v55 }
 0x21b   : > { %5102 = vmatprep.subr.bf16.mxu0 %v14300_v38 }
 0x21c   : > { %5168 = vmatpush2.bf16.msra.mxu1 %v14334_v49 }
 0x21d   : > { %5169 = vmatprep.subr.bf16.mxu1 %v14339_v25  ;;  %v3903_v25 = vadd.f32 %v16646_v2, %v16785_v35  ;;  %v14346_v2 = vld [vmem:[%s19585_s27 + $0x190] ss:$8 sps:$4 sm:$0xff]  }
 0x21e   : > { %5103 = vmatpush2.bf16.msra.mxu0 %v14298_v21 }
 0x21f   : > { %5104 = vmatprep.subr.bf16.mxu0 %v14303_v5 }
 0x220   : > { %5170 = vmatpush2.bf16.msra.mxu1 %v14337_v41 }
 0x221   : > { %5171 = vmatprep.subr.bf16.mxu1 %v14342_v14 }
 0x222   : > { %5105 = vmatpush2.bf16.msra.mxu0 %v14301_v34 }
 0x223   : > { %v4034_v15 = vpop.f32.mrf.mxu0 }
 0x224   : > { %v4107_v4 = vpop.f32.mrf.mxu1  ;;  %v4035_v38 = vadd.f32 %v4034_v15, %v3962_v61  ;;  %5172 = vmatpush2.bf16.msra.mxu1 %v14340_v59  ;;  %v3974_v15 = vadd.f32 %v16630_v1, %v3901_v32  ;;  %v3976_v61 = vadd.f32 %v16648_v11, %v3903_v25  ;;  %v14349_v11 = vld [vmem:[%s19585_s27 + $0x180] ss:$8 sps:$4 sm:$0xff]  }
 0x225   : > { %v4036_v13 = vpop.f32.mrf.mxu0  ;;  %5173 = vmatprep.subr.bf16.mxu1 %v14345_v18  ;;  %v3978_v18 = vadd.f32 %v16664_v0, %v3905_v60  ;;  %v3913_v0 = vadd.f32 %v16710_v56, %v16785_v35 }
 0x226   : > { %v4037_v53 = vadd.f32 %v4036_v13, %v3964_v16  ;;  %v4109_v55 = vpop.f32.mrf.mxu1  ;;  %v4108_v43 = vadd.f32 %v4107_v4, %v4035_v38 }
 0x227   : > { %v4038_v51 = vpop.f32.mrf.mxu0  ;;  %v3986_v60 = vadd.f32 %v16715_v40, %v3913_v0 }
 0x228   : > { %v4039_v21 = vadd.f32 %v4038_v51, %v3966_v29  ;;  %v4111_v5 = vpop.f32.mrf.mxu1  ;;  %v4110_v34 = vadd.f32 %v4109_v55, %v4037_v53  ;;  %5174 = vmatpush2.bf16.msra.mxu1 %v14343_v42  ;;  %v4438_v55 = vmax.f32 %v4108_v43, 0.0  ;;  %v14351_v51 = vld [vmem:[%s19585_s27 + $0x184] ss:$8 sps:$4 sm:$0xff]   ;;  %v3915_v43 = vadd.f32 %v16726_v48, %v16778_v46 }
 0x229   : > { %v4040_v49 = vpop.f32.mrf.mxu0  ;;  %5175 = vmatprep.subr.bf16.mxu1 %v14348_v3  ;;  %v3921_v48 = vadd.f32 %v16758_v9, %v16778_v46 }
 0x22a   : > { %v4112_v8 = vadd.f32 %v4111_v5, %v4039_v21  ;;  %v4041_v37 = vadd.f32 %v4040_v49, %v3968_v54  ;;  %v4113_v41 = vpop.f32.mrf.mxu1  ;;  %v4439_v13 = vmax.f32 %v4110_v34, 0.0  ;;  %v3909_v5 = vadd.f32 %v16678_v30, %v16785_v35 }
 0x22b   : > { %v4044_v17 = vpop.f32.mrf.mxu0  ;;  %v3994_v9 = vadd.f32 %v16768_v62, %v3921_v48 }
 0x22c   : > { %v4114_v14 = vadd.f32 %v4113_v41, %v4041_v37  ;;  %v4117_v16 = vpop.f32.mrf.mxu1  ;;  %v4442_v4 = vmax.f32 %v4112_v8, 0.0  ;;  %v4045_v33 = vadd.f32 %v4044_v17, %v3972_v57  ;;  %5176 = vmatpush2.bf16.msra.mxu1 %v14346_v2  ;;  %v3984_v41 = vadd.f32 %v16699_v28, %v3911_v31 }
 0x22d   : > { %v4046_v59 = vpop.f32.mrf.mxu0  ;;  %5177 = vmatprep.subr.bf16.mxu1 %v14351_v51  ;;  %v3982_v3 = vadd.f32 %v16683_v39, %v3909_v5  ;;  %v3988_v28 = vadd.f32 %v16731_v20, %v3915_v43  ;;  %v3919_v39 = vadd.f32 %v16742_v6, %v16785_v35 }
 0x22e   : > { %v4443_v29 = vmax.f32 %v4114_v14, 0.0  ;;  %v4047_v1 = vadd.f32 %v4046_v59, %v3974_v15  ;;  %v4119_v53 = vpop.f32.mrf.mxu1  ;;  %v13683_v42 = vpack.c.bf16 %v4442_v4, %v4438_v55  ;;  %v4118_v8 = vadd.f32 %v4117_v16, %v4045_v33 }
 0x22f   : > { %v4048_v38 = vpop.f32.mrf.mxu0  ;;  %v3923_v55 = vadd.f32 %v16787_v52, %v16785_v35 }
 0x230   : > { %v4049_v54 = vadd.f32 %v4048_v38, %v3976_v61  ;;  %v4121_v32 = vpop.f32.mrf.mxu1  ;;  %v13684_v21 = vpack.c.bf16 %v4443_v29, %v4439_v13  ;;  %v4120_v49 = vadd.f32 %v4119_v53, %v4047_v1  ;;  %5178 = vmatpush2.bf16.msra.mxu1 %v14349_v11  ;;  %v4446_v4 = vmax.f32 %v4118_v8, 0.0 }
 0x231   : > { %v4050_v63 = vpop.f32.mrf.mxu0  ;;  %v3996_v35 = vadd.f32 %v16792_v58, %v3923_v55 }
 0x232   : > { %v4051_v25 = vadd.f32 %v4050_v63, %v3978_v18  ;;  %v4122_v36 = vadd.f32 %v4121_v32, %v4049_v54  ;;  %5106 = vmatprep.mubr.bf16.mxu0 %v13684_v21  ;;  %v4123_v34 = vpop.f32.mrf.mxu1  ;;  %v4447_v14 = vmax.f32 %v4120_v49, 0.0  ;;  %v3925_v54 = vadd.f32 %v16804_v45, %v16778_v46 }
 0x233   : > { %v4054_v37 = vpop.f32.mrf.mxu0  ;;  %5107 = vmatmul.mubr.bf16.vlgmr.msra.gmra.mxu0 %v13683_v42  ;;  %v3992_v21 = vadd.f32 %v16747_v7, %v3919_v39 }
 0x234   : > { %v4124_v30 = vadd.f32 %v4123_v34, %v4051_v25  ;;  %v4127_v17 = vpop.f32.mrf.mxu1  ;;  %v4450_v15 = vmax.f32 %v4122_v36, 0.0  ;;  %v4055_v59 = vadd.f32 %v4054_v37, %v3982_v3  ;;  %v3998_v62 = vadd.f32 %v16808_v10, %v3925_v54 }
 0x235   : > { %v4056_v56 = vpop.f32.mrf.mxu0 }
 0x236   : > { %v4451_v2 = vmax.f32 %v4124_v30, 0.0  ;;  %v4057_v57 = vadd.f32 %v4056_v56, %v3984_v41  ;;  %v4129_v16 = vpop.f32.mrf.mxu1  ;;  %v13687_v53 = vpack.c.bf16 %v4450_v15, %v4446_v4  ;;  %v4128_v20 = vadd.f32 %v4127_v17, %v4055_v59 }
 0x237   : > { %v4058_v61 = vpop.f32.mrf.mxu0 }
 0x238   : > { %v4059_v13 = vadd.f32 %v4058_v61, %v3986_v60  ;;  %v4131_v29 = vpop.f32.mrf.mxu1  ;;  %v13688_v1 = vpack.c.bf16 %v4451_v2, %v4447_v14  ;;  %v4130_v33 = vadd.f32 %v4129_v16, %v4057_v57  ;;  %v4454_v49 = vmax.f32 %v4128_v20, 0.0 }
 0x239   : > { %v4060_v40 = vpop.f32.mrf.mxu0 }
 0x23a   : > { %v4061_v38 = vadd.f32 %v4060_v40, %v3988_v28  ;;  %v4132_v51 = vadd.f32 %v4131_v29, %v4059_v13  ;;  %5116 = vmatprep.mubr.bf16.mxu0 %v13688_v1  ;;  %v4133_v18 = vpop.f32.mrf.mxu1  ;;  %v4455_v52 = vmax.f32 %v4130_v33, 0.0 }
 0x23b   : > { %v4064_v31 = vpop.f32.mrf.mxu0  ;;  %5117 = vmatmul.mubr.bf16.gmra.mxu0 %v13687_v53 }
 0x23c   : > { %v4134_v32 = vadd.f32 %v4133_v18, %v4061_v38  ;;  %v4137_v6 = vpop.f32.mrf.mxu1  ;;  %v4458_v11 = vmax.f32 %v4132_v51, 0.0  ;;  %v4065_v25 = vadd.f32 %v4064_v31, %v3992_v21  ;;  %v14354_v21 = vld [vmem:[%s19555_s7 + $0x70] sm:$0xff]  }
 0x23d   : > { %v4066_v5 = vpop.f32.mrf.mxu0 }
 0x23e   : > { %v4459_v42 = vmax.f32 %v4134_v32, 0.0  ;;  %v4067_v63 = vadd.f32 %v4066_v5, %v3994_v9  ;;  %v4139_v0 = vpop.f32.mrf.mxu1  ;;  %v13691_v45 = vpack.c.bf16 %v4458_v11, %v4454_v49  ;;  %v4138_v58 = vadd.f32 %v4137_v6, %v4065_v25  ;;  %v14352_v32 = vld [vmem:[%s19555_s7 + $0x78] sm:$0xff]   ;;  %v14360_v25 = vld [vmem:[%s19555_s7 + $0x60] sm:$0xff]  }
 0x23f   : > { %v4068_v36 = vpop.f32.mrf.mxu0  ;;  %v14353_v6 = vld [vmem:[%s19555_s7 + $0x38] sm:$0xff]   ;;  %13763 = vmatprep.subr.bf16.mxu0 %v14352_v32 }
 0x240   : > { %v4069_v34 = vadd.f32 %v4068_v36, %v3996_v35  ;;  %v4141_v8 = vpop.f32.mrf.mxu1  ;;  %v13692_v46 = vpack.c.bf16 %v4459_v42, %v4455_v52  ;;  %v4140_v41 = vadd.f32 %v4139_v0, %v4067_v63  ;;  %v4462_v60 = vmax.f32 %v4138_v58, 0.0  ;;  %v14357_v5 = vld [vmem:[%s19555_s7 + $0x78] sm:$0xff]   ;;  %13764 = vmatpush3.bf16.msra.mxu0 %v14353_v6  ;;  %v14355_v35 = vld [vmem:[%s19555_s7 + $0x30] sm:$0xff]   ;;  %v14356_v42 = vld [vmem:[%s19555_s7 + $0x68] sm:$0xff]  }
 0x241   : > { %v4070_v37 = vpop.f32.mrf.mxu0  ;;  %13785 = vmatprep.subr.bf16.mxu1 %v14357_v5  ;;  %13765 = vmatprep.subr.bf16.mxu0 %v14354_v21  ;;  %v14358_v0 = vld [vmem:[%s19555_s7 + $0x28] sm:$0xff]  }
 0x242   : > { %v4071_v7 = vadd.f32 %v4070_v37, %v3998_v62  ;;  %v4142_v43 = vadd.f32 %v4141_v8, %v4069_v34  ;;  %5126 = vmatprep.mubr.bf16.mxu0 %v13692_v46  ;;  %v4143_v30 = vpop.f32.mrf.mxu1  ;;  %v4463_v15 = vmax.f32 %v4140_v41, 0.0  ;;  %v16942_v62 = vrot.slane %v16766_v12, %v15755_v27  ;;  %v14362_v34 = vld [vmem:[%s19555_s7 + $0x20] sm:$0xff]  }
 0x243   : > { %5127 = vmatmul.mubr.bf16.gmra.mxu0 %v13691_v45  ;;  %v16949_v8 = vrot.slane %v16766_v12, %v15744_v24  ;;  %v14364_v45 = vld [vmem:[%s19555_s7 + $0x58] sm:$0xff]  }
 0x244   : > { %v4144_v17 = vadd.f32 %v4143_v30, %v4071_v7  ;;  %v4466_v3 = vmax.f32 %v4142_v43, 0.0  ;;  %13766 = vmatpush3.bf16.msra.mxu0 %v14355_v35  ;;  %v14366_v7 = vld [vmem:[%s19555_s7 + $0x18] sm:$0xff]  }
 0x245   : > { %13767 = vmatprep.subr.bf16.mxu0 %v14356_v42 }
 0x246   : > { %v4467_v56 = vmax.f32 %v4144_v17, 0.0  ;;  %v13695_v2 = vpack.c.bf16 %v4466_v3, %v4462_v60 }
 0x248   : > { %v13696_v14 = vpack.c.bf16 %v4467_v56, %v4463_v15  ;;  %13768 = vmatpush3.bf16.msra.mxu0 %v14358_v0 }
 0x249   : > { %13769 = vmatprep.subr.bf16.mxu0 %v14360_v25 }
 0x24a   : > { %5136 = vmatprep.mubr.bf16.mxu0 %v13696_v14 }
 0x24b   : > { %5137 = vmatmul.mubr.bf16.gmra.mxu0 %v13695_v2 }
 0x24c   : > { %13770 = vmatpush3.bf16.msra.mxu0 %v14362_v34 }
 0x24d   : > { %13771 = vmatprep.subr.bf16.mxu0 %v14364_v45 }
 0x250   : > { %13772 = vmatpush3.bf16.msra.mxu0 %v14366_v7 }
 0x263   : > { %v4180_v10 = vpop.f32.mrf.mxu0 }
 0x264   : > { %v4253_v57 = vpop.f32.mrf.mxu1  ;;  %v4181_v43 = vadd.f32 %v4180_v10, %v16949_v8 }
 0x265   : > { %v4182_v16 = vpop.f32.mrf.mxu0 }
 0x266   : > { %v4255_v4 = vpop.f32.mrf.mxu1  ;;  %v4183_v41 = vadd.f32 %v4182_v16, %v16942_v62  ;;  %v4254_v60 = vadd.f32 %v4253_v57, %v4181_v43 }
 0x267   : > { %v4184_v59 = vpop.f32.mrf.mxu0 }
 0x268   : > { %v4257_v61 = vpop.f32.mrf.mxu1  ;;  %v4185_v30 = vadd.f32 %v4184_v59, %v16949_v8  ;;  %v4256_v3 = vadd.f32 %v4255_v4, %v4183_v41 }
 0x269   : > { %v4186_v28 = vpop.f32.mrf.mxu0 }
 0x26a   : > { %v16876_v48 = vpop.f32.mrf.mxu1  ;;  %v4187_v15 = vadd.f32 %v4186_v28, %v16942_v62  ;;  %v4258_v2 = vadd.f32 %v4257_v61, %v4185_v30 }
 0x26b   : > { %v16878_v13 = vpop.f32.mrf.mxu0 }
 0x26c   : > { %v16880_v29 = vpop.f32.mrf.mxu1  ;;  %v4260_v21 = vadd.f32 %v16876_v48, %v4187_v15  ;;  %v4191_v4 = vadd.f32 %v16878_v13, %v16949_v8 }
 0x26d   : > { %v4192_v1 = vpop.f32.mrf.mxu0 }
 0x26e   : > { %v16882_v39 = vpop.f32.mrf.mxu1  ;;  %v4193_v5 = vadd.f32 %v4192_v1, %v16942_v62  ;;  %v4264_v43 = vadd.f32 %v16880_v29, %v4191_v4  ;;  %v14359_v29 = vld [vmem:[%s19555_s7 + $0x38] sm:$0xff]  }
 0x26f   : > { %v16884_v53 = vpop.f32.mrf.mxu0 }
 0x270   : > { %v16886_v40 = vpop.f32.mrf.mxu1  ;;  %v4195_v28 = vadd.f32 %v16884_v53, %v16949_v8  ;;  %v4266_v41 = vadd.f32 %v16882_v39, %v4193_v5  ;;  %v14361_v5 = vld [vmem:[%s19555_s7 + $0x70] sm:$0xff]  }
 0x271   : > { %v16888_v55 = vpop.f32.mrf.mxu0 }
 0x272   : > { %v16890_v33 = vpop.f32.mrf.mxu1  ;;  %v4197_v48 = vadd.f32 %v16888_v55, %v16942_v62 }
 0x273   : > { %v16892_v38 = vpop.f32.mrf.mxu0 }
 0x274   : > { %v16894_v51 = vpop.f32.mrf.mxu1  ;;  %v4270_v39 = vadd.f32 %v16890_v33, %v4197_v48 }
 0x275   : > { %v16896_v18 = vpop.f32.mrf.mxu0 }
 0x276   : > { %v16898_v20 = vpop.f32.mrf.mxu1  ;;  %v4203_v55 = vadd.f32 %v16896_v18, %v16942_v62 }
 0x277   : > { %v16900_v31 = vpop.f32.mrf.mxu0 }
 0x278   : > { %v16902_v9 = vpop.f32.mrf.mxu1  ;;  %v4205_v33 = vadd.f32 %v16900_v31, %v16949_v8  ;;  %v14363_v31 = vld [vmem:[%s19555_s7 + $0x30] sm:$0xff]  }
 0x279   : > { %v16904_v54 = vpop.f32.mrf.mxu0 }
 0x27a   : > { %v16915_v11 = vpop.f32.mrf.mxu1 }
 0x27b   : > { %v16923_v52 = vpop.f32.mrf.mxu0 }
 0x27c   : > { %v16928_v63 = vpop.f32.mrf.mxu1 }
 0x27d   : > { %v16933_v49 = vpop.f32.mrf.mxu0 }
 0x27e   : > { %v16938_v36 = vpop.f32.mrf.mxu1 }
 0x27f   : > { %v16951_v46 = vpop.f32.mrf.mxu0 }
 0x280   : > { %v16956_v37 = vpop.f32.mrf.mxu1 }
 0x281   : > { %v16963_v12 = vpop.f32.mrf.mxu0 }
 0x282   : > { %v16966_v58 = vpop.f32.mrf.mxu1 }
 0x2a4   : > { %v4326_v17 = vpop.f32.mrf.mxu0 }
 0x2a5   : > { %v4399_v56 = vpop.f32.mrf.mxu1  ;;  %v4327_v6 = vadd.f32 %v4326_v17, %v4254_v60  ;;  %v4268_v17 = vadd.f32 %v16886_v40, %v4195_v28  ;;  %v4201_v40 = vadd.f32 %v16892_v38, %v16949_v8  ;;  %v4207_v38 = vadd.f32 %v16904_v54, %v16942_v62 }
 0x2a6   : > { %v4328_v14 = vpop.f32.mrf.mxu0 }
 0x2a7   : > { %v4329_v16 = vadd.f32 %v4328_v14, %v4256_v3  ;;  %v4401_v32 = vpop.f32.mrf.mxu1  ;;  %v4400_v34 = vadd.f32 %v4399_v56, %v4327_v6 }
 0x2a8   : > { %v4330_v10 = vpop.f32.mrf.mxu0 }
 0x2a9   : > { %v4331_v59 = vadd.f32 %v4330_v10, %v4258_v2  ;;  %v4403_v35 = vpop.f32.mrf.mxu1  ;;  %v4402_v57 = vadd.f32 %v4401_v32, %v4329_v16  ;;  %v4440_v14 = vmax.f32 %v4400_v34, 0.0 }
 0x2aa   : > { %v4332_v42 = vpop.f32.mrf.mxu0 }
 0x2ab   : > { %v4404_v0 = vadd.f32 %v4403_v35, %v4331_v59  ;;  %v4333_v61 = vadd.f32 %v4332_v42, %v4260_v21  ;;  %v4405_v25 = vpop.f32.mrf.mxu1  ;;  %v4441_v53 = vmax.f32 %v4402_v57, 0.0  ;;  %v4276_v57 = vadd.f32 %v16898_v20, %v4203_v55 }
 0x2ac   : > { %v4336_v45 = vpop.f32.mrf.mxu0  ;;  %v4278_v20 = vadd.f32 %v16902_v9, %v4205_v33  ;;  %v14367_v9 = vld [vmem:[%s19555_s7 + $0x28] sm:$0xff]  }
 0x2ad   : > { %v4406_v1 = vadd.f32 %v4405_v25, %v4333_v61  ;;  %v4409_v7 = vpop.f32.mrf.mxu1  ;;  %v4444_v13 = vmax.f32 %v4404_v0, 0.0  ;;  %v4337_v56 = vadd.f32 %v4336_v45, %v4264_v43  ;;  %v4274_v25 = vadd.f32 %v16894_v51, %v4201_v40 }
 0x2ae   : > { %v4338_v30 = vpop.f32.mrf.mxu0  ;;  %v4213_v51 = vadd.f32 %v16933_v49, %v16942_v62 }
 0x2af   : > { %v4445_v3 = vmax.f32 %v4406_v1, 0.0  ;;  %v4339_v15 = vadd.f32 %v4338_v30, %v4266_v41  ;;  %v4411_v60 = vpop.f32.mrf.mxu1  ;;  %v13685_v10 = vpack.c.bf16 %v4444_v13, %v4440_v14  ;;  %v4410_v42 = vadd.f32 %v4409_v7, %v4337_v56  ;;  %v14365_v41 = vld [vmem:[%s19555_s7 + $0x68] sm:$0xff]  }
 0x2b0   : > { %v4340_v2 = vpop.f32.mrf.mxu0 }
 0x2b1   : > { %v4341_v16 = vadd.f32 %v4340_v2, %v4268_v17  ;;  %v4413_v32 = vpop.f32.mrf.mxu1  ;;  %v13686_v6 = vpack.c.bf16 %v4445_v3, %v4441_v53  ;;  %v4412_v18 = vadd.f32 %v4411_v60, %v4339_v15  ;;  %v4448_v43 = vmax.f32 %v4410_v42, 0.0 }
 0x2b2   : > { %v4342_v21 = vpop.f32.mrf.mxu0  ;;  %v4280_v17 = vadd.f32 %v16915_v11, %v4207_v38  ;;  %v4211_v60 = vadd.f32 %v16923_v52, %v16949_v8  ;;  %v4215_v11 = vadd.f32 %v16951_v46, %v16949_v8 }
 0x2b3   : > { %v4414_v59 = vadd.f32 %v4413_v32, %v4341_v16  ;;  %v4343_v35 = vadd.f32 %v4342_v21, %v4270_v39  ;;  %v4415_v4 = vpop.f32.mrf.mxu1  ;;  %5179 = vmatprep.mubr.bf16.mxu1 %v13686_v6  ;;  %v4449_v48 = vmax.f32 %v4412_v18, 0.0  ;;  %v4286_v6 = vadd.f32 %v16938_v36, %v4213_v51  ;;  %v14375_v51 = vld [vmem:[%s19555_s7 + $0x18] sm:$0xff]  }
 0x2b4   : > { %v4346_v28 = vpop.f32.mrf.mxu0  ;;  %5180 = vmatmul.mubr.bf16.vlgmr.msra.gmra.mxu1 %v13685_v10  ;;  %v4284_v10 = vadd.f32 %v16928_v63, %v4211_v60  ;;  %v4288_v46 = vadd.f32 %v16956_v37, %v4215_v11  ;;  %v14380_v60 = vld [vmem:[%s19555_s7 + $0x48] sm:$0xff]   ;;  %v14384_v11 = vld [vmem:[%s19555_s7 + $0x40] sm:$0xff]  }
 0x2b5   : > { %v4416_v0 = vadd.f32 %v4415_v4, %v4343_v35  ;;  %v4419_v61 = vpop.f32.mrf.mxu1  ;;  %13786 = vmatpush3.bf16.msra.mxu1 %v14359_v29  ;;  %v4452_v34 = vmax.f32 %v4414_v59, 0.0  ;;  %v4347_v13 = vadd.f32 %v4346_v28, %v4274_v25  ;;  %v4217_v29 = vadd.f32 %v16963_v12, %v16942_v62 }
 0x2b6   : > { %v4348_v45 = vpop.f32.mrf.mxu0  ;;  %13787 = vmatprep.subr.bf16.mxu1 %v14361_v5 }
 0x2b7   : > { %v4453_v54 = vmax.f32 %v4416_v0, 0.0  ;;  %v4349_v1 = vadd.f32 %v4348_v45, %v4276_v57  ;;  %v4421_v7 = vpop.f32.mrf.mxu1  ;;  %v13689_v14 = vpack.c.bf16 %v4452_v34, %v4448_v43  ;;  %v4420_v16 = vadd.f32 %v4419_v61, %v4347_v13  ;;  %v14371_v43 = vld [vmem:[%s19555_s7 + $0x20] sm:$0xff]   ;;  %v14372_v13 = vld [vmem:[%s19555_s7 + $0x48] sm:$0xff]  }
 0x2b8   : > { %v4350_v30 = vpop.f32.mrf.mxu0  ;;  %v4290_v36 = vadd.f32 %v16966_v58, %v4217_v29  ;;  %v14368_v58 = vld [vmem:[%s19555_s7 + $0x50] sm:$0xff]  }
 0x2b9   : > { %v4351_v53 = vadd.f32 %v4350_v30, %v4278_v20  ;;  %v4423_v3 = vpop.f32.mrf.mxu1  ;;  %v13690_v15 = vpack.c.bf16 %v4453_v54, %v4449_v48  ;;  %13788 = vmatpush3.bf16.msra.mxu1 %v14363_v31  ;;  %v4422_v2 = vadd.f32 %v4421_v7, %v4349_v1  ;;  %v4456_v35 = vmax.f32 %v4420_v16, 0.0  ;;  %v14369_v1 = vld [vmem:[%s19555_s7 + $0x60] sm:$0xff]   ;;  %v14370_v7 = vld [vmem:[%s19555_s7 + $0x10] sm:$0xff]   ;;  %13773 = vmatprep.subr.bf16.mxu0 %v14368_v58  ;;  %v14373_v30 = vld [vmem:[%s19555_s7 + $0x58] sm:$0xff]  }
 0x2ba   : > { %v4352_v56 = vpop.f32.mrf.mxu0  ;;  %13789 = vmatprep.subr.bf16.mxu1 %v14365_v41  ;;  %13774 = vmatpush3.bf16.msra.mxu0 %v14370_v7 }
 0x2bb   : > { %v4424_v39 = vadd.f32 %v4423_v3, %v4351_v53  ;;  %v4353_v49 = vadd.f32 %v4352_v56, %v4280_v17  ;;  %v4425_v55 = vpop.f32.mrf.mxu1  ;;  %5189 = vmatprep.mubr.bf16.mxu1 %v13690_v15  ;;  %v4457_v5 = vmax.f32 %v4422_v2, 0.0  ;;  %v14374_v17 = vld [vmem:[%s19555_s7 + $0x8] sm:$0xff]   ;;  %13775 = vmatprep.subr.bf16.mxu0 %v14372_v13  ;;  %v14376_v53 = vld [vmem:[%s19555_s7 + $0x40] sm:$0xff]   ;;  %v14377_v3 = vld [vmem:[%s19555_s7 + $0x50] sm:$0xff]  }
 0x2bc   : > { %v4356_v32 = vpop.f32.mrf.mxu0  ;;  %5190 = vmatmul.mubr.bf16.gmra.mxu1 %v13689_v14  ;;  %v14378_v15 = vld [vmem:[%s19555_s7] sm:$0xff]   ;;  %v14381_v14 = vld [vmem:[%s19555_s7 + $0x78] sm:$0xff]   ;;  %v14382_v56 = vld [vmem:[%s19555_s7 + $0x8] sm:$0xff]  }
 0x2bd   : > { %v4426_v52 = vadd.f32 %v4425_v55, %v4353_v49  ;;  %v4429_v40 = vpop.f32.mrf.mxu1  ;;  %13790 = vmatpush3.bf16.msra.mxu1 %v14367_v9  ;;  %v4460_v21 = vmax.f32 %v4424_v39, 0.0  ;;  %v4357_v4 = vadd.f32 %v4356_v32, %v4284_v10  ;;  %v14379_v9 = vld [vmem:[%s19555_s7 + $0x10] sm:$0xff]   ;;  %v14386_v2 = vld [vmem:[%s19555_s7] sm:$0xff]   ;;  %v14389_v39 = vld [vmem:[%s19555_s7 + $0x78] sm:$0xff]  }
 0x2be   : > { %v4358_v8 = vpop.f32.mrf.mxu0  ;;  %13791 = vmatprep.subr.bf16.mxu1 %v14369_v1  ;;  %13776 = vmatpush3.bf16.msra.mxu0 %v14374_v17  ;;  %v4662_v10 = vld [vmem:[%s19554_s6] sm:$0x3] }
 0x2bf   : > { %v4461_v33 = vmax.f32 %v4426_v52, 0.0  ;;  %v4359_v18 = vadd.f32 %v4358_v8, %v4286_v6  ;;  %v4431_v59 = vpop.f32.mrf.mxu1  ;;  %v13693_v57 = vpack.c.bf16 %v4460_v21, %v4456_v35  ;;  %v4430_v31 = vadd.f32 %v4429_v40, %v4357_v4  ;;  %13777 = vmatprep.subr.bf16.mxu0 %v14376_v53 }
 0x2c0   : > { %v4360_v42 = vpop.f32.mrf.mxu0  ;;  %v17080_v8 = vrot.slane %v4662_v10, %v15752_v26 }
 0x2c1   : > { %v4361_v28 = vadd.f32 %v4360_v42, %v4288_v46  ;;  %v4433_v62 = vpop.f32.mrf.mxu1  ;;  %v13694_v12 = vpack.c.bf16 %v4461_v33, %v4457_v5  ;;  %v4432_v0 = vadd.f32 %v4431_v59, %v4359_v18  ;;  %v4464_v20 = vmax.f32 %v4430_v31, 0.0  ;;  %13792 = vmatpush3.bf16.msra.mxu1 %v14371_v43  ;;  %v14385_v43 = vld [vmem:[%s19555_s7 + $0x70] sm:$0xff]  }
 0x2c2   : > { %v4362_v38 = vpop.f32.mrf.mxu0  ;;  %13793 = vmatprep.subr.bf16.mxu1 %v14373_v30  ;;  %13778 = vmatpush3.bf16.msra.mxu0 %v14378_v15  ;;  %v17083_v46 = vrot.slane %v4662_v10, %v15741_v23  ;;  %v14392_v10 = vld [vmem:[%s19555_s7 + $0x60] sm:$0xff]  }
 0x2c3   : > { %v4434_v63 = vadd.f32 %v4433_v62, %v4361_v28  ;;  %v4363_v61 = vadd.f32 %v4362_v38, %v4290_v36  ;;  %5199 = vmatprep.mubr.bf16.mxu1 %v13694_v12  ;;  %v4435_v37 = vpop.f32.mrf.mxu1  ;;  %v4465_v45 = vmax.f32 %v4432_v0, 0.0  ;;  %13807 = vmatprep.subr.bf16.mxu0 %v14381_v14 }
 0x2c4   : > { %5200 = vmatmul.mubr.bf16.gmra.mxu1 %v13693_v57 }
 0x2c5   : > { %v4436_v25 = vadd.f32 %v4435_v37, %v4363_v61  ;;  %v4468_v34 = vmax.f32 %v4434_v63, 0.0  ;;  %13794 = vmatpush3.bf16.msra.mxu1 %v14375_v51 }
 0x2c6   : > { %13795 = vmatprep.subr.bf16.mxu1 %v14377_v3 }
 0x2c7   : > { %v4469_v41 = vmax.f32 %v4436_v25, 0.0  ;;  %v13697_v54 = vpack.c.bf16 %v4468_v34, %v4464_v20 }
 0x2c9   : > { %v13698_v48 = vpack.c.bf16 %v4469_v41, %v4465_v45  ;;  %13796 = vmatpush3.bf16.msra.mxu1 %v14379_v9  ;;  %v14387_v9 = vld [vmem:[%s19555_s7 + $0x30] sm:$0xff]  }
 0x2ca   : > { %13797 = vmatprep.subr.bf16.mxu1 %v14380_v60 }
 0x2cb   : > { %5209 = vmatprep.mubr.bf16.mxu1 %v13698_v48 }
 0x2cc   : > { %5210 = vmatmul.mubr.bf16.gmra.mxu1 %v13697_v54  ;;  %v14383_v54 = vld [vmem:[%s19555_s7 + $0x38] sm:$0xff]  }
 0x2cd   : > { %13798 = vmatpush3.bf16.msra.mxu1 %v14382_v56  ;;  %v14388_v56 = vld [vmem:[%s19555_s7 + $0x68] sm:$0xff]  }
 0x2ce   : > { %13799 = vmatprep.subr.bf16.mxu1 %v14384_v11 }
 0x2d1   : > { %13800 = vmatpush3.bf16.msra.mxu1 %v14386_v2 }
 0x2d2   : > { %13829 = vmatprep.subr.bf16.mxu1 %v14389_v39 }
 0x2f3   : > { %v5108_v49 = vpop.f32.mrf.mxu0 }
 0x2f4   : > { %v5109_v4 = vadd.f32 %v5108_v49, %v17083_v46 }
 0x2f5   : > { %v5110_v55 = vpop.f32.mrf.mxu0 }
 0x2f6   : > { %v5111_v59 = vadd.f32 %v5110_v55, %v17080_v8 }
 0x2f7   : > { %v5112_v16 = vpop.f32.mrf.mxu0 }
 0x2f8   : > { %v5113_v35 = vadd.f32 %v5112_v16, %v17083_v46 }
 0x2f9   : > { %v5114_v32 = vpop.f32.mrf.mxu0 }
 0x2fa   : > { %v5115_v36 = vadd.f32 %v5114_v32, %v17080_v8 }
 0x2fb   : > { %v5118_v6 = vpop.f32.mrf.mxu0 }
 0x2fc   : > { %v5119_v58 = vadd.f32 %v5118_v6, %v17083_v46  ;;  %v14390_v6 = vld [vmem:[%s19555_s7 + $0x28] sm:$0xff]  }
 0x2fd   : > { %v5120_v29 = vpop.f32.mrf.mxu0 }
 0x2fe   : > { %v5121_v41 = vadd.f32 %v5120_v29, %v17080_v8  ;;  %v14391_v29 = vld [vmem:[%s19555_s7 + $0x38] sm:$0xff]  }
 0x2ff   : > { %v5122_v52 = vpop.f32.mrf.mxu0 }
 0x300   : > { %v5123_v20 = vadd.f32 %v5122_v52, %v17083_v46 }
 0x301   : > { %v5124_v40 = vpop.f32.mrf.mxu0 }
 0x302   : > { %v5125_v13 = vadd.f32 %v5124_v40, %v17080_v8 }
 0x303   : > { %v17077_v21 = vpop.f32.mrf.mxu0 }
 0x305   : > { %v5130_v33 = vpop.f32.mrf.mxu0 }
 0x306   : > { %v5131_v16 = vadd.f32 %v5130_v33, %v17080_v8 }
 0x307   : > { %v17089_v12 = vpop.f32.mrf.mxu0 }
 0x309   : > { %v5134_v25 = vpop.f32.mrf.mxu0 }
 0x30a   : > { %v5135_v33 = vadd.f32 %v5134_v25, %v17080_v8  ;;  %v14398_v25 = vld [vmem:[%s19555_s7 + $0x18] sm:$0xff]  }
 0x30b   : > { %v17101_v51 = vpop.f32.mrf.mxu0 }
 0x30d   : > { %v5140_v39 = vpop.f32.mrf.mxu0 }
 0x374   : > { %v5181_v5 = vpop.f32.mrf.mxu1 }
 0x375   : > { %v5182_v57 = vadd.f32 %v5181_v5, %v5109_v4  ;;  %v14393_v5 = vld [vmem:[%s19555_s7 + $0x70] sm:$0xff]  }
 0x376   : > { %v5183_v18 = vpop.f32.mrf.mxu1 }
 0x377   : > { %v5184_v28 = vadd.f32 %v5183_v18, %v5111_v59  ;;  %v5220_v34 = vmax.f32 %v5182_v57, 0.0  ;;  %v17125_v59 = vpop.f32.mrf.mxu0  ;;  %v14397_v57 = vld [vmem:[%s19555_s7 + $0x68] sm:$0xff]  }
 0x378   : > { %v5185_v42 = vpop.f32.mrf.mxu1 }
 0x379   : > { %v5186_v62 = vadd.f32 %v5185_v42, %v5113_v35  ;;  %v5221_v31 = vmax.f32 %v5184_v28, 0.0  ;;  %v14394_v42 = vld [vmem:[%s19555_s7 + $0x20] sm:$0xff]  }
 0x37a   : > { %v5187_v38 = vpop.f32.mrf.mxu1 }
 0x37b   : > { %v5188_v0 = vadd.f32 %v5187_v38, %v5115_v36  ;;  %v5222_v63 = vmax.f32 %v5186_v62, 0.0  ;;  %v14395_v36 = vld [vmem:[%s19555_s7 + $0x30] sm:$0xff]   ;;  %v14396_v62 = vld [vmem:[%s19555_s7 + $0x58] sm:$0xff]  }
 0x37c   : > { %v5191_v61 = vpop.f32.mrf.mxu1 }
 0x37d   : > { %v5223_v37 = vmax.f32 %v5188_v0, 0.0  ;;  %v13699_v1 = vpack.c.bf16 %v5222_v63, %v5220_v34  ;;  %v5192_v53 = vadd.f32 %v5191_v61, %v5119_v58  ;;  %v5144_v63 = vpop.f32.mrf.mxu0  ;;  %v14399_v34 = vld [vmem:[%s19555_s7 + $0x28] sm:$0xff]  }
 0x37e   : > { %v5193_v45 = vpop.f32.mrf.mxu1 }
 0x37f   : > { %v13700_v48 = vpack.c.bf16 %v5223_v37, %v5221_v31  ;;  %v5194_v30 = vadd.f32 %v5193_v45, %v5121_v41  ;;  %v5224_v49 = vmax.f32 %v5192_v53, 0.0  ;;  %v5141_v31 = vadd.f32 %v5140_v39, %v17080_v8  ;;  %v14400_v41 = vld [vmem:[%s19555_s7 + $0x50] sm:$0xff]  }
 0x380   : > { %v5195_v7 = vpop.f32.mrf.mxu1  ;;  %v5133_v53 = vadd.f32 %v17089_v12, %v17083_v46  ;;  %v14408_v12 = vld [vmem:[%s19555_s7 + $0x40] sm:$0xff]   ;;  %v14411_v39 = vld [vmem:[%s19555_s7 + $0x10] sm:$0xff]  }
 0x381   : > { %v5196_v17 = vadd.f32 %v5195_v7, %v5123_v20  ;;  %5471 = vmatprep.mubr.bf16.mxu0 %v13700_v48  ;;  %v5225_v11 = vmax.f32 %v5194_v30, 0.0  ;;  %v14401_v20 = vld [vmem:[%s19555_s7 + $0x60] sm:$0xff]   ;;  %v5145_v48 = vadd.f32 %v5144_v63, %v17080_v8  ;;  %v14402_v7 = vld [vmem:[%s19555_s7 + $0x10] sm:$0xff]   ;;  %v14404_v8 = vld [vmem:[%s19555_s7 + $0x48] sm:$0xff]  }
 0x382   : > { %v5197_v3 = vpop.f32.mrf.mxu1  ;;  %5472 = vmatmul.mubr.bf16.vlgmr.msra.gmra.mxu0 %v13699_v1  ;;  %v14431_v63 = vld [vmem:[%s19557_s9 + $0x20] ss:$8 sps:$4 sm:$0xff]  }
 0x383   : > { %v5198_v15 = vadd.f32 %v5197_v3, %v5125_v13  ;;  %13808 = vmatpush3.bf16.msra.mxu0 %v14383_v54  ;;  %v5226_v60 = vmax.f32 %v5196_v17, 0.0  ;;  %v14405_v13 = vld [vmem:[%s19555_s7 + $0x58] sm:$0xff]  }
 0x384   : > { %v17106_v14 = vpop.f32.mrf.mxu1  ;;  %13809 = vmatprep.subr.bf16.mxu0 %v14385_v43  ;;  %v14403_v43 = vld [vmem:[%s19555_s7 + $0x20] sm:$0xff]  }
 0x385   : > { %v5227_v2 = vmax.f32 %v5198_v15, 0.0  ;;  %v13701_v52 = vpack.c.bf16 %v5226_v60, %v5224_v49  ;;  %v14406_v15 = vld [vmem:[%s19555_s7 + $0x8] sm:$0xff]   ;;  %v5129_v60 = vadd.f32 %v17077_v21, %v17083_v46  ;;  %v14410_v21 = vld [vmem:[%s19555_s7] sm:$0xff]  }
 0x386   : > { %v5203_v55 = vpop.f32.mrf.mxu1 }
 0x387   : > { %13810 = vmatpush3.bf16.msra.mxu0 %v14387_v9  ;;  %v13702_v32 = vpack.c.bf16 %v5227_v2, %v5225_v11  ;;  %v5204_v18 = vadd.f32 %v5203_v55, %v5131_v16  ;;  %v14407_v9 = vld [vmem:[%s19555_s7 + $0x18] sm:$0xff]   ;;  %v14409_v11 = vld [vmem:[%s19555_s7 + $0x50] sm:$0xff]   ;;  %v5202_v2 = vadd.f32 %v17106_v14, %v5129_v60  ;;  %v14412_v55 = vld [vmem:[%s19555_s7 + $0x48] sm:$0xff]   ;;  %v5143_v16 = vadd.f32 %v17125_v59, %v17083_v46 }
 0x388   : > { %v5205_v40 = vpop.f32.mrf.mxu1  ;;  %13811 = vmatprep.subr.bf16.mxu0 %v14388_v56  ;;  %v14418_v14 = vld [vmem:[%s19557_s9 + $0x74] ss:$8 sps:$4 sm:$0xff]  }
 0x389   : > { %5671 = vmatprep.mubr.bf16.mxu1 %v13702_v32  ;;  %v5229_v38 = vmax.f32 %v5204_v18, 0.0  ;;  %v5206_v56 = vadd.f32 %v5205_v40, %v5133_v53  ;;  %v5228_v32 = vmax.f32 %v5202_v2, 0.0  ;;  %v14463_v53 = vld [vmem:[%s19557_s9 + $0xc4] ss:$8 sps:$4 sm:$0xff]   ;;  %v14469_v60 = vld [vmem:[%s19557_s9 + $0xb4] ss:$8 sps:$4 sm:$0xff]  }
 0x38a   : > { %v5207_v35 = vpop.f32.mrf.mxu1  ;;  %5672 = vmatmul.mubr.bf16.vlgmr.msra.gmra.mxu1 %v13701_v52  ;;  %v5139_v52 = vadd.f32 %v17101_v51, %v17083_v46  ;;  %v14415_v46 = vld [vmem:[%s19555_s7] sm:$0xff]  }
 0x38b   : > { %v5208_v4 = vadd.f32 %v5207_v35, %v5135_v33  ;;  %13812 = vmatpush3.bf16.msra.mxu0 %v14390_v6  ;;  %13830 = vmatpush3.bf16.msra.mxu1 %v14391_v29  ;;  %v5230_v49 = vmax.f32 %v5206_v56, 0.0  ;;  %v14413_v6 = vld [vmem:[%s19555_s7 + $0x8] sm:$0xff]   ;;  %v14416_v29 = vld [vmem:[%s19557_s9 + $0x70] ss:$8 sps:$4 sm:$0xff]   ;;  %v14424_v35 = vld [vmem:[%s19557_s9 + $0x54] ss:$8 sps:$4 sm:$0xff]  }
 0x38c   : > { %v17133_v28 = vpop.f32.mrf.mxu1  ;;  %13813 = vmatprep.subr.bf16.mxu0 %v14392_v10  ;;  %13831 = vmatprep.subr.bf16.mxu1 %v14393_v5  ;;  %v14414_v5 = vld [vmem:[%s19555_s7 + $0x40] sm:$0xff]   ;;  %v14467_v56 = vld [vmem:[%s19557_s9 + $0xb0] ss:$8 sps:$4 sm:$0xff]  }
 0x38d   : > { %v5231_v0 = vmax.f32 %v5208_v4, 0.0  ;;  %v13703_v40 = vpack.c.bf16 %v5230_v49, %v5228_v32  ;;  %v14421_v33 = vld [vmem:[%s19557_s9 + $0x64] ss:$8 sps:$4 sm:$0xff]   ;;  %v5212_v18 = vadd.f32 %v17133_v28, %v5139_v52  ;;  %v14419_v51 = vld [vmem:[%s19557_s9 + $0x60] ss:$8 sps:$4 sm:$0xff]  }
 0x38e   : > { %v5213_v61 = vpop.f32.mrf.mxu1  ;;  %v14427_v28 = vld [vmem:[%s19557_s9 + $0x44] ss:$8 sps:$4 sm:$0xff]   ;;  %v14478_v49 = vld [vmem:[%s19557_s9 + $0x114] ss:$8 sps:$4 sm:$0xff]  }
 0x38f   : > { %13814 = vmatpush3.bf16.msra.mxu0 %v14394_v42  ;;  %13832 = vmatpush3.bf16.msra.mxu1 %v14395_v36  ;;  %v13704_v37 = vpack.c.bf16 %v5231_v0, %v5229_v38  ;;  %v5214_v54 = vadd.f32 %v5213_v61, %v5141_v31  ;;  %v5232_v4 = vmax.f32 %v5212_v18, 0.0  ;;  %v14422_v42 = vld [vmem:[%s19557_s9 + $0x50] ss:$8 sps:$4 sm:$0xff]   ;;  %v14433_v0 = vld [vmem:[%s19557_s9 + $0x24] ss:$8 sps:$4 sm:$0xff]  }
 0x390   : > { %v5215_v45 = vpop.f32.mrf.mxu1  ;;  %13815 = vmatprep.subr.bf16.mxu0 %v14396_v62  ;;  %13833 = vmatprep.subr.bf16.mxu1 %v14397_v57  ;;  %v14425_v62 = vld [vmem:[%s19557_s9 + $0x40] ss:$8 sps:$4 sm:$0xff]   ;;  %v14430_v57 = vld [vmem:[%s19557_s9 + $0x34] ss:$8 sps:$4 sm:$0xff]   ;;  %v14428_v38 = vld [vmem:[%s19557_s9 + $0x30] ss:$8 sps:$4 sm:$0xff]  }
 0x391   : > { %5871 = vmatprep.mubr.bf16.mxu0 %v13704_v37  ;;  %v5233_v30 = vmax.f32 %v5214_v54, 0.0  ;;  %v5216_v10 = vadd.f32 %v5215_v45, %v5143_v16  ;;  %v14436_v61 = vld [vmem:[%s19557_s9 + $0x14] ss:$8 sps:$4 sm:$0xff]   ;;  %v14434_v31 = vld [vmem:[%s19557_s9 + $0x10] ss:$8 sps:$4 sm:$0xff]  }
 0x392   : > { %v5217_v58 = vpop.f32.mrf.mxu1  ;;  %v14439_v37 = vld [vmem:[%s19557_s9 + $0x4] ss:$8 sps:$4 sm:$0xff]   ;;  %v14440_v45 = vld [vmem:[%s19557_s9 + $0x170] ss:$8 sps:$4 sm:$0xff]   ;;  %v14446_v54 = vld [vmem:[%s19557_s9 + $0x160] ss:$8 sps:$4 sm:$0xff]  }
 0x393   : > { %v5218_v1 = vadd.f32 %v5217_v58, %v5145_v48  ;;  %13816 = vmatpush3.bf16.msra.mxu0 %v14398_v25  ;;  %13834 = vmatpush3.bf16.msra.mxu1 %v14399_v34  ;;  %v5234_v59 = vmax.f32 %v5216_v10, 0.0  ;;  %v14437_v25 = vld [vmem:[%s19557_s9] ss:$8 sps:$4 sm:$0xff]   ;;  %v14442_v34 = vld [vmem:[%s19557_s9 + $0x174] ss:$8 sps:$4 sm:$0xff]  }
 0x394   : > { %13817 = vmatprep.subr.bf16.mxu0 %v14400_v41  ;;  %13835 = vmatprep.subr.bf16.mxu1 %v14401_v20  ;;  %v14445_v41 = vld [vmem:[%s19557_s9 + $0xf4] ss:$8 sps:$4 sm:$0xff]   ;;  %v14443_v20 = vld [vmem:[%s19557_s9 + $0xf0] ss:$8 sps:$4 sm:$0xff]   ;;  %v14448_v48 = vld [vmem:[%s19557_s9 + $0x164] ss:$8 sps:$4 sm:$0xff]  }
 0x395   : > { %v5235_v17 = vmax.f32 %v5218_v1, 0.0  ;;  %v13705_v36 = vpack.c.bf16 %v5234_v59, %v5232_v4  ;;  %v14451_v58 = vld [vmem:[%s19557_s9 + $0xe4] ss:$8 sps:$4 sm:$0xff]   ;;  %v14449_v1 = vld [vmem:[%s19557_s9 + $0xe0] ss:$8 sps:$4 sm:$0xff]  }
 0x396   : > { %v14475_v2 = vld [vmem:[%s19557_s9 + $0xa4] ss:$8 sps:$4 sm:$0xff]   ;;  %v14493_v52 = vld [vmem:[%s19557_s9 + $0x1f4] ss:$8 sps:$4 sm:$0xff]   ;;  %v14497_v18 = vld [vmem:[%s19557_s9 + $0x1d0] ss:$8 sps:$4 sm:$0xff]  }
 0x397   : > { %13818 = vmatpush3.bf16.msra.mxu0 %v14402_v7  ;;  %13836 = vmatpush3.bf16.msra.mxu1 %v14403_v43  ;;  %v13706_v3 = vpack.c.bf16 %v5235_v17, %v5233_v30  ;;  %v14454_v7 = vld [vmem:[%s19557_s9 + $0x154] ss:$8 sps:$4 sm:$0xff]   ;;  %v14452_v43 = vld [vmem:[%s19557_s9 + $0x150] ss:$8 sps:$4 sm:$0xff]   ;;  %v14460_v30 = vld [vmem:[%s19557_s9 + $0x144] ss:$8 sps:$4 sm:$0xff]  }
 0x398   : > { %13819 = vmatprep.subr.bf16.mxu0 %v14404_v8  ;;  %13837 = vmatprep.subr.bf16.mxu1 %v14405_v13  ;;  %v14457_v8 = vld [vmem:[%s19557_s9 + $0xd4] ss:$8 sps:$4 sm:$0xff]   ;;  %v14455_v13 = vld [vmem:[%s19557_s9 + $0xd0] ss:$8 sps:$4 sm:$0xff]   ;;  %v14458_v17 = vld [vmem:[%s19557_s9 + $0x140] ss:$8 sps:$4 sm:$0xff]  }
 0x399   : > { %6071 = vmatprep.mubr.bf16.mxu1 %v13706_v3  ;;  %v14461_v3 = vld [vmem:[%s19557_s9 + $0xc0] ss:$8 sps:$4 sm:$0xff]   ;;  %v14484_v16 = vld [vmem:[%s19557_s9 + $0x104] ss:$8 sps:$4 sm:$0xff]   ;;  %v14505_v59 = vld [vmem:[%s19557_s9 + $0x1b4] ss:$8 sps:$4 sm:$0xff]  }
 0x39a   : > { %v14487_v32 = vld [vmem:[%s19557_s9 + $0x84] ss:$8 sps:$4 sm:$0xff]  }
 0x39b   : > { %13820 = vmatpush3.bf16.msra.mxu0 %v14406_v15  ;;  %13838 = vmatpush3.bf16.msra.mxu1 %v14407_v9  ;;  %v14466_v15 = vld [vmem:[%s19557_s9 + $0x134] ss:$8 sps:$4 sm:$0xff]   ;;  %v14464_v9 = vld [vmem:[%s19557_s9 + $0x130] ss:$8 sps:$4 sm:$0xff]   ;;  %v14496_v10 = vld [vmem:[%s19557_s9 + $0x1e4] ss:$8 sps:$4 sm:$0xff]  }
 0x39c   : > { %13821 = vmatprep.subr.bf16.mxu0 %v14408_v12  ;;  %13839 = vmatprep.subr.bf16.mxu1 %v14409_v11  ;;  %v14472_v12 = vld [vmem:[%s19557_s9 + $0x124] ss:$8 sps:$4 sm:$0xff]   ;;  %v14470_v11 = vld [vmem:[%s19557_s9 + $0x120] ss:$8 sps:$4 sm:$0xff]  }
 0x39d   : > { %v14508_v4 = vld [vmem:[%s19557_s9 + $0x1a4] ss:$8 sps:$4 sm:$0xff]  }
 0x39f   : > { %13822 = vmatpush3.bf16.msra.mxu0 %v14410_v21  ;;  %13840 = vmatpush3.bf16.msra.mxu1 %v14411_v39  ;;  %v14473_v21 = vld [vmem:[%s19557_s9 + $0xa0] ss:$8 sps:$4 sm:$0xff]   ;;  %v14476_v39 = vld [vmem:[%s19557_s9 + $0x110] ss:$8 sps:$4 sm:$0xff]  }
 0x3a0   : > { %13841 = vmatprep.subr.bf16.mxu1 %v14412_v55  ;;  %6512 = vmatprep.subr.bf16.mxu0 %v14418_v14  ;;  %v14479_v55 = vld [vmem:[%s19557_s9 + $0x90] ss:$8 sps:$4 sm:$0xff]   ;;  %v14481_v14 = vld [vmem:[%s19557_s9 + $0x94] ss:$8 sps:$4 sm:$0xff]  }
 0x3a2   : > { %5872 = vmatmul.mubr.bf16.vlgmr.msra.gmra.mxu0 %v13703_v40  ;;  %v14491_v40 = vld [vmem:[%s19557_s9 + $0x1f0] ss:$8 sps:$4 sm:$0xff]  }
 0x3a3   : > { %13842 = vmatpush3.bf16.msra.mxu1 %v14413_v6  ;;  %6513 = vmatpush1.bf16.msra.mxu0 %v14416_v29  ;;  %v14482_v6 = vld [vmem:[%s19557_s9 + $0x100] ss:$8 sps:$4 sm:$0xff]  }
 0x3a4   : > { %13843 = vmatprep.subr.bf16.mxu1 %v14414_v5  ;;  %6514 = vmatprep.subr.bf16.mxu0 %v14421_v33  ;;  %v14485_v29 = vld [vmem:[%s19557_s9 + $0x80] ss:$8 sps:$4 sm:$0xff]   ;;  %v14499_v33 = vld [vmem:[%s19557_s9 + $0x1d4] ss:$8 sps:$4 sm:$0xff]  }
 0x3a5   : > { %v14494_v5 = vld [vmem:[%s19557_s9 + $0x1e0] ss:$8 sps:$4 sm:$0xff]  }
 0x3a7   : > { %13844 = vmatpush3.bf16.msra.mxu1 %v14415_v46  ;;  %6515 = vmatpush1.bf16.msra.mxu0 %v14419_v51  ;;  %v14502_v46 = vld [vmem:[%s19557_s9 + $0x1c4] ss:$8 sps:$4 sm:$0xff]   ;;  %v14500_v51 = vld [vmem:[%s19557_s9 + $0x1c0] ss:$8 sps:$4 sm:$0xff]  }
 0x3a8   : > { %6516 = vmatprep.subr.bf16.mxu0 %v14424_v35  ;;  %6555 = vmatprep.subr.bf16.mxu1 %v14442_v34  ;;  %v14503_v35 = vld [vmem:[%s19557_s9 + $0x1b0] ss:$8 sps:$4 sm:$0xff]  }
 0x3aa   : > { %6072 = vmatmul.mubr.bf16.vlgmr.msra.gmra.mxu1 %v13705_v36  ;;  %v14509_v36 = vld [vmem:[%s19557_s9 + $0x190] ss:$8 sps:$4 sm:$0xff]  }
 0x3ab   : > { %6517 = vmatpush1.bf16.msra.mxu0 %v14422_v42  ;;  %6556 = vmatpush1.bf16.msra.mxu1 %v14440_v45  ;;  %v14506_v42 = vld [vmem:[%s19557_s9 + $0x1a0] ss:$8 sps:$4 sm:$0xff]  }
 0x3ac   : > { %6518 = vmatprep.subr.bf16.mxu0 %v14427_v28  ;;  %6557 = vmatprep.subr.bf16.mxu1 %v14448_v48  ;;  %v14511_v28 = vld [vmem:[%s19557_s9 + $0x194] ss:$8 sps:$4 sm:$0xff]  }
 0x3af   : > { %6519 = vmatpush1.bf16.msra.mxu0 %v14425_v62  ;;  %6558 = vmatpush1.bf16.msra.mxu1 %v14446_v54  ;;  %v14514_v62 = vld [vmem:[%s19557_s9 + $0x184] ss:$8 sps:$4 sm:$0xff]  }
 0x3b0   : > { %6520 = vmatprep.subr.bf16.mxu0 %v14430_v57  ;;  %6559 = vmatprep.subr.bf16.mxu1 %v14454_v7  ;;  %v14512_v57 = vld [vmem:[%s19557_s9 + $0x180] ss:$8 sps:$4 sm:$0xff]  }
 0x3b3   : > { %6521 = vmatpush1.bf16.msra.mxu0 %v14428_v38  ;;  %6560 = vmatpush1.bf16.msra.mxu1 %v14452_v43  ;;  %v14520_v38 = vld [vmem:[%s19559_s11 + $0xe4] ss:$16 sps:$4 sm:$0xff]  }
 0x3b4   : > { %6522 = vmatprep.subr.bf16.mxu0 %v14433_v0  ;;  %6561 = vmatprep.subr.bf16.mxu1 %v14460_v30  ;;  %v14523_v0 = vld [vmem:[%s19559_s11 + $0xec] ss:$16 sps:$4 sm:$0xff]  }
 0x3b7   : > { %6523 = vmatpush1.bf16.msra.mxu0 %v14431_v63  ;;  %6562 = vmatpush1.bf16.msra.mxu1 %v14458_v17 }
 0x3b8   : > { %6524 = vmatprep.subr.bf16.mxu0 %v14436_v61  ;;  %6563 = vmatprep.subr.bf16.mxu1 %v14466_v15  ;;  %v17408_v61 = vld [vmem:[%s19556_s8] ss:$0 sm:$0xff] }
 0x3bb   : > { %6525 = vmatpush1.bf16.msra.mxu0 %v14434_v31  ;;  %6564 = vmatpush1.bf16.msra.mxu1 %v14464_v9 }
 0x3bc   : > { %6526 = vmatprep.subr.bf16.mxu0 %v14439_v37  ;;  %6565 = vmatprep.subr.bf16.mxu1 %v14472_v12  ;;  %v14518_v12 = vld [vmem:[%s19559_s11 + $0xe0] ss:$16 sps:$4 sm:$0xff]  }
 0x3bf   : > { %6527 = vmatpush1.bf16.msra.mxu0 %v14437_v25  ;;  %6566 = vmatpush1.bf16.msra.mxu1 %v14470_v11 }
 0x3c0   : > { %6528 = vmatprep.subr.bf16.mxu0 %v14445_v41  ;;  %6567 = vmatprep.subr.bf16.mxu1 %v14478_v49 }
 0x3c3   : > { %6529 = vmatpush2.bf16.msra.mxu0 %v14443_v20  ;;  %6568 = vmatpush1.bf16.msra.mxu1 %v14476_v39 }
 0x3c4   : > { %6530 = vmatprep.subr.bf16.mxu0 %v14451_v58  ;;  %6569 = vmatprep.subr.bf16.mxu1 %v14484_v16  ;;  %v14532_v16 = vld [vmem:[%s19559_s11 + $0xa4] ss:$16 sps:$4 sm:$0xff]  }
 0x3c7   : > { %6531 = vmatpush2.bf16.msra.mxu0 %v14449_v1  ;;  %6570 = vmatpush1.bf16.msra.mxu1 %v14482_v6 }
 0x3c8   : > { %6532 = vmatprep.subr.bf16.mxu0 %v14457_v8  ;;  %6571 = vmatprep.subr.bf16.mxu1 %v14493_v52  ;;  %v14530_v52 = vld [vmem:[%s19559_s11 + $0xa0] ss:$16 sps:$4 sm:$0xff]  }
 0x3cb   : > { %6533 = vmatpush2.bf16.msra.mxu0 %v14455_v13  ;;  %6572 = vmatpush2.bf16.msra.mxu1 %v14491_v40 }
 0x3cc   : > { %6534 = vmatprep.subr.bf16.mxu0 %v14463_v53  ;;  %6573 = vmatprep.subr.bf16.mxu1 %v14496_v10 }
 0x3cf   : > { %6535 = vmatpush2.bf16.msra.mxu0 %v14461_v3  ;;  %6574 = vmatpush2.bf16.msra.mxu1 %v14494_v5  ;;  %v14538_v5 = vld [vmem:[%s19559_s11 + $0x84] ss:$16 sps:$4 sm:$0xff]  }
 0x3d0   : > { %6536 = vmatprep.subr.bf16.mxu0 %v14469_v60  ;;  %6575 = vmatprep.subr.bf16.mxu1 %v14499_v33 }
 0x3d3   : > { %6537 = vmatpush2.bf16.msra.mxu0 %v14467_v56  ;;  %6576 = vmatpush2.bf16.msra.mxu1 %v14497_v18 }
 0x3d4   : > { %6538 = vmatprep.subr.bf16.mxu0 %v14475_v2  ;;  %6577 = vmatprep.subr.bf16.mxu1 %v14502_v46 }
 0x3d7   : > { %6539 = vmatpush2.bf16.msra.mxu0 %v14473_v21  ;;  %6578 = vmatpush2.bf16.msra.mxu1 %v14500_v51  ;;  %v14526_v21 = vld [vmem:[%s19559_s11 + $0xc4] ss:$16 sps:$4 sm:$0xff]  }
 0x3d8   : > { %6540 = vmatprep.subr.bf16.mxu0 %v14481_v14  ;;  %6579 = vmatprep.subr.bf16.mxu1 %v14505_v59  ;;  %v14536_v59 = vld [vmem:[%s19559_s11 + $0x80] ss:$16 sps:$4 sm:$0xff]  }
 0x3db   : > { %6541 = vmatpush2.bf16.msra.mxu0 %v14479_v55  ;;  %6580 = vmatpush2.bf16.msra.mxu1 %v14503_v35  ;;  %v14524_v55 = vld [vmem:[%s19559_s11 + $0xc0] ss:$16 sps:$4 sm:$0xff]  }
 0x3dc   : > { %6542 = vmatprep.subr.bf16.mxu0 %v14487_v32  ;;  %6581 = vmatprep.subr.bf16.mxu1 %v14508_v4 }
 0x3df   : > { %6543 = vmatpush2.bf16.msra.mxu0 %v14485_v29  ;;  %6582 = vmatpush2.bf16.msra.mxu1 %v14506_v42  ;;  %v14544_v42 = vld [vmem:[%s19559_s11 + $0x64] ss:$16 sps:$4 sm:$0xff]  }
 0x3e0   : > { %6583 = vmatprep.subr.bf16.mxu1 %v14511_v28  ;;  %7010 = vmatprep.subr.bf16.mxu0 %v14520_v38  ;;  %v14542_v38 = vld [vmem:[%s19559_s11 + $0x60] ss:$16 sps:$4 sm:$0xff]  }
 0x3e3   : > { %6584 = vmatpush2.bf16.msra.mxu1 %v14509_v36 }
 0x3e4   : > { %6585 = vmatprep.subr.bf16.mxu1 %v14514_v62 }
 0x3e7   : > { %6586 = vmatpush2.bf16.msra.mxu1 %v14512_v57 }
 0x3e8   : > { %7053 = vmatprep.subr.bf16.mxu1 %v14523_v0 }
 0x442   : > { %v13779_v63 = vpop.f32.mrf.mxu0 }
 0x444   : > { %v13780_v31 = vpop.f32.mrf.mxu0 }
 0x445   : > { %v13781_v37 = vadd.f32 %v13780_v31, %v13779_v63 }
 0x446   : > { %v13782_v25 = vpop.f32.mrf.mxu0 }
 0x447   : > { %v5474_v34 = vadd.f32 %v13781_v37, %v17408_v61 }
 0x448   : > { %v13783_v45 = vpop.f32.mrf.mxu0 }
 0x449   : > { %v5480_v41 = vmax.f32 %v5474_v34, 0.0  ;;  %v13784_v20 = vadd.f32 %v13783_v45, %v13782_v25  ;;  %v14521_v45 = vld [vmem:[%s19559_s11 + $0xe8] ss:$16 sps:$4 sm:$0xff]  }
 0x44a   : > { %v13801_v48 = vpop.f32.mrf.mxu1 }
 0x44b   : > { %v13556_v54 = vpack.c.bf16 %v5480_v41, %v5480_v41  ;;  %v5477_v58 = vadd.f32 %v13784_v20, %v17408_v61 }
 0x44c   : > { %v13802_v1 = vpop.f32.mrf.mxu1 }
 0x44d   : > { %5490 = vst [vmem:[#allocation5] sm:$0xf] %v13556_v54  ;;  %v5481_v7 = vmax.f32 %v5477_v58, 0.0  ;;  %v13803_v43 = vadd.f32 %v13802_v1, %v13801_v48  ;;  %v14529_v48 = vld [vmem:[%s19559_s11 + $0xcc] ss:$16 sps:$4 sm:$0xff]  }
 0x44e   : > { %v13804_v8 = vpop.f32.mrf.mxu1  ;;  %v14535_v54 = vld [vmem:[%s19559_s11 + $0xac] ss:$16 sps:$4 sm:$0xff]   ;;  %v14533_v58 = vld [vmem:[%s19559_s11 + $0xa8] ss:$16 sps:$4 sm:$0xff]  }
 0x44f   : > { %v13557_v13 = vpack.c.bf16 %v5481_v7, %v5481_v7  ;;  %v5674_v30 = vadd.f32 %v13803_v43, %v17408_v61  ;;  %v14541_v1 = vld [vmem:[%s19559_s11 + $0x8c] ss:$16 sps:$4 sm:$0xff]   ;;  %v14539_v7 = vld [vmem:[%s19559_s11 + $0x88] ss:$16 sps:$4 sm:$0xff]  }
 0x450   : > { %v13805_v17 = vpop.f32.mrf.mxu1  ;;  %v14547_v43 = vld [vmem:[%s19559_s11 + $0x6c] ss:$16 sps:$4 sm:$0xff]  }
 0x451   : > { %5491 = vst [vmem:[#allocation5 + $0x10] sm:$0xf] %v13557_v13  ;;  %v5680_v53 = vmax.f32 %v5674_v30, 0.0  ;;  %v13806_v3 = vadd.f32 %v13805_v17, %v13804_v8  ;;  %v14545_v8 = vld [vmem:[%s19559_s11 + $0x68] ss:$16 sps:$4 sm:$0xff]  }
 0x452   : > { %v14550_v13 = vld [vmem:[%s19559_s11 + $0x44] ss:$16 sps:$4 sm:$0xff]   ;;  %v14553_v30 = vld [vmem:[%s19559_s11 + $0x4c] ss:$16 sps:$4 sm:$0xff]   ;;  %v14548_v17 = vld [vmem:[%s19559_s11 + $0x40] ss:$16 sps:$4 sm:$0xff]  }
 0x453   : > { %v13558_v15 = vpack.c.bf16 %v5680_v53, %v5680_v53  ;;  %v5677_v9 = vadd.f32 %v13806_v3, %v17408_v61  ;;  %v14551_v53 = vld [vmem:[%s19559_s11 + $0x48] ss:$16 sps:$4 sm:$0xff]   ;;  %v14556_v3 = vld [vmem:[%s19559_s11 + $0x24] ss:$16 sps:$4 sm:$0xff]  }
 0x455   : > { %5690 = vst [vmem:[#allocation5 + $0x4] sm:$0xf] %v13558_v15  ;;  %v5681_v60 = vmax.f32 %v5677_v9, 0.0  ;;  %v14559_v15 = vld [vmem:[%s19559_s11 + $0x2c] ss:$16 sps:$4 sm:$0xff]  }
 0x456   : > { %v14554_v9 = vld [vmem:[%s19559_s11 + $0x20] ss:$16 sps:$4 sm:$0xff]  }
 0x457   : > { %v13559_v56 = vpack.c.bf16 %v5681_v60, %v5681_v60  ;;  %v14557_v60 = vld [vmem:[%s19559_s11 + $0x28] ss:$16 sps:$4 sm:$0xff]  }
 0x458   : > { %v14488_v11 = vld [vmem:[#allocation5] ss:$16 sps:$4 sm:$0xff]  }
 0x459   : > { %5691 = vst [vmem:[#allocation5 + $0x14] sm:$0xf] %v13559_v56  ;;  %v14560_v56 = vld [vmem:[%s19559_s11] ss:$16 sps:$4 sm:$0xff]  }
 0x460   : > { %v14490_v2 = vld [vmem:[#allocation5 + $0x4] ss:$16 sps:$4 sm:$0xff]  }
 0x461   : > { %6544 = vmatprep.mubr.bf16.mxu0 %v14490_v2  ;;  %v14565_v2 = vld [vmem:[%s19559_s11 + $0xc] ss:$16 sps:$4 sm:$0xff]  }
 0x462   : > { %v13823_v39 = vpop.f32.mrf.mxu0  ;;  %6545 = vmatmul.mubr.bf16.vlgmr.msra.gmra.mxu0 %v14488_v11  ;;  %v14563_v11 = vld [vmem:[%s19559_s11 + $0x8] ss:$16 sps:$4 sm:$0xff]  }
 0x463   : > { %7011 = vmatpush1.bf16.msra.mxu0 %v14518_v12  ;;  %v14562_v12 = vld [vmem:[%s19559_s11 + $0x4] ss:$16 sps:$4 sm:$0xff]  }
 0x464   : > { %v13824_v49 = vpop.f32.mrf.mxu0  ;;  %7012 = vmatprep.subr.bf16.mxu0 %v14526_v21  ;;  %v14568_v21 = vld [vmem:[%s19559_s11 + $0x1e4] ss:$16 sps:$4 sm:$0xff]  }
 0x465   : > { %v13825_v14 = vadd.f32 %v13824_v49, %v13823_v39  ;;  %v14571_v39 = vld [vmem:[%s19559_s11 + $0x1ec] ss:$16 sps:$4 sm:$0xff]   ;;  %v14566_v49 = vld [vmem:[%s19559_s11 + $0x1e0] ss:$16 sps:$4 sm:$0xff]  }
 0x466   : > { %v13826_v32 = vpop.f32.mrf.mxu0 }
 0x467   : > { %v5874_v6 = vadd.f32 %v13825_v14, %v17408_v61  ;;  %7013 = vmatpush1.bf16.msra.mxu0 %v14524_v55  ;;  %v14569_v55 = vld [vmem:[%s19559_s11 + $0x1e8] ss:$16 sps:$4 sm:$0xff]   ;;  %v14574_v14 = vld [vmem:[%s19559_s11 + $0x1c4] ss:$16 sps:$4 sm:$0xff]  }
 0x468   : > { %v13827_v29 = vpop.f32.mrf.mxu0  ;;  %7014 = vmatprep.subr.bf16.mxu0 %v14532_v16  ;;  %v14577_v16 = vld [vmem:[%s19559_s11 + $0x1cc] ss:$16 sps:$4 sm:$0xff]  }
 0x469   : > { %v5880_v40 = vmax.f32 %v5874_v6, 0.0  ;;  %v13828_v10 = vadd.f32 %v13827_v29, %v13826_v32  ;;  %v14572_v32 = vld [vmem:[%s19559_s11 + $0x1c0] ss:$16 sps:$4 sm:$0xff]   ;;  %v14575_v6 = vld [vmem:[%s19559_s11 + $0x1c8] ss:$16 sps:$4 sm:$0xff]  }
 0x46a   : > { %v13845_v33 = vpop.f32.mrf.mxu1  ;;  %v14580_v29 = vld [vmem:[%s19559_s11 + $0x1a4] ss:$16 sps:$4 sm:$0xff]  }
 0x46b   : > { %v13560_v18 = vpack.c.bf16 %v5880_v40, %v5880_v40  ;;  %v5877_v46 = vadd.f32 %v13828_v10, %v17408_v61  ;;  %7015 = vmatpush1.bf16.msra.mxu0 %v14530_v52  ;;  %v14583_v52 = vld [vmem:[%s19559_s11 + $0x1ac] ss:$16 sps:$4 sm:$0xff]   ;;  %v14578_v40 = vld [vmem:[%s19559_s11 + $0x1a0] ss:$16 sps:$4 sm:$0xff]   ;;  %v14581_v10 = vld [vmem:[%s19559_s11 + $0x1a8] ss:$16 sps:$4 sm:$0xff]  }
 0x46c   : > { %v13846_v51 = vpop.f32.mrf.mxu1  ;;  %7016 = vmatprep.subr.bf16.mxu0 %v14538_v5  ;;  %v14586_v5 = vld [vmem:[%s19559_s11 + $0x184] ss:$16 sps:$4 sm:$0xff]  }
 0x46d   : > { %5890 = vst [vmem:[#allocation5 + $0x8] sm:$0xf] %v13560_v18  ;;  %v5881_v35 = vmax.f32 %v5877_v46, 0.0  ;;  %v13847_v4 = vadd.f32 %v13846_v51, %v13845_v33  ;;  %v14589_v33 = vld [vmem:[%s19559_s11 + $0x18c] ss:$16 sps:$4 sm:$0xff]  }
 0x46e   : > { %v13848_v36 = vpop.f32.mrf.mxu1  ;;  %v14584_v18 = vld [vmem:[%s19559_s11 + $0x180] ss:$16 sps:$4 sm:$0xff]   ;;  %v14587_v46 = vld [vmem:[%s19559_s11 + $0x188] ss:$16 sps:$4 sm:$0xff]   ;;  %v14592_v51 = vld [vmem:[%s19559_s11 + $0x164] ss:$16 sps:$4 sm:$0xff]  }
 0x46f   : > { %v13561_v28 = vpack.c.bf16 %v5881_v35, %v5881_v35  ;;  %v6074_v62 = vadd.f32 %v13847_v4, %v17408_v61  ;;  %7017 = vmatpush1.bf16.msra.mxu0 %v14536_v59  ;;  %v14595_v59 = vld [vmem:[%s19559_s11 + $0x16c] ss:$16 sps:$4 sm:$0xff]   ;;  %v14590_v35 = vld [vmem:[%s19559_s11 + $0x160] ss:$16 sps:$4 sm:$0xff]   ;;  %v14593_v4 = vld [vmem:[%s19559_s11 + $0x168] ss:$16 sps:$4 sm:$0xff]  }
 0x470   : > { %v13849_v57 = vpop.f32.mrf.mxu1  ;;  %7018 = vmatprep.subr.bf16.mxu0 %v14544_v42  ;;  %v14598_v42 = vld [vmem:[%s19559_s11 + $0x144] ss:$16 sps:$4 sm:$0xff]  }
 0x471   : > { %5891 = vst [vmem:[#allocation5 + $0x18] sm:$0xf] %v13561_v28  ;;  %v6080_v0 = vmax.f32 %v6074_v62, 0.0  ;;  %v13850_v63 = vadd.f32 %v13849_v57, %v13848_v36  ;;  %v14601_v36 = vld [vmem:[%s19559_s11 + $0x14c] ss:$16 sps:$4 sm:$0xff]  }
 0x472   : > { %v14596_v28 = vld [vmem:[%s19559_s11 + $0x140] ss:$16 sps:$4 sm:$0xff]   ;;  %v14599_v62 = vld [vmem:[%s19559_s11 + $0x148] ss:$16 sps:$4 sm:$0xff]   ;;  %v14604_v57 = vld [vmem:[%s19559_s11 + $0x124] ss:$16 sps:$4 sm:$0xff]  }
 0x473   : > { %v13562_v31 = vpack.c.bf16 %v6080_v0, %v6080_v0  ;;  %v6077_v37 = vadd.f32 %v13850_v63, %v17408_v61  ;;  %7019 = vmatpush1.bf16.msra.mxu0 %v14542_v38  ;;  %v14527_v61 = vld [vmem:[%s19559_s11 + $0xc8] ss:$16 sps:$4 sm:$0xff]   ;;  %v14607_v38 = vld [vmem:[%s19559_s11 + $0x12c] ss:$16 sps:$4 sm:$0xff]   ;;  %v14602_v0 = vld [vmem:[%s19559_s11 + $0x120] ss:$16 sps:$4 sm:$0xff]  }
 0x474   : > { %7020 = vmatprep.subr.bf16.mxu0 %v14550_v13  ;;  %v14605_v63 = vld [vmem:[%s19559_s11 + $0x128] ss:$16 sps:$4 sm:$0xff]  }
 0x475   : > { %6090 = vst [vmem:[#allocation5 + $0xc] sm:$0xf] %v13562_v31  ;;  %v6081_v25 = vmax.f32 %v6077_v37, 0.0  ;;  %v14610_v31 = vld [vmem:[%s19559_s11 + $0x104] ss:$16 sps:$4 sm:$0xff]  }
 0x476   : > { %v14613_v37 = vld [vmem:[%s19559_s11 + $0x10c] ss:$16 sps:$4 sm:$0xff]  }
 0x477   : > { %v13563_v34 = vpack.c.bf16 %v6081_v25, %v6081_v25  ;;  %7021 = vmatpush1.bf16.msra.mxu0 %v14548_v17  ;;  %v14608_v25 = vld [vmem:[%s19559_s11 + $0x100] ss:$16 sps:$4 sm:$0xff]  }
 0x478   : > { %v14515_v41 = vld [vmem:[#allocation5 + $0x8] ss:$16 sps:$4 sm:$0xff]   ;;  %7022 = vmatprep.subr.bf16.mxu0 %v14556_v3 }
 0x479   : > { %6091 = vst [vmem:[#allocation5 + $0x1c] sm:$0xf] %v13563_v34  ;;  %v14611_v34 = vld [vmem:[%s19559_s11 + $0x108] ss:$16 sps:$4 sm:$0xff]  }
 0x47b   : > { %7023 = vmatpush1.bf16.msra.mxu0 %v14554_v9 }
 0x47c   : > { %7024 = vmatprep.subr.bf16.mxu0 %v14562_v12 }
 0x47f   : > { %7025 = vmatpush1.bf16.msra.mxu0 %v14560_v56 }
 0x480   : > { %v14517_v20 = vld [vmem:[#allocation5 + $0xc] ss:$16 sps:$4 sm:$0xff]   ;;  %7026 = vmatprep.subr.bf16.mxu0 %v14568_v21 }
 0x481   : > { %6587 = vmatprep.mubr.bf16.mxu1 %v14517_v20 }
 0x482   : > { %6588 = vmatmul.mubr.bf16.vlgmr.msra.gmra.mxu1 %v14515_v41 }
 0x483   : > { %7054 = vmatpush1.bf16.msra.mxu1 %v14521_v45  ;;  %7027 = vmatpush2.bf16.msra.mxu0 %v14566_v49  ;;  %v14616_v45 = vld [vmem:[%s19561_s13 + $0x74] ss:$8 sps:$4 sm:$0xff]   ;;  %v14614_v49 = vld [vmem:[%s19561_s13 + $0x70] ss:$8 sps:$4 sm:$0xff]  }
 0x484   : > { %7055 = vmatprep.subr.bf16.mxu1 %v14529_v48  ;;  %7028 = vmatprep.subr.bf16.mxu0 %v14574_v14  ;;  %v6160_v48 = vld [vmem:[%s19558_s10] sm:$0x3]  ;;  %v14619_v14 = vld [vmem:[%s19561_s13 + $0x64] ss:$8 sps:$4 sm:$0xff]  }
 0x487   : > { %7056 = vmatpush1.bf16.msra.mxu1 %v14527_v61  ;;  %7029 = vmatpush2.bf16.msra.mxu0 %v14572_v32  ;;  %v14622_v32 = vld [vmem:[%s19561_s13 + $0x54] ss:$8 sps:$4 sm:$0xff]  }
 0x488   : > { %7057 = vmatprep.subr.bf16.mxu1 %v14535_v54  ;;  %7030 = vmatprep.subr.bf16.mxu0 %v14580_v29  ;;  %v6169_v54 = vrot.slane %v6160_v48, %v15752_v26  ;;  %v14625_v29 = vld [vmem:[%s19561_s13 + $0x44] ss:$8 sps:$4 sm:$0xff]  }
 0x48b   : > { %7058 = vmatpush1.bf16.msra.mxu1 %v14533_v58  ;;  %7031 = vmatpush2.bf16.msra.mxu0 %v14578_v40  ;;  %v6165_v58 = vrot.slane %v6160_v48, %v15741_v23  ;;  %v14628_v40 = vld [vmem:[%s19561_s13 + $0x34] ss:$8 sps:$4 sm:$0xff]   ;;  %v14684_v48 = vld [vmem:[%s19563_s15] ss:$16 sps:$4 sm:$0xff]  }
 0x48c   : > { %7059 = vmatprep.subr.bf16.mxu1 %v14541_v1  ;;  %7032 = vmatprep.subr.bf16.mxu0 %v14586_v5  ;;  %v14631_v5 = vld [vmem:[%s19561_s13 + $0x24] ss:$8 sps:$4 sm:$0xff]  }
 0x48f   : > { %7060 = vmatpush1.bf16.msra.mxu1 %v14539_v7  ;;  %7033 = vmatpush2.bf16.msra.mxu0 %v14584_v18  ;;  %v14634_v18 = vld [vmem:[%s19561_s13 + $0x14] ss:$8 sps:$4 sm:$0xff]  }
 0x490   : > { %7061 = vmatprep.subr.bf16.mxu1 %v14547_v43  ;;  %7034 = vmatprep.subr.bf16.mxu0 %v14592_v51  ;;  %v14635_v51 = vld [vmem:[%s19561_s13] ss:$8 sps:$4 sm:$0xff]  }
 0x493   : > { %7062 = vmatpush1.bf16.msra.mxu1 %v14545_v8  ;;  %7035 = vmatpush2.bf16.msra.mxu0 %v14590_v35  ;;  %v14971_v35 = vmov 0  }
 0x494   : > { %7063 = vmatprep.subr.bf16.mxu1 %v14553_v30  ;;  %7036 = vmatprep.subr.bf16.mxu0 %v14598_v42  ;;  %v14644_v42 = vld [vmem:[%s19563_s15 + $0xe4] ss:$16 sps:$4 sm:$0xff]  }
 0x497   : > { %7064 = vmatpush1.bf16.msra.mxu1 %v14551_v53  ;;  %7037 = vmatpush2.bf16.msra.mxu0 %v14596_v28  ;;  %v14650_v28 = vld [vmem:[%s19563_s15 + $0xc4] ss:$16 sps:$4 sm:$0xff]  }
 0x498   : > { %7065 = vmatprep.subr.bf16.mxu1 %v14559_v15  ;;  %7038 = vmatprep.subr.bf16.mxu0 %v14604_v57  ;;  %v14656_v57 = vld [vmem:[%s19563_s15 + $0xa4] ss:$16 sps:$4 sm:$0xff]  }
 0x49b   : > { %7066 = vmatpush1.bf16.msra.mxu1 %v14557_v60  ;;  %7039 = vmatpush2.bf16.msra.mxu0 %v14602_v0  ;;  %v14662_v0 = vld [vmem:[%s19563_s15 + $0x84] ss:$16 sps:$4 sm:$0xff]  }
 0x49c   : > { %7067 = vmatprep.subr.bf16.mxu1 %v14565_v2  ;;  %7040 = vmatprep.subr.bf16.mxu0 %v14610_v31  ;;  %v14668_v31 = vld [vmem:[%s19563_s15 + $0x64] ss:$16 sps:$4 sm:$0xff]  }
 0x49f   : > { %7068 = vmatpush1.bf16.msra.mxu1 %v14563_v11  ;;  %7041 = vmatpush2.bf16.msra.mxu0 %v14608_v25  ;;  %v14674_v25 = vld [vmem:[%s19563_s15 + $0x44] ss:$16 sps:$4 sm:$0xff]  }
 0x4a0   : > { %7069 = vmatprep.subr.bf16.mxu1 %v14571_v39  ;;  %7284 = vmatprep.subr.bf16.mxu0 %v14616_v45  ;;  %v14680_v45 = vld [vmem:[%s19563_s15 + $0x24] ss:$16 sps:$4 sm:$0xff]  }
 0x4a3   : > { %7070 = vmatpush2.bf16.msra.mxu1 %v14569_v55 }
 0x4a4   : > { %7071 = vmatprep.subr.bf16.mxu1 %v14577_v16  ;;  %v14617_v16 = vld [vmem:[%s19561_s13 + $0x60] ss:$8 sps:$4 sm:$0xff]  }
 0x4a7   : > { %7072 = vmatpush2.bf16.msra.mxu1 %v14575_v6  ;;  %v14620_v6 = vld [vmem:[%s19561_s13 + $0x50] ss:$8 sps:$4 sm:$0xff]  }
 0x4a8   : > { %7073 = vmatprep.subr.bf16.mxu1 %v14583_v52  ;;  %v14623_v52 = vld [vmem:[%s19561_s13 + $0x40] ss:$8 sps:$4 sm:$0xff]  }
 0x4ab   : > { %7074 = vmatpush2.bf16.msra.mxu1 %v14581_v10  ;;  %v14626_v10 = vld [vmem:[%s19561_s13 + $0x30] ss:$8 sps:$4 sm:$0xff]  }
 0x4ac   : > { %7075 = vmatprep.subr.bf16.mxu1 %v14589_v33  ;;  %v14629_v33 = vld [vmem:[%s19561_s13 + $0x20] ss:$8 sps:$4 sm:$0xff]  }
 0x4af   : > { %7076 = vmatpush2.bf16.msra.mxu1 %v14587_v46  ;;  %v14632_v46 = vld [vmem:[%s19561_s13 + $0x10] ss:$8 sps:$4 sm:$0xff]  }
 0x4b0   : > { %7077 = vmatprep.subr.bf16.mxu1 %v14595_v59  ;;  %v14637_v59 = vld [vmem:[%s19561_s13 + $0x4] ss:$8 sps:$4 sm:$0xff]  }
 0x4b3   : > { %7078 = vmatpush2.bf16.msra.mxu1 %v14593_v4  ;;  %v14642_v4 = vld [vmem:[%s19563_s15 + $0xe0] ss:$16 sps:$4 sm:$0xff]  }
 0x4b4   : > { %7079 = vmatprep.subr.bf16.mxu1 %v14601_v36  ;;  %v14647_v36 = vld [vmem:[%s19563_s15 + $0xec] ss:$16 sps:$4 sm:$0xff]  }
 0x4b7   : > { %7080 = vmatpush2.bf16.msra.mxu1 %v14599_v62  ;;  %v14648_v62 = vld [vmem:[%s19563_s15 + $0xc0] ss:$16 sps:$4 sm:$0xff]  }
 0x4b8   : > { %7081 = vmatprep.subr.bf16.mxu1 %v14607_v38  ;;  %v14654_v38 = vld [vmem:[%s19563_s15 + $0xa0] ss:$16 sps:$4 sm:$0xff]  }
 0x4bb   : > { %7082 = vmatpush2.bf16.msra.mxu1 %v14605_v63  ;;  %v14660_v63 = vld [vmem:[%s19563_s15 + $0x80] ss:$16 sps:$4 sm:$0xff]  }
 0x4bc   : > { %7083 = vmatprep.subr.bf16.mxu1 %v14613_v37  ;;  %v14666_v37 = vld [vmem:[%s19563_s15 + $0x60] ss:$16 sps:$4 sm:$0xff]  }
 0x4bf   : > { %7084 = vmatpush2.bf16.msra.mxu1 %v14611_v34  ;;  %v14672_v34 = vld [vmem:[%s19563_s15 + $0x40] ss:$16 sps:$4 sm:$0xff]  }
 0x4c0   : > { %7883 = vmatprep.subr.bf16.mxu1 %v14644_v42 }
 0x522   : > { %v6546_v41 = vpop.f32.mrf.mxu0 }
 0x523   : > { %v6547_v30 = vadd.f32 %v6546_v41, %v6165_v58  ;;  %v14678_v41 = vld [vmem:[%s19563_s15 + $0x20] ss:$16 sps:$4 sm:$0xff]  }
 0x524   : > { %v6548_v20 = vpop.f32.mrf.mxu0 }
 0x525   : > { %v6549_v8 = vadd.f32 %v6548_v20, %v6169_v54  ;;  %v14686_v20 = vld [vmem:[%s19563_s15 + $0x4] ss:$16 sps:$4 sm:$0xff]  }
 0x526   : > { %v6550_v61 = vpop.f32.mrf.mxu0 }
 0x527   : > { %v6551_v13 = vadd.f32 %v6550_v61, %v6165_v58  ;;  %v14692_v61 = vld [vmem:[%s19563_s15 + $0x1e4] ss:$16 sps:$4 sm:$0xff]  }
 0x528   : > { %v6552_v7 = vpop.f32.mrf.mxu0  ;;  %v14698_v58 = vld [vmem:[%s19563_s15 + $0x1c4] ss:$16 sps:$4 sm:$0xff]  }
 0x529   : > { %v6553_v53 = vadd.f32 %v6552_v7, %v6169_v54  ;;  %v14690_v54 = vld [vmem:[%s19563_s15 + $0x1e0] ss:$16 sps:$4 sm:$0xff]   ;;  %v14704_v7 = vld [vmem:[%s19563_s15 + $0x1a4] ss:$16 sps:$4 sm:$0xff]  }
 0x542   : > { %v6589_v1 = vpop.f32.mrf.mxu1 }
 0x543   : > { %v6590_v9 = vadd.f32 %v6589_v1, %v6547_v30  ;;  %v14696_v1 = vld [vmem:[%s19563_s15 + $0x1c0] ss:$16 sps:$4 sm:$0xff]   ;;  %v14716_v30 = vld [vmem:[%s19563_s15 + $0x164] ss:$16 sps:$4 sm:$0xff]  }
 0x544   : > { %v6591_v43 = vpop.f32.mrf.mxu1 }
 0x545   : > { %v6592_v3 = vadd.f32 %v6591_v43, %v6549_v8  ;;  %v6598_v21 = vmax.f32 %v6590_v9, 0.0  ;;  %v14702_v43 = vld [vmem:[%s19563_s15 + $0x1a0] ss:$16 sps:$4 sm:$0xff]   ;;  %v14710_v8 = vld [vmem:[%s19563_s15 + $0x184] ss:$16 sps:$4 sm:$0xff]  }
 0x546   : > { %v6593_v17 = vpop.f32.mrf.mxu1 }
 0x547   : > { %v6594_v15 = vadd.f32 %v6593_v17, %v6551_v13  ;;  %v6599_v11 = vmax.f32 %v6592_v3, 0.0  ;;  %v14708_v13 = vld [vmem:[%s19563_s15 + $0x180] ss:$16 sps:$4 sm:$0xff]  }
 0x548   : > { %v6595_v60 = vpop.f32.mrf.mxu1  ;;  %v14714_v17 = vld [vmem:[%s19563_s15 + $0x160] ss:$16 sps:$4 sm:$0xff]  }
 0x549   : > { %v6596_v56 = vadd.f32 %v6595_v60, %v6553_v53  ;;  %v6600_v12 = vmax.f32 %v6594_v15, 0.0  ;;  %v6668_v53 = vld [vmem:[%s19560_s12] sm:$0xf] }
 0x54a   : > { %v6673_v3 = vrot.slane %v6668_v53, %v15741_v23  ;;  %v6681_v15 = vrot.slane %v6668_v53, %v15744_v24 }
 0x54b   : > { %v6601_v2 = vmax.f32 %v6596_v56, 0.0  ;;  %v6602_v55 = vpack.c.bf16 %v6600_v12, %v6598_v21  ;;  %v6677_v56 = vrot.slane %v6668_v53, %v15752_v26  ;;  %v6685_v12 = vrot.slane %v6668_v53, %v15755_v27  ;;  %v14699_v53 = vld [vmem:[%s19563_s15 + $0x1c8] ss:$16 sps:$4 sm:$0xff]  }
 0x54d   : > { %v6603_v39 = vpack.c.bf16 %v6601_v2, %v6599_v11 }
 0x54f   : > { %7042 = vmatprep.mubr.bf16.mxu0 %v6603_v39  ;;  %7085 = vmatprep.mubr.bf16.mxu1 %v6603_v39 }
 0x550   : > { %7043 = vmatmul.mubr.bf16.vlgmr.msra.gmra.mxu0 %v6602_v55  ;;  %7086 = vmatmul.mubr.bf16.vlgmr.msra.gmra.mxu1 %v6602_v55 }
 0x551   : > { %7285 = vmatpush1.bf16.msra.mxu0 %v14614_v49  ;;  %7316 = vmatprep.mubr.bf16.mxu0 %v14971_v35 }
 0x552   : > { %7286 = vmatprep.subr.bf16.mxu0 %v14619_v14  ;;  %7884 = vmatpush1.bf16.msra.mxu1 %v14642_v4 }
 0x553   : > { %7885 = vmatprep.subr.bf16.mxu1 %v14650_v28 }
 0x555   : > { %7287 = vmatpush1.bf16.msra.mxu0 %v14617_v16 }
 0x556   : > { %7288 = vmatprep.subr.bf16.mxu0 %v14622_v32  ;;  %7886 = vmatpush1.bf16.msra.mxu1 %v14648_v62 }
 0x557   : > { %7887 = vmatprep.subr.bf16.mxu1 %v14656_v57 }
 0x559   : > { %7289 = vmatpush1.bf16.msra.mxu0 %v14620_v6 }
 0x55a   : > { %7290 = vmatprep.subr.bf16.mxu0 %v14625_v29  ;;  %7888 = vmatpush1.bf16.msra.mxu1 %v14654_v38  ;;  %v14645_v38 = vld [vmem:[%s19563_s15 + $0xe8] ss:$16 sps:$4 sm:$0xff]  }
 0x55b   : > { %7889 = vmatprep.subr.bf16.mxu1 %v14662_v0  ;;  %v14653_v0 = vld [vmem:[%s19563_s15 + $0xcc] ss:$16 sps:$4 sm:$0xff]  }
 0x55d   : > { %7291 = vmatpush1.bf16.msra.mxu0 %v14623_v52 }
 0x55e   : > { %7292 = vmatprep.subr.bf16.mxu0 %v14628_v40  ;;  %7890 = vmatpush1.bf16.msra.mxu1 %v14660_v63 }
 0x55f   : > { %7891 = vmatprep.subr.bf16.mxu1 %v14668_v31  ;;  %v14651_v31 = vld [vmem:[%s19563_s15 + $0xc8] ss:$16 sps:$4 sm:$0xff]  }
 0x561   : > { %7293 = vmatpush1.bf16.msra.mxu0 %v14626_v10 }
 0x562   : > { %7294 = vmatprep.subr.bf16.mxu0 %v14631_v5  ;;  %7892 = vmatpush1.bf16.msra.mxu1 %v14666_v37  ;;  %v14659_v37 = vld [vmem:[%s19563_s15 + $0xac] ss:$16 sps:$4 sm:$0xff]  }
 0x563   : > { %7893 = vmatprep.subr.bf16.mxu1 %v14674_v25  ;;  %v14657_v25 = vld [vmem:[%s19563_s15 + $0xa8] ss:$16 sps:$4 sm:$0xff]  }
 0x565   : > { %7295 = vmatpush1.bf16.msra.mxu0 %v14629_v33 }
 0x566   : > { %7296 = vmatprep.subr.bf16.mxu0 %v14634_v18  ;;  %7894 = vmatpush1.bf16.msra.mxu1 %v14672_v34 }
 0x567   : > { %7895 = vmatprep.subr.bf16.mxu1 %v14680_v45  ;;  %v14665_v45 = vld [vmem:[%s19563_s15 + $0x8c] ss:$16 sps:$4 sm:$0xff]  }
 0x569   : > { %7297 = vmatpush1.bf16.msra.mxu0 %v14632_v46 }
 0x56a   : > { %7298 = vmatprep.subr.bf16.mxu0 %v14637_v59  ;;  %7896 = vmatpush1.bf16.msra.mxu1 %v14678_v41  ;;  %v14663_v41 = vld [vmem:[%s19563_s15 + $0x88] ss:$16 sps:$4 sm:$0xff]  }
 0x56b   : > { %7897 = vmatprep.subr.bf16.mxu1 %v14686_v20  ;;  %v14671_v20 = vld [vmem:[%s19563_s15 + $0x6c] ss:$16 sps:$4 sm:$0xff]  }
 0x56d   : > { %7299 = vmatpush1.bf16.msra.mxu0 %v14635_v51 }
 0x56e   : > { %7956 = vmatprep.subr.bf16.mxu0 %v14647_v36  ;;  %7898 = vmatpush1.bf16.msra.mxu1 %v14684_v48  ;;  %v14669_v48 = vld [vmem:[%s19563_s15 + $0x68] ss:$16 sps:$4 sm:$0xff]  }
 0x56f   : > { %7899 = vmatprep.subr.bf16.mxu1 %v14692_v61 }
 0x572   : > { %7900 = vmatpush2.bf16.msra.mxu1 %v14690_v54  ;;  %v14677_v54 = vld [vmem:[%s19563_s15 + $0x4c] ss:$16 sps:$4 sm:$0xff]  }
 0x573   : > { %7901 = vmatprep.subr.bf16.mxu1 %v14698_v58  ;;  %v14675_v58 = vld [vmem:[%s19563_s15 + $0x48] ss:$16 sps:$4 sm:$0xff]  }
 0x576   : > { %7902 = vmatpush2.bf16.msra.mxu1 %v14696_v1  ;;  %v14683_v1 = vld [vmem:[%s19563_s15 + $0x2c] ss:$16 sps:$4 sm:$0xff]  }
 0x577   : > { %7903 = vmatprep.subr.bf16.mxu1 %v14704_v7  ;;  %v14681_v7 = vld [vmem:[%s19563_s15 + $0x28] ss:$16 sps:$4 sm:$0xff]  }
 0x57a   : > { %7904 = vmatpush2.bf16.msra.mxu1 %v14702_v43 }
 0x57b   : > { %7905 = vmatprep.subr.bf16.mxu1 %v14710_v8  ;;  %v14687_v8 = vld [vmem:[%s19563_s15 + $0x8] ss:$16 sps:$4 sm:$0xff]  }
 0x57e   : > { %7906 = vmatpush2.bf16.msra.mxu1 %v14708_v13  ;;  %v14695_v13 = vld [vmem:[%s19563_s15 + $0x1ec] ss:$16 sps:$4 sm:$0xff]  }
 0x57f   : > { %7907 = vmatprep.subr.bf16.mxu1 %v14716_v30  ;;  %v14693_v30 = vld [vmem:[%s19563_s15 + $0x1e8] ss:$16 sps:$4 sm:$0xff]  }
 0x582   : > { %7908 = vmatpush2.bf16.msra.mxu1 %v14714_v17  ;;  %v14701_v17 = vld [vmem:[%s19563_s15 + $0x1cc] ss:$16 sps:$4 sm:$0xff]  }
 0x610   : > { %v7044_v9 = vpop.f32.mrf.mxu0  ;;  %v7087_v60 = vpop.f32.mrf.mxu1 }
 0x611   : > { %v7045_v11 = vadd.f32 %v7044_v9, %v6673_v3  ;;  %v7088_v2 = vadd.f32 %v7087_v60, %v6681_v15  ;;  %v14713_v9 = vld [vmem:[%s19563_s15 + $0x18c] ss:$16 sps:$4 sm:$0xff]   ;;  %v14711_v60 = vld [vmem:[%s19563_s15 + $0x188] ss:$16 sps:$4 sm:$0xff]  }
 0x612   : > { %v7046_v21 = vpop.f32.mrf.mxu0  ;;  %v7089_v39 = vpop.f32.mrf.mxu1 }
 0x613   : > { %v7047_v49 = vadd.f32 %v7046_v21, %v6677_v56  ;;  %v7090_v55 = vadd.f32 %v7089_v39, %v6685_v12  ;;  %v7096_v29 = vmax.f32 %v7045_v11, 0.0  ;;  %v7098_v52 = vmax.f32 %v7088_v2, 0.0  ;;  %v14722_v11 = vld [vmem:[%s19563_s15 + $0x144] ss:$16 sps:$4 sm:$0xff]   ;;  %v14725_v2 = vld [vmem:[%s19563_s15 + $0x14c] ss:$16 sps:$4 sm:$0xff]  }
 0x614   : > { %v7048_v14 = vpop.f32.mrf.mxu0  ;;  %v7091_v16 = vpop.f32.mrf.mxu1  ;;  %v14720_v21 = vld [vmem:[%s19563_s15 + $0x140] ss:$16 sps:$4 sm:$0xff]   ;;  %v14723_v39 = vld [vmem:[%s19563_s15 + $0x148] ss:$16 sps:$4 sm:$0xff]   ;;  %7909 = vmatprep.subr.bf16.mxu1 %v14722_v11 }
 0x615   : > { %v7049_v32 = vadd.f32 %v7048_v14, %v6673_v3  ;;  %v7092_v6 = vadd.f32 %v7091_v16, %v6681_v15  ;;  %v7097_v51 = vmax.f32 %v7047_v49, 0.0  ;;  %v7099_v59 = vmax.f32 %v7090_v55, 0.0  ;;  %v14707_v3 = vld [vmem:[%s19563_s15 + $0x1ac] ss:$16 sps:$4 sm:$0xff]   ;;  %v14705_v15 = vld [vmem:[%s19563_s15 + $0x1a8] ss:$16 sps:$4 sm:$0xff]   ;;  %7910 = vmatpush2.bf16.msra.mxu1 %v14720_v21 }
 0x616   : > { %v7050_v40 = vpop.f32.mrf.mxu0  ;;  %v7093_v10 = vpop.f32.mrf.mxu1  ;;  %v14728_v49 = vld [vmem:[%s19563_s15 + $0x124] ss:$16 sps:$4 sm:$0xff]   ;;  %v14731_v55 = vld [vmem:[%s19563_s15 + $0x12c] ss:$16 sps:$4 sm:$0xff]   ;;  %v14726_v14 = vld [vmem:[%s19563_s15 + $0x120] ss:$16 sps:$4 sm:$0xff]  }
 0x617   : > { %v7100_v5 = vmax.f32 %v7049_v32, 0.0  ;;  %v7102_v33 = vmax.f32 %v7092_v6, 0.0  ;;  %v7051_v18 = vadd.f32 %v7050_v40, %v6677_v56  ;;  %v7094_v46 = vadd.f32 %v7093_v10, %v6685_v12  ;;  %v14719_v56 = vld [vmem:[%s19563_s15 + $0x16c] ss:$16 sps:$4 sm:$0xff]   ;;  %v14717_v12 = vld [vmem:[%s19563_s15 + $0x168] ss:$16 sps:$4 sm:$0xff]   ;;  %7911 = vmatprep.subr.bf16.mxu1 %v14728_v49 }
 0x618   : > { %v14729_v16 = vld [vmem:[%s19563_s15 + $0x128] ss:$16 sps:$4 sm:$0xff]   ;;  %v14734_v32 = vld [vmem:[%s19563_s15 + $0x104] ss:$16 sps:$4 sm:$0xff]   ;;  %v14737_v6 = vld [vmem:[%s19563_s15 + $0x10c] ss:$16 sps:$4 sm:$0xff]  }
 0x619   : > { %v13631_v4 = vpack.c.bf16 %v7100_v5, %v7096_v29  ;;  %v13641_v42 = vpack.c.bf16 %v7102_v33, %v7098_v52  ;;  %v7101_v36 = vmax.f32 %v7051_v18, 0.0  ;;  %v7103_v28 = vmax.f32 %v7094_v46, 0.0  ;;  %7912 = vmatpush2.bf16.msra.mxu1 %v14726_v14  ;;  %v14732_v29 = vld [vmem:[%s19563_s15 + $0x100] ss:$16 sps:$4 sm:$0xff]   ;;  %v14735_v52 = vld [vmem:[%s19563_s15 + $0x108] ss:$16 sps:$4 sm:$0xff]  }
 0x61a   : > { %7913 = vmatprep.subr.bf16.mxu1 %v14734_v32  ;;  %v8245_v40 = vld [vmem:[%s19565_s17 + $0x1c0] sm:$0xff] }
 0x61b   : > { %13632 = vst [vmem:[#allocation6] sm:$0xff] %v13631_v4   ;;  %13649 = vst [vmem:[#allocation6 + $0x10] sm:$0xff] %v13641_v42   ;;  %v13636_v62 = vpack.c.bf16 %v7101_v36, %v7097_v51  ;;  %v13646_v57 = vpack.c.bf16 %v7103_v28, %v7099_v59  ;;  %v8249_v10 = vld [vmem:[%s19565_s17 + $0x1e0] sm:$0xff] }
 0x61c   : > { %v8373_v5 = vld [vmem:[%s19565_s17 + $0x5c0] sm:$0xff]  ;;  %v13104_v33 = vcombine.low %v8245_v40, %v8249_v10  ;;  %v13105_v18 = vcombine.high %v8245_v40, %v8249_v10 }
 0x61d   : > { %13648 = vst [vmem:[#allocation6 + $0x8] sm:$0xff] %v13636_v62   ;;  %13650 = vst [vmem:[#allocation6 + $0x18] sm:$0xff] %v13646_v57   ;;  %7914 = vmatpush2.bf16.msra.mxu1 %v14732_v29  ;;  %v8377_v46 = vld [vmem:[%s19565_s17 + $0x5e0] sm:$0xff] }
 0x61e   : > { %v13232_v51 = vcombine.low %v8373_v5, %v8377_v46  ;;  %v13233_v59 = vcombine.high %v8373_v5, %v8377_v46  ;;  %9847 = vmatprep.subr.bf16.mxu1 %v13105_v18  ;;  %v7168_v4 = vld [vmem:[%s19562_s14] sm:$0x3] }
 0x61f   : > { %v17876_v36 = vrot.slane %v7168_v4, %v15752_v26  ;;  %v17879_v28 = vrot.slane %v7168_v4, %v15741_v23  ;;  %v8221_v14 = vld [vmem:[%s19565_s17 + $0x100] sm:$0xff] }
 0x620   : > { %v8349_v29 = vld [vmem:[%s19565_s17 + $0x500] sm:$0xff] }
 0x622   : > { %v14638_v63 = vld [vmem:[#allocation6] sm:$0xff]   ;;  %v14640_v61 = vld [vmem:[#allocation6 + $0x10] sm:$0xff]  }
 0x623   : > { %7317 = vmatmul.mubr.bf16.vlgmr.msra.gmra.mxu0 %v14638_v63 }
 0x624   : > { %7326 = vmatprep.mubr.bf16.mxu0 %v14971_v35  ;;  %7957 = vmatpush1.bf16.msra.mxu0 %v14645_v38  ;;  %v14639_v34 = vld [vmem:[#allocation6 + $0x8] sm:$0xff]   ;;  %v14641_v43 = vld [vmem:[#allocation6 + $0x18] sm:$0xff]  }
 0x625   : > { %7958 = vmatprep.subr.bf16.mxu0 %v14653_v0 }
 0x628   : > { %7959 = vmatpush1.bf16.msra.mxu0 %v14651_v31 }
 0x629   : > { %7960 = vmatprep.subr.bf16.mxu0 %v14659_v37 }
 0x62b   : > { %7327 = vmatmul.mubr.bf16.gmra.mxu0 %v14639_v34 }
 0x62c   : > { %7336 = vmatprep.mubr.bf16.mxu0 %v14971_v35  ;;  %7961 = vmatpush1.bf16.msra.mxu0 %v14657_v25 }
 0x62d   : > { %7962 = vmatprep.subr.bf16.mxu0 %v14665_v45  ;;  %v8237_v45 = vld [vmem:[%s19565_s17 + $0x180] sm:$0xff] }
 0x630   : > { %7963 = vmatpush1.bf16.msra.mxu0 %v14663_v41 }
 0x631   : > { %7964 = vmatprep.subr.bf16.mxu0 %v14671_v20 }
 0x633   : > { %7337 = vmatmul.mubr.bf16.gmra.mxu0 %v14640_v61  ;;  %v8365_v61 = vld [vmem:[%s19565_s17 + $0x580] sm:$0xff] }
 0x634   : > { %7346 = vmatprep.mubr.bf16.mxu0 %v14971_v35  ;;  %7965 = vmatpush1.bf16.msra.mxu0 %v14669_v48  ;;  %v14689_v35 = vld [vmem:[%s19563_s15 + $0xc] ss:$16 sps:$4 sm:$0xff]   ;;  %v8241_v48 = vld [vmem:[%s19565_s17 + $0x1a0] sm:$0xff] }
 0x635   : > { %7966 = vmatprep.subr.bf16.mxu0 %v14677_v54  ;;  %v8369_v54 = vld [vmem:[%s19565_s17 + $0x5a0] sm:$0xff]  ;;  %v13096_v11 = vcombine.low %v8237_v45, %v8241_v48 }
 0x638   : > { %7967 = vmatpush1.bf16.msra.mxu0 %v14675_v58 }
 0x639   : > { %7968 = vmatprep.subr.bf16.mxu0 %v14683_v1 }
 0x63b   : > { %7347 = vmatmul.mubr.bf16.gmra.mxu0 %v14641_v43 }
 0x63c   : > { %7969 = vmatpush1.bf16.msra.mxu0 %v14681_v7 }
 0x63d   : > { %7970 = vmatprep.subr.bf16.mxu0 %v14689_v35 }
 0x640   : > { %7971 = vmatpush1.bf16.msra.mxu0 %v14687_v8  ;;  %v13097_v8 = vcombine.high %v8237_v45, %v8241_v48 }
 0x641   : > { %7972 = vmatprep.subr.bf16.mxu0 %v14695_v13  ;;  %v13225_v13 = vcombine.high %v8365_v61, %v8369_v54 }
 0x644   : > { %7973 = vmatpush2.bf16.msra.mxu0 %v14693_v30  ;;  %v8229_v30 = vld [vmem:[%s19565_s17 + $0x140] sm:$0xff] }
 0x645   : > { %7974 = vmatprep.subr.bf16.mxu0 %v14701_v17 }
 0x648   : > { %7975 = vmatpush2.bf16.msra.mxu0 %v14699_v53 }
 0x649   : > { %7976 = vmatprep.subr.bf16.mxu0 %v14707_v3  ;;  %v8233_v3 = vld [vmem:[%s19565_s17 + $0x160] sm:$0xff] }
 0x64a   : > { %v13089_v49 = vcombine.high %v8229_v30, %v8233_v3 }
 0x64c   : > { %7977 = vmatpush2.bf16.msra.mxu0 %v14705_v15  ;;  %v8357_v15 = vld [vmem:[%s19565_s17 + $0x540] sm:$0xff] }
 0x64d   : > { %7978 = vmatprep.subr.bf16.mxu0 %v14713_v9  ;;  %v8361_v9 = vld [vmem:[%s19565_s17 + $0x560] sm:$0xff] }
 0x64e   : > { %v13216_v18 = vcombine.low %v8357_v15, %v8361_v9 }
 0x650   : > { %7979 = vmatpush2.bf16.msra.mxu0 %v14711_v60 }
 0x651   : > { %7980 = vmatprep.subr.bf16.mxu0 %v14719_v56 }
 0x654   : > { %7981 = vmatpush2.bf16.msra.mxu0 %v14717_v12 }
 0x655   : > { %7982 = vmatprep.subr.bf16.mxu0 %v14725_v2  ;;  %v13224_v2 = vcombine.low %v8365_v61, %v8369_v54  ;;  %v8205_v54 = vld [vmem:[%s19565_s17 + $0x80] sm:$0xff] }
 0x658   : > { %7983 = vmatpush2.bf16.msra.mxu0 %v14723_v39 }
 0x659   : > { %7984 = vmatprep.subr.bf16.mxu0 %v14731_v55  ;;  %v13217_v55 = vcombine.high %v8357_v15, %v8361_v9 }
 0x65c   : > { %7985 = vmatpush2.bf16.msra.mxu0 %v14729_v16 }
 0x65d   : > { %7986 = vmatprep.subr.bf16.mxu0 %v14737_v6  ;;  %v8225_v6 = vld [vmem:[%s19565_s17 + $0x120] sm:$0xff] }
 0x660   : > { %7987 = vmatpush2.bf16.msra.mxu0 %v14735_v52  ;;  %v8353_v52 = vld [vmem:[%s19565_s17 + $0x520] sm:$0xff] }
 0x661   : > { %9920 = vmatprep.subr.bf16.mxu0 %v13233_v59  ;;  %v13081_v59 = vcombine.high %v8221_v14, %v8225_v6  ;;  %v13209_v4 = vcombine.high %v8349_v29, %v8353_v52  ;;  %v13208_v45 = vcombine.low %v8349_v29, %v8353_v52 }
 0x6e3   : > { %v7318_v42 = vpop.f32.mrf.mxu0 }
 0x6e4   : > { %v7319_v63 = vadd.f32 %v7318_v42, %v17879_v28  ;;  %v8213_v42 = vld [vmem:[%s19565_s17 + $0xc0] sm:$0xff] }
 0x6e5   : > { %v7320_v62 = vpop.f32.mrf.mxu0 }
 0x6e6   : > { %v7321_v38 = vadd.f32 %v7320_v62, %v17876_v36  ;;  %v7357_v58 = vmax.f32 %v7319_v63, 0.0  ;;  %v8345_v63 = vld [vmem:[%s19565_s17 + $0x4e0] sm:$0xff] }
 0x6e7   : > { %v7322_v57 = vpop.f32.mrf.mxu0 }
 0x6e8   : > { %v7323_v0 = vadd.f32 %v7322_v57, %v17879_v28  ;;  %v7358_v41 = vmax.f32 %v7321_v38, 0.0  ;;  %v8217_v38 = vld [vmem:[%s19565_s17 + $0xe0] sm:$0xff] }
 0x6e9   : > { %v7324_v31 = vpop.f32.mrf.mxu0  ;;  %v13073_v48 = vcombine.high %v8213_v42, %v8217_v38 }
 0x6ea   : > { %v7325_v37 = vadd.f32 %v7324_v31, %v17876_v36  ;;  %v7359_v25 = vmax.f32 %v7323_v0, 0.0  ;;  %v8341_v0 = vld [vmem:[%s19565_s17 + $0x4c0] sm:$0xff] }
 0x6eb   : > { %v7328_v34 = vpop.f32.mrf.mxu0  ;;  %v13201_v61 = vcombine.high %v8341_v0, %v8345_v63 }
 0x6ec   : > { %v7360_v20 = vmax.f32 %v7325_v37, 0.0  ;;  %v13707_v43 = vpack.c.bf16 %v7359_v25, %v7357_v58  ;;  %v7329_v60 = vadd.f32 %v7328_v34, %v17879_v28  ;;  %v13080_v34 = vcombine.low %v8221_v14, %v8225_v6 }
 0x6ed   : > { %v7330_v1 = vpop.f32.mrf.mxu0 }
 0x6ee   : > { %v13708_v7 = vpack.c.bf16 %v7360_v20, %v7358_v41  ;;  %v7331_v17 = vadd.f32 %v7330_v1, %v17876_v36  ;;  %v7361_v40 = vmax.f32 %v7329_v60, 0.0 }
 0x6ef   : > { %v7332_v35 = vpop.f32.mrf.mxu0 }
 0x6f0   : > { %v7333_v53 = vadd.f32 %v7332_v35, %v17879_v28  ;;  %7915 = vmatprep.mubr.bf16.mxu1 %v13708_v7  ;;  %7988 = vmatprep.mubr.bf16.mxu0 %v13708_v7  ;;  %v7362_v16 = vmax.f32 %v7331_v17, 0.0  ;;  %v8209_v7 = vld [vmem:[%s19565_s17 + $0xa0] sm:$0xff]  ;;  %v13072_v17 = vcombine.low %v8213_v42, %v8217_v38 }
 0x6f1   : > { %v7334_v56 = vpop.f32.mrf.mxu0  ;;  %7916 = vmatmul.mubr.bf16.vlgmr.msra.gmra.mxu1 %v13707_v43  ;;  %7989 = vmatmul.mubr.bf16.vlgmr.msra.gmra.mxu0 %v13707_v43  ;;  %v8333_v43 = vld [vmem:[%s19565_s17 + $0x480] sm:$0xff]  ;;  %v13065_v9 = vcombine.high %v8205_v54, %v8209_v7 }
 0x6f2   : > { %v7335_v12 = vadd.f32 %v7334_v56, %v17876_v36  ;;  %9848 = vmatpush1.bf16.msra.mxu1 %v13104_v33  ;;  %9921 = vmatpush1.bf16.msra.mxu0 %v13232_v51  ;;  %v7363_v21 = vmax.f32 %v7333_v53, 0.0  ;;  %v13088_v33 = vcombine.low %v8229_v30, %v8233_v3  ;;  %v8337_v35 = vld [vmem:[%s19565_s17 + $0x4a0] sm:$0xff]  ;;  %v13200_v53 = vcombine.low %v8341_v0, %v8345_v63 }
 0x6f3   : > { %v7338_v39 = vpop.f32.mrf.mxu0  ;;  %9849 = vmatprep.subr.bf16.mxu1 %v13097_v8  ;;  %9922 = vmatprep.subr.bf16.mxu0 %v13225_v13  ;;  %v13193_v60 = vcombine.high %v8333_v43, %v8337_v35  ;;  %v8197_v56 = vld [vmem:[%s19565_s17 + $0x40] sm:$0xff] }
 0x6f4   : > { %v7364_v32 = vmax.f32 %v7335_v12, 0.0  ;;  %v13709_v46 = vpack.c.bf16 %v7363_v21, %v7361_v40  ;;  %v7339_v31 = vadd.f32 %v7338_v39, %v17879_v28  ;;  %v8325_v21 = vld [vmem:[%s19565_s17 + $0x440] sm:$0xff] }
 0x6f5   : > { %v7340_v10 = vpop.f32.mrf.mxu0  ;;  %v8329_v39 = vld [vmem:[%s19565_s17 + $0x460] sm:$0xff] }
 0x6f6   : > { %v13710_v5 = vpack.c.bf16 %v7364_v32, %v7362_v16  ;;  %9850 = vmatpush1.bf16.msra.mxu1 %v13096_v11  ;;  %9923 = vmatpush1.bf16.msra.mxu0 %v13224_v2  ;;  %v7341_v62 = vadd.f32 %v7340_v10, %v17876_v36  ;;  %v7365_v8 = vmax.f32 %v7339_v31, 0.0  ;;  %v8201_v2 = vld [vmem:[%s19565_s17 + $0x60] sm:$0xff]  ;;  %v13064_v16 = vcombine.low %v8205_v54, %v8209_v7 }
 0x6f7   : > { %v7342_v51 = vpop.f32.mrf.mxu0  ;;  %9851 = vmatprep.subr.bf16.mxu1 %v13089_v49  ;;  %9924 = vmatprep.subr.bf16.mxu0 %v13217_v55  ;;  %v13192_v32 = vcombine.low %v8333_v43, %v8337_v35  ;;  %v13057_v29 = vcombine.high %v8197_v56, %v8201_v2  ;;  %v13185_v52 = vcombine.high %v8325_v21, %v8329_v39  ;;  %v8189_v40 = vld [vmem:[%s19565_s17] sm:$0xff] }
 0x6f8   : > { %v7343_v57 = vadd.f32 %v7342_v51, %v17879_v28  ;;  %7925 = vmatprep.mubr.bf16.mxu1 %v13710_v5  ;;  %7998 = vmatprep.mubr.bf16.mxu0 %v13710_v5  ;;  %v7366_v58 = vmax.f32 %v7341_v62, 0.0  ;;  %v8193_v5 = vld [vmem:[%s19565_s17 + $0x20] sm:$0xff]  ;;  %v13056_v51 = vcombine.low %v8197_v56, %v8201_v2 }
 0x6f9   : > { %v7344_v37 = vpop.f32.mrf.mxu0  ;;  %7926 = vmatmul.mubr.bf16.gmra.mxu1 %v13709_v46  ;;  %7999 = vmatmul.mubr.bf16.gmra.mxu0 %v13709_v46  ;;  %v13049_v42 = vcombine.high %v8189_v40, %v8193_v5  ;;  %v8313_v38 = vld [vmem:[%s19565_s17 + $0x3e0] sm:$0xff]  ;;  %v13048_v31 = vcombine.low %v8189_v40, %v8193_v5 }
 0x6fa   : > { %v7345_v25 = vadd.f32 %v7344_v37, %v17876_v36  ;;  %9852 = vmatpush1.bf16.msra.mxu1 %v13088_v33  ;;  %9925 = vmatpush1.bf16.msra.mxu0 %v13216_v18  ;;  %v7367_v41 = vmax.f32 %v7343_v57, 0.0  ;;  %v8321_v33 = vld [vmem:[%s19565_s17 + $0x420] sm:$0xff] }
 0x6fb   : > { %v7348_v20 = vpop.f32.mrf.mxu0  ;;  %9853 = vmatprep.subr.bf16.mxu1 %v13081_v59  ;;  %9926 = vmatprep.subr.bf16.mxu0 %v13209_v4  ;;  %v13184_v59 = vcombine.low %v8325_v21, %v8329_v39  ;;  %v8309_v57 = vld [vmem:[%s19565_s17 + $0x3c0] sm:$0xff] }
 0x6fc   : > { %v7368_v1 = vmax.f32 %v7345_v25, 0.0  ;;  %v13711_v3 = vpack.c.bf16 %v7367_v41, %v7365_v8  ;;  %v7349_v49 = vadd.f32 %v7348_v20, %v17879_v28  ;;  %v8437_v0 = vld [vmem:[%s19565_s17 + $0x7c0] sm:$0xff]  ;;  %v13169_v25 = vcombine.high %v8309_v57, %v8313_v38 }
 0x6fd   : > { %v7350_v13 = vpop.f32.mrf.mxu0  ;;  %v8441_v63 = vld [vmem:[%s19565_s17 + $0x7e0] sm:$0xff] }
 0x6fe   : > { %v13712_v30 = vpack.c.bf16 %v7368_v1, %v7366_v58  ;;  %9854 = vmatpush1.bf16.msra.mxu1 %v13080_v34  ;;  %9927 = vmatpush1.bf16.msra.mxu0 %v13208_v45  ;;  %v7351_v12 = vadd.f32 %v7350_v13, %v17876_v36  ;;  %v7369_v18 = vmax.f32 %v7349_v49, 0.0  ;;  %v13297_v34 = vcombine.high %v8437_v0, %v8441_v63  ;;  %v8301_v45 = vld [vmem:[%s19565_s17 + $0x380] sm:$0xff] }
 0x6ff   : > { %v7352_v15 = vpop.f32.mrf.mxu0  ;;  %9855 = vmatprep.subr.bf16.mxu1 %v13073_v48  ;;  %9928 = vmatprep.subr.bf16.mxu0 %v13201_v61  ;;  %v8305_v41 = vld [vmem:[%s19565_s17 + $0x3a0] sm:$0xff]  ;;  %v13168_v61 = vcombine.low %v8309_v57, %v8313_v38  ;;  %v13296_v54 = vcombine.low %v8437_v0, %v8441_v63 }
 0x700   : > { %v7353_v11 = vadd.f32 %v7352_v15, %v17879_v28  ;;  %7935 = vmatprep.mubr.bf16.mxu1 %v13712_v30  ;;  %8008 = vmatprep.mubr.bf16.mxu0 %v13712_v30  ;;  %v7370_v10 = vmax.f32 %v7351_v12, 0.0  ;;  %v8429_v20 = vld [vmem:[%s19565_s17 + $0x780] sm:$0xff]  ;;  %v13161_v58 = vcombine.high %v8301_v45, %v8305_v41  ;;  %v13160_v13 = vcombine.low %v8301_v45, %v8305_v41 }
 0x701   : > { %v7354_v55 = vpop.f32.mrf.mxu0  ;;  %7936 = vmatmul.mubr.bf16.gmra.mxu1 %v13711_v3  ;;  %8009 = vmatmul.mubr.bf16.gmra.mxu0 %v13711_v3  ;;  %v8433_v48 = vld [vmem:[%s19565_s17 + $0x7a0] sm:$0xff] }
 0x702   : > { %v7355_v14 = vadd.f32 %v7354_v55, %v17876_v36  ;;  %9856 = vmatpush1.bf16.msra.mxu1 %v13072_v17  ;;  %9929 = vmatpush1.bf16.msra.mxu0 %v13200_v53  ;;  %v7371_v6 = vmax.f32 %v7353_v11, 0.0  ;;  %v8317_v36 = vld [vmem:[%s19565_s17 + $0x400] sm:$0xff]  ;;  %v13289_v1 = vcombine.high %v8429_v20, %v8433_v48  ;;  %v13288_v30 = vcombine.low %v8429_v20, %v8433_v48  ;;  %v18080_v48 = vld [vmem:[%s19565_s17 + $0x1c8] sm:$0xff] }
 0x703   : > { %9857 = vmatprep.subr.bf16.mxu1 %v13065_v9  ;;  %9930 = vmatprep.subr.bf16.mxu0 %v13193_v60  ;;  %v13177_v62 = vcombine.high %v8317_v36, %v8321_v33  ;;  %v13176_v37 = vcombine.low %v8317_v36, %v8321_v33  ;;  %v8293_v7 = vld [vmem:[%s19565_s17 + $0x340] sm:$0xff] }
 0x704   : > { %v7372_v28 = vmax.f32 %v7355_v14, 0.0  ;;  %v13713_v4 = vpack.c.bf16 %v7371_v6, %v7369_v18  ;;  %v8297_v43 = vld [vmem:[%s19565_s17 + $0x360] sm:$0xff] }
 0x705   : > { %v8421_v35 = vld [vmem:[%s19565_s17 + $0x740] sm:$0xff]  ;;  %v13153_v17 = vcombine.high %v8293_v7, %v8297_v43  ;;  %v13152_v56 = vcombine.low %v8293_v7, %v8297_v43 }
 0x706   : > { %v13714_v46 = vpack.c.bf16 %v7372_v28, %v7370_v10  ;;  %9858 = vmatpush1.bf16.msra.mxu1 %v13064_v16  ;;  %9931 = vmatpush1.bf16.msra.mxu0 %v13192_v32  ;;  %v8425_v8 = vld [vmem:[%s19565_s17 + $0x760] sm:$0xff] }
 0x707   : > { %9859 = vmatprep.subr.bf16.mxu1 %v13057_v29  ;;  %9932 = vmatprep.subr.bf16.mxu0 %v13185_v52  ;;  %v13281_v53 = vcombine.high %v8421_v35, %v8425_v8  ;;  %v8285_v3 = vld [vmem:[%s19565_s17 + $0x300] sm:$0xff]  ;;  %v13280_v12 = vcombine.low %v8421_v35, %v8425_v8 }
 0x708   : > { %7945 = vmatprep.mubr.bf16.mxu1 %v13714_v46  ;;  %8018 = vmatprep.mubr.bf16.mxu0 %v13714_v46  ;;  %v8289_v15 = vld [vmem:[%s19565_s17 + $0x320] sm:$0xff] }
 0x709   : > { %7946 = vmatmul.mubr.bf16.gmra.mxu1 %v13713_v4  ;;  %8019 = vmatmul.mubr.bf16.gmra.mxu0 %v13713_v4  ;;  %v8413_v9 = vld [vmem:[%s19565_s17 + $0x700] sm:$0xff]  ;;  %v13145_v11 = vcombine.high %v8285_v3, %v8289_v15  ;;  %v13144_v14 = vcombine.low %v8285_v3, %v8289_v15 }
 0x70a   : > { %9860 = vmatpush1.bf16.msra.mxu1 %v13056_v51  ;;  %9933 = vmatpush1.bf16.msra.mxu0 %v13184_v59  ;;  %v8417_v60 = vld [vmem:[%s19565_s17 + $0x720] sm:$0xff] }
 0x70b   : > { %9861 = vmatprep.subr.bf16.mxu1 %v13049_v42  ;;  %9934 = vmatprep.subr.bf16.mxu0 %v13177_v62  ;;  %v13273_v2 = vcombine.high %v8413_v9, %v8417_v60  ;;  %v8277_v21 = vld [vmem:[%s19565_s17 + $0x2c0] sm:$0xff]  ;;  %v13272_v16 = vcombine.low %v8413_v9, %v8417_v60 }
 0x70c   : > { %v8281_v39 = vld [vmem:[%s19565_s17 + $0x2e0] sm:$0xff] }
 0x70d   : > { %v8405_v49 = vld [vmem:[%s19565_s17 + $0x6c0] sm:$0xff]  ;;  %v13137_v32 = vcombine.high %v8277_v21, %v8281_v39  ;;  %v13136_v29 = vcombine.low %v8277_v21, %v8281_v39 }
 0x70e   : > { %9862 = vmatpush1.bf16.msra.mxu1 %v13048_v31  ;;  %9935 = vmatpush1.bf16.msra.mxu0 %v13176_v37  ;;  %v8409_v55 = vld [vmem:[%s19565_s17 + $0x6e0] sm:$0xff] }
 0x70f   : > { %9863 = vmatprep.subr.bf16.mxu1 %v13169_v25  ;;  %9936 = vmatprep.subr.bf16.mxu0 %v13297_v34  ;;  %v13265_v6 = vcombine.high %v8405_v49, %v8409_v55  ;;  %v13264_v52 = vcombine.low %v8405_v49, %v8409_v55  ;;  %v8269_v40 = vld [vmem:[%s19565_s17 + $0x280] sm:$0xff] }
 0x710   : > { %v8273_v10 = vld [vmem:[%s19565_s17 + $0x2a0] sm:$0xff] }
 0x711   : > { %v8397_v28 = vld [vmem:[%s19565_s17 + $0x680] sm:$0xff]  ;;  %v13129_v5 = vcombine.high %v8269_v40, %v8273_v10  ;;  %v13128_v33 = vcombine.low %v8269_v40, %v8273_v10 }
 0x712   : > { %9864 = vmatpush2.bf16.msra.mxu1 %v13168_v61  ;;  %9937 = vmatpush2.bf16.msra.mxu0 %v13296_v54  ;;  %v8401_v36 = vld [vmem:[%s19565_s17 + $0x6a0] sm:$0xff]  ;;  %v18085_v61 = vld [vmem:[%s19565_s17 + $0x1e8] sm:$0xff] }
 0x713   : > { %9865 = vmatprep.subr.bf16.mxu1 %v13161_v58  ;;  %9938 = vmatprep.subr.bf16.mxu0 %v13289_v1  ;;  %v13256_v18 = vcombine.low %v8397_v28, %v8401_v36  ;;  %v13257_v46 = vcombine.high %v8397_v28, %v8401_v36  ;;  %v8261_v51 = vld [vmem:[%s19565_s17 + $0x240] sm:$0xff]  ;;  %v18090_v54 = vld [vmem:[%s19565_s17 + $0x5c8] sm:$0xff]  ;;  %v13107_v58 = vcombine.high %v18080_v48, %v18085_v61 }
 0x714   : > { %v8265_v59 = vld [vmem:[%s19565_s17 + $0x260] sm:$0xff]  ;;  %v18097_v1 = vld [vmem:[%s19565_s17 + $0x5e8] sm:$0xff]  ;;  %v13106_v7 = vcombine.low %v18080_v48, %v18085_v61 }
 0x715   : > { %v8389_v4 = vld [vmem:[%s19565_s17 + $0x640] sm:$0xff]  ;;  %v13121_v42 = vcombine.high %v8261_v51, %v8265_v59  ;;  %v13120_v57 = vcombine.low %v8261_v51, %v8265_v59  ;;  %v13234_v43 = vcombine.low %v18090_v54, %v18097_v1  ;;  %v13235_v35 = vcombine.high %v18090_v54, %v18097_v1  ;;  %v18131_v28 = vld [vmem:[%s19565_s17 + $0x188] sm:$0xff] }
 0x716   : > { %9866 = vmatpush2.bf16.msra.mxu1 %v13160_v13  ;;  %9939 = vmatpush2.bf16.msra.mxu0 %v13288_v30  ;;  %v8393_v62 = vld [vmem:[%s19565_s17 + $0x660] sm:$0xff]  ;;  %v18141_v51 = vld [vmem:[%s19565_s17 + $0x588] sm:$0xff] }
 0x717   : > { %9867 = vmatprep.subr.bf16.mxu1 %v13153_v17  ;;  %9940 = vmatprep.subr.bf16.mxu0 %v13281_v53  ;;  %v13248_v38 = vcombine.low %v8389_v4, %v8393_v62  ;;  %v13249_v0 = vcombine.high %v8389_v4, %v8393_v62  ;;  %v8253_v63 = vld [vmem:[%s19565_s17 + $0x200] sm:$0xff]  ;;  %v18146_v59 = vld [vmem:[%s19565_s17 + $0x5a8] sm:$0xff] }
 0x718   : > { %v8257_v31 = vld [vmem:[%s19565_s17 + $0x220] sm:$0xff]  ;;  %v18201_v48 = vld [vmem:[%s19565_s17 + $0x108] sm:$0xff] }
 0x719   : > { %v8381_v37 = vld [vmem:[%s19565_s17 + $0x600] sm:$0xff]  ;;  %v13113_v25 = vcombine.high %v8253_v63, %v8257_v31  ;;  %v13112_v45 = vcombine.low %v8253_v63, %v8257_v31 }
 0x71a   : > { %9868 = vmatpush2.bf16.msra.mxu1 %v13152_v56  ;;  %9941 = vmatpush2.bf16.msra.mxu0 %v13280_v12  ;;  %v8385_v34 = vld [vmem:[%s19565_s17 + $0x620] sm:$0xff] }
 0x71b   : > { %9869 = vmatprep.subr.bf16.mxu1 %v13145_v11  ;;  %9942 = vmatprep.subr.bf16.mxu0 %v13273_v2  ;;  %v13240_v41 = vcombine.low %v8381_v37, %v8385_v34  ;;  %v13241_v20 = vcombine.high %v8381_v37, %v8385_v34  ;;  %v7501_v8 = vld [vmem:[%s19564_s16] sm:$0xf] }
 0x71c   : > { %v18109_v17 = vrot.slane %v7501_v8, %v15752_v26  ;;  %v18112_v53 = vrot.slane %v7501_v8, %v15755_v27  ;;  %v18115_v3 = vrot.slane %v7501_v8, %v15741_v23  ;;  %v18118_v15 = vrot.slane %v7501_v8, %v15744_v24  ;;  %v18169_v8 = vld [vmem:[%s19565_s17 + $0x148] sm:$0xff] }
 0x71e   : > { %9870 = vmatpush2.bf16.msra.mxu1 %v13144_v14  ;;  %9943 = vmatpush2.bf16.msra.mxu0 %v13272_v16 }
 0x71f   : > { %9871 = vmatprep.subr.bf16.mxu1 %v13137_v32  ;;  %9944 = vmatprep.subr.bf16.mxu0 %v13265_v6 }
 0x722   : > { %9872 = vmatpush2.bf16.msra.mxu1 %v13136_v29  ;;  %9945 = vmatpush2.bf16.msra.mxu0 %v13264_v52 }
 0x723   : > { %9873 = vmatprep.subr.bf16.mxu1 %v13129_v5  ;;  %9946 = vmatprep.subr.bf16.mxu0 %v13257_v46  ;;  %v18136_v5 = vld [vmem:[%s19565_s17 + $0x1a8] sm:$0xff] }
 0x724   : > { %v13099_v63 = vcombine.high %v18131_v28, %v18136_v5 }
 0x726   : > { %9874 = vmatpush2.bf16.msra.mxu1 %v13128_v33  ;;  %9947 = vmatpush2.bf16.msra.mxu0 %v13256_v18 }
 0x727   : > { %9875 = vmatprep.subr.bf16.mxu1 %v13121_v42  ;;  %9948 = vmatprep.subr.bf16.mxu0 %v13249_v0 }
 0x72a   : > { %9876 = vmatpush2.bf16.msra.mxu1 %v13120_v57  ;;  %9949 = vmatpush2.bf16.msra.mxu0 %v13248_v38 }
 0x72b   : > { %9877 = vmatprep.subr.bf16.mxu1 %v13113_v25  ;;  %9950 = vmatprep.subr.bf16.mxu0 %v13241_v20 }
 0x72e   : > { %9878 = vmatpush2.bf16.msra.mxu1 %v13112_v45  ;;  %9951 = vmatpush2.bf16.msra.mxu0 %v13240_v41  ;;  %v13227_v41 = vcombine.high %v18141_v51, %v18146_v59 }
 0x72f   : > { %9993 = vmatprep.subr.bf16.mxu1 %v13107_v58  ;;  %10066 = vmatprep.subr.bf16.mxu0 %v13235_v35 }
 0x7b1   : > { %v7917_v13 = vpop.f32.mrf.mxu1  ;;  %v7990_v30 = vpop.f32.mrf.mxu0 }
 0x7b2   : > { %v7918_v49 = vadd.f32 %v7917_v13, %v18115_v3  ;;  %v7991_v55 = vadd.f32 %v7990_v30, %v18118_v15  ;;  %v18174_v13 = vld [vmem:[%s19565_s17 + $0x168] sm:$0xff] }
 0x7b3   : > { %v7919_v9 = vpop.f32.mrf.mxu1  ;;  %v7992_v60 = vpop.f32.mrf.mxu0 }
 0x7b4   : > { %v7920_v11 = vadd.f32 %v7919_v9, %v18109_v17  ;;  %v7993_v2 = vadd.f32 %v7992_v60, %v18112_v53  ;;  %v8029_v4 = vmax.f32 %v7918_v49, 0.0  ;;  %v8031_v42 = vmax.f32 %v7991_v55, 0.0  ;;  %v8362_v49 = vld [vmem:[%s19565_s17 + $0x568] sm:$0xff] }
 0x7b5   : > { %v7921_v56 = vpop.f32.mrf.mxu1  ;;  %v7994_v12 = vpop.f32.mrf.mxu0  ;;  %v13091_v55 = vcombine.high %v18169_v8, %v18174_v13 }
 0x7b6   : > { %v7922_v21 = vadd.f32 %v7921_v56, %v18115_v3  ;;  %v7995_v39 = vadd.f32 %v7994_v12, %v18118_v15  ;;  %v8030_v36 = vmax.f32 %v7920_v11, 0.0  ;;  %v8032_v33 = vmax.f32 %v7993_v2, 0.0 }
 0x7b7   : > { %v7923_v14 = vpop.f32.mrf.mxu1  ;;  %v7996_v16 = vpop.f32.mrf.mxu0  ;;  %v13098_v12 = vcombine.low %v18131_v28, %v18136_v5 }
 0x7b8   : > { %v7924_v32 = vadd.f32 %v7923_v14, %v18109_v17  ;;  %v7997_v6 = vadd.f32 %v7996_v16, %v18112_v53  ;;  %v8033_v29 = vmax.f32 %v7922_v21, 0.0  ;;  %v8035_v52 = vmax.f32 %v7995_v39, 0.0  ;;  %v8358_v39 = vld [vmem:[%s19565_s17 + $0x548] sm:$0xff] }
 0x7b9   : > { %v7927_v40 = vpop.f32.mrf.mxu1  ;;  %v8000_v10 = vpop.f32.mrf.mxu0  ;;  %v13226_v21 = vcombine.low %v18141_v51, %v18146_v59  ;;  %v18210_v14 = vld [vmem:[%s19565_s17 + $0x128] sm:$0xff] }
 0x7ba   : > { %v8034_v18 = vmax.f32 %v7924_v32, 0.0  ;;  %v8036_v46 = vmax.f32 %v7997_v6, 0.0  ;;  %v18154_v31 = vpack.c.bf16 %v8033_v29, %v8029_v4  ;;  %v18156_v37 = vpack.c.bf16 %v8035_v52, %v8031_v42  ;;  %v18215_v16 = vld [vmem:[%s19565_s17 + $0x508] sm:$0xff] }
 0x7bb   : > { %v7929_v62 = vpop.f32.mrf.mxu1  ;;  %v8002_v57 = vpop.f32.mrf.mxu0  ;;  %v7928_v30 = vadd.f32 %v7927_v40, %v18115_v3  ;;  %v8001_v9 = vadd.f32 %v8000_v10, %v18118_v15  ;;  %v18220_v32 = vld [vmem:[%s19565_s17 + $0x528] sm:$0xff]  ;;  %v13083_v59 = vcombine.high %v18201_v48, %v18210_v14 }
 0x7bc   : > { %v18148_v38 = vpack.c.bf16 %v8034_v18, %v8030_v36  ;;  %v18150_v0 = vpack.c.bf16 %v8036_v46, %v8032_v33  ;;  %v7930_v25 = vadd.f32 %v7929_v62, %v18109_v17  ;;  %v8003_v20 = vadd.f32 %v8002_v57, %v18112_v53 }
 0x7bd   : > { %v7931_v34 = vpop.f32.mrf.mxu1  ;;  %v8004_v45 = vpop.f32.mrf.mxu0  ;;  %v8037_v10 = vmax.f32 %v7928_v30, 0.0  ;;  %v8039_v28 = vmax.f32 %v8001_v9, 0.0  ;;  %v13218_v33 = vcombine.low %v8358_v39, %v8362_v49  ;;  %v13219_v18 = vcombine.high %v8358_v39, %v8362_v49 }
 0x7be   : > { %v7932_v58 = vadd.f32 %v7931_v34, %v18115_v3  ;;  %v8005_v35 = vadd.f32 %v8004_v45, %v18118_v15  ;;  %9879 = vmatprep.mubr.bf16.mxu1 %v18148_v38  ;;  %9952 = vmatprep.mubr.bf16.mxu0 %v18150_v0  ;;  %v8038_v6 = vmax.f32 %v7930_v25, 0.0  ;;  %v8040_v29 = vmax.f32 %v8003_v20, 0.0  ;;  %v18243_v20 = vld [vmem:[%s19565_s17 + $0xc8] sm:$0xff] }
 0x7bf   : > { %v7933_v60 = vpop.f32.mrf.mxu1  ;;  %v8006_v56 = vpop.f32.mrf.mxu0  ;;  %9880 = vmatmul.mubr.bf16.vlgmr.msra.gmra.mxu1 %v18154_v31  ;;  %9953 = vmatmul.mubr.bf16.vlgmr.msra.gmra.mxu0 %v18156_v37  ;;  %v13211_v4 = vcombine.high %v18215_v16, %v18220_v32  ;;  %v13082_v9 = vcombine.low %v18201_v48, %v18210_v14 }
 0x7c0   : > { %v7934_v11 = vadd.f32 %v7933_v60, %v18109_v17  ;;  %v8007_v2 = vadd.f32 %v8006_v56, %v18112_v53  ;;  %9994 = vmatpush1.bf16.msra.mxu1 %v13106_v7  ;;  %10067 = vmatpush1.bf16.msra.mxu0 %v13234_v43  ;;  %v8041_v61 = vmax.f32 %v7932_v58, 0.0  ;;  %v8043_v7 = vmax.f32 %v8005_v35, 0.0  ;;  %v18248_v58 = vld [vmem:[%s19565_s17 + $0xe8] sm:$0xff] }
 0x7c1   : > { %v7937_v54 = vpop.f32.mrf.mxu1  ;;  %v8010_v1 = vpop.f32.mrf.mxu0  ;;  %9995 = vmatprep.subr.bf16.mxu1 %v13099_v63  ;;  %10068 = vmatprep.subr.bf16.mxu0 %v13227_v41  ;;  %v13090_v43 = vcombine.low %v18169_v8, %v18174_v13 }
 0x7c2   : > { %v8042_v52 = vmax.f32 %v7934_v11, 0.0  ;;  %v8044_v40 = vmax.f32 %v8007_v2, 0.0  ;;  %v18230_v42 = vpack.c.bf16 %v8041_v61, %v8037_v10  ;;  %v18232_v62 = vpack.c.bf16 %v8043_v7, %v8039_v28  ;;  %v8342_v11 = vld [vmem:[%s19565_s17 + $0x4c8] sm:$0xff] }
 0x7c3   : > { %v7939_v5 = vpop.f32.mrf.mxu1  ;;  %v8012_v36 = vpop.f32.mrf.mxu0  ;;  %v7938_v35 = vadd.f32 %v7937_v54, %v18115_v3  ;;  %v8011_v8 = vadd.f32 %v8010_v1, %v18118_v15  ;;  %v8346_v2 = vld [vmem:[%s19565_s17 + $0x4e8] sm:$0xff]  ;;  %v13074_v7 = vcombine.low %v18243_v20, %v18248_v58  ;;  %v13075_v54 = vcombine.high %v18243_v20, %v18248_v58 }
 0x7c4   : > { %v18222_v46 = vpack.c.bf16 %v8042_v52, %v8038_v6  ;;  %v18224_v51 = vpack.c.bf16 %v8044_v40, %v8040_v29  ;;  %9996 = vmatpush1.bf16.msra.mxu1 %v13098_v12  ;;  %v7940_v57 = vadd.f32 %v7939_v5, %v18109_v17  ;;  %10069 = vmatpush1.bf16.msra.mxu0 %v13226_v21  ;;  %v18269_v21 = vld [vmem:[%s19565_s17 + $0x88] sm:$0xff] }
 0x7c5   : > { %v7941_v63 = vpop.f32.mrf.mxu1  ;;  %v8014_v25 = vpop.f32.mrf.mxu0  ;;  %9997 = vmatprep.subr.bf16.mxu1 %v13091_v55  ;;  %v8013_v34 = vadd.f32 %v8012_v36, %v18112_v53  ;;  %10070 = vmatprep.subr.bf16.mxu0 %v13219_v18  ;;  %v13210_v12 = vcombine.low %v18215_v16, %v18220_v32  ;;  %v18278_v1 = vld [vmem:[%s19565_s17 + $0xa8] sm:$0xff]  ;;  %v8045_v29 = vmax.f32 %v7938_v35, 0.0  ;;  %v8047_v52 = vmax.f32 %v8011_v8, 0.0 }
 0x7c6   : > { %v7942_v45 = vadd.f32 %v7941_v63, %v18115_v3  ;;  %v8015_v41 = vadd.f32 %v8014_v25, %v18118_v15  ;;  %9889 = vmatprep.mubr.bf16.mxu1 %v18222_v46  ;;  %9962 = vmatprep.mubr.bf16.mxu0 %v18224_v51  ;;  %v18288_v55 = vld [vmem:[%s19565_s17 + $0x4a8] sm:$0xff]  ;;  %v8046_v14 = vmax.f32 %v7940_v57, 0.0  ;;  %v13202_v28 = vcombine.low %v8342_v11, %v8346_v2 }
 0x7c7   : > { %v7943_v13 = vpop.f32.mrf.mxu1  ;;  %v8016_v30 = vpop.f32.mrf.mxu0  ;;  %9890 = vmatmul.mubr.bf16.gmra.mxu1 %v18230_v42  ;;  %9963 = vmatmul.mubr.bf16.gmra.mxu0 %v18232_v62  ;;  %v8048_v16 = vmax.f32 %v8013_v34, 0.0  ;;  %v13203_v5 = vcombine.high %v8342_v11, %v8346_v2  ;;  %v13067_v18 = vcombine.high %v18269_v21, %v18278_v1  ;;  %v8198_v58 = vld [vmem:[%s19565_s17 + $0x48] sm:$0xff] }
 0x7c8   : > { %v7944_v60 = vadd.f32 %v7943_v13, %v18109_v17  ;;  %v8017_v56 = vadd.f32 %v8016_v30, %v18112_v53  ;;  %9998 = vmatpush1.bf16.msra.mxu1 %v13090_v43  ;;  %v8049_v39 = vmax.f32 %v7942_v45, 0.0  ;;  %v8051_v49 = vmax.f32 %v8015_v41, 0.0  ;;  %10071 = vmatpush1.bf16.msra.mxu0 %v13218_v33  ;;  %v18283_v43 = vld [vmem:[%s19565_s17 + $0x488] sm:$0xff] }
 0x7c9   : > { %v7947_v48 = vpop.f32.mrf.mxu1  ;;  %v8020_v61 = vpop.f32.mrf.mxu0  ;;  %9999 = vmatprep.subr.bf16.mxu1 %v13083_v59  ;;  %10072 = vmatprep.subr.bf16.mxu0 %v13211_v4  ;;  %v13195_v59 = vcombine.high %v18283_v43, %v18288_v55  ;;  %v8202_v35 = vld [vmem:[%s19565_s17 + $0x68] sm:$0xff] }
 0x7ca   : > { %v8050_v32 = vmax.f32 %v7944_v60, 0.0  ;;  %v8052_v6 = vmax.f32 %v8017_v56, 0.0  ;;  %v18298_v57 = vpack.c.bf16 %v8049_v39, %v8045_v29  ;;  %v18300_v4 = vpack.c.bf16 %v8051_v49, %v8047_v52  ;;  %v8330_v11 = vld [vmem:[%s19565_s17 + $0x468] sm:$0xff] }
 0x7cb   : > { %v7949_v40 = vpop.f32.mrf.mxu1  ;;  %v8022_v10 = vpop.f32.mrf.mxu0  ;;  %v7948_v8 = vadd.f32 %v7947_v48, %v18115_v3  ;;  %v8021_v60 = vadd.f32 %v8020_v61, %v18118_v15 }
 0x7cc   : > { %v18290_v36 = vpack.c.bf16 %v8050_v32, %v8046_v14  ;;  %v18292_v33 = vpack.c.bf16 %v8052_v6, %v8048_v16  ;;  %10000 = vmatpush1.bf16.msra.mxu1 %v13082_v9  ;;  %v7950_v63 = vadd.f32 %v7949_v40, %v18109_v17  ;;  %10073 = vmatpush1.bf16.msra.mxu0 %v13210_v12  ;;  %v8318_v32 = vld [vmem:[%s19565_s17 + $0x408] sm:$0xff] }
 0x7cd   : > { %v7951_v25 = vpop.f32.mrf.mxu1  ;;  %v8024_v34 = vpop.f32.mrf.mxu0  ;;  %10001 = vmatprep.subr.bf16.mxu1 %v13075_v54  ;;  %v8023_v45 = vadd.f32 %v8022_v10, %v18112_v53  ;;  %10074 = vmatprep.subr.bf16.mxu0 %v13203_v5  ;;  %v13066_v9 = vcombine.low %v18269_v21, %v18278_v1  ;;  %v8053_v61 = vmax.f32 %v7948_v8, 0.0  ;;  %v8190_v54 = vld [vmem:[%s19565_s17 + $0x8] sm:$0xff]  ;;  %v8055_v14 = vmax.f32 %v8021_v60, 0.0 }
 0x7ce   : > { %v7952_v41 = vadd.f32 %v7951_v25, %v18115_v3  ;;  %v8025_v20 = vadd.f32 %v8024_v34, %v18118_v15  ;;  %9899 = vmatprep.mubr.bf16.mxu1 %v18290_v36  ;;  %9972 = vmatprep.mubr.bf16.mxu0 %v18292_v33  ;;  %v8326_v3 = vld [vmem:[%s19565_s17 + $0x448] sm:$0xff]  ;;  %v8054_v2 = vmax.f32 %v7950_v63, 0.0  ;;  %v13059_v15 = vcombine.high %v8198_v58, %v8202_v35 }
 0x7cf   : > { %v7953_v13 = vpop.f32.mrf.mxu1  ;;  %v8026_v30 = vpop.f32.mrf.mxu0  ;;  %9900 = vmatmul.mubr.bf16.gmra.mxu1 %v18298_v57  ;;  %9973 = vmatmul.mubr.bf16.gmra.mxu0 %v18300_v4  ;;  %v8194_v1 = vld [vmem:[%s19565_s17 + $0x28] sm:$0xff]  ;;  %v13186_v52 = vcombine.low %v8326_v3, %v8330_v11 }
 0x7d0   : > { %v7954_v56 = vadd.f32 %v7953_v13, %v18109_v17  ;;  %v8027_v12 = vadd.f32 %v8026_v30, %v18112_v53  ;;  %10002 = vmatpush1.bf16.msra.mxu1 %v13074_v7  ;;  %v8057_v39 = vmax.f32 %v7952_v41, 0.0  ;;  %10075 = vmatpush1.bf16.msra.mxu0 %v13202_v28  ;;  %v13194_v17 = vcombine.low %v18283_v43, %v18288_v55  ;;  %v8322_v6 = vld [vmem:[%s19565_s17 + $0x428] sm:$0xff] }
 0x7d1   : > { %10003 = vmatprep.subr.bf16.mxu1 %v13067_v18  ;;  %v8056_v53 = vmax.f32 %v8023_v45, 0.0  ;;  %v8059_v21 = vmax.f32 %v8025_v20, 0.0  ;;  %10076 = vmatprep.subr.bf16.mxu0 %v13195_v59  ;;  %v13187_v7 = vcombine.high %v8326_v3, %v8330_v11  ;;  %v13058_v55 = vcombine.low %v8198_v58, %v8202_v35  ;;  %v8310_v28 = vld [vmem:[%s19565_s17 + $0x3c8] sm:$0xff] }
 0x7d2   : > { %v8058_v49 = vmax.f32 %v7954_v56, 0.0  ;;  %v8060_v48 = vmax.f32 %v8027_v12, 0.0  ;;  %v18346_v29 = vpack.c.bf16 %v8057_v39, %v8053_v61  ;;  %v13051_v10 = vcombine.high %v8190_v54, %v8194_v1  ;;  %v8314_v5 = vld [vmem:[%s19565_s17 + $0x3e8] sm:$0xff] }
 0x7d3   : > { %v18348_v40 = vpack.c.bf16 %v8059_v21, %v8055_v14  ;;  %v13179_v18 = vcombine.high %v8318_v32, %v8322_v6  ;;  %v8438_v59 = vld [vmem:[%s19565_s17 + $0x7c8] sm:$0xff]  ;;  %v13050_v25 = vcombine.low %v8190_v54, %v8194_v1  ;;  %v13178_v34 = vcombine.low %v8318_v32, %v8322_v6 }
 0x7d4   : > { %v18336_v16 = vpack.c.bf16 %v8058_v49, %v8054_v2  ;;  %v18338_v43 = vpack.c.bf16 %v8060_v48, %v8056_v53  ;;  %10004 = vmatpush1.bf16.msra.mxu1 %v13066_v9  ;;  %10077 = vmatpush1.bf16.msra.mxu0 %v13194_v17  ;;  %v8442_v63 = vld [vmem:[%s19565_s17 + $0x7e8] sm:$0xff]  ;;  %v13171_v45 = vcombine.high %v8310_v28, %v8314_v5 }
 0x7d5   : > { %10005 = vmatprep.subr.bf16.mxu1 %v13059_v15  ;;  %10078 = vmatprep.subr.bf16.mxu0 %v13187_v7  ;;  %v13299_v41 = vcombine.high %v8438_v59, %v8442_v63  ;;  %v8302_v20 = vld [vmem:[%s19565_s17 + $0x388] sm:$0xff]  ;;  %v13170_v13 = vcombine.low %v8310_v28, %v8314_v5  ;;  %v13298_v30 = vcombine.low %v8438_v59, %v8442_v63 }
 0x7d6   : > { %9909 = vmatprep.mubr.bf16.mxu1 %v18336_v16  ;;  %9982 = vmatprep.mubr.bf16.mxu0 %v18338_v43  ;;  %v8306_v58 = vld [vmem:[%s19565_s17 + $0x3a8] sm:$0xff] }
 0x7d7   : > { %9910 = vmatmul.mubr.bf16.gmra.mxu1 %v18346_v29  ;;  %9983 = vmatmul.mubr.bf16.gmra.mxu0 %v18348_v40  ;;  %v8430_v35 = vld [vmem:[%s19565_s17 + $0x788] sm:$0xff]  ;;  %v13163_v9 = vcombine.high %v8302_v20, %v8306_v58  ;;  %v13162_v2 = vcombine.low %v8302_v20, %v8306_v58 }
 0x7d8   : > { %10006 = vmatpush1.bf16.msra.mxu1 %v13058_v55  ;;  %10079 = vmatpush1.bf16.msra.mxu0 %v13186_v52  ;;  %v8434_v8 = vld [vmem:[%s19565_s17 + $0x7a8] sm:$0xff] }
 0x7d9   : > { %10025 = vmatprep.mubr.bf16.mxu1 %v18148_v38  ;;  %10098 = vmatprep.mubr.bf16.mxu0 %v18150_v0  ;;  %v13291_v60 = vcombine.high %v8430_v35, %v8434_v8  ;;  %v8294_v56 = vld [vmem:[%s19565_s17 + $0x348] sm:$0xff]  ;;  %v13290_v39 = vcombine.low %v8430_v35, %v8434_v8 }
 0x7da   : > { %10007 = vmatprep.subr.bf16.mxu1 %v13051_v10  ;;  %10080 = vmatprep.subr.bf16.mxu0 %v13179_v18  ;;  %v8298_v12 = vld [vmem:[%s19565_s17 + $0x368] sm:$0xff] }
 0x7db   : > { %v8422_v3 = vld [vmem:[%s19565_s17 + $0x748] sm:$0xff]  ;;  %v13155_v17 = vcombine.high %v8294_v56, %v8298_v12  ;;  %v13154_v61 = vcombine.low %v8294_v56, %v8298_v12 }
 0x7dc   : > { %10008 = vmatpush1.bf16.msra.mxu1 %v13050_v25  ;;  %10081 = vmatpush1.bf16.msra.mxu0 %v13178_v34  ;;  %v8426_v11 = vld [vmem:[%s19565_s17 + $0x768] sm:$0xff] }
 0x7dd   : > { %10009 = vmatprep.subr.bf16.mxu1 %v13171_v45  ;;  %10082 = vmatprep.subr.bf16.mxu0 %v13299_v41  ;;  %v13283_v15 = vcombine.high %v8422_v3, %v8426_v11  ;;  %v8286_v53 = vld [vmem:[%s19565_s17 + $0x308] sm:$0xff]  ;;  %v13282_v7 = vcombine.low %v8422_v3, %v8426_v11 }
 0x7de   : > { %v8290_v21 = vld [vmem:[%s19565_s17 + $0x328] sm:$0xff] }
 0x7df   : > { %v8414_v49 = vld [vmem:[%s19565_s17 + $0x708] sm:$0xff]  ;;  %v13147_v54 = vcombine.high %v8286_v53, %v8290_v21  ;;  %v13146_v52 = vcombine.low %v8286_v53, %v8290_v21  ;;  %v8247_v21 = vld [vmem:[%s19565_s17 + $0x1d0] sm:$0xff] }
 0x7e0   : > { %10010 = vmatpush2.bf16.msra.mxu1 %v13170_v13  ;;  %10083 = vmatpush2.bf16.msra.mxu0 %v13298_v30  ;;  %v8418_v48 = vld [vmem:[%s19565_s17 + $0x728] sm:$0xff] }
 0x7e1   : > { %10011 = vmatprep.subr.bf16.mxu1 %v13163_v9  ;;  %10084 = vmatprep.subr.bf16.mxu0 %v13291_v60  ;;  %v13275_v1 = vcombine.high %v8414_v49, %v8418_v48  ;;  %v8278_v14 = vld [vmem:[%s19565_s17 + $0x2c8] sm:$0xff]  ;;  %v13274_v10 = vcombine.low %v8414_v49, %v8418_v48  ;;  %v8251_v49 = vld [vmem:[%s19565_s17 + $0x1f0] sm:$0xff] }
 0x7e2   : > { %v8282_v55 = vld [vmem:[%s19565_s17 + $0x2e8] sm:$0xff]  ;;  %v8375_v48 = vld [vmem:[%s19565_s17 + $0x5d0] sm:$0xff] }
 0x7e3   : > { %v8406_v32 = vld [vmem:[%s19565_s17 + $0x6c8] sm:$0xff]  ;;  %v13139_v28 = vcombine.high %v8278_v14, %v8282_v55  ;;  %v13138_v34 = vcombine.low %v8278_v14, %v8282_v55  ;;  %v8239_v55 = vld [vmem:[%s19565_s17 + $0x190] sm:$0xff] }
 0x7e4   : > { %10012 = vmatpush2.bf16.msra.mxu1 %v13162_v2  ;;  %10085 = vmatpush2.bf16.msra.mxu0 %v13290_v39  ;;  %v8410_v6 = vld [vmem:[%s19565_s17 + $0x6e8] sm:$0xff] }
 0x7e5   : > { %10013 = vmatprep.subr.bf16.mxu1 %v13155_v17  ;;  %10086 = vmatprep.subr.bf16.mxu0 %v13283_v15  ;;  %v13267_v5 = vcombine.high %v8406_v32, %v8410_v6  ;;  %v8270_v18 = vld [vmem:[%s19565_s17 + $0x288] sm:$0xff]  ;;  %v13266_v45 = vcombine.low %v8406_v32, %v8410_v6  ;;  %v8243_v32 = vld [vmem:[%s19565_s17 + $0x1b0] sm:$0xff] }
 0x7e6   : > { %v8274_v59 = vld [vmem:[%s19565_s17 + $0x2a8] sm:$0xff]  ;;  %v8367_v6 = vld [vmem:[%s19565_s17 + $0x590] sm:$0xff] }
 0x7e7   : > { %v8398_v63 = vld [vmem:[%s19565_s17 + $0x688] sm:$0xff]  ;;  %v13131_v41 = vcombine.high %v8270_v18, %v8274_v59  ;;  %v13130_v30 = vcombine.low %v8270_v18, %v8274_v59  ;;  %v8231_v59 = vld [vmem:[%s19565_s17 + $0x150] sm:$0xff] }
 0x7e8   : > { %10014 = vmatpush2.bf16.msra.mxu1 %v13154_v61  ;;  %10087 = vmatpush2.bf16.msra.mxu0 %v13282_v7  ;;  %v8402_v25 = vld [vmem:[%s19565_s17 + $0x6a8] sm:$0xff]  ;;  %v8379_v61 = vld [vmem:[%s19565_s17 + $0x5f0] sm:$0xff] }
 0x7e9   : > { %10015 = vmatprep.subr.bf16.mxu1 %v13147_v54  ;;  %10088 = vmatprep.subr.bf16.mxu0 %v13275_v1  ;;  %v13259_v20 = vcombine.high %v8398_v63, %v8402_v25  ;;  %v8262_v58 = vld [vmem:[%s19565_s17 + $0x248] sm:$0xff]  ;;  %v13258_v9 = vcombine.low %v8398_v63, %v8402_v25  ;;  %v13109_v1 = vcombine.high %v8247_v21, %v8251_v49  ;;  %v8235_v63 = vld [vmem:[%s19565_s17 + $0x170] sm:$0xff] }
 0x7ea   : > { %v8266_v35 = vld [vmem:[%s19565_s17 + $0x268] sm:$0xff]  ;;  %v13237_v14 = vcombine.high %v8375_v48, %v8379_v61  ;;  %v8359_v25 = vld [vmem:[%s19565_s17 + $0x550] sm:$0xff] }
 0x7eb   : > { %v8390_v8 = vld [vmem:[%s19565_s17 + $0x648] sm:$0xff]  ;;  %v13123_v60 = vcombine.high %v8262_v58, %v8266_v35  ;;  %v13122_v39 = vcombine.low %v8262_v58, %v8266_v35  ;;  %v8223_v35 = vld [vmem:[%s19565_s17 + $0x110] sm:$0xff] }
 0x7ec   : > { %10016 = vmatpush2.bf16.msra.mxu1 %v13146_v52  ;;  %10089 = vmatpush2.bf16.msra.mxu0 %v13274_v10  ;;  %v8394_v13 = vld [vmem:[%s19565_s17 + $0x668] sm:$0xff]  ;;  %v8371_v52 = vld [vmem:[%s19565_s17 + $0x5b0] sm:$0xff]  ;;  %v13108_v10 = vcombine.low %v8247_v21, %v8251_v49 }
 0x7ed   : > { %10017 = vmatprep.subr.bf16.mxu1 %v13139_v28  ;;  %10090 = vmatprep.subr.bf16.mxu0 %v13267_v5  ;;  %v13251_v56 = vcombine.high %v8390_v8, %v8394_v13  ;;  %v8254_v12 = vld [vmem:[%s19565_s17 + $0x208] sm:$0xff]  ;;  %v13250_v17 = vcombine.low %v8390_v8, %v8394_v13  ;;  %v13236_v28 = vcombine.low %v8375_v48, %v8379_v61  ;;  %v8227_v8 = vld [vmem:[%s19565_s17 + $0x130] sm:$0xff] }
 0x7ee   : > { %v8258_v3 = vld [vmem:[%s19565_s17 + $0x228] sm:$0xff]  ;;  %v13101_v5 = vcombine.high %v8239_v55, %v8243_v32  ;;  %v13229_v18 = vcombine.high %v8367_v6, %v8371_v52  ;;  %v8351_v13 = vld [vmem:[%s19565_s17 + $0x510] sm:$0xff] }
 0x7ef   : > { %v8382_v11 = vld [vmem:[%s19565_s17 + $0x608] sm:$0xff]  ;;  %v13115_v15 = vcombine.high %v8254_v12, %v8258_v3  ;;  %v13114_v7 = vcombine.low %v8254_v12, %v8258_v3  ;;  %v8215_v3 = vld [vmem:[%s19565_s17 + $0xd0] sm:$0xff] }
 0x7f0   : > { %10018 = vmatpush2.bf16.msra.mxu1 %v13138_v34  ;;  %10091 = vmatpush2.bf16.msra.mxu0 %v13266_v45  ;;  %v8386_v2 = vld [vmem:[%s19565_s17 + $0x628] sm:$0xff]  ;;  %v8363_v34 = vld [vmem:[%s19565_s17 + $0x570] sm:$0xff]  ;;  %v13100_v45 = vcombine.low %v8239_v55, %v8243_v32 }
 0x7f1   : > { %10019 = vmatprep.subr.bf16.mxu1 %v13131_v41  ;;  %10092 = vmatprep.subr.bf16.mxu0 %v13259_v20  ;;  %v13243_v53 = vcombine.high %v8382_v11, %v8386_v2  ;;  %v13242_v54 = vcombine.low %v8382_v11, %v8386_v2  ;;  %v13228_v41 = vcombine.low %v8367_v6, %v8371_v52  ;;  %v8219_v11 = vld [vmem:[%s19565_s17 + $0xf0] sm:$0xff] }
 0x7f2   : > { %v13093_v20 = vcombine.high %v8231_v59, %v8235_v63  ;;  %v13221_v58 = vcombine.high %v8359_v25, %v8363_v34  ;;  %v8343_v2 = vld [vmem:[%s19565_s17 + $0x4d0] sm:$0xff] }
 0x7f3   : > { %v8207_v49 = vld [vmem:[%s19565_s17 + $0x90] sm:$0xff] }
 0x7f4   : > { %10020 = vmatpush2.bf16.msra.mxu1 %v13130_v30  ;;  %10093 = vmatpush2.bf16.msra.mxu0 %v13258_v9  ;;  %v8355_v30 = vld [vmem:[%s19565_s17 + $0x530] sm:$0xff]  ;;  %v13092_v9 = vcombine.low %v8231_v59, %v8235_v63 }
 0x7f5   : > { %10021 = vmatprep.subr.bf16.mxu1 %v13123_v60  ;;  %10094 = vmatprep.subr.bf16.mxu0 %v13251_v56  ;;  %v13220_v60 = vcombine.low %v8359_v25, %v8363_v34  ;;  %v13085_v56 = vcombine.high %v8223_v35, %v8227_v8  ;;  %v13213_v12 = vcombine.high %v8351_v13, %v8355_v30  ;;  %v8211_v48 = vld [vmem:[%s19565_s17 + $0xb0] sm:$0xff] }
 0x7f6   : > { %v8335_v61 = vld [vmem:[%s19565_s17 + $0x490] sm:$0xff] }
 0x7f7   : > { %v8199_v32 = vld [vmem:[%s19565_s17 + $0x50] sm:$0xff] }
 0x7f8   : > { %10022 = vmatpush2.bf16.msra.mxu1 %v13122_v39  ;;  %10095 = vmatpush2.bf16.msra.mxu0 %v13250_v17  ;;  %v8347_v39 = vld [vmem:[%s19565_s17 + $0x4f0] sm:$0xff]  ;;  %v13084_v17 = vcombine.low %v8223_v35, %v8227_v8 }
 0x7f9   : > { %10023 = vmatprep.subr.bf16.mxu1 %v13115_v15  ;;  %10096 = vmatprep.subr.bf16.mxu0 %v13243_v53  ;;  %v13212_v15 = vcombine.low %v8351_v13, %v8355_v30  ;;  %v13077_v53 = vcombine.high %v8215_v3, %v8219_v11  ;;  %v13205_v21 = vcombine.high %v8343_v2, %v8347_v39  ;;  %v8203_v6 = vld [vmem:[%s19565_s17 + $0x70] sm:$0xff] }
 0x7fa   : > { %v8327_v52 = vld [vmem:[%s19565_s17 + $0x450] sm:$0xff] }
 0x7fb   : > { %v8191_v63 = vld [vmem:[%s19565_s17 + $0x10] sm:$0xff] }
 0x7fc   : > { %10024 = vmatpush2.bf16.msra.mxu1 %v13114_v7  ;;  %10097 = vmatpush2.bf16.msra.mxu0 %v13242_v54  ;;  %v8339_v7 = vld [vmem:[%s19565_s17 + $0x4b0] sm:$0xff]  ;;  %v13076_v54 = vcombine.low %v8215_v3, %v8219_v11 }
 0x7fd   : > { %10139 = vmatprep.subr.bf16.mxu1 %v13109_v1  ;;  %10212 = vmatprep.subr.bf16.mxu0 %v13237_v14  ;;  %v13204_v1 = vcombine.low %v8343_v2, %v8347_v39  ;;  %v13069_v14 = vcombine.high %v8207_v49, %v8211_v48  ;;  %v13197_v55 = vcombine.high %v8335_v61, %v8339_v7  ;;  %v8195_v25 = vld [vmem:[%s19565_s17 + $0x30] sm:$0xff] }
 0x7fe   : > { %v8319_v34 = vld [vmem:[%s19565_s17 + $0x410] sm:$0xff] }
 0x7ff   : > { %10026 = vmatmul.mubr.bf16.vlgmr.msra.gmra.mxu1 %v18154_v31  ;;  %10099 = vmatmul.mubr.bf16.vlgmr.msra.gmra.mxu0 %v18156_v37  ;;  %v8311_v8 = vld [vmem:[%s19565_s17 + $0x3d0] sm:$0xff] }
 0x800   : > { %10035 = vmatprep.mubr.bf16.mxu1 %v18222_v46  ;;  %10108 = vmatprep.mubr.bf16.mxu0 %v18224_v51  ;;  %v8315_v13 = vld [vmem:[%s19565_s17 + $0x3f0] sm:$0xff] }
 0x801   : > { %10140 = vmatpush1.bf16.msra.mxu1 %v13108_v10  ;;  %10213 = vmatpush1.bf16.msra.mxu0 %v13236_v28  ;;  %v8331_v10 = vld [vmem:[%s19565_s17 + $0x470] sm:$0xff]  ;;  %v13068_v28 = vcombine.low %v8207_v49, %v8211_v48 }
 0x802   : > { %10141 = vmatprep.subr.bf16.mxu1 %v13101_v5  ;;  %10214 = vmatprep.subr.bf16.mxu0 %v13229_v18  ;;  %v13196_v5 = vcombine.low %v8335_v61, %v8339_v7  ;;  %v13061_v18 = vcombine.high %v8199_v32, %v8203_v6  ;;  %v13189_v59 = vcombine.high %v8327_v52, %v8331_v10  ;;  %v8439_v30 = vld [vmem:[%s19565_s17 + $0x7d0] sm:$0xff] }
 0x803   : > { %v8303_v11 = vld [vmem:[%s19565_s17 + $0x390] sm:$0xff] }
 0x804   : > { %v8307_v2 = vld [vmem:[%s19565_s17 + $0x3b0] sm:$0xff] }
 0x805   : > { %10142 = vmatpush1.bf16.msra.mxu1 %v13100_v45  ;;  %10215 = vmatpush1.bf16.msra.mxu0 %v13228_v41  ;;  %v8323_v45 = vld [vmem:[%s19565_s17 + $0x430] sm:$0xff]  ;;  %v13060_v41 = vcombine.low %v8199_v32, %v8203_v6 }
 0x806   : > { %10143 = vmatprep.subr.bf16.mxu1 %v13093_v20  ;;  %10216 = vmatprep.subr.bf16.mxu0 %v13221_v58  ;;  %v13188_v20 = vcombine.low %v8327_v52, %v8331_v10  ;;  %v13053_v58 = vcombine.high %v8191_v63, %v8195_v25  ;;  %v13181_v35 = vcombine.high %v8319_v34, %v8323_v45  ;;  %v8431_v39 = vld [vmem:[%s19565_s17 + $0x790] sm:$0xff] }
 0x807   : > { %10036 = vmatmul.mubr.bf16.gmra.mxu1 %v18230_v42  ;;  %10109 = vmatmul.mubr.bf16.gmra.mxu0 %v18232_v62  ;;  %v8295_v48 = vld [vmem:[%s19565_s17 + $0x350] sm:$0xff] }
 0x808   : > { %10045 = vmatprep.mubr.bf16.mxu1 %v18290_v36  ;;  %10118 = vmatprep.mubr.bf16.mxu0 %v18292_v33  ;;  %v8299_v61 = vld [vmem:[%s19565_s17 + $0x370] sm:$0xff] }
 0x809   : > { %10144 = vmatpush1.bf16.msra.mxu1 %v13092_v9  ;;  %10217 = vmatpush1.bf16.msra.mxu0 %v13220_v60  ;;  %v8443_v9 = vld [vmem:[%s19565_s17 + $0x7f0] sm:$0xff]  ;;  %v13052_v60 = vcombine.low %v8191_v63, %v8195_v25 }
 0x80a   : > { %10145 = vmatprep.subr.bf16.mxu1 %v13085_v56  ;;  %10218 = vmatprep.subr.bf16.mxu0 %v13213_v12  ;;  %v13180_v56 = vcombine.low %v8319_v34, %v8323_v45  ;;  %v13173_v12 = vcombine.high %v8311_v8, %v8315_v13  ;;  %v13301_v3 = vcombine.high %v8439_v30, %v8443_v9  ;;  %v8423_v7 = vld [vmem:[%s19565_s17 + $0x750] sm:$0xff] }
 0x80b   : > { %v8287_v6 = vld [vmem:[%s19565_s17 + $0x310] sm:$0xff] }
 0x80c   : > { %v8291_v52 = vld [vmem:[%s19565_s17 + $0x330] sm:$0xff] }
 0x80d   : > { %10146 = vmatpush1.bf16.msra.mxu1 %v13084_v17  ;;  %10219 = vmatpush1.bf16.msra.mxu0 %v13212_v15  ;;  %v8435_v17 = vld [vmem:[%s19565_s17 + $0x7b0] sm:$0xff]  ;;  %v13172_v15 = vcombine.low %v8311_v8, %v8315_v13 }
 0x80e   : > { %10147 = vmatprep.subr.bf16.mxu1 %v13077_v53  ;;  %10220 = vmatprep.subr.bf16.mxu0 %v13205_v21  ;;  %v13300_v53 = vcombine.low %v8439_v30, %v8443_v9  ;;  %v13165_v21 = vcombine.high %v8303_v11, %v8307_v2  ;;  %v13293_v49 = vcombine.high %v8431_v39, %v8435_v17  ;;  %v8415_v10 = vld [vmem:[%s19565_s17 + $0x710] sm:$0xff] }
 0x80f   : > { %10046 = vmatmul.mubr.bf16.gmra.mxu1 %v18298_v57  ;;  %10119 = vmatmul.mubr.bf16.gmra.mxu0 %v18300_v4  ;;  %v8279_v25 = vld [vmem:[%s19565_s17 + $0x2d0] sm:$0xff] }
 0x810   : > { %10055 = vmatprep.mubr.bf16.mxu1 %v18336_v16  ;;  %10128 = vmatprep.mubr.bf16.mxu0 %v18338_v43  ;;  %v8283_v34 = vld [vmem:[%s19565_s17 + $0x2f0] sm:$0xff] }
 0x811   : > { %10148 = vmatpush1.bf16.msra.mxu1 %v13076_v54  ;;  %10221 = vmatpush1.bf16.msra.mxu0 %v13204_v1  ;;  %v8427_v54 = vld [vmem:[%s19565_s17 + $0x770] sm:$0xff]  ;;  %v13164_v1 = vcombine.low %v8303_v11, %v8307_v2 }
 0x812   : > { %10149 = vmatprep.subr.bf16.mxu1 %v13069_v14  ;;  %10222 = vmatprep.subr.bf16.mxu0 %v13197_v55  ;;  %v13292_v14 = vcombine.low %v8431_v39, %v8435_v17  ;;  %v13157_v55 = vcombine.high %v8295_v48, %v8299_v61  ;;  %v13285_v32 = vcombine.high %v8423_v7, %v8427_v54  ;;  %v8407_v45 = vld [vmem:[%s19565_s17 + $0x6d0] sm:$0xff] }
 0x813   : > { %v8271_v13 = vld [vmem:[%s19565_s17 + $0x290] sm:$0xff] }
 0x814   : > { %v8275_v30 = vld [vmem:[%s19565_s17 + $0x2b0] sm:$0xff] }
 0x815   : > { %10150 = vmatpush1.bf16.msra.mxu1 %v13068_v28  ;;  %10223 = vmatpush1.bf16.msra.mxu0 %v13196_v5  ;;  %v8419_v28 = vld [vmem:[%s19565_s17 + $0x730] sm:$0xff]  ;;  %v13156_v5 = vcombine.low %v8295_v48, %v8299_v61 }
 0x816   : > { %10151 = vmatprep.subr.bf16.mxu1 %v13061_v18  ;;  %10224 = vmatprep.subr.bf16.mxu0 %v13189_v59  ;;  %v13284_v18 = vcombine.low %v8423_v7, %v8427_v54  ;;  %v13149_v59 = vcombine.high %v8287_v6, %v8291_v52  ;;  %v13277_v63 = vcombine.high %v8415_v10, %v8419_v28  ;;  %v8399_v9 = vld [vmem:[%s19565_s17 + $0x690] sm:$0xff] }
 0x817   : > { %10056 = vmatmul.mubr.bf16.gmra.mxu1 %v18346_v29  ;;  %10129 = vmatmul.mubr.bf16.gmra.mxu0 %v18348_v40  ;;  %v8263_v2 = vld [vmem:[%s19565_s17 + $0x250] sm:$0xff] }
 0x818   : > { %10171 = vmatprep.mubr.bf16.mxu1 %v18148_v38  ;;  %10244 = vmatprep.mubr.bf16.mxu0 %v18150_v0  ;;  %v8267_v39 = vld [vmem:[%s19565_s17 + $0x270] sm:$0xff] }
 0x819   : > { %10152 = vmatpush1.bf16.msra.mxu1 %v13060_v41  ;;  %10225 = vmatpush1.bf16.msra.mxu0 %v13188_v20  ;;  %v8411_v41 = vld [vmem:[%s19565_s17 + $0x6f0] sm:$0xff]  ;;  %v13148_v20 = vcombine.low %v8287_v6, %v8291_v52  ;;  %v8248_v52 = vld [vmem:[%s19565_s17 + $0x1d8] sm:$0xff] }
 0x81a   : > { %10153 = vmatprep.subr.bf16.mxu1 %v13053_v58  ;;  %10226 = vmatprep.subr.bf16.mxu0 %v13181_v35  ;;  %v13276_v58 = vcombine.low %v8415_v10, %v8419_v28  ;;  %v13141_v35 = vcombine.high %v8279_v25, %v8283_v34  ;;  %v13269_v8 = vcombine.high %v8407_v45, %v8411_v41  ;;  %v8391_v17 = vld [vmem:[%s19565_s17 + $0x650] sm:$0xff]  ;;  %v8252_v10 = vld [vmem:[%s19565_s17 + $0x1f8] sm:$0xff] }
 0x81b   : > { %v8255_v61 = vld [vmem:[%s19565_s17 + $0x210] sm:$0xff]  ;;  %v8376_v28 = vld [vmem:[%s19565_s17 + $0x5d8] sm:$0xff] }
 0x81c   : > { %v8259_v7 = vld [vmem:[%s19565_s17 + $0x230] sm:$0xff] }
 0x81d   : > { %10154 = vmatpush1.bf16.msra.mxu1 %v13052_v60  ;;  %10227 = vmatpush1.bf16.msra.mxu0 %v13180_v56  ;;  %v8403_v60 = vld [vmem:[%s19565_s17 + $0x6b0] sm:$0xff]  ;;  %v13140_v56 = vcombine.low %v8279_v25, %v8283_v34  ;;  %v8240_v34 = vld [vmem:[%s19565_s17 + $0x198] sm:$0xff] }
 0x81e   : > { %10155 = vmatprep.subr.bf16.mxu1 %v13173_v12  ;;  %10228 = vmatprep.subr.bf16.mxu0 %v13301_v3  ;;  %v13268_v12 = vcombine.low %v8407_v45, %v8411_v41  ;;  %v13133_v3 = vcombine.high %v8271_v13, %v8275_v30  ;;  %v13261_v11 = vcombine.high %v8399_v9, %v8403_v60  ;;  %v8383_v54 = vld [vmem:[%s19565_s17 + $0x610] sm:$0xff]  ;;  %v8244_v45 = vld [vmem:[%s19565_s17 + $0x1b8] sm:$0xff] }
 0x81f   : > { %v8368_v41 = vld [vmem:[%s19565_s17 + $0x598] sm:$0xff] }
 0x821   : > { %10156 = vmatpush2.bf16.msra.mxu1 %v13172_v15  ;;  %10229 = vmatpush2.bf16.msra.mxu0 %v13300_v53  ;;  %v8395_v15 = vld [vmem:[%s19565_s17 + $0x670] sm:$0xff]  ;;  %v13132_v53 = vcombine.low %v8271_v13, %v8275_v30  ;;  %v8232_v30 = vld [vmem:[%s19565_s17 + $0x158] sm:$0xff] }
 0x822   : > { %10157 = vmatprep.subr.bf16.mxu1 %v13165_v21  ;;  %10230 = vmatprep.subr.bf16.mxu0 %v13293_v49  ;;  %v13260_v21 = vcombine.low %v8399_v9, %v8403_v60  ;;  %v13125_v49 = vcombine.high %v8263_v2, %v8267_v39  ;;  %v13253_v48 = vcombine.high %v8391_v17, %v8395_v15  ;;  %v8236_v9 = vld [vmem:[%s19565_s17 + $0x178] sm:$0xff] }
 0x823   : > { %v8360_v60 = vld [vmem:[%s19565_s17 + $0x558] sm:$0xff] }
 0x825   : > { %10158 = vmatpush2.bf16.msra.mxu1 %v13164_v1  ;;  %10231 = vmatpush2.bf16.msra.mxu0 %v13292_v14  ;;  %v8387_v1 = vld [vmem:[%s19565_s17 + $0x630] sm:$0xff]  ;;  %v13124_v14 = vcombine.low %v8263_v2, %v8267_v39  ;;  %v8224_v39 = vld [vmem:[%s19565_s17 + $0x118] sm:$0xff] }
 0x826   : > { %10159 = vmatprep.subr.bf16.mxu1 %v13157_v55  ;;  %10232 = vmatprep.subr.bf16.mxu0 %v13285_v32  ;;  %v13252_v55 = vcombine.low %v8391_v17, %v8395_v15  ;;  %v13117_v32 = vcombine.high %v8255_v61, %v8259_v7  ;;  %v13245_v6 = vcombine.high %v8383_v54, %v8387_v1  ;;  %v8228_v17 = vld [vmem:[%s19565_s17 + $0x138] sm:$0xff] }
 0x827   : > { %v8352_v15 = vld [vmem:[%s19565_s17 + $0x518] sm:$0xff] }
 0x829   : > { %10160 = vmatpush2.bf16.msra.mxu1 %v13156_v5  ;;  %10233 = vmatpush2.bf16.msra.mxu0 %v13284_v18  ;;  %v8380_v5 = vld [vmem:[%s19565_s17 + $0x5f8] sm:$0xff]  ;;  %v13116_v18 = vcombine.low %v8255_v61, %v8259_v7 }
 0x82a   : > { %10161 = vmatprep.subr.bf16.mxu1 %v13149_v59  ;;  %10234 = vmatprep.subr.bf16.mxu0 %v13277_v63  ;;  %v13244_v59 = vcombine.low %v8383_v54, %v8387_v1  ;;  %v13111_v63 = vcombine.high %v8248_v52, %v8252_v10  ;;  %v13239_v25 = vcombine.high %v8376_v28, %v8380_v5  ;;  %v8216_v7 = vld [vmem:[%s19565_s17 + $0xd8] sm:$0xff] }
 0x82b   : > { %v8220_v54 = vld [vmem:[%s19565_s17 + $0xf8] sm:$0xff] }
 0x82c   : > { %v8344_v1 = vld [vmem:[%s19565_s17 + $0x4d8] sm:$0xff] }
 0x82d   : > { %10162 = vmatpush2.bf16.msra.mxu1 %v13148_v20  ;;  %10235 = vmatpush2.bf16.msra.mxu0 %v13276_v58  ;;  %v8372_v20 = vld [vmem:[%s19565_s17 + $0x5b8] sm:$0xff]  ;;  %v13110_v58 = vcombine.low %v8248_v52, %v8252_v10 }
 0x82e   : > { %10163 = vmatprep.subr.bf16.mxu1 %v13141_v35  ;;  %10236 = vmatprep.subr.bf16.mxu0 %v13269_v8  ;;  %v13238_v35 = vcombine.low %v8376_v28, %v8380_v5  ;;  %v13103_v8 = vcombine.high %v8240_v34, %v8244_v45  ;;  %v13231_v13 = vcombine.high %v8368_v41, %v8372_v20  ;;  %v8208_v10 = vld [vmem:[%s19565_s17 + $0x98] sm:$0xff] }
 0x82f   : > { %v8212_v28 = vld [vmem:[%s19565_s17 + $0xb8] sm:$0xff] }
 0x830   : > { %v8336_v5 = vld [vmem:[%s19565_s17 + $0x498] sm:$0xff] }
 0x831   : > { %10164 = vmatpush2.bf16.msra.mxu1 %v13140_v56  ;;  %10237 = vmatpush2.bf16.msra.mxu0 %v13268_v12  ;;  %v8364_v56 = vld [vmem:[%s19565_s17 + $0x578] sm:$0xff]  ;;  %v13102_v12 = vcombine.low %v8240_v34, %v8244_v45 }
 0x832   : > { %10165 = vmatprep.subr.bf16.mxu1 %v13133_v3  ;;  %10238 = vmatprep.subr.bf16.mxu0 %v13261_v11  ;;  %v13230_v3 = vcombine.low %v8368_v41, %v8372_v20  ;;  %v13095_v11 = vcombine.high %v8232_v30, %v8236_v9  ;;  %v13223_v2 = vcombine.high %v8360_v60, %v8364_v56  ;;  %v8200_v45 = vld [vmem:[%s19565_s17 + $0x58] sm:$0xff] }
 0x833   : > { %v8204_v41 = vld [vmem:[%s19565_s17 + $0x78] sm:$0xff] }
 0x834   : > { %v8328_v20 = vld [vmem:[%s19565_s17 + $0x458] sm:$0xff] }
 0x835   : > { %10166 = vmatpush2.bf16.msra.mxu1 %v13132_v53  ;;  %10239 = vmatpush2.bf16.msra.mxu0 %v13260_v21  ;;  %v8356_v53 = vld [vmem:[%s19565_s17 + $0x538] sm:$0xff]  ;;  %v13094_v21 = vcombine.low %v8232_v30, %v8236_v9 }
 0x836   : > { %10167 = vmatprep.subr.bf16.mxu1 %v13125_v49  ;;  %10240 = vmatprep.subr.bf16.mxu0 %v13253_v48  ;;  %v13222_v49 = vcombine.low %v8360_v60, %v8364_v56  ;;  %v13087_v48 = vcombine.high %v8224_v39, %v8228_v17  ;;  %v13215_v61 = vcombine.high %v8352_v15, %v8356_v53  ;;  %v8192_v9 = vld [vmem:[%s19565_s17 + $0x18] sm:$0xff] }
 0x837   : > { %v8196_v60 = vld [vmem:[%s19565_s17 + $0x38] sm:$0xff] }
 0x838   : > { %v8320_v56 = vld [vmem:[%s19565_s17 + $0x418] sm:$0xff] }
 0x839   : > { %10168 = vmatpush2.bf16.msra.mxu1 %v13124_v14  ;;  %10241 = vmatpush2.bf16.msra.mxu0 %v13252_v55  ;;  %v8348_v14 = vld [vmem:[%s19565_s17 + $0x4f8] sm:$0xff]  ;;  %v13086_v55 = vcombine.low %v8224_v39, %v8228_v17 }
 0x83a   : > { %10169 = vmatprep.subr.bf16.mxu1 %v13117_v32  ;;  %10242 = vmatprep.subr.bf16.mxu0 %v13245_v6  ;;  %v13214_v32 = vcombine.low %v8352_v15, %v8356_v53  ;;  %v13079_v6 = vcombine.high %v8216_v7, %v8220_v54  ;;  %v13207_v52 = vcombine.high %v8344_v1, %v8348_v14  ;;  %v8312_v17 = vld [vmem:[%s19565_s17 + $0x3d8] sm:$0xff] }
 0x83b   : > { %v8316_v15 = vld [vmem:[%s19565_s17 + $0x3f8] sm:$0xff] }
 0x83c   : > { %v8440_v53 = vld [vmem:[%s19565_s17 + $0x7d8] sm:$0xff] }
 0x83d   : > { %10170 = vmatpush2.bf16.msra.mxu1 %v13116_v18  ;;  %10243 = vmatpush2.bf16.msra.mxu0 %v13244_v59  ;;  %v8340_v18 = vld [vmem:[%s19565_s17 + $0x4b8] sm:$0xff]  ;;  %v13078_v59 = vcombine.low %v8216_v7, %v8220_v54 }
 0x83e   : > { %10285 = vmatprep.subr.bf16.mxu1 %v13111_v63  ;;  %10358 = vmatprep.subr.bf16.mxu0 %v13239_v25  ;;  %v13206_v63 = vcombine.low %v8344_v1, %v8348_v14  ;;  %v13071_v25 = vcombine.high %v8208_v10, %v8212_v28  ;;  %v13199_v34 = vcombine.high %v8336_v5, %v8340_v18  ;;  %v8308_v54 = vld [vmem:[%s19565_s17 + $0x3b8] sm:$0xff] }
 0x83f   : > { %v8432_v1 = vld [vmem:[%s19565_s17 + $0x798] sm:$0xff]  ;;  %v13174_v14 = vcombine.low %v8312_v17, %v8316_v15 }
 0x840   : > { %10172 = vmatmul.mubr.bf16.vlgmr.msra.gmra.mxu1 %v18154_v31  ;;  %10245 = vmatmul.mubr.bf16.vlgmr.msra.gmra.mxu0 %v18156_v37 }
 0x841   : > { %10181 = vmatprep.mubr.bf16.mxu1 %v18222_v46  ;;  %10254 = vmatprep.mubr.bf16.mxu0 %v18224_v51 }
 0x842   : > { %10286 = vmatpush1.bf16.msra.mxu1 %v13110_v58  ;;  %10359 = vmatpush1.bf16.msra.mxu0 %v13238_v35  ;;  %v8332_v58 = vld [vmem:[%s19565_s17 + $0x478] sm:$0xff]  ;;  %v13070_v35 = vcombine.low %v8208_v10, %v8212_v28 }
 0x843   : > { %10287 = vmatprep.subr.bf16.mxu1 %v13103_v8  ;;  %10360 = vmatprep.subr.bf16.mxu0 %v13231_v13  ;;  %v13198_v8 = vcombine.low %v8336_v5, %v8340_v18  ;;  %v13063_v13 = vcombine.high %v8200_v45, %v8204_v41  ;;  %v13191_v30 = vcombine.high %v8328_v20, %v8332_v58  ;;  %v8300_v10 = vld [vmem:[%s19565_s17 + $0x378] sm:$0xff] }
 0x844   : > { %v8424_v28 = vld [vmem:[%s19565_s17 + $0x758] sm:$0xff] }
 0x845   : > { %v8428_v5 = vld [vmem:[%s19565_s17 + $0x778] sm:$0xff] }
 0x846   : > { %10288 = vmatpush1.bf16.msra.mxu1 %v13102_v12  ;;  %10361 = vmatpush1.bf16.msra.mxu0 %v13230_v3  ;;  %v8324_v12 = vld [vmem:[%s19565_s17 + $0x438] sm:$0xff]  ;;  %v13062_v3 = vcombine.low %v8200_v45, %v8204_v41 }
 0x847   : > { %10289 = vmatprep.subr.bf16.mxu1 %v13095_v11  ;;  %10362 = vmatprep.subr.bf16.mxu0 %v13223_v2  ;;  %v13190_v11 = vcombine.low %v8328_v20, %v8332_v58  ;;  %v13055_v2 = vcombine.high %v8192_v9, %v8196_v60  ;;  %v13183_v39 = vcombine.high %v8320_v56, %v8324_v12  ;;  %v8292_v45 = vld [vmem:[%s19565_s17 + $0x338] sm:$0xff] }
 0x848   : > { %10182 = vmatmul.mubr.bf16.gmra.mxu1 %v18230_v42  ;;  %10255 = vmatmul.mubr.bf16.gmra.mxu0 %v18232_v62  ;;  %v8416_v41 = vld [vmem:[%s19565_s17 + $0x718] sm:$0xff] }
 0x849   : > { %10191 = vmatprep.mubr.bf16.mxu1 %v18290_v36  ;;  %10264 = vmatprep.mubr.bf16.mxu0 %v18292_v33  ;;  %v8420_v20 = vld [vmem:[%s19565_s17 + $0x738] sm:$0xff] }
 0x84a   : > { %10290 = vmatpush1.bf16.msra.mxu1 %v13094_v21  ;;  %10363 = vmatpush1.bf16.msra.mxu0 %v13222_v49  ;;  %v8444_v21 = vld [vmem:[%s19565_s17 + $0x7f8] sm:$0xff]  ;;  %v13054_v49 = vcombine.low %v8192_v9, %v8196_v60 }
 0x84b   : > { %10291 = vmatprep.subr.bf16.mxu1 %v13087_v48  ;;  %10364 = vmatprep.subr.bf16.mxu0 %v13215_v61  ;;  %v13182_v48 = vcombine.low %v8320_v56, %v8324_v12  ;;  %v13175_v61 = vcombine.high %v8312_v17, %v8316_v15  ;;  %v13303_v7 = vcombine.high %v8440_v53, %v8444_v21  ;;  %v8284_v9 = vld [vmem:[%s19565_s17 + $0x2f8] sm:$0xff] }
 0x84c   : > { %v8408_v60 = vld [vmem:[%s19565_s17 + $0x6d8] sm:$0xff] }
 0x84d   : > { %v8412_v56 = vld [vmem:[%s19565_s17 + $0x6f8] sm:$0xff] }
 0x84e   : > { %10292 = vmatpush1.bf16.msra.mxu1 %v13086_v55  ;;  %10365 = vmatpush1.bf16.msra.mxu0 %v13214_v32  ;;  %v13302_v55 = vcombine.low %v8440_v53, %v8444_v21  ;;  %v8276_v17 = vld [vmem:[%s19565_s17 + $0x2b8] sm:$0xff] }
 0x84f   : > { %10293 = vmatprep.subr.bf16.mxu1 %v13079_v6  ;;  %10366 = vmatprep.subr.bf16.mxu0 %v13207_v52  ;;  %v8296_v52 = vld [vmem:[%s19565_s17 + $0x358] sm:$0xff] }
 0x850   : > { %10192 = vmatmul.mubr.bf16.gmra.mxu1 %v18298_v57  ;;  %10265 = vmatmul.mubr.bf16.gmra.mxu0 %v18300_v4  ;;  %v13158_v58 = vcombine.low %v8296_v52, %v8300_v10  ;;  %v8400_v15 = vld [vmem:[%s19565_s17 + $0x698] sm:$0xff] }
 0x851   : > { %10201 = vmatprep.mubr.bf16.mxu1 %v18336_v16  ;;  %10274 = vmatprep.mubr.bf16.mxu0 %v18338_v43  ;;  %v8404_v53 = vld [vmem:[%s19565_s17 + $0x6b8] sm:$0xff] }
 0x852   : > { %10294 = vmatpush1.bf16.msra.mxu1 %v13078_v59  ;;  %10367 = vmatpush1.bf16.msra.mxu0 %v13206_v63  ;;  %v13159_v63 = vcombine.high %v8296_v52, %v8300_v10  ;;  %v8260_v52 = vld [vmem:[%s19565_s17 + $0x238] sm:$0xff] }
 0x853   : > { %10295 = vmatprep.subr.bf16.mxu1 %v13071_v25  ;;  %10368 = vmatprep.subr.bf16.mxu0 %v13199_v34  ;;  %v13287_v25 = vcombine.high %v8424_v28, %v8428_v5  ;;  %v8288_v34 = vld [vmem:[%s19565_s17 + $0x318] sm:$0xff] }
 0x854   : > { %v13150_v12 = vcombine.low %v8288_v34, %v8292_v45  ;;  %v8384_v10 = vld [vmem:[%s19565_s17 + $0x618] sm:$0xff] }
 0x856   : > { %10296 = vmatpush1.bf16.msra.mxu1 %v13070_v35  ;;  %10369 = vmatpush1.bf16.msra.mxu0 %v13198_v8  ;;  %v13286_v35 = vcombine.low %v8424_v28, %v8428_v5  ;;  %v13151_v8 = vcombine.high %v8288_v34, %v8292_v45  ;;  %v8388_v28 = vld [vmem:[%s19565_s17 + $0x638] sm:$0xff] }
 0x857   : > { %10297 = vmatprep.subr.bf16.mxu1 %v13063_v13  ;;  %10370 = vmatprep.subr.bf16.mxu0 %v13191_v30  ;;  %v13279_v13 = vcombine.high %v8416_v41, %v8420_v20  ;;  %v8280_v30 = vld [vmem:[%s19565_s17 + $0x2d8] sm:$0xff]  ;;  %v13246_v34 = vcombine.low %v8384_v10, %v8388_v28 }
 0x858   : > { %10202 = vmatmul.mubr.bf16.gmra.mxu1 %v18346_v29  ;;  %10275 = vmatmul.mubr.bf16.gmra.mxu0 %v18348_v40  ;;  %v13142_v21 = vcombine.low %v8280_v30, %v8284_v9  ;;  %v14740_v45 = vld [vmem:[%s19567_s19 + $0x74] ss:$8 sps:$4 sm:$0xff]  }
 0x859   : > { %10317 = vmatprep.mubr.bf16.mxu1 %v18148_v38  ;;  %10390 = vmatprep.mubr.bf16.mxu0 %v18150_v0  ;;  %v8304_v38 = vld [vmem:[%s19565_s17 + $0x398] sm:$0xff] }
 0x85a   : > { %10298 = vmatpush1.bf16.msra.mxu1 %v13062_v3  ;;  %10371 = vmatpush1.bf16.msra.mxu0 %v13190_v11  ;;  %v8436_v0 = vld [vmem:[%s19565_s17 + $0x7b8] sm:$0xff]  ;;  %v13167_v32 = vcombine.high %v8304_v38, %v8308_v54  ;;  %v13166_v18 = vcombine.low %v8304_v38, %v8308_v54  ;;  %v13278_v3 = vcombine.low %v8416_v41, %v8420_v20 }
 0x85b   : > { %10299 = vmatprep.subr.bf16.mxu1 %v13055_v2  ;;  %10372 = vmatprep.subr.bf16.mxu0 %v13183_v39  ;;  %v13295_v6 = vcombine.high %v8432_v1, %v8436_v0  ;;  %v13294_v59 = vcombine.low %v8432_v1, %v8436_v0  ;;  %v13143_v11 = vcombine.high %v8280_v30, %v8284_v9  ;;  %v8272_v39 = vld [vmem:[%s19565_s17 + $0x298] sm:$0xff]  ;;  %v14761_v30 = vld [vmem:[%s19567_s19 + $0x164] ss:$8 sps:$4 sm:$0xff]  }
 0x85c   : > { %v13271_v2 = vcombine.high %v8408_v60, %v8412_v56  ;;  %v8268_v38 = vld [vmem:[%s19565_s17 + $0x278] sm:$0xff]  ;;  %v13134_v0 = vcombine.low %v8272_v39, %v8276_v17 }
 0x85d   : > { %v8392_v54 = vld [vmem:[%s19565_s17 + $0x658] sm:$0xff] }
 0x85e   : > { %10300 = vmatpush1.bf16.msra.mxu1 %v13054_v49  ;;  %10373 = vmatpush1.bf16.msra.mxu0 %v13182_v48  ;;  %v13270_v49 = vcombine.low %v8408_v60, %v8412_v56  ;;  %v13135_v48 = vcombine.high %v8272_v39, %v8276_v17  ;;  %v8396_v1 = vld [vmem:[%s19565_s17 + $0x678] sm:$0xff]  ;;  %v14741_v60 = vld [vmem:[%s19567_s19 + $0x60] ss:$8 sps:$4 sm:$0xff]   ;;  %v14773_v17 = vld [vmem:[%s19567_s19 + $0x144] ss:$8 sps:$4 sm:$0xff]  }
 0x85f   : > { %10301 = vmatprep.subr.bf16.mxu1 %v13175_v61  ;;  %10374 = vmatprep.subr.bf16.mxu0 %v13303_v7  ;;  %v13263_v61 = vcombine.high %v8400_v15, %v8404_v53  ;;  %v8264_v7 = vld [vmem:[%s19565_s17 + $0x258] sm:$0xff] }
 0x860   : > { %v13126_v5 = vcombine.low %v8264_v7, %v8268_v38  ;;  %v14755_v41 = vld [vmem:[%s19567_s19 + $0x174] ss:$8 sps:$4 sm:$0xff]   ;;  %v14738_v20 = vld [vmem:[%s19567_s19 + $0x70] ss:$8 sps:$4 sm:$0xff]  }
 0x862   : > { %10302 = vmatpush2.bf16.msra.mxu1 %v13174_v14  ;;  %10375 = vmatpush2.bf16.msra.mxu0 %v13302_v55  ;;  %v13262_v14 = vcombine.low %v8400_v15, %v8404_v53  ;;  %v13127_v55 = vcombine.high %v8264_v7, %v8268_v38  ;;  %v14758_v38 = vld [vmem:[%s19567_s19 + $0x24] ss:$8 sps:$4 sm:$0xff]  }
 0x863   : > { %10303 = vmatprep.subr.bf16.mxu1 %v13167_v32  ;;  %10376 = vmatprep.subr.bf16.mxu0 %v13295_v6  ;;  %v13255_v32 = vcombine.high %v8392_v54, %v8396_v1  ;;  %v8256_v6 = vld [vmem:[%s19565_s17 + $0x218] sm:$0xff] }
 0x866   : > { %10304 = vmatpush2.bf16.msra.mxu1 %v13166_v18  ;;  %10377 = vmatpush2.bf16.msra.mxu0 %v13294_v59  ;;  %v13254_v18 = vcombine.low %v8392_v54, %v8396_v1  ;;  %v13119_v59 = vcombine.high %v8256_v6, %v8260_v52  ;;  %v14777_v54 = vld [vmem:[%s19567_s19 + $0x130] ss:$8 sps:$4 sm:$0xff]  }
 0x867   : > { %10305 = vmatprep.subr.bf16.mxu1 %v13159_v63  ;;  %10378 = vmatprep.subr.bf16.mxu0 %v13287_v25  ;;  %v13247_v63 = vcombine.high %v8384_v10, %v8388_v28  ;;  %v13118_v25 = vcombine.low %v8256_v6, %v8260_v52  ;;  %v14764_v6 = vld [vmem:[%s19567_s19 + $0x14] ss:$8 sps:$4 sm:$0xff]   ;;  %v14762_v28 = vld [vmem:[%s19567_s19 + $0x10] ss:$8 sps:$4 sm:$0xff]  }
 0x86a   : > { %10306 = vmatpush2.bf16.msra.mxu1 %v13158_v58  ;;  %10379 = vmatpush2.bf16.msra.mxu0 %v13286_v35  ;;  %v14743_v35 = vld [vmem:[%s19567_s19 + $0x64] ss:$8 sps:$4 sm:$0xff]  }
 0x86b   : > { %10307 = vmatprep.subr.bf16.mxu1 %v13151_v8  ;;  %10380 = vmatprep.subr.bf16.mxu0 %v13279_v13  ;;  %v14753_v8 = vld [vmem:[%s19567_s19 + $0x170] ss:$8 sps:$4 sm:$0xff]  }
 0x86e   : > { %10308 = vmatpush2.bf16.msra.mxu1 %v13150_v12  ;;  %10381 = vmatpush2.bf16.msra.mxu0 %v13278_v3  ;;  %v14744_v12 = vld [vmem:[%s19567_s19 + $0x50] ss:$8 sps:$4 sm:$0xff]   ;;  %v14749_v3 = vld [vmem:[%s19567_s19 + $0x44] ss:$8 sps:$4 sm:$0xff]  }
 0x86f   : > { %10309 = vmatprep.subr.bf16.mxu1 %v13143_v11  ;;  %10382 = vmatprep.subr.bf16.mxu0 %v13271_v2  ;;  %v14765_v11 = vld [vmem:[%s19567_s19 + $0x150] ss:$8 sps:$4 sm:$0xff]   ;;  %v18920_v2 = vld [vmem:[%s19566_s18] sm:$0xff] }
 0x870   : > { %v18928_v15 = vrot.slane %v18920_v2, %v15752_v26 }
 0x872   : > { %10310 = vmatpush2.bf16.msra.mxu1 %v13142_v21  ;;  %10383 = vmatpush2.bf16.msra.mxu0 %v13270_v49  ;;  %v14752_v49 = vld [vmem:[%s19567_s19 + $0x34] ss:$8 sps:$4 sm:$0xff]  }
 0x873   : > { %10311 = vmatprep.subr.bf16.mxu1 %v13135_v48  ;;  %10384 = vmatprep.subr.bf16.mxu0 %v13263_v61  ;;  %v14750_v61 = vld [vmem:[%s19567_s19 + $0x30] ss:$8 sps:$4 sm:$0xff]  }
 0x876   : > { %10312 = vmatpush2.bf16.msra.mxu1 %v13134_v0  ;;  %10385 = vmatpush2.bf16.msra.mxu0 %v13262_v14  ;;  %v14785_v0 = vld [vmem:[%s19567_s19 + $0x124] ss:$8 sps:$4 sm:$0xff]  }
 0x877   : > { %10313 = vmatprep.subr.bf16.mxu1 %v13127_v55  ;;  %10386 = vmatprep.subr.bf16.mxu0 %v13255_v32  ;;  %v14756_v32 = vld [vmem:[%s19567_s19 + $0x20] ss:$8 sps:$4 sm:$0xff]  }
 0x87a   : > { %10314 = vmatpush2.bf16.msra.mxu1 %v13126_v5  ;;  %10387 = vmatpush2.bf16.msra.mxu0 %v13254_v18  ;;  %v14770_v18 = vld [vmem:[%s19567_s19 + $0x4] ss:$8 sps:$4 sm:$0xff]  }
 0x87b   : > { %10315 = vmatprep.subr.bf16.mxu1 %v13119_v59  ;;  %10388 = vmatprep.subr.bf16.mxu0 %v13247_v63  ;;  %v14789_v59 = vld [vmem:[%s19567_s19 + $0x110] ss:$8 sps:$4 sm:$0xff]  }
 0x87e   : > { %10316 = vmatpush2.bf16.msra.mxu1 %v13118_v25  ;;  %10389 = vmatpush2.bf16.msra.mxu0 %v13246_v34  ;;  %v14797_v25 = vld [vmem:[%s19567_s19 + $0x104] ss:$8 sps:$4 sm:$0xff]  }
 0x87f   : > { %11691 = vmatprep.subr.bf16.mxu1 %v14740_v45  ;;  %v18877_v58 = vpop.f32.mrf.mxu1  ;;  %11764 = vmatprep.subr.bf16.mxu0 %v14755_v41  ;;  %v18890_v9 = vpop.f32.mrf.mxu0  ;;  %v14768_v45 = vld [vmem:[%s19567_s19] ss:$8 sps:$4 sm:$0xff]  }
 0x880   : > { %v14795_v41 = vld [vmem:[%s19567_s19 + $0x100] ss:$8 sps:$4 sm:$0xff]  }
 0x881   : > { %10318 = vmatmul.mubr.bf16.vlgmr.msra.gmra.mxu1 %v18154_v31  ;;  %v9883_v13 = vpop.f32.mrf.mxu1  ;;  %10391 = vmatmul.mubr.bf16.vlgmr.msra.gmra.mxu0 %v18156_v37  ;;  %v14746_v31 = vld [vmem:[%s19567_s19 + $0x54] ss:$8 sps:$4 sm:$0xff]   ;;  %v14759_v37 = vld [vmem:[%s19567_s19 + $0x160] ss:$8 sps:$4 sm:$0xff]  }
 0x882   : > { %10327 = vmatprep.mubr.bf16.mxu1 %v18222_v46  ;;  %10400 = vmatprep.mubr.bf16.mxu0 %v18224_v51  ;;  %v14767_v46 = vld [vmem:[%s19567_s19 + $0x154] ss:$8 sps:$4 sm:$0xff]   ;;  %v9956_v51 = vpop.f32.mrf.mxu0 }
 0x883   : > { %11692 = vmatpush1.bf16.msra.mxu1 %v14738_v20  ;;  %11765 = vmatpush1.bf16.msra.mxu0 %v14753_v8  ;;  %v18903_v56 = vpop.f32.mrf.mxu1  ;;  %v14774_v8 = vld [vmem:[%s19567_s19 + $0xf0] ss:$8 sps:$4 sm:$0xff]  }
 0x884   : > { %11693 = vmatprep.subr.bf16.mxu1 %v14743_v35  ;;  %11766 = vmatprep.subr.bf16.mxu0 %v14761_v30  ;;  %v18930_v53 = vpop.f32.mrf.mxu0  ;;  %v14801_v30 = vld [vmem:[%s19567_s19 + $0x1f0] ss:$8 sps:$4 sm:$0xff]  }
 0x885   : > { %v9887_v39 = vpop.f32.mrf.mxu1 }
 0x886   : > { %v9888_v21 = vadd.f32 %v9887_v39, %v18928_v15  ;;  %v9960_v48 = vpop.f32.mrf.mxu0 }
 0x887   : > { %11694 = vmatpush1.bf16.msra.mxu1 %v14741_v60  ;;  %11767 = vmatpush1.bf16.msra.mxu0 %v14759_v37  ;;  %v18958_v1 = vpop.f32.mrf.mxu1 }
 0x888   : > { %11695 = vmatprep.subr.bf16.mxu1 %v14746_v31  ;;  %11768 = vmatprep.subr.bf16.mxu0 %v14767_v46  ;;  %v9961_v7 = vadd.f32 %v9960_v48, %v9888_v21  ;;  %v18964_v55 = vpop.f32.mrf.mxu0  ;;  %v14809_v31 = vld [vmem:[%s19567_s19 + $0x1e4] ss:$8 sps:$4 sm:$0xff]   ;;  %v14780_v46 = vld [vmem:[%s19567_s19 + $0xe0] ss:$8 sps:$4 sm:$0xff]   ;;  %v14813_v21 = vld [vmem:[%s19567_s19 + $0x1d0] ss:$8 sps:$4 sm:$0xff]  }
 0x889   : > { %10328 = vmatmul.mubr.bf16.gmra.mxu1 %v18230_v42  ;;  %10401 = vmatmul.mubr.bf16.gmra.mxu0 %v18232_v62  ;;  %v14747_v42 = vld [vmem:[%s19567_s19 + $0x40] ss:$8 sps:$4 sm:$0xff]   ;;  %v18978_v52 = vpop.f32.mrf.mxu1  ;;  %v14800_v48 = vld [vmem:[%s19567_s19 + $0xb4] ss:$8 sps:$4 sm:$0xff]  }
 0x88a   : > { %10337 = vmatprep.mubr.bf16.mxu1 %v18290_v36  ;;  %10410 = vmatprep.mubr.bf16.mxu0 %v18292_v33  ;;  %v14771_v62 = vld [vmem:[%s19567_s19 + $0x140] ss:$8 sps:$4 sm:$0xff]   ;;  %v14779_v36 = vld [vmem:[%s19567_s19 + $0x134] ss:$8 sps:$4 sm:$0xff]   ;;  %v9884_v33 = vadd.f32 %v9883_v13, %v18928_v15  ;;  %v18983_v10 = vpop.f32.mrf.mxu0  ;;  %v14782_v13 = vld [vmem:[%s19567_s19 + $0xe4] ss:$8 sps:$4 sm:$0xff]  }
 0x88b   : > { %11696 = vmatpush1.bf16.msra.mxu1 %v14744_v12  ;;  %11769 = vmatpush1.bf16.msra.mxu0 %v14765_v11  ;;  %v18994_v63 = vpop.f32.mrf.mxu1  ;;  %v14807_v12 = vld [vmem:[%s19567_s19 + $0x1e0] ss:$8 sps:$4 sm:$0xff]   ;;  %v14815_v11 = vld [vmem:[%s19567_s19 + $0x1d4] ss:$8 sps:$4 sm:$0xff]  }
 0x88c   : > { %11697 = vmatprep.subr.bf16.mxu1 %v14749_v3  ;;  %11770 = vmatprep.subr.bf16.mxu0 %v14773_v17  ;;  %v9957_v14 = vadd.f32 %v9956_v51, %v9884_v33  ;;  %v19000_v34 = vpop.f32.mrf.mxu0  ;;  %v14788_v51 = vld [vmem:[%s19567_s19 + $0xd4] ss:$8 sps:$4 sm:$0xff]   ;;  %v14786_v17 = vld [vmem:[%s19567_s19 + $0xd0] ss:$8 sps:$4 sm:$0xff]   ;;  %v14792_v33 = vld [vmem:[%s19567_s19 + $0xc0] ss:$8 sps:$4 sm:$0xff]  }
 0x88d   : > { %v9897_v20 = vpop.f32.mrf.mxu1 }
 0x88e   : > { %v19015_v35 = vpop.f32.mrf.mxu0 }
 0x88f   : > { %11698 = vmatpush1.bf16.msra.mxu1 %v14747_v42  ;;  %11771 = vmatpush1.bf16.msra.mxu0 %v14771_v62  ;;  %v19026_v60 = vpop.f32.mrf.mxu1  ;;  %v14794_v42 = vld [vmem:[%s19567_s19 + $0xc4] ss:$8 sps:$4 sm:$0xff]  }
 0x890   : > { %11699 = vmatprep.subr.bf16.mxu1 %v14752_v49  ;;  %11772 = vmatprep.subr.bf16.mxu0 %v14779_v36  ;;  %v19031_v37 = vpop.f32.mrf.mxu0  ;;  %v14821_v62 = vld [vmem:[%s19567_s19 + $0x1c4] ss:$8 sps:$4 sm:$0xff]  }
 0x891   : > { %10338 = vmatmul.mubr.bf16.gmra.mxu1 %v18298_v57  ;;  %10411 = vmatmul.mubr.bf16.gmra.mxu0 %v18300_v4  ;;  %v10440_v57 = vmax.f32 %v9961_v7, 0.0  ;;  %v14783_v4 = vld [vmem:[%s19567_s19 + $0x120] ss:$8 sps:$4 sm:$0xff]   ;;  %v19042_v3 = vpop.f32.mrf.mxu1 }
 0x892   : > { %10347 = vmatprep.mubr.bf16.mxu1 %v18336_v16  ;;  %10420 = vmatprep.mubr.bf16.mxu0 %v18338_v43  ;;  %v14791_v16 = vld [vmem:[%s19567_s19 + $0x114] ss:$8 sps:$4 sm:$0xff]   ;;  %v10432_v43 = vmax.f32 %v9957_v14, 0.0  ;;  %v19047_v39 = vpop.f32.mrf.mxu0  ;;  %v14806_v14 = vld [vmem:[%s19567_s19 + $0xa4] ss:$8 sps:$4 sm:$0xff]  }
 0x893   : > { %11700 = vmatpush1.bf16.msra.mxu1 %v14750_v61  ;;  %11773 = vmatpush1.bf16.msra.mxu0 %v14777_v54  ;;  %v19058_v49 = vpop.f32.mrf.mxu1  ;;  %v14819_v61 = vld [vmem:[%s19567_s19 + $0x1c0] ss:$8 sps:$4 sm:$0xff]  }
 0x894   : > { %11701 = vmatprep.subr.bf16.mxu1 %v14758_v38  ;;  %11774 = vmatprep.subr.bf16.mxu0 %v14785_v0  ;;  %v13732_v5 = vpack.c.bf16 %v10440_v57, %v10432_v43  ;;  %v19063_v36 = vpop.f32.mrf.mxu0  ;;  %v14824_v38 = vld [vmem:[%s19567_s19 + $0x1b4] ss:$8 sps:$4 sm:$0xff]   ;;  %v14798_v0 = vld [vmem:[%s19567_s19 + $0xb0] ss:$8 sps:$4 sm:$0xff]   ;;  %v14804_v43 = vld [vmem:[%s19567_s19 + $0xa0] ss:$8 sps:$4 sm:$0xff]  }
 0x895   : > { %v9907_v7 = vpop.f32.mrf.mxu1 }
 0x896   : > { %v19077_v54 = vpop.f32.mrf.mxu0 }
 0x897   : > { %11702 = vmatpush1.bf16.msra.mxu1 %v14756_v32  ;;  %11775 = vmatpush1.bf16.msra.mxu0 %v14783_v4  ;;  %v14822_v32 = vld [vmem:[%s19567_s19 + $0x1b0] ss:$8 sps:$4 sm:$0xff]   ;;  %v19088_v57 = vpop.f32.mrf.mxu1  ;;  %v19095_v4 = vrot.slane %v18920_v2, %v15741_v23 }
 0x898   : > { %11703 = vmatprep.subr.bf16.mxu1 %v14764_v6  ;;  %11776 = vmatprep.subr.bf16.mxu0 %v14791_v16  ;;  %v14827_v6 = vld [vmem:[%s19567_s19 + $0x1a4] ss:$8 sps:$4 sm:$0xff]   ;;  %v19097_v16 = vpop.f32.mrf.mxu0 }
 0x899   : > { %10348 = vmatmul.mubr.bf16.gmra.mxu1 %v18346_v29  ;;  %10421 = vmatmul.mubr.bf16.gmra.mxu0 %v18348_v40  ;;  %v14776_v29 = vld [vmem:[%s19567_s19 + $0xf4] ss:$8 sps:$4 sm:$0xff]  }
 0x89a   : > { %11723 = vmatprep.mubr.bf16.mxu1 %v13732_v5  ;;  %v14803_v40 = vld [vmem:[%s19567_s19 + $0x1f4] ss:$8 sps:$4 sm:$0xff]  }
 0x89b   : > { %11704 = vmatpush1.bf16.msra.mxu1 %v14762_v28  ;;  %11777 = vmatpush1.bf16.msra.mxu0 %v14789_v59  ;;  %v9886_v28 = vadd.f32 %v18903_v56, %v19095_v4  ;;  %v14812_v5 = vld [vmem:[%s19567_s19 + $0x94] ss:$8 sps:$4 sm:$0xff]   ;;  %v9898_v59 = vadd.f32 %v9897_v20, %v18928_v15  ;;  %v9882_v56 = vadd.f32 %v18877_v58, %v19095_v4  ;;  %v14810_v20 = vld [vmem:[%s19567_s19 + $0x90] ss:$8 sps:$4 sm:$0xff]  }
 0x89c   : > { %11705 = vmatprep.subr.bf16.mxu1 %v14770_v18  ;;  %11778 = vmatprep.subr.bf16.mxu0 %v14797_v25  ;;  %v14825_v18 = vld [vmem:[%s19567_s19 + $0x1a0] ss:$8 sps:$4 sm:$0xff]   ;;  %v19111_v25 = vpop.f32.mrf.mxu1  ;;  %v14828_v58 = vld [vmem:[%s19567_s19 + $0x190] ss:$8 sps:$4 sm:$0xff]  }
 0x89f   : > { %11706 = vmatpush1.bf16.msra.mxu1 %v14768_v45  ;;  %11779 = vmatpush1.bf16.msra.mxu0 %v14795_v41  ;;  %v14830_v45 = vld [vmem:[%s19567_s19 + $0x194] ss:$8 sps:$4 sm:$0xff]   ;;  %v9894_v41 = vadd.f32 %v18978_v52, %v18928_v15  ;;  %v19133_v52 = vpop.f32.mrf.mxu1 }
 0x8a0   : > { %11707 = vmatprep.subr.bf16.mxu1 %v14776_v29  ;;  %11780 = vmatprep.subr.bf16.mxu0 %v14803_v40  ;;  %v19118_v29 = vpop.f32.mrf.mxu0  ;;  %v9959_v40 = vadd.f32 %v18930_v53, %v9886_v28  ;;  %v9955_v53 = vadd.f32 %v18890_v9, %v9882_v56  ;;  %v14836_v9 = vld [vmem:[%s19567_s19 + $0x274] ss:$8 sps:$4 sm:$0xff]   ;;  %v14837_v56 = vld [vmem:[%s19567_s19 + $0x260] ss:$8 sps:$4 sm:$0xff]  }
 0x8a3   : > { %11708 = vmatpush2.bf16.msra.mxu1 %v14774_v8  ;;  %11781 = vmatpush2.bf16.msra.mxu0 %v14801_v30  ;;  %v14818_v8 = vld [vmem:[%s19567_s19 + $0x84] ss:$8 sps:$4 sm:$0xff]  }
 0x8a4   : > { %11709 = vmatprep.subr.bf16.mxu1 %v14782_v13  ;;  %11782 = vmatprep.subr.bf16.mxu0 %v14809_v31  ;;  %v9971_v13 = vadd.f32 %v19015_v35, %v9898_v59  ;;  %v14833_v30 = vld [vmem:[%s19567_s19 + $0x184] ss:$8 sps:$4 sm:$0xff]   ;;  %v19139_v31 = vpop.f32.mrf.mxu0  ;;  %v9896_v35 = vadd.f32 %v18994_v63, %v19095_v4  ;;  %v10431_v63 = vmax.f32 %v9955_v53, 0.0 }
 0x8a7   : > { %11710 = vmatpush2.bf16.msra.mxu1 %v14780_v46  ;;  %11783 = vmatpush2.bf16.msra.mxu0 %v14807_v12  ;;  %v9967_v46 = vadd.f32 %v18983_v10, %v9894_v41  ;;  %v10439_v12 = vmax.f32 %v9959_v40, 0.0  ;;  %v10456_v10 = vmax.f32 %v9971_v13, 0.0  ;;  %v9906_v41 = vadd.f32 %v19058_v49, %v19095_v4 }
 0x8a8   : > { %11711 = vmatprep.subr.bf16.mxu1 %v14788_v51  ;;  %11784 = vmatprep.subr.bf16.mxu0 %v14815_v11  ;;  %v14816_v51 = vld [vmem:[%s19567_s19 + $0x80] ss:$8 sps:$4 sm:$0xff]   ;;  %v9902_v40 = vadd.f32 %v19026_v60, %v19095_v4  ;;  %v14840_v60 = vld [vmem:[%s19567_s19 + $0x250] ss:$8 sps:$4 sm:$0xff]  }
 0x8a9   : > { %v14831_v11 = vld [vmem:[%s19567_s19 + $0x180] ss:$8 sps:$4 sm:$0xff]  }
 0x8ab   : > { %11712 = vmatpush2.bf16.msra.mxu1 %v14786_v17  ;;  %11785 = vmatpush2.bf16.msra.mxu0 %v14813_v21  ;;  %v9908_v17 = vadd.f32 %v9907_v7, %v18928_v15  ;;  %v14884_v21 = vld [vmem:[%s19567_s19 + $0x374] ss:$8 sps:$4 sm:$0xff]   ;;  %v19167_v7 = vrot.slane %v18920_v2, %v15744_v24 }
 0x8ac   : > { %11713 = vmatprep.subr.bf16.mxu1 %v14794_v42  ;;  %11786 = vmatprep.subr.bf16.mxu0 %v14821_v62  ;;  %v9917_v42 = vpop.f32.mrf.mxu1  ;;  %v9892_v62 = vadd.f32 %v18958_v1, %v19095_v4  ;;  %v13731_v1 = vpack.c.bf16 %v10439_v12, %v10431_v63  ;;  %v14845_v63 = vld [vmem:[%s19567_s19 + $0x244] ss:$8 sps:$4 sm:$0xff]  }
 0x8ae   : > { %v9965_v28 = vadd.f32 %v18964_v55, %v9892_v62  ;;  %v9975_v62 = vadd.f32 %v19031_v37, %v9902_v40  ;;  %v14843_v37 = vld [vmem:[%s19567_s19 + $0x240] ss:$8 sps:$4 sm:$0xff]  }
 0x8af   : > { %11714 = vmatpush2.bf16.msra.mxu1 %v14792_v33  ;;  %11787 = vmatpush2.bf16.msra.mxu0 %v14819_v61  ;;  %v9990_v33 = vpop.f32.mrf.mxu0  ;;  %v10448_v61 = vmax.f32 %v9967_v46, 0.0 }
 0x8b0   : > { %11715 = vmatprep.subr.bf16.mxu1 %v14800_v48  ;;  %11788 = vmatprep.subr.bf16.mxu0 %v14824_v38  ;;  %v19161_v48 = vrot.slane %v18920_v2, %v15755_v27  ;;  %v9904_v38 = vadd.f32 %v19042_v3, %v18928_v15  ;;  %v14839_v27 = vld [vmem:[%s19567_s19 + $0x264] ss:$8 sps:$4 sm:$0xff]  }
 0x8b1   : > { %v13740_v3 = vpack.c.bf16 %v10456_v10, %v10448_v61 }
 0x8b3   : > { %11716 = vmatpush2.bf16.msra.mxu1 %v14798_v0  ;;  %11789 = vmatpush2.bf16.msra.mxu0 %v14822_v32  ;;  %v9969_v32 = vadd.f32 %v19000_v34, %v9896_v35  ;;  %v9977_v34 = vadd.f32 %v19047_v39, %v9904_v38  ;;  %v14842_v39 = vld [vmem:[%s19567_s19 + $0x254] ss:$8 sps:$4 sm:$0xff]   ;;  %v9914_v35 = vadd.f32 %v19111_v25, %v18928_v15 }
 0x8b4   : > { %11717 = vmatprep.subr.bf16.mxu1 %v14806_v14  ;;  %11790 = vmatprep.subr.bf16.mxu0 %v14827_v6  ;;  %v14834_v14 = vld [vmem:[%s19567_s19 + $0x270] ss:$8 sps:$4 sm:$0xff]  }
 0x8b5   : > { %v10464_v12 = vmax.f32 %v9977_v34, 0.0  ;;  %v10463_v34 = vmax.f32 %v9975_v62, 0.0  ;;  %v14849_v62 = vld [vmem:[%s19567_s19 + $0x220] ss:$8 sps:$4 sm:$0xff]  }
 0x8b7   : > { %11718 = vmatpush2.bf16.msra.mxu1 %v14804_v43  ;;  %11791 = vmatpush2.bf16.msra.mxu0 %v14825_v18  ;;  %v9981_v43 = vadd.f32 %v19077_v54, %v9908_v17  ;;  %v10455_v54 = vmax.f32 %v9969_v32, 0.0  ;;  %v9979_v17 = vadd.f32 %v19063_v36, %v9906_v41  ;;  %v9987_v36 = vadd.f32 %v19118_v29, %v9914_v35  ;;  %v14848_v29 = vld [vmem:[%s19567_s19 + $0x234] ss:$8 sps:$4 sm:$0xff]  }
 0x8b8   : > { %11719 = vmatprep.subr.bf16.mxu1 %v14812_v5  ;;  %11792 = vmatprep.subr.bf16.mxu0 %v14830_v45 }
 0x8b9   : > { %v10480_v40 = vmax.f32 %v9987_v36, 0.0 }
 0x8bb   : > { %11720 = vmatpush2.bf16.msra.mxu1 %v14810_v20  ;;  %11793 = vmatpush2.bf16.msra.mxu0 %v14828_v58  ;;  %v9918_v58 = vadd.f32 %v9917_v42, %v18928_v15 }
 0x8bc   : > { %11721 = vmatprep.subr.bf16.mxu1 %v14818_v8  ;;  %11794 = vmatprep.subr.bf16.mxu0 %v14833_v30  ;;  %v10472_v8 = vmax.f32 %v9981_v43, 0.0  ;;  %v10447_v30 = vmax.f32 %v9965_v28, 0.0  ;;  %v9916_v43 = vadd.f32 %v19133_v52, %v19095_v4  ;;  %v14887_v52 = vld [vmem:[%s19567_s19 + $0x364] ss:$8 sps:$4 sm:$0xff]  }
 0x8bd   : > { %v9991_v25 = vadd.f32 %v9990_v33, %v9918_v58  ;;  %v10471_v33 = vmax.f32 %v9979_v17, 0.0 }
 0x8be   : > { %v13739_v10 = vpack.c.bf16 %v10455_v54, %v10447_v30  ;;  %v13748_v15 = vpack.c.bf16 %v10472_v8, %v10464_v12  ;;  %v9912_v54 = vadd.f32 %v19088_v57, %v19095_v4  ;;  %v14851_v4 = vld [vmem:[%s19567_s19 + $0x224] ss:$8 sps:$4 sm:$0xff]  }
 0x8bf   : > { %11722 = vmatpush2.bf16.msra.mxu1 %v14816_v51  ;;  %v10027_v0 = vpop.f32.mrf.mxu1  ;;  %v10100_v6 = vpop.f32.mrf.mxu0  ;;  %11795 = vmatpush2.bf16.msra.mxu0 %v14831_v11  ;;  %v13747_v30 = vpack.c.bf16 %v10471_v33, %v10463_v34  ;;  %v14891_v34 = vld [vmem:[%s19567_s19 + $0x340] ss:$8 sps:$4 sm:$0xff]  }
 0x8c0   : > { %11837 = vmatprep.subr.bf16.mxu1 %v14836_v9  ;;  %11910 = vmatprep.subr.bf16.mxu0 %v14884_v21  ;;  %v10028_v59 = vadd.f32 %v10027_v0, %v19167_v7 }
 0x8c1   : > { %v10029_v24 = vpop.f32.mrf.mxu1  ;;  %v10102_v18 = vpop.f32.mrf.mxu0 }
 0x8c2   : > { %11724 = vmatmul.mubr.bf16.vlgmr.msra.gmra.mxu1 %v13731_v1  ;;  %v10030_v5 = vadd.f32 %v10029_v24, %v19161_v48  ;;  %v10101_v11 = vadd.f32 %v10100_v6, %v10028_v59  ;;  %v10488_v59 = vmax.f32 %v9991_v25, 0.0 }
 0x8c3   : > { %11733 = vmatprep.mubr.bf16.mxu1 %v13740_v3  ;;  %v10031_v45 = vpop.f32.mrf.mxu1  ;;  %11838 = vmatpush1.bf16.msra.mxu1 %v14834_v14  ;;  %v10104_v20 = vpop.f32.mrf.mxu0 }
 0x8c4   : > { %v10032_v55 = vadd.f32 %v10031_v45, %v19167_v7  ;;  %11839 = vmatprep.subr.bf16.mxu1 %v14839_v27  ;;  %v10103_v53 = vadd.f32 %v10102_v18, %v10030_v5  ;;  %v10433_v6 = vmax.f32 %v10101_v11, 0.0  ;;  %v14882_v18 = vld [vmem:[%s19567_s19 + $0x370] ss:$8 sps:$4 sm:$0xff]   ;;  %v9985_v11 = vadd.f32 %v19097_v16, %v9912_v54 }
 0x8c5   : > { %v10033_v13 = vpop.f32.mrf.mxu1  ;;  %v10106_v51 = vpop.f32.mrf.mxu0 }
 0x8c6   : > { %v10105_v46 = vadd.f32 %v10104_v20, %v10032_v55  ;;  %v10034_v49 = vadd.f32 %v10033_v13, %v19161_v48  ;;  %v10434_v0 = vmax.f32 %v10103_v53, 0.0  ;;  %v14846_v13 = vld [vmem:[%s19567_s19 + $0x230] ss:$8 sps:$4 sm:$0xff]   ;;  %v9989_v53 = vadd.f32 %v19139_v31, %v9916_v43  ;;  %v14890_v31 = vld [vmem:[%s19567_s19 + $0x354] ss:$8 sps:$4 sm:$0xff]  }
 0x8c7   : > { %v10037_v9 = vpop.f32.mrf.mxu1  ;;  %11840 = vmatpush1.bf16.msra.mxu1 %v14837_v56  ;;  %v10110_v21 = vpop.f32.mrf.mxu0  ;;  %v10479_v36 = vmax.f32 %v9985_v11, 0.0  ;;  %v14858_v11 = vld [vmem:[%s19567_s19 + $0x2f0] ss:$8 sps:$4 sm:$0xff]  }
 0x8c8   : > { %v10107_v42 = vadd.f32 %v10106_v51, %v10034_v49  ;;  %11841 = vmatprep.subr.bf16.mxu1 %v14842_v39  ;;  %v10441_v61 = vmax.f32 %v10105_v46, 0.0  ;;  %v10038_v27 = vadd.f32 %v10037_v9, %v19167_v7  ;;  %v14885_v49 = vld [vmem:[%s19567_s19 + $0x360] ss:$8 sps:$4 sm:$0xff]   ;;  %v13756_v51 = vpack.c.bf16 %v10488_v59, %v10480_v40 }
 0x8c9   : > { %v10039_v38 = vpop.f32.mrf.mxu1  ;;  %v10112_v32 = vpop.f32.mrf.mxu0 }
 0x8ca   : > { %v10442_v14 = vmax.f32 %v10107_v42, 0.0  ;;  %11734 = vmatmul.mubr.bf16.gmra.mxu1 %v13739_v10  ;;  %v10040_v1 = vadd.f32 %v10039_v38, %v19161_v48  ;;  %v13733_v45 = vpack.c.bf16 %v10441_v61, %v10433_v6  ;;  %v10111_v8 = vadd.f32 %v10110_v21, %v10038_v27  ;;  %v14854_v38 = vld [vmem:[%s19567_s19 + $0x214] ss:$8 sps:$4 sm:$0xff]  }
 0x8cb   : > { %11743 = vmatprep.mubr.bf16.mxu1 %v13748_v15  ;;  %v10041_v3 = vpop.f32.mrf.mxu1  ;;  %11842 = vmatpush1.bf16.msra.mxu1 %v14840_v60  ;;  %v10114_v5 = vpop.f32.mrf.mxu0  ;;  %v10487_v15 = vmax.f32 %v9989_v53, 0.0  ;;  %v14860_v53 = vld [vmem:[%s19567_s19 + $0x2f4] ss:$8 sps:$4 sm:$0xff]  }
 0x8cc   : > { %v13734_v24 = vpack.c.bf16 %v10442_v14, %v10434_v0  ;;  %v10042_v28 = vadd.f32 %v10041_v3, %v19167_v7  ;;  %11843 = vmatprep.subr.bf16.mxu1 %v14845_v63  ;;  %v10113_v41 = vadd.f32 %v10112_v32, %v10040_v1  ;;  %v10449_v42 = vmax.f32 %v10111_v8, 0.0  ;;  %v14888_v0 = vld [vmem:[%s19567_s19 + $0x350] ss:$8 sps:$4 sm:$0xff]   ;;  %v14893_v32 = vld [vmem:[%s19567_s19 + $0x344] ss:$8 sps:$4 sm:$0xff]  }
 0x8cd   : > { %v10043_v56 = vpop.f32.mrf.mxu1  ;;  %v10116_v39 = vpop.f32.mrf.mxu0  ;;  %v14855_v8 = vld [vmem:[%s19567_s19 + $0x200] ss:$8 sps:$4 sm:$0xff]  }
 0x8ce   : > { %v10115_v55 = vadd.f32 %v10114_v5, %v10042_v28  ;;  %v10044_v20 = vadd.f32 %v10043_v56, %v19161_v48  ;;  %11796 = vmatprep.mubr.bf16.mxu0 %v13734_v24  ;;  %v10450_v9 = vmax.f32 %v10113_v41, 0.0  ;;  %v14852_v24 = vld [vmem:[%s19567_s19 + $0x210] ss:$8 sps:$4 sm:$0xff]   ;;  %v13755_v28 = vpack.c.bf16 %v10487_v15, %v10479_v36  ;;  %v14896_v56 = vld [vmem:[%s19567_s19 + $0x334] ss:$8 sps:$4 sm:$0xff]  }
 0x8cf   : > { %v10047_v58 = vpop.f32.mrf.mxu1  ;;  %11797 = vmatmul.mubr.bf16.vlgmr.msra.gmra.mxu0 %v13733_v45  ;;  %11844 = vmatpush1.bf16.msra.mxu1 %v14843_v37  ;;  %v10120_v57 = vpop.f32.mrf.mxu0  ;;  %v14867_v36 = vld [vmem:[%s19567_s19 + $0x2c0] ss:$8 sps:$4 sm:$0xff]  }
 0x8d0   : > { %v10117_v46 = vadd.f32 %v10116_v39, %v10044_v20  ;;  %11845 = vmatprep.subr.bf16.mxu1 %v14848_v29  ;;  %11911 = vmatpush1.bf16.msra.mxu0 %v14882_v18  ;;  %v10457_v12 = vmax.f32 %v10115_v55, 0.0  ;;  %v10048_v21 = vadd.f32 %v10047_v58, %v19167_v7  ;;  %v14857_v18 = vld [vmem:[%s19567_s19 + $0x204] ss:$8 sps:$4 sm:$0xff]  }
 0x8d1   : > { %v10049_v35 = vpop.f32.mrf.mxu1  ;;  %11912 = vmatprep.subr.bf16.mxu0 %v14887_v52  ;;  %v10122_v17 = vpop.f32.mrf.mxu0 }
 0x8d2   : > { %v10458_v60 = vmax.f32 %v10117_v46, 0.0  ;;  %11744 = vmatmul.mubr.bf16.gmra.mxu1 %v13747_v30  ;;  %v10050_v10 = vadd.f32 %v10049_v35, %v19161_v48  ;;  %v13741_v14 = vpack.c.bf16 %v10457_v12, %v10449_v42  ;;  %v10121_v33 = vadd.f32 %v10120_v57, %v10048_v21  ;;  %v14894_v46 = vld [vmem:[%s19567_s19 + $0x330] ss:$8 sps:$4 sm:$0xff]  }
 0x8d3   : > { %11753 = vmatprep.mubr.bf16.mxu1 %v13756_v51  ;;  %v10051_v63 = vpop.f32.mrf.mxu1  ;;  %11846 = vmatpush1.bf16.msra.mxu1 %v14846_v13  ;;  %v10124_v61 = vpop.f32.mrf.mxu0 }
 0x8d4   : > { %v13742_v25 = vpack.c.bf16 %v10458_v60, %v10450_v9  ;;  %v10052_v16 = vadd.f32 %v10051_v63, %v19167_v7  ;;  %11847 = vmatprep.subr.bf16.mxu1 %v14851_v4  ;;  %11913 = vmatpush1.bf16.msra.mxu0 %v14885_v49  ;;  %v10123_v6 = vadd.f32 %v10122_v17, %v10050_v10  ;;  %v10465_v20 = vmax.f32 %v10121_v33, 0.0  ;;  %v14899_v49 = vld [vmem:[%s19567_s19 + $0x324] ss:$8 sps:$4 sm:$0xff]   ;;  %v14902_v17 = vld [vmem:[%s19567_s19 + $0x314] ss:$8 sps:$4 sm:$0xff]  }
 0x8d5   : > { %v10053_v1 = vpop.f32.mrf.mxu1  ;;  %11914 = vmatprep.subr.bf16.mxu0 %v14890_v31  ;;  %v10126_v37 = vpop.f32.mrf.mxu0  ;;  %v14863_v60 = vld [vmem:[%s19567_s19 + $0x2e4] ss:$8 sps:$4 sm:$0xff]  }
 0x8d6   : > { %v10125_v27 = vadd.f32 %v10124_v61, %v10052_v16  ;;  %v10054_v3 = vadd.f32 %v10053_v1, %v19161_v48  ;;  %11806 = vmatprep.mubr.bf16.mxu0 %v13742_v25  ;;  %v10466_v52 = vmax.f32 %v10123_v6, 0.0  ;;  %v14866_v25 = vld [vmem:[%s19567_s19 + $0x2d4] ss:$8 sps:$4 sm:$0xff]   ;;  %v14900_v16 = vld [vmem:[%s19567_s19 + $0x310] ss:$8 sps:$4 sm:$0xff]  }
 0x8d7   : > { %v10057_v43 = vpop.f32.mrf.mxu1  ;;  %11807 = vmatmul.mubr.bf16.gmra.mxu0 %v13741_v14  ;;  %11848 = vmatpush1.bf16.msra.mxu1 %v14849_v62  ;;  %v10130_v29 = vpop.f32.mrf.mxu0  ;;  %v14861_v62 = vld [vmem:[%s19567_s19 + $0x2e0] ss:$8 sps:$4 sm:$0xff]   ;;  %v14869_v14 = vld [vmem:[%s19567_s19 + $0x2c4] ss:$8 sps:$4 sm:$0xff]   ;;  %v14872_v6 = vld [vmem:[%s19567_s19 + $0x2b4] ss:$8 sps:$4 sm:$0xff]  }
 0x8d8   : > { %v10127_v5 = vadd.f32 %v10126_v37, %v10054_v3  ;;  %11849 = vmatprep.subr.bf16.mxu1 %v14854_v38  ;;  %11915 = vmatpush1.bf16.msra.mxu0 %v14888_v0  ;;  %v10473_v59 = vmax.f32 %v10125_v27, 0.0  ;;  %v10058_v39 = vadd.f32 %v10057_v43, %v19167_v7  ;;  %v14905_v38 = vld [vmem:[%s19567_s19 + $0x304] ss:$8 sps:$4 sm:$0xff]   ;;  %v14864_v0 = vld [vmem:[%s19567_s19 + $0x2d0] ss:$8 sps:$4 sm:$0xff]  }
 0x8d9   : > { %v10059_v45 = vpop.f32.mrf.mxu1  ;;  %11916 = vmatprep.subr.bf16.mxu0 %v14893_v32  ;;  %v10132_v55 = vpop.f32.mrf.mxu0  ;;  %v14903_v1 = vld [vmem:[%s19567_s19 + $0x300] ss:$8 sps:$4 sm:$0xff]   ;;  %v14908_v32 = vld [vmem:[%s19567_s19 + $0x3f4] ss:$8 sps:$4 sm:$0xff]   ;;  %v14906_v27 = vld [vmem:[%s19567_s19 + $0x3f0] ss:$8 sps:$4 sm:$0xff]  }
 0x8da   : > { %v10474_v54 = vmax.f32 %v10127_v5, 0.0  ;;  %11754 = vmatmul.mubr.bf16.gmra.mxu1 %v13755_v28  ;;  %v10060_v41 = vadd.f32 %v10059_v45, %v19161_v48  ;;  %v13749_v57 = vpack.c.bf16 %v10473_v59, %v10465_v20  ;;  %v10131_v35 = vadd.f32 %v10130_v29, %v10058_v39  ;;  %v14911_v3 = vld [vmem:[%s19567_s19 + $0x3e4] ss:$8 sps:$4 sm:$0xff]   ;;  %v14870_v37 = vld [vmem:[%s19567_s19 + $0x2b0] ss:$8 sps:$4 sm:$0xff]  }
 0x8db   : > { %v10061_v40 = vpop.f32.mrf.mxu1  ;;  %11850 = vmatpush1.bf16.msra.mxu1 %v14852_v24  ;;  %v10134_v30 = vpop.f32.mrf.mxu0  ;;  %v14875_v33 = vld [vmem:[%s19567_s19 + $0x2a4] ss:$8 sps:$4 sm:$0xff]   ;;  %v14909_v43 = vld [vmem:[%s19567_s19 + $0x3e0] ss:$8 sps:$4 sm:$0xff]   ;;  %v14914_v24 = vld [vmem:[%s19567_s19 + $0x3d4] ss:$8 sps:$4 sm:$0xff]   ;;  %v19384_v20 = vrot.slane %v18920_v2, %v822_v19 }
 0x8dc   : > { %v13750_v58 = vpack.c.bf16 %v10474_v54, %v10466_v52  ;;  %v10062_v13 = vadd.f32 %v10061_v40, %v19167_v7  ;;  %11851 = vmatprep.subr.bf16.mxu1 %v14857_v18  ;;  %11917 = vmatpush1.bf16.msra.mxu0 %v14891_v34  ;;  %v10133_v51 = vadd.f32 %v10132_v55, %v10060_v41  ;;  %v10481_v63 = vmax.f32 %v10131_v35, 0.0  ;;  %v14873_v28 = vld [vmem:[%s19567_s19 + $0x2a0] ss:$8 sps:$4 sm:$0xff]   ;;  %v14878_v5 = vld [vmem:[%s19567_s19 + $0x294] ss:$8 sps:$4 sm:$0xff]  }
 0x8dd   : > { %v10063_v4 = vpop.f32.mrf.mxu1  ;;  %11918 = vmatprep.subr.bf16.mxu0 %v14896_v56  ;;  %v10136_v31 = vpop.f32.mrf.mxu0  ;;  %v14912_v29 = vld [vmem:[%s19567_s19 + $0x3d0] ss:$8 sps:$4 sm:$0xff]   ;;  %v14917_v18 = vld [vmem:[%s19567_s19 + $0x3c4] ss:$8 sps:$4 sm:$0xff]   ;;  %v14915_v45 = vld [vmem:[%s19567_s19 + $0x3c0] ss:$8 sps:$4 sm:$0xff]   ;;  %v19379_v55 = vrot.slane %v18920_v2, %v826_v44 }
 0x8de   : > { %v10135_v7 = vadd.f32 %v10134_v30, %v10062_v13  ;;  %v10064_v12 = vadd.f32 %v10063_v4, %v19161_v48  ;;  %11816 = vmatprep.mubr.bf16.mxu0 %v13750_v58  ;;  %v14897_v48 = vld [vmem:[%s19567_s19 + $0x320] ss:$8 sps:$4 sm:$0xff]   ;;  %v10482_v42 = vmax.f32 %v10133_v51, 0.0  ;;  %v14876_v34 = vld [vmem:[%s19567_s19 + $0x290] ss:$8 sps:$4 sm:$0xff]  }
 0x8df   : > { %11817 = vmatmul.mubr.bf16.gmra.mxu0 %v13749_v57  ;;  %11852 = vmatpush1.bf16.msra.mxu1 %v14855_v8  ;;  %v14881_v59 = vld [vmem:[%s19567_s19 + $0x284] ss:$8 sps:$4 sm:$0xff]   ;;  %v14920_v56 = vld [vmem:[%s19567_s19 + $0x3b4] ss:$8 sps:$4 sm:$0xff]   ;;  %v14879_v52 = vld [vmem:[%s19567_s19 + $0x280] ss:$8 sps:$4 sm:$0xff]  }
 0x8e0   : > { %v10137_v9 = vadd.f32 %v10136_v31, %v10064_v12  ;;  %11853 = vmatprep.subr.bf16.mxu1 %v14860_v53  ;;  %11919 = vmatpush1.bf16.msra.mxu0 %v14894_v46  ;;  %v10489_v10 = vmax.f32 %v10135_v7, 0.0  ;;  %v14918_v54 = vld [vmem:[%s19567_s19 + $0x3b0] ss:$8 sps:$4 sm:$0xff]   ;;  %v14923_v41 = vld [vmem:[%s19567_s19 + $0x3a4] ss:$8 sps:$4 sm:$0xff]  }
 0x8e1   : > { %11920 = vmatprep.subr.bf16.mxu0 %v14899_v49  ;;  %v14921_v40 = vld [vmem:[%s19567_s19 + $0x3a0] ss:$8 sps:$4 sm:$0xff]   ;;  %v14926_v58 = vld [vmem:[%s19567_s19 + $0x394] ss:$8 sps:$4 sm:$0xff]   ;;  %v14924_v2 = vld [vmem:[%s19567_s19 + $0x390] ss:$8 sps:$4 sm:$0xff]  }
 0x8e2   : > { %v10490_v21 = vmax.f32 %v10137_v9, 0.0  ;;  %v13757_v61 = vpack.c.bf16 %v10489_v10, %v10481_v63  ;;  %v14929_v4 = vld [vmem:[%s19567_s19 + $0x384] ss:$8 sps:$4 sm:$0xff]   ;;  %v14927_v9 = vld [vmem:[%s19567_s19 + $0x380] ss:$8 sps:$4 sm:$0xff]  }
 0x8e3   : > { %11854 = vmatpush2.bf16.msra.mxu1 %v14858_v11 }
 0x8e4   : > { %v13758_v15 = vpack.c.bf16 %v10490_v21, %v10482_v42  ;;  %11855 = vmatprep.subr.bf16.mxu1 %v14863_v60  ;;  %11921 = vmatpush1.bf16.msra.mxu0 %v14897_v48 }
 0x8e5   : > { %11922 = vmatprep.subr.bf16.mxu0 %v14902_v17 }
 0x8e6   : > { %11826 = vmatprep.mubr.bf16.mxu0 %v13758_v15 }
 0x8e7   : > { %11827 = vmatmul.mubr.bf16.gmra.mxu0 %v13757_v61  ;;  %11856 = vmatpush2.bf16.msra.mxu1 %v14861_v62 }
 0x8e8   : > { %11857 = vmatprep.subr.bf16.mxu1 %v14866_v25  ;;  %11923 = vmatpush1.bf16.msra.mxu0 %v14900_v16 }
 0x8e9   : > { %11924 = vmatprep.subr.bf16.mxu0 %v14905_v38 }
 0x8eb   : > { %11858 = vmatpush2.bf16.msra.mxu1 %v14864_v0 }
 0x8ec   : > { %11859 = vmatprep.subr.bf16.mxu1 %v14869_v14  ;;  %11925 = vmatpush1.bf16.msra.mxu0 %v14903_v1 }
 0x8ed   : > { %11926 = vmatprep.subr.bf16.mxu0 %v14908_v32 }
 0x8ef   : > { %11860 = vmatpush2.bf16.msra.mxu1 %v14867_v36 }
 0x8f0   : > { %11861 = vmatprep.subr.bf16.mxu1 %v14872_v6  ;;  %11927 = vmatpush2.bf16.msra.mxu0 %v14906_v27 }
 0x8f1   : > { %11928 = vmatprep.subr.bf16.mxu0 %v14911_v3 }
 0x8f3   : > { %11862 = vmatpush2.bf16.msra.mxu1 %v14870_v37 }
 0x8f4   : > { %11863 = vmatprep.subr.bf16.mxu1 %v14875_v33  ;;  %11929 = vmatpush2.bf16.msra.mxu0 %v14909_v43 }
 0x8f5   : > { %11930 = vmatprep.subr.bf16.mxu0 %v14914_v24 }
 0x8f7   : > { %11864 = vmatpush2.bf16.msra.mxu1 %v14873_v28 }
 0x8f8   : > { %11865 = vmatprep.subr.bf16.mxu1 %v14878_v5  ;;  %11931 = vmatpush2.bf16.msra.mxu0 %v14912_v29 }
 0x8f9   : > { %11932 = vmatprep.subr.bf16.mxu0 %v14917_v18 }
 0x8fb   : > { %11866 = vmatpush2.bf16.msra.mxu1 %v14876_v34 }
 0x8fc   : > { %11867 = vmatprep.subr.bf16.mxu1 %v14881_v59  ;;  %11933 = vmatpush2.bf16.msra.mxu0 %v14915_v45 }
 0x8fd   : > { %11934 = vmatprep.subr.bf16.mxu0 %v14920_v56 }
 0x8ff   : > { %11868 = vmatpush2.bf16.msra.mxu1 %v14879_v52 }
 0x900   : > { %v10173_v39 = vpop.f32.mrf.mxu1  ;;  %11935 = vmatpush2.bf16.msra.mxu0 %v14918_v54  ;;  %v10246_v8 = vpop.f32.mrf.mxu0 }
 0x901   : > { %11936 = vmatprep.subr.bf16.mxu0 %v14923_v41  ;;  %v10174_v53 = vadd.f32 %v10173_v39, %v19384_v20 }
 0x902   : > { %v10175_v44 = vpop.f32.mrf.mxu1  ;;  %v10248_v30 = vpop.f32.mrf.mxu0 }
 0x903   : > { %v10176_v13 = vadd.f32 %v10175_v44, %v19379_v55  ;;  %v10247_v31 = vadd.f32 %v10246_v8, %v10174_v53 }
 0x904   : > { %v10177_v19 = vpop.f32.mrf.mxu1  ;;  %11937 = vmatpush2.bf16.msra.mxu0 %v14921_v40  ;;  %v10250_v57 = vpop.f32.mrf.mxu0 }
 0x905   : > { %v10178_v46 = vadd.f32 %v10177_v19, %v19384_v20  ;;  %11938 = vmatprep.subr.bf16.mxu0 %v14926_v58  ;;  %v10249_v51 = vadd.f32 %v10248_v30, %v10176_v13  ;;  %v10435_v15 = vmax.f32 %v10247_v31, 0.0 }
 0x906   : > { %v10179_v49 = vpop.f32.mrf.mxu1  ;;  %v10252_v35 = vpop.f32.mrf.mxu0 }
 0x907   : > { %v10251_v7 = vadd.f32 %v10250_v57, %v10178_v46  ;;  %v10180_v12 = vadd.f32 %v10179_v49, %v19379_v55  ;;  %v10436_v42 = vmax.f32 %v10249_v51, 0.0 }
 0x908   : > { %v10183_v11 = vpop.f32.mrf.mxu1  ;;  %11939 = vmatpush2.bf16.msra.mxu0 %v14924_v2  ;;  %v10256_v48 = vpop.f32.mrf.mxu0 }
 0x909   : > { %v10253_v60 = vadd.f32 %v10252_v35, %v10180_v12  ;;  %11940 = vmatprep.subr.bf16.mxu0 %v14929_v4  ;;  %v10443_v10 = vmax.f32 %v10251_v7, 0.0  ;;  %v10184_v25 = vadd.f32 %v10183_v11, %v19384_v20 }
 0x90a   : > { %v10185_v17 = vpop.f32.mrf.mxu1  ;;  %v10258_v62 = vpop.f32.mrf.mxu0 }
 0x90b   : > { %v10444_v21 = vmax.f32 %v10253_v60, 0.0  ;;  %v10186_v63 = vadd.f32 %v10185_v17, %v19379_v55  ;;  %v13735_v14 = vpack.c.bf16 %v10443_v10, %v10435_v15  ;;  %v10257_v3 = vadd.f32 %v10256_v48, %v10184_v25 }
 0x90c   : > { %v10187_v16 = vpop.f32.mrf.mxu1  ;;  %11941 = vmatpush2.bf16.msra.mxu0 %v14927_v9  ;;  %v10260_v0 = vpop.f32.mrf.mxu0 }
 0x90d   : > { %v13736_v61 = vpack.c.bf16 %v10444_v21, %v10436_v42  ;;  %v10188_v38 = vadd.f32 %v10187_v16, %v19384_v20  ;;  %v10259_v32 = vadd.f32 %v10258_v62, %v10186_v63  ;;  %v10451_v59 = vmax.f32 %v10257_v3, 0.0 }
 0x90e   : > { %v10189_v1 = vpop.f32.mrf.mxu1  ;;  %v10262_v27 = vpop.f32.mrf.mxu0 }
 0x90f   : > { %v10261_v36 = vadd.f32 %v10260_v0, %v10188_v38  ;;  %v10190_v6 = vadd.f32 %v10189_v1, %v19379_v55  ;;  %11869 = vmatprep.mubr.bf16.mxu1 %v13736_v61  ;;  %v10452_v5 = vmax.f32 %v10259_v32, 0.0 }
 0x910   : > { %v10193_v37 = vpop.f32.mrf.mxu1  ;;  %11870 = vmatmul.mubr.bf16.vlgmr.msra.gmra.mxu1 %v13735_v14  ;;  %v10266_v43 = vpop.f32.mrf.mxu0 }
 0x911   : > { %v10263_v33 = vadd.f32 %v10262_v27, %v10190_v6  ;;  %v10459_v24 = vmax.f32 %v10261_v36, 0.0  ;;  %v10194_v45 = vadd.f32 %v10193_v37, %v19384_v20 }
 0x912   : > { %v10195_v28 = vpop.f32.mrf.mxu1  ;;  %v10268_v34 = vpop.f32.mrf.mxu0 }
 0x913   : > { %v10460_v29 = vmax.f32 %v10263_v33, 0.0  ;;  %v10196_v18 = vadd.f32 %v10195_v28, %v19379_v55  ;;  %v13743_v39 = vpack.c.bf16 %v10459_v24, %v10451_v59  ;;  %v10267_v30 = vadd.f32 %v10266_v43, %v10194_v45 }
 0x914   : > { %v10197_v56 = vpop.f32.mrf.mxu1  ;;  %v10270_v41 = vpop.f32.mrf.mxu0 }
 0x915   : > { %v13744_v52 = vpack.c.bf16 %v10460_v29, %v10452_v5  ;;  %v10198_v54 = vadd.f32 %v10197_v56, %v19384_v20  ;;  %v10269_v8 = vadd.f32 %v10268_v34, %v10196_v18  ;;  %v10467_v12 = vmax.f32 %v10267_v30, 0.0 }
 0x916   : > { %v10199_v40 = vpop.f32.mrf.mxu1  ;;  %v10272_v13 = vpop.f32.mrf.mxu0 }
 0x917   : > { %v10271_v58 = vadd.f32 %v10270_v41, %v10198_v54  ;;  %v10200_v44 = vadd.f32 %v10199_v40, %v19379_v55  ;;  %11879 = vmatprep.mubr.bf16.mxu1 %v13744_v52  ;;  %v10468_v4 = vmax.f32 %v10269_v8, 0.0 }
 0x918   : > { %v10203_v53 = vpop.f32.mrf.mxu1  ;;  %11880 = vmatmul.mubr.bf16.gmra.mxu1 %v13743_v39  ;;  %v10276_v2 = vpop.f32.mrf.mxu0 }
 0x919   : > { %v10273_v19 = vadd.f32 %v10272_v13, %v10200_v44  ;;  %v10475_v46 = vmax.f32 %v10271_v58, 0.0  ;;  %v10204_v35 = vadd.f32 %v10203_v53, %v19384_v20 }
 0x91a   : > { %v10205_v57 = vpop.f32.mrf.mxu1  ;;  %v10278_v7 = vpop.f32.mrf.mxu0 }
 0x91b   : > { %v10476_v49 = vmax.f32 %v10273_v19, 0.0  ;;  %v10206_v51 = vadd.f32 %v10205_v57, %v19379_v55  ;;  %v13751_v48 = vpack.c.bf16 %v10475_v46, %v10467_v12  ;;  %v10277_v63 = vadd.f32 %v10276_v2, %v10204_v35 }
 0x91c   : > { %v10207_v31 = vpop.f32.mrf.mxu1  ;;  %v10280_v60 = vpop.f32.mrf.mxu0 }
 0x91d   : > { %v13752_v11 = vpack.c.bf16 %v10476_v49, %v10468_v4  ;;  %v10208_v9 = vadd.f32 %v10207_v31, %v19384_v20  ;;  %v10279_v17 = vadd.f32 %v10278_v7, %v10206_v51  ;;  %v10483_v38 = vmax.f32 %v10277_v63, 0.0  ;;  %v14962_v20 = vld [vmem:[%s19566_s18] sm:$0xff] }
 0x91e   : > { %v10209_v10 = vpop.f32.mrf.mxu1  ;;  %v10282_v62 = vpop.f32.mrf.mxu0  ;;  %v19426_v1 = vrot.slane %v14962_v20, %v830_v50 }
 0x91f   : > { %v10281_v42 = vadd.f32 %v10280_v60, %v10208_v9  ;;  %v10210_v21 = vadd.f32 %v10209_v10, %v19379_v55  ;;  %11889 = vmatprep.mubr.bf16.mxu1 %v13752_v11  ;;  %v10484_v16 = vmax.f32 %v10279_v17, 0.0  ;;  %v19422_v55 = vrot.slane %v14962_v20, %v834_v47 }
 0x920   : > { %11890 = vmatmul.mubr.bf16.gmra.mxu1 %v13751_v48 }
 0x921   : > { %v10283_v15 = vadd.f32 %v10282_v62, %v10210_v21  ;;  %v10491_v25 = vmax.f32 %v10281_v42, 0.0 }
 0x923   : > { %v10492_v61 = vmax.f32 %v10283_v15, 0.0  ;;  %v13759_v14 = vpack.c.bf16 %v10491_v25, %v10483_v38 }
 0x925   : > { %v13760_v0 = vpack.c.bf16 %v10492_v61, %v10484_v16 }
 0x927   : > { %11899 = vmatprep.mubr.bf16.mxu1 %v13760_v0 }
 0x928   : > { %11900 = vmatmul.mubr.bf16.gmra.mxu1 %v13759_v14 }
 0x941   : > { %v10319_v32 = vpop.f32.mrf.mxu1  ;;  %v10392_v36 = vpop.f32.mrf.mxu0 }
 0x942   : > { %v10320_v37 = vadd.f32 %v10319_v32, %v19426_v1 }
 0x943   : > { %v10321_v6 = vpop.f32.mrf.mxu1  ;;  %v10394_v3 = vpop.f32.mrf.mxu0 }
 0x944   : > { %v10322_v27 = vadd.f32 %v10321_v6, %v19422_v55  ;;  %v10393_v50 = vadd.f32 %v10392_v36, %v10320_v37 }
 0x945   : > { %v10323_v33 = vpop.f32.mrf.mxu1  ;;  %v10396_v24 = vpop.f32.mrf.mxu0 }
 0x946   : > { %v10324_v43 = vadd.f32 %v10323_v33, %v19426_v1  ;;  %v10395_v5 = vadd.f32 %v10394_v3, %v10322_v27  ;;  %v10437_v40 = vmax.f32 %v10393_v50, 0.0 }
 0x947   : > { %v10325_v28 = vpop.f32.mrf.mxu1  ;;  %v10398_v22 = vpop.f32.mrf.mxu0 }
 0x948   : > { %v10397_v47 = vadd.f32 %v10396_v24, %v10324_v43  ;;  %v10326_v29 = vadd.f32 %v10325_v28, %v19422_v55  ;;  %v10438_v52 = vmax.f32 %v10395_v5, 0.0 }
 0x949   : > { %v10329_v18 = vpop.f32.mrf.mxu1  ;;  %v10402_v59 = vpop.f32.mrf.mxu0 }
 0x94a   : > { %v10399_v34 = vadd.f32 %v10398_v22, %v10326_v29  ;;  %v10445_v45 = vmax.f32 %v10397_v47, 0.0  ;;  %v10330_v8 = vadd.f32 %v10329_v18, %v19426_v1 }
 0x94b   : > { %v10331_v56 = vpop.f32.mrf.mxu1  ;;  %v10404_v39 = vpop.f32.mrf.mxu0 }
 0x94c   : > { %v10446_v54 = vmax.f32 %v10399_v34, 0.0  ;;  %v10332_v41 = vadd.f32 %v10331_v56, %v19422_v55  ;;  %v13737_v53 = vpack.c.bf16 %v10445_v45, %v10437_v40  ;;  %v10403_v49 = vadd.f32 %v10402_v59, %v10330_v8 }
 0x94d   : > { %v10333_v58 = vpop.f32.mrf.mxu1  ;;  %v10406_v30 = vpop.f32.mrf.mxu0 }
 0x94e   : > { %v13738_v44 = vpack.c.bf16 %v10446_v54, %v10438_v52  ;;  %v10334_v13 = vadd.f32 %v10333_v58, %v19426_v1  ;;  %v10405_v2 = vadd.f32 %v10404_v39, %v10332_v41  ;;  %v10453_v10 = vmax.f32 %v10403_v49, 0.0 }
 0x94f   : > { %v10335_v19 = vpop.f32.mrf.mxu1  ;;  %v10408_v4 = vpop.f32.mrf.mxu0 }
 0x950   : > { %v10407_v46 = vadd.f32 %v10406_v30, %v10334_v13  ;;  %v10336_v57 = vadd.f32 %v10335_v19, %v19422_v55  ;;  %11942 = vmatprep.mubr.bf16.mxu0 %v13738_v44  ;;  %v10454_v11 = vmax.f32 %v10405_v2, 0.0 }
 0x951   : > { %v10339_v51 = vpop.f32.mrf.mxu1  ;;  %11943 = vmatmul.mubr.bf16.vlgmr.msra.gmra.mxu0 %v13737_v53  ;;  %v10412_v12 = vpop.f32.mrf.mxu0 }
 0x952   : > { %v10409_v7 = vadd.f32 %v10408_v4, %v10336_v57  ;;  %v10461_v35 = vmax.f32 %v10407_v46, 0.0  ;;  %v10340_v17 = vadd.f32 %v10339_v51, %v19426_v1 }
 0x953   : > { %v10341_v31 = vpop.f32.mrf.mxu1  ;;  %v10414_v48 = vpop.f32.mrf.mxu0 }
 0x954   : > { %v10462_v9 = vmax.f32 %v10409_v7, 0.0  ;;  %v10342_v60 = vadd.f32 %v10341_v31, %v19422_v55  ;;  %v13745_v15 = vpack.c.bf16 %v10461_v35, %v10453_v10  ;;  %v10413_v14 = vadd.f32 %v10412_v12, %v10340_v17 }
 0x955   : > { %v10343_v42 = vpop.f32.mrf.mxu1  ;;  %v10416_v62 = vpop.f32.mrf.mxu0 }
 0x956   : > { %v13746_v21 = vpack.c.bf16 %v10462_v9, %v10454_v11  ;;  %v10344_v63 = vadd.f32 %v10343_v42, %v19426_v1  ;;  %v10415_v16 = vadd.f32 %v10414_v48, %v10342_v60  ;;  %v10469_v24 = vmax.f32 %v10413_v14, 0.0 }
 0x957   : > { %v10345_v25 = vpop.f32.mrf.mxu1  ;;  %v10418_v0 = vpop.f32.mrf.mxu0 }
 0x958   : > { %v10417_v61 = vadd.f32 %v10416_v62, %v10344_v63  ;;  %v10346_v38 = vadd.f32 %v10345_v25, %v19422_v55  ;;  %11952 = vmatprep.mubr.bf16.mxu0 %v13746_v21  ;;  %v10470_v3 = vmax.f32 %v10415_v16, 0.0 }
 0x959   : > { %v10349_v20 = vpop.f32.mrf.mxu1  ;;  %11953 = vmatmul.mubr.bf16.gmra.mxu0 %v13745_v15  ;;  %v10422_v36 = vpop.f32.mrf.mxu0 }
 0x95a   : > { %v10419_v32 = vadd.f32 %v10418_v0, %v10346_v38  ;;  %v10477_v6 = vmax.f32 %v10417_v61, 0.0  ;;  %v10350_v28 = vadd.f32 %v10349_v20, %v19426_v1 }
 0x95b   : > { %v10351_v27 = vpop.f32.mrf.mxu1  ;;  %v10424_v43 = vpop.f32.mrf.mxu0 }
 0x95c   : > { %v10478_v37 = vmax.f32 %v10419_v32, 0.0  ;;  %v10352_v33 = vadd.f32 %v10351_v27, %v19422_v55  ;;  %v13753_v50 = vpack.c.bf16 %v10477_v6, %v10469_v24  ;;  %v10423_v56 = vadd.f32 %v10422_v36, %v10350_v28  ;;  %v10879_v36 = vld [vmem:[%s19568_s20] sm:$0x3] }
 0x95d   : > { %v10353_v5 = vpop.f32.mrf.mxu1  ;;  %v10426_v22 = vpop.f32.mrf.mxu0 }
 0x95e   : > { %v13754_v47 = vpack.c.bf16 %v10478_v37, %v10470_v3  ;;  %v10354_v29 = vadd.f32 %v10353_v5, %v19426_v1  ;;  %v10425_v34 = vadd.f32 %v10424_v43, %v10352_v33  ;;  %v10485_v8 = vmax.f32 %v10423_v56, 0.0 }
 0x95f   : > { %v10355_v18 = vpop.f32.mrf.mxu1  ;;  %v10428_v52 = vpop.f32.mrf.mxu0  ;;  %v19480_v3 = vrot.slane %v10879_v36, %v15741_v23  ;;  %v19483_v37 = vrot.slane %v10879_v36, %v15752_v26 }
 0x960   : > { %v10427_v59 = vadd.f32 %v10426_v22, %v10354_v29  ;;  %v10356_v45 = vadd.f32 %v10355_v18, %v19422_v55  ;;  %11962 = vmatprep.mubr.bf16.mxu0 %v13754_v47  ;;  %v10486_v39 = vmax.f32 %v10425_v34, 0.0 }
 0x961   : > { %11963 = vmatmul.mubr.bf16.gmra.mxu0 %v13753_v50 }
 0x962   : > { %v10429_v54 = vadd.f32 %v10428_v52, %v10356_v45  ;;  %v10493_v41 = vmax.f32 %v10427_v59, 0.0 }
 0x964   : > { %v10494_v40 = vmax.f32 %v10429_v54, 0.0  ;;  %v13761_v44 = vpack.c.bf16 %v10493_v41, %v10485_v8 }
 0x966   : > { %v13762_v58 = vpack.c.bf16 %v10494_v40, %v10486_v39 }
 0x968   : > { %11972 = vmatprep.mubr.bf16.mxu0 %v13762_v58 }
 0x969   : > { %11973 = vmatmul.mubr.bf16.gmra.mxu0 %v13761_v44 }
 0x982   : > { %v11725_v1 = vpop.f32.mrf.mxu1 }
 0x983   : > { %v11726_v24 = vadd.f32 %v11725_v1, %v19480_v3 }
 0x984   : > { %v11727_v13 = vpop.f32.mrf.mxu1 }
 0x985   : > { %v11728_v28 = vadd.f32 %v11727_v13, %v19483_v37 }
 0x986   : > { %v11729_v30 = vpop.f32.mrf.mxu1 }
 0x987   : > { %v11730_v22 = vadd.f32 %v11729_v30, %v19480_v3 }
 0x988   : > { %v11731_v53 = vpop.f32.mrf.mxu1 }
 0x989   : > { %v11732_v34 = vadd.f32 %v11731_v53, %v19483_v37 }
 0x98a   : > { %v11735_v19 = vpop.f32.mrf.mxu1 }
 0x98b   : > { %v11736_v52 = vadd.f32 %v11735_v19, %v19480_v3 }
 0x98c   : > { %v11737_v2 = vpop.f32.mrf.mxu1 }
 0x98d   : > { %v11738_v58 = vadd.f32 %v11737_v2, %v19483_v37 }
 0x98e   : > { %v19444_v55 = vpop.f32.mrf.mxu1 }
 0x98f   : > { %v11798_v4 = vpop.f32.mrf.mxu0 }
 0x990   : > { %v19446_v46 = vpop.f32.mrf.mxu1  ;;  %v11799_v5 = vadd.f32 %v11798_v4, %v11726_v24 }
 0x991   : > { %v11800_v51 = vpop.f32.mrf.mxu0 }
 0x992   : > { %v19448_v57 = vpop.f32.mrf.mxu1  ;;  %v11801_v50 = vadd.f32 %v11800_v51, %v11728_v28  ;;  %v11740_v51 = vadd.f32 %v19444_v55, %v19480_v3 }
 0x993   : > { %v11802_v12 = vpop.f32.mrf.mxu0 }
 0x994   : > { %v19450_v49 = vpop.f32.mrf.mxu1  ;;  %v11803_v26 = vadd.f32 %v11802_v12, %v11730_v22 }
 0x995   : > { %v11804_v31 = vpop.f32.mrf.mxu0 }
 0x996   : > { %v19452_v7 = vpop.f32.mrf.mxu1  ;;  %v11805_v41 = vadd.f32 %v11804_v31, %v11732_v34 }
 0x997   : > { %v11808_v9 = vpop.f32.mrf.mxu0 }
 0x998   : > { %v19454_v35 = vpop.f32.mrf.mxu1  ;;  %v11809_v44 = vadd.f32 %v11808_v9, %v11736_v52  ;;  %v11750_v52 = vadd.f32 %v19452_v7, %v19480_v3 }
 0x999   : > { %v11810_v48 = vpop.f32.mrf.mxu0 }
 0x99a   : > { %v19456_v11 = vpop.f32.mrf.mxu1  ;;  %v11811_v12 = vadd.f32 %v11810_v48, %v11738_v58 }
 0x99b   : > { %v11812_v17 = vpop.f32.mrf.mxu0 }
 0x99c   : > { %v19458_v60 = vpop.f32.mrf.mxu1  ;;  %v11813_v2 = vadd.f32 %v11812_v17, %v11740_v51 }
 0x99d   : > { %v11814_v63 = vpop.f32.mrf.mxu0 }
 0x99e   : > { %v19460_v10 = vpop.f32.mrf.mxu1 }
 0x99f   : > { %v19464_v15 = vpop.f32.mrf.mxu0 }
 0x9a0   : > { %v19462_v42 = vpop.f32.mrf.mxu1 }
 0x9a1   : > { %v19466_v16 = vpop.f32.mrf.mxu0 }
 0x9a3   : > { %v19468_v38 = vpop.f32.mrf.mxu0 }
 0x9a5   : > { %v19470_v14 = vpop.f32.mrf.mxu0 }
 0x9a7   : > { %v19472_v32 = vpop.f32.mrf.mxu0 }
 0x9a9   : > { %v19477_v27 = vpop.f32.mrf.mxu0 }
 0x9ab   : > { %v19485_v43 = vpop.f32.mrf.mxu0 }
 0x9ad   : > { %v19489_v29 = vpop.f32.mrf.mxu0 }
 0x9d0   : > { %v11871_v21 = vpop.f32.mrf.mxu1 }
 0x9d1   : > { %v11872_v18 = vadd.f32 %v11871_v21, %v11799_v5  ;;  %v11746_v5 = vadd.f32 %v19448_v57, %v19480_v3 }
 0x9d2   : > { %v11873_v62 = vpop.f32.mrf.mxu1 }
 0x9d3   : > { %v11874_v59 = vadd.f32 %v11873_v62, %v11801_v50 }
 0x9d4   : > { %v11875_v25 = vpop.f32.mrf.mxu1 }
 0x9d5   : > { %v11876_v39 = vadd.f32 %v11875_v25, %v11803_v26  ;;  %v11742_v25 = vadd.f32 %v19446_v46, %v19483_v37  ;;  %v11819_v46 = vadd.f32 %v19464_v15, %v11746_v5 }
 0x9d6   : > { %v11877_v61 = vpop.f32.mrf.mxu1 }
 0x9d7   : > { %v11878_v13 = vadd.f32 %v11877_v61, %v11805_v41  ;;  %v11815_v55 = vadd.f32 %v11814_v63, %v11742_v25 }
 0x9d8   : > { %v11881_v0 = vpop.f32.mrf.mxu1 }
 0x9d9   : > { %v11882_v19 = vadd.f32 %v11881_v0, %v11809_v44 }
 0x9da   : > { %v11883_v20 = vpop.f32.mrf.mxu1 }
 0x9db   : > { %v11884_v36 = vadd.f32 %v11883_v20, %v11811_v12 }
 0x9dc   : > { %v11885_v6 = vpop.f32.mrf.mxu1 }
 0x9dd   : > { %v11886_v22 = vadd.f32 %v11885_v6, %v11813_v2 }
 0x9de   : > { %v11887_v33 = vpop.f32.mrf.mxu1 }
 0x9df   : > { %v11888_v20 = vadd.f32 %v11887_v33, %v11815_v55 }
 0x9e0   : > { %v11891_v47 = vpop.f32.mrf.mxu1 }
 0x9e2   : > { %v11893_v45 = vpop.f32.mrf.mxu1 }
 0x9e4   : > { %v11895_v30 = vpop.f32.mrf.mxu1 }
 0x9e6   : > { %v11897_v61 = vpop.f32.mrf.mxu1 }
 0xa11   : > { %v11944_v23 = vpop.f32.mrf.mxu0 }
 0xa12   : > { %v11945_v56 = vadd.f32 %v11944_v23, %v11872_v18  ;;  %v11748_v18 = vadd.f32 %v19450_v49, %v19483_v37  ;;  %v11901_v23 = vpop.f32.mrf.mxu1  ;;  %v11752_v49 = vadd.f32 %v19454_v35, %v19483_v37 }
 0xa13   : > { %v11946_v54 = vpop.f32.mrf.mxu0 }
 0xa14   : > { %v11983_v40 = vmul.f32 0.5, %v11945_v56  ;;  %v11947_v8 = vadd.f32 %v11946_v54, %v11874_v59  ;;  %v11821_v57 = vadd.f32 %v19466_v16, %v11748_v18  ;;  %v11892_v59 = vadd.f32 %v11891_v47, %v11819_v46  ;;  %v11903_v54 = vpop.f32.mrf.mxu1 }
 0xa15   : > { %v11948_v1 = vpop.f32.mrf.mxu0  ;;  %v11756_v16 = vadd.f32 %v19456_v11, %v19480_v3  ;;  %v11823_v47 = vadd.f32 %v19468_v38, %v11750_v52 }
 0xa16   : > { %14930 = vtanh.f32 %v11983_v40  ;;  %v11984_v4 = vmul.f32 0.5, %v11947_v8  ;;  %v11949_v53 = vadd.f32 %v11948_v1, %v11876_v39  ;;  %v11894_v33 = vadd.f32 %v11893_v45, %v11821_v57  ;;  %v11905_v38 = vpop.f32.mrf.mxu1 }
 0xa17   : > { %v11950_v21 = vpop.f32.mrf.mxu0  ;;  %v11825_v8 = vadd.f32 %v19470_v14, %v11752_v49  ;;  %v11829_v45 = vadd.f32 %v19472_v32, %v11756_v16 }
 0xa18   : > { %14932 = vtanh.f32 %v11984_v4  ;;  %v11985_v31 = vmul.f32 0.5, %v11949_v53  ;;  %v11951_v62 = vadd.f32 %v11950_v21, %v11878_v13  ;;  %v11896_v13 = vadd.f32 %v11895_v30, %v11823_v47 }
 0xa19   : > { %v11954_v9 = vpop.f32.mrf.mxu0  ;;  %v11898_v11 = vadd.f32 %v11897_v61, %v11825_v8  ;;  %v11758_v21 = vadd.f32 %v19458_v60, %v19483_v37 }
 0xa1a   : > { %14934 = vtanh.f32 %v11985_v31  ;;  %v11986_v24 = vmul.f32 0.5, %v11951_v62  ;;  %v11955_v28 = vadd.f32 %v11954_v9, %v11882_v19  ;;  %v11760_v19 = vadd.f32 %v19460_v10, %v19480_v3  ;;  %v11907_v3 = vpop.f32.mrf.mxu1 }
 0xa1b   : > { %v11956_v48 = vpop.f32.mrf.mxu0  ;;  %v11902_v31 = vadd.f32 %v11901_v23, %v11829_v45  ;;  %v11831_v61 = vadd.f32 %v19477_v27, %v11758_v21 }
 0xa1c   : > { %14936 = vtanh.f32 %v11986_v24  ;;  %v11987_v0 = vmul.f32 0.5, %v11955_v28  ;;  %v11957_v50 = vadd.f32 %v11956_v48, %v11884_v36  ;;  %v11762_v36 = vadd.f32 %v19462_v42, %v19483_v37 }
 0xa1d   : > { %v11958_v17 = vpop.f32.mrf.mxu0  ;;  %v11833_v60 = vadd.f32 %v19485_v43, %v11760_v19 }
 0xa1e   : > { %14938 = vtanh.f32 %v11987_v0  ;;  %v11988_v34 = vmul.f32 0.5, %v11957_v50  ;;  %v11959_v26 = vadd.f32 %v11958_v17, %v11886_v22  ;;  %v11835_v0 = vadd.f32 %v19489_v29, %v11762_v36 }
 0xa1f   : > { %v11960_v63 = vpop.f32.mrf.mxu0  ;;  %v11904_v50 = vadd.f32 %v11903_v54, %v11831_v61  ;;  %v11906_v18 = vadd.f32 %v11905_v38, %v11833_v60 }
 0xa20   : > { %14940 = vtanh.f32 %v11988_v34  ;;  %v11989_v6 = vmul.f32 0.5, %v11959_v26  ;;  %v11961_v56 = vadd.f32 %v11960_v63, %v11888_v20  ;;  %v11908_v17 = vadd.f32 %v11907_v3, %v11835_v0 }
 0xa21   : > { %v11964_v15 = vpop.f32.mrf.mxu0 }
 0xa22   : > { %14942 = vtanh.f32 %v11989_v6  ;;  %v11990_v41 = vmul.f32 0.5, %v11961_v56  ;;  %v11965_v39 = vadd.f32 %v11964_v15, %v11892_v59 }
 0xa23   : > { %v14931_v40 = vpop.eup %14930  ;;  %v11966_v58 = vpop.f32.mrf.mxu0 }
 0xa24   : > { %v12015_v7 = vmul.f32 0.5, %v14931_v40  ;;  %14944 = vtanh.f32 %v11990_v41  ;;  %v11991_v44 = vmul.f32 0.5, %v11965_v39  ;;  %v11967_v35 = vadd.f32 %v11966_v58, %v11894_v33 }
 0xa25   : > { %v14933_v1 = vpop.eup %14932  ;;  %v11968_v4 = vpop.f32.mrf.mxu0 }
 0xa26   : > { %v12031_v53 = vadd.f32 0.5, %v12015_v7  ;;  %v12016_v14 = vmul.f32 0.5, %v14933_v1  ;;  %14946 = vtanh.f32 %v11991_v44  ;;  %v11992_v51 = vmul.f32 0.5, %v11967_v35 }
 0xa27   : > { %v14935_v12 = vpop.eup %14934  ;;  %v11969_v62 = vadd.f32 %v11968_v4, %v11896_v13  ;;  %v11970_v25 = vpop.f32.mrf.mxu0 }
 0xa28   : > { %12047 = vst [vmem:[%s19517_s0] sm:$0xff] %v12031_v53  ;;  %v12032_v32 = vadd.f32 0.5, %v12016_v14  ;;  %v12017_v30 = vmul.f32 0.5, %v14935_v12  ;;  %14948 = vtanh.f32 %v11992_v51  ;;  %v11971_v2 = vadd.f32 %v11970_v25, %v11898_v11 }
 0xa29   : > { %v14937_v9 = vpop.eup %14936  ;;  %v11993_v24 = vmul.f32 0.5, %v11969_v62  ;;  %v11974_v10 = vpop.f32.mrf.mxu0 }
 0xa2a   : > { %12048 = vst [vmem:[%s19517_s0 + $0x8] sm:$0xff] %v12032_v32  ;;  %v12033_v28 = vadd.f32 0.5, %v12017_v30  ;;  %v12018_v5 = vmul.f32 0.5, %v14937_v9  ;;  %v11994_v55 = vmul.f32 0.5, %v11971_v2  ;;  %v11975_v48 = vadd.f32 %v11974_v10, %v11902_v31 }
 0xa2b   : > { %v14939_v22 = vpop.eup %14938  ;;  %14950 = vtanh.f32 %v11993_v24  ;;  %v11976_v42 = vpop.f32.mrf.mxu0 }
 0xa2c   : > { %12049 = vst [vmem:[%s19517_s0 + $0x10] sm:$0xff] %v12033_v28  ;;  %v12034_v27 = vadd.f32 0.5, %v12018_v5  ;;  %v12019_v37 = vmul.f32 0.5, %v14939_v22  ;;  %14952 = vtanh.f32 %v11994_v55  ;;  %v11995_v43 = vmul.f32 0.5, %v11975_v48 }
 0xa2d   : > { %v14941_v46 = vpop.eup %14940  ;;  %v11977_v20 = vadd.f32 %v11976_v42, %v11904_v50  ;;  %v11978_v23 = vpop.f32.mrf.mxu0 }
 0xa2e   : > { %12050 = vst [vmem:[%s19517_s0 + $0x18] sm:$0xff] %v12034_v27  ;;  %v12035_v34 = vadd.f32 0.5, %v12019_v37  ;;  %v12020_v26 = vmul.f32 0.5, %v14941_v46  ;;  %14954 = vtanh.f32 %v11995_v43  ;;  %v11979_v29 = vadd.f32 %v11978_v23, %v11906_v18 }
 0xa2f   : > { %v14943_v57 = vpop.eup %14942  ;;  %v11996_v63 = vmul.f32 0.5, %v11977_v20  ;;  %v11980_v59 = vpop.f32.mrf.mxu0 }
 0xa30   : > { %12051 = vst [vmem:[%s19517_s0 + $0x20] sm:$0xff] %v12035_v34  ;;  %v12036_v6 = vadd.f32 0.5, %v12020_v26  ;;  %v12021_v56 = vmul.f32 0.5, %v14943_v57  ;;  %v11997_v52 = vmul.f32 0.5, %v11979_v29  ;;  %v11981_v49 = vadd.f32 %v11980_v59, %v11908_v17 }
 0xa31   : > { %v14945_v15 = vpop.eup %14944  ;;  %14956 = vtanh.f32 %v11996_v63 }
 0xa32   : > { %12052 = vst [vmem:[%s19517_s0 + $0x28] sm:$0xff] %v12036_v6  ;;  %v12037_v33 = vadd.f32 0.5, %v12021_v56  ;;  %v12022_v54 = vmul.f32 0.5, %v14945_v15  ;;  %14958 = vtanh.f32 %v11997_v52  ;;  %v11998_v41 = vmul.f32 0.5, %v11981_v49 }
 0xa33   : > { %v14947_v39 = vpop.eup %14946 }
 0xa34   : > { %12053 = vst [vmem:[%s19517_s0 + $0x30] sm:$0xff] %v12037_v33  ;;  %v12038_v40 = vadd.f32 0.5, %v12022_v54  ;;  %v12023_v16 = vmul.f32 0.5, %v14947_v39  ;;  %14960 = vtanh.f32 %v11998_v41 }
 0xa35   : > { %v14949_v47 = vpop.eup %14948 }
 0xa36   : > { %12054 = vst [vmem:[%s19517_s0 + $0x38] sm:$0xff] %v12038_v40  ;;  %v12039_v8 = vadd.f32 0.5, %v12023_v16  ;;  %v12024_v58 = vmul.f32 0.5, %v14949_v47 }
 0xa38   : > { %v14951_v7 = vpop.eup %14950  ;;  %12055 = vst [vmem:[%s19517_s0 + $0x40] sm:$0xff] %v12039_v8  ;;  %v12040_v44 = vadd.f32 0.5, %v12024_v58 }
 0xa39   : > { %v14953_v35 = vpop.eup %14952  ;;  %v12025_v1 = vmul.f32 0.5, %v14951_v7 }
 0xa3a   : > { %12056 = vst [vmem:[%s19517_s0 + $0x48] sm:$0xff] %v12040_v44  ;;  %v12026_v45 = vmul.f32 0.5, %v14953_v35 }
 0xa3b   : > { %v14955_v13 = vpop.eup %14954  ;;  %v12041_v11 = vadd.f32 0.5, %v12025_v1 }
 0xa3c   : > { %v12042_v4 = vadd.f32 0.5, %v12026_v45  ;;  %v12027_v38 = vmul.f32 0.5, %v14955_v13 }
 0xa3d   : > { %12057 = vst [vmem:[%s19517_s0 + $0x50] sm:$0xff] %v12041_v11 }
 0xa3e   : > { %v14957_v53 = vpop.eup %14956  ;;  %12058 = vst [vmem:[%s19517_s0 + $0x58] sm:$0xff] %v12042_v4  ;;  %v12043_v14 = vadd.f32 0.5, %v12027_v38 }
 0xa3f   : > { %v14959_v51 = vpop.eup %14958  ;;  %v12028_v12 = vmul.f32 0.5, %v14957_v53 }
 0xa40   : > { %12059 = vst [vmem:[%s19517_s0 + $0x60] sm:$0xff] %v12043_v14  ;;  %v12029_v21 = vmul.f32 0.5, %v14959_v51 }
 0xa41   : > { %v14961_v19 = vpop.eup %14960  ;;  %v12044_v31 = vadd.f32 0.5, %v12028_v12 }
 0xa42   : > { %v12045_v62 = vadd.f32 0.5, %v12029_v21  ;;  %v12030_v25 = vmul.f32 0.5, %v14961_v19 }
 0xa43   : > { %12060 = vst [vmem:[%s19517_s0 + $0x68] sm:$0xff] %v12044_v31 }
 0xa44   : > { %12061 = vst [vmem:[%s19517_s0 + $0x70] sm:$0xff] %v12045_v62  ;;  %v12046_v32 = vadd.f32 0.5, %v12030_v25 }
 0xa46   : > { %12062 = vst [vmem:[%s19517_s0 + $0x78] sm:$0xff] %v12046_v32 }
 0xa47 PF: > { %s19587_s4 = sld [smem:[#allocation10_spill]] }
 0xa4d   : > { %s31_s2 = sadd.s32 1, %s19587_s4  }
 0xa4e   : > { %p28_p4 = scmp.ge.s32.totalorder %s31_s2, 4  }
 0xa50   :  { %30 = sbr.rel (!%p28_p4) target bundleno = 7 (0x7), region = 134 }

</bundles_post_ra>
